<compile_context>
chip_gen: v5e
topology: v5e:2x2
jax: 0.10.0
libtpu: 0.0.40
codegen_flags: <defaults>
</compile_context>

<pallas_src>
import functools
import math

import jax
import jax.numpy as jnp
import numpy as np
from jax.experimental import pallas as pl
from jax.experimental.pallas import tpu as pltpu


# ---------------------------------------------------------------------------
# Tiled matmul + bias  (used for c_attn and c_proj)
# ---------------------------------------------------------------------------

def _matmul_bias_kernel(x_ref, w_ref, b_ref, o_ref, acc_ref, *, nk):
    # Cast the (possibly f32) activation tile to bf16 in-register for the MXU.
    x = x_ref[...].astype(jnp.bfloat16)

    if nk == 1:
        # Fast path: single K step -> no scratch accumulation round-trip.
        o_ref[...] = (jnp.dot(x, w_ref[...], preferred_element_type=jnp.float32)
                      + b_ref[...].astype(jnp.float32)).astype(o_ref.dtype)
    else:
        k = pl.program_id(2)

        @pl.when(k == 0)
        def _init():
            acc_ref[...] = jnp.zeros_like(acc_ref)

        acc_ref[...] += jnp.dot(x, w_ref[...],
                                preferred_element_type=jnp.float32)

        @pl.when(k == nk - 1)
        def _done():
            o_ref[...] = (acc_ref[...] + b_ref[...].astype(jnp.float32)
                          ).astype(o_ref.dtype)


def _pick_tile(dim, candidates):
    for c in candidates:
        if dim % c == 0:
            return c
    return dim  # full extent is always a legal block size


def _linear(x2d, w, b2d, *, out_dtype):
    """(M, K) @ (K, N) + (1, N) -> (M, N); bf16 MXU operands, f32 accumulation.

    x2d may be f32 or bf16 (cast happens inside the kernel); w must already be
    bf16 (converted once, outside the jit); b2d is f32 of shape (1, N).
    """
    M, K = x2d.shape
    Kw, N = w.shape
    assert K == Kw
    tm = _pick_tile(M, (512, 256, 128))
    tn = _pick_tile(N, (512, 256, 128))
    tk = _pick_tile(K, (512, 256, 128))
    grid = (M // tm, N // tn, K // tk)

    cost = pl.CostEstimate(
        flops=2 * M * N * K,
        transcendentals=0,
        bytes_accessed=int(M * K * np.dtype(x2d.dtype).itemsize
                           + K * N * np.dtype(w.dtype).itemsize
                           + N * 4
                           + M * N * np.dtype(out_dtype).itemsize),
    )

    kernel = functools.partial(_matmul_bias_kernel, nk=grid[2])

    return pl.pallas_call(
        kernel,
        out_shape=jax.ShapeDtypeStruct((M, N), out_dtype),
        grid_spec=pltpu.PrefetchScalarGridSpec(
            num_scalar_prefetch=0,
            grid=grid,
            in_specs=[
                pl.BlockSpec((tm, tk), lambda i, j, k: (i, k)),
                pl.BlockSpec((tk, tn), lambda i, j, k: (k, j)),
                pl.BlockSpec((1, tn), lambda i, j, k: (0, j)),
            ],
            out_specs=pl.BlockSpec((tm, tn), lambda i, j, k: (i, j)),
            scratch_shapes=[pltpu.VMEM((tm, tn), jnp.float32)],
        ),
        compiler_params=pltpu.CompilerParams(
            dimension_semantics=("parallel", "parallel", "arbitrary")),
        cost_estimate=cost,
    )(x2d, w, b2d)


# ---------------------------------------------------------------------------
# Flash attention over the packed (B, T, 3C) qkv tensor
# ---------------------------------------------------------------------------

def _flash_kernel(q_ref, k_ref, v_ref, o_ref, m_sc, l_sc, acc_sc, *, block_kv):
    """One (batch, head, q_tile) grid step; kv loop runs in-kernel.

    q_ref : (1, tq, D)  bf16  (already scaled by 1/sqrt(D) via weight folding)
    k_ref : (1, T,  D)  bf16  (full per-head K, VMEM-resident across q tiles)
    v_ref : (1, T,  D)  bf16
    o_ref : (1, tq, D)
    """
    qi = pl.program_id(2)
    tq = q_ref.shape[1]

    q = q_ref[0]                                           # (tq, D) bf16

    # Large finite negative (not -inf): the diagonal row element is always
    # unmasked, so no exp(nan) path exists.
    m_sc[...] = jnp.full_like(m_sc, -1e30)
    l_sc[...] = jnp.zeros_like(l_sc)
    acc_sc[...] = jnp.zeros_like(acc_sc)

    def contribute(kt, masked):
        start = pl.multiple_of(kt * block_kv, block_kv)
        k = k_ref[0, pl.ds(start, block_kv), :]            # (tk, D) bf16
        v = v_ref[0, pl.ds(start, block_kv), :]            # (tk, D) bf16
        # QK^T with K consumed in stored layout (no materialized transpose).
        s = jax.lax.dot_general(
            q, k, dimension_numbers=(((1,), (1,)), ((), ())),
            preferred_element_type=jnp.float32)            # (tq, tk) f32
        if masked:
            # Diagonal tile only (tq == tk): local causal mask.
            row = jax.lax.broadcasted_iota(jnp.int32, (tq, block_kv), 0)
            col = jax.lax.broadcasted_iota(jnp.int32, (tq, block_kv), 1)
            s = jnp.where(row >= col, s, -1e30)
        m_prev = m_sc[...]
        m_new = jnp.maximum(m_prev, jnp.max(s, axis=-1, keepdims=True))
        alpha = jnp.exp(m_prev - m_new)
        p = jnp.exp(s - m_new)
        l_sc[...] = alpha * l_sc[...] + jnp.sum(p, axis=-1, keepdims=True)
        acc_sc[...] = alpha * acc_sc[...] + jnp.dot(
            p.astype(v.dtype), v, preferred_element_type=jnp.float32)
        m_sc[...] = m_new

    # Fully-visible kv tiles strictly below the diagonal: no masking work.
    @pl.loop(0, qi)
    def _off_diag(kt):
        contribute(kt, masked=False)

    # Diagonal kv tile: masked contribution, then normalize once.
    contribute(qi, masked=True)
    o_ref[0] = (acc_sc[...] * pl.reciprocal(l_sc[...], approx=True)
                ).astype(o_ref.dtype)


def _flash_attention(qkv, *, n_head, head_dim):
    """qkv: (B, T, 3C) packed as [q | k | v] along the last axis (bf16),
    with q already scaled by 1/sqrt(head_dim).
    Returns y: (B, T, C) with head h occupying columns [h*D, (h+1)*D)."""
    B, T, C3 = qkv.shape
    C = C3 // 3
    H, D = n_head, head_dim
    tile = _pick_tile(T, (256, 128))
    nq = T // tile

    kernel = functools.partial(_flash_kernel, block_kv=tile)

    cost = pl.CostEstimate(
        flops=int(2 * B * H * T * T * D),            # causal-adjusted qk + pv
        transcendentals=int(B * H * T * T // 2),
        bytes_accessed=int(qkv.size * np.dtype(qkv.dtype).itemsize
                           + B * T * C * np.dtype(qkv.dtype).itemsize),
    )

    return pl.pallas_call(
        kernel,
        out_shape=jax.ShapeDtypeStruct((B, T, C), qkv.dtype),
        grid_spec=pltpu.PrefetchScalarGridSpec(
            num_scalar_prefetch=0,
            grid=(B, H, nq),
            in_specs=[
                # q tile sliced out of the packed qkv.
                pl.BlockSpec((1, tile, D), lambda b, h, qi: (b, qi, h)),
                # Full per-head K and V: block index is qi-independent, so the
                # copy is elided across consecutive q tiles of the same head.
                pl.BlockSpec((1, T, D), lambda b, h, qi: (b, 0, H + h)),
                pl.BlockSpec((1, T, D), lambda b, h, qi: (b, 0, 2 * H + h)),
            ],
            out_specs=pl.BlockSpec((1, tile, D), lambda b, h, qi: (b, qi, h)),
            scratch_shapes=[
                pltpu.VMEM((tile, 1), jnp.float32),   # running max
                pltpu.VMEM((tile, 1), jnp.float32),   # running sum
                pltpu.VMEM((tile, D), jnp.float32),   # output accumulator
            ],
        ),
        compiler_params=pltpu.CompilerParams(
            dimension_semantics=("parallel", "parallel", "parallel")),
        cost_estimate=cost,
    )(qkv, qkv, qkv)


# ---------------------------------------------------------------------------
# Parameter preparation (one-time, outside the jit)
# ---------------------------------------------------------------------------

def prepare_params(w_qkv, b_qkv, w_proj, b_proj, n_head):
    """Fold 1/sqrt(head_dim) into the q columns and convert weights to bf16
    once, so no per-call weight casts / score scaling are needed."""
    C = w_qkv.shape[0]
    D = C // n_head
    scale = 1.0 / math.sqrt(D)
    col_scale = jnp.concatenate(
        [jnp.full((C,), scale, jnp.float32), jnp.ones((2 * C,), jnp.float32)])
    w_qkv_p = (w_qkv.astype(jnp.float32) * col_scale[None, :]).astype(jnp.bfloat16)
    b_qkv_p = (b_qkv.astype(jnp.float32) * col_scale).reshape(1, -1)
    w_proj_p = w_proj.astype(jnp.bfloat16)
    b_proj_p = b_proj.astype(jnp.float32).reshape(1, -1)
    return w_qkv_p, b_qkv_p, w_proj_p, b_proj_p


# ---------------------------------------------------------------------------
# Full forward pass
# ---------------------------------------------------------------------------

@functools.partial(jax.jit, static_argnames=("n_head",))
def mha_causal_pallas(x, w_qkv_p, b_qkv_p, w_proj_p, b_proj_p, *, n_head):
    B, T, C = x.shape
    assert C % n_head == 0
    D = C // n_head
    # TODO(synk): for head_dim not a multiple of 128, relayout q/k/v to
    # (B*H, T, D) in the wrapper instead of head-slicing the packed qkv.
    assert D % 128 == 0, "head_dim must be a multiple of 128 for this layout"

    # QKV projection: f32 activations in, bf16 cast happens inside the kernel,
    # bf16 packed qkv out (handed straight to attention).
    qkv = _linear(x.reshape(B * T, C), w_qkv_p, b_qkv_p, out_dtype=jnp.bfloat16)
    qkv = qkv.reshape(B, T, 3 * C)

    y = _flash_attention(qkv, n_head=n_head, head_dim=D)            # (B, T, C)

    out = _linear(y.reshape(B * T, C), w_proj_p, b_proj_p, out_dtype=x.dtype)
    return out.reshape(B, T, C)


def mha_causal_ref(x, w_qkv, b_qkv, w_proj, b_proj, n_head):
    """Pure-JAX reference matching the PyTorch forward (non-flash path)."""
    B, T, C = x.shape
    D = C // n_head
    qkv = x @ w_qkv + b_qkv
    q, k, v = jnp.split(qkv, 3, axis=-1)
    q = q.reshape(B, T, n_head, D).transpose(0, 2, 1, 3)
    k = k.reshape(B, T, n_head, D).transpose(0, 2, 1, 3)
    v = v.reshape(B, T, n_head, D).transpose(0, 2, 1, 3)
    att = jnp.einsum('bhqd,bhkd->bhqk', q, k) * (1.0 / math.sqrt(D))
    mask = jnp.tril(jnp.ones((T, T), dtype=bool))
    att = jnp.where(mask[None, None], att, -jnp.inf)
    att = jax.nn.softmax(att, axis=-1)
    y = jnp.einsum('bhqk,bhkd->bhqd', att, v)
    y = y.transpose(0, 2, 1, 3).reshape(B, T, C)
    return y @ w_proj + b_proj


if __name__ == "__main__":
    # Small shapes consistent with the module, chosen lane-aligned:
    # B=2, T=512 (max_n), C=256, 2 heads -> head_dim=128.
    B, T, C, n_head = 2, 512, 256, 2

    key = jax.random.PRNGKey(0)
    kx, k1, k2, k3, k4 = jax.random.split(key, 5)

    x = jax.random.normal(kx, (B, T, C), dtype=jnp.float32)
    # Linear weights stored transposed as (in, out) so kernels compute x @ W + b.
    w_qkv = jax.random.normal(k1, (C, 3 * C), dtype=jnp.float32) * (1.0 / math.sqrt(C))
    b_qkv = jax.random.normal(k2, (3 * C,), dtype=jnp.float32) * 0.02
    w_proj = jax.random.normal(k3, (C, C), dtype=jnp.float32) * (1.0 / math.sqrt(C))
    b_proj = jax.random.normal(k4, (C,), dtype=jnp.float32) * 0.02

    # Round-trip inputs/weights through bf16 so the f32 reference isolates the
    # (expected) error from bf16 MXU operands / bf16 inter-kernel handoffs.
    x = x.astype(jnp.bfloat16).astype(jnp.float32)
    w_qkv = w_qkv.astype(jnp.bfloat16).astype(jnp.float32)
    w_proj = w_proj.astype(jnp.bfloat16).astype(jnp.float32)

    # One-time parameter preparation (bf16 conversion + softmax-scale folding),
    # done outside the jitted forward.
    params = prepare_params(w_qkv, b_qkv, w_proj, b_proj, n_head)

    out = mha_causal_pallas(x, *params, n_head=n_head)
    out = jax.block_until_ready(out)

    ref = mha_causal_ref(x, w_qkv, b_qkv, w_proj, b_proj, n_head)
    assert out.shape == (B, T, C)
    max_err = float(jnp.max(jnp.abs(out - ref)))
    assert jnp.allclose(out, ref, atol=5e-2, rtol=5e-2), (
        f"mismatch vs JAX reference, max abs err = {max_err}")

    print("KERNEL_OK")
</pallas_src>

<mosaic_0001>
module attributes {stable_mosaic.version = 11 : i64} {
  func.func @_flash_kernel(%arg0: i32, %arg1: i32, %arg2: i32, %arg3: memref<1x256x128xbf16, #tpu.memory_space<vmem>>, %arg4: memref<1x512x128xbf16, #tpu.memory_space<vmem>>, %arg5: memref<1x512x128xbf16, #tpu.memory_space<vmem>>, %arg6: memref<1x256x128xbf16, #tpu.memory_space<vmem>>, %arg7: memref<256x1xf32, #tpu.memory_space<vmem>>, %arg8: memref<256x1xf32, #tpu.memory_space<vmem>>, %arg9: memref<256x128xf32, #tpu.memory_space<vmem>>) attributes {dimension_semantics = [#tpu.dimension_semantics<parallel>, #tpu.dimension_semantics<parallel>, #tpu.dimension_semantics<parallel>], iteration_bounds = array<i64: 2, 2, 2>, scalar_prefetch = 0 : i64, scratch_operands = 3 : i64, tpu.core_type = #tpu.core_type<tc>, window_params = [{transform_indices = @transform_0, window_bounds = array<i64: 1, 256, 128>}, {transform_indices = @transform_1, window_bounds = array<i64: 1, 512, 128>}, {transform_indices = @transform_2, window_bounds = array<i64: 1, 512, 128>}, {transform_indices = @transform_3, window_bounds = array<i64: 1, 256, 128>}]} {
    %c0 = arith.constant 0 : index
    %c0_0 = arith.constant 0 : index
    %c0_1 = arith.constant 0 : index
    %0 = vector.load %arg3[%c0, %c0_0, %c0_1] : memref<1x256x128xbf16, #tpu.memory_space<vmem>>, vector<1x256x128xbf16>
    %1 = vector.shape_cast %0 : vector<1x256x128xbf16> to vector<256x128xbf16>
    %cst = arith.constant -1.000000e+30 : f32
    %2 = vector.broadcast %cst : f32 to vector<256x1xf32>
    %c0_2 = arith.constant 0 : index
    %c0_3 = arith.constant 0 : index
    %3 = vector.load %arg7[%c0_2, %c0_3] : memref<256x1xf32, #tpu.memory_space<vmem>>, vector<256x1xf32>
    tpu.vector_store %arg7[%c0_2, %c0_3], %2 {strides = array<i32>} : memref<256x1xf32, #tpu.memory_space<vmem>>, vector<256x1xf32>,
    %cst_4 = arith.constant 0.000000e+00 : f32
    %4 = vector.broadcast %cst_4 : f32 to vector<256x1xf32>
    %c0_5 = arith.constant 0 : index
    %c0_6 = arith.constant 0 : index
    %5 = vector.load %arg8[%c0_5, %c0_6] : memref<256x1xf32, #tpu.memory_space<vmem>>, vector<256x1xf32>
    tpu.vector_store %arg8[%c0_5, %c0_6], %4 {strides = array<i32>} : memref<256x1xf32, #tpu.memory_space<vmem>>, vector<256x1xf32>,
    %cst_7 = arith.constant 0.000000e+00 : f32
    %6 = vector.broadcast %cst_7 : f32 to vector<256x128xf32>
    %c0_8 = arith.constant 0 : index
    %c0_9 = arith.constant 0 : index
    %7 = vector.load %arg9[%c0_8, %c0_9] : memref<256x128xf32, #tpu.memory_space<vmem>>, vector<256x128xf32>
    tpu.vector_store %arg9[%c0_8, %c0_9], %6 {strides = array<i32>} : memref<256x128xf32, #tpu.memory_space<vmem>>, vector<256x128xf32>,
    %c0_i32 = arith.constant 0 : i32
    %8 = arith.subi %arg2, %c0_i32 : i32
    %c1_i32 = arith.constant 1 : i32
    %c1_i32_10 = arith.constant 1 : i32
    %9 = arith.subi %c1_i32, %c1_i32_10 : i32
    %10 = arith.addi %8, %9 : i32
    %c1_i32_11 = arith.constant 1 : i32
    %11 = arith.divsi %10, %c1_i32_11 : i32
    %c1_i32_12 = arith.constant 1 : i32
    %c0_i32_13 = arith.constant 0 : i32
    %c0_i32_14 = arith.constant 0 : i32
    %12 = arith.subi %11, %c0_i32_14 : i32
    %13 = arith.addi %c0_i32_14, %12 : i32
    %c1_i32_15 = arith.constant 1 : i32
    scf.for %arg10 = %c0_i32_14 to %13 step %c1_i32_15  : i32 {
      %60 = arith.muli %arg10, %c1_i32_12 : i32
      %61 = arith.addi %c0_i32_13, %60 : i32
      %c256_i32_44 = arith.constant 256 : i32
      %62 = arith.muli %61, %c256_i32_44 : i32
      %63 = tpu.assume_multiple %62, 256 : i32
      %c0_45 = arith.constant 0 : index
      %64 = arith.index_cast %63 : i32 to index
      %c0_46 = arith.constant 0 : index
      %65 = vector.load %arg4[%c0_45, %64, %c0_46] : memref<1x512x128xbf16, #tpu.memory_space<vmem>>, vector<1x256x128xbf16>
      %66 = vector.shape_cast %65 : vector<1x256x128xbf16> to vector<256x128xbf16>
      %c0_47 = arith.constant 0 : index
      %67 = arith.index_cast %63 : i32 to index
      %c0_48 = arith.constant 0 : index
      %68 = vector.load %arg5[%c0_47, %67, %c0_48] : memref<1x512x128xbf16, #tpu.memory_space<vmem>>, vector<1x256x128xbf16>
      %69 = vector.shape_cast %68 : vector<1x256x128xbf16> to vector<256x128xbf16>
      %cst_49 = arith.constant dense<0.000000e+00> : vector<256x256xf32>
      %70 = tpu.matmul %1, %66, %cst_49 {dimension_numbers = #tpu.dot_dimension_numbers<[1], [1], [0], [0], [0, 0, 1, 0], [], []>} : vector<256x128xbf16>, vector<256x128xbf16>, vector<256x256xf32> -> vector<256x256xf32>
      %c0_50 = arith.constant 0 : index
      %c0_51 = arith.constant 0 : index
      %71 = vector.load %arg7[%c0_50, %c0_51] : memref<256x1xf32, #tpu.memory_space<vmem>>, vector<256x1xf32>
      %cst_52 = arith.constant dense<0xFF800000> : vector<256xf32>
      %72 = vector.multi_reduction <maximumf>, %70, %cst_52 [1] : vector<256x256xf32> to vector<256xf32>
      %73 = vector.shape_cast %72 : vector<256xf32> to vector<256x1xf32>
      %74 = arith.maximumf %71, %73 : vector<256x1xf32>
      %75 = arith.subf %71, %74 : vector<256x1xf32>
      %76 = math.exp %75 : vector<256x1xf32>
      %77 = vector.broadcast %74 : vector<256x1xf32> to vector<256x256xf32>
      %78 = arith.subf %70, %77 : vector<256x256xf32>
      %79 = math.exp %78 : vector<256x256xf32>
      %c0_53 = arith.constant 0 : index
      %c0_54 = arith.constant 0 : index
      %80 = vector.load %arg8[%c0_53, %c0_54] : memref<256x1xf32, #tpu.memory_space<vmem>>, vector<256x1xf32>
      %81 = arith.mulf %76, %80 : vector<256x1xf32>
      %cst_55 = arith.constant dense<0.000000e+00> : vector<256xf32>
      %82 = vector.multi_reduction <add>, %79, %cst_55 [1] : vector<256x256xf32> to vector<256xf32>
      %83 = vector.shape_cast %82 : vector<256xf32> to vector<256x1xf32>
      %84 = arith.addf %81, %83 : vector<256x1xf32>
      %c0_56 = arith.constant 0 : index
      %c0_57 = arith.constant 0 : index
      %85 = vector.load %arg8[%c0_56, %c0_57] : memref<256x1xf32, #tpu.memory_space<vmem>>, vector<256x1xf32>
      tpu.vector_store %arg8[%c0_56, %c0_57], %84 {strides = array<i32>} : memref<256x1xf32, #tpu.memory_space<vmem>>, vector<256x1xf32>,
      %c0_58 = arith.constant 0 : index
      %c0_59 = arith.constant 0 : index
      %86 = vector.load %arg9[%c0_58, %c0_59] : memref<256x128xf32, #tpu.memory_space<vmem>>, vector<256x128xf32>
      %87 = vector.broadcast %76 : vector<256x1xf32> to vector<256x128xf32>
      %88 = arith.mulf %87, %86 : vector<256x128xf32>
      %89 = arith.truncf %79 : vector<256x256xf32> to vector<256x256xbf16>
      %cst_60 = arith.constant dense<0.000000e+00> : vector<256x128xf32>
      %90 = tpu.matmul %89, %69, %cst_60 {dimension_numbers = #tpu.dot_dimension_numbers<[1], [0], [0], [1], [0, 0, 1, 1], [], []>} : vector<256x256xbf16>, vector<256x128xbf16>, vector<256x128xf32> -> vector<256x128xf32>
      %91 = arith.addf %88, %90 : vector<256x128xf32>
      %c0_61 = arith.constant 0 : index
      %c0_62 = arith.constant 0 : index
      %92 = vector.load %arg9[%c0_61, %c0_62] : memref<256x128xf32, #tpu.memory_space<vmem>>, vector<256x128xf32>
      tpu.vector_store %arg9[%c0_61, %c0_62], %91 {strides = array<i32>} : memref<256x128xf32, #tpu.memory_space<vmem>>, vector<256x128xf32>,
      %c0_63 = arith.constant 0 : index
      %c0_64 = arith.constant 0 : index
      %93 = vector.load %arg7[%c0_63, %c0_64] : memref<256x1xf32, #tpu.memory_space<vmem>>, vector<256x1xf32>
      tpu.vector_store %arg7[%c0_63, %c0_64], %74 {strides = array<i32>} : memref<256x1xf32, #tpu.memory_space<vmem>>, vector<256x1xf32>,
    }
    %c256_i32 = arith.constant 256 : i32
    %14 = arith.muli %arg2, %c256_i32 : i32
    %15 = tpu.assume_multiple %14, 256 : i32
    %c0_16 = arith.constant 0 : index
    %16 = arith.index_cast %15 : i32 to index
    %c0_17 = arith.constant 0 : index
    %17 = vector.load %arg4[%c0_16, %16, %c0_17] : memref<1x512x128xbf16, #tpu.memory_space<vmem>>, vector<1x256x128xbf16>
    %18 = vector.shape_cast %17 : vector<1x256x128xbf16> to vector<256x128xbf16>
    %c0_18 = arith.constant 0 : index
    %19 = arith.index_cast %15 : i32 to index
    %c0_19 = arith.constant 0 : index
    %20 = vector.load %arg5[%c0_18, %19, %c0_19] : memref<1x512x128xbf16, #tpu.memory_space<vmem>>, vector<1x256x128xbf16>
    %21 = vector.shape_cast %20 : vector<1x256x128xbf16> to vector<256x128xbf16>
    %cst_20 = arith.constant dense<0.000000e+00> : vector<256x256xf32>
    %22 = tpu.matmul %1, %18, %cst_20 {dimension_numbers = #tpu.dot_dimension_numbers<[1], [1], [0], [0], [0, 0, 1, 0], [], []>} : vector<256x128xbf16>, vector<256x128xbf16>, vector<256x256xf32> -> vector<256x256xf32>
    %23 = tpu.iota {dimensions = array<i32: 0>} : vector<256x256xi32>
    %24 = tpu.iota {dimensions = array<i32: 1>} : vector<256x256xi32>
    %25 = arith.cmpi sge, %23, %24 : vector<256x256xi32>
    %cst_21 = arith.constant -1.000000e+30 : f32
    %26 = vector.broadcast %cst_21 : f32 to vector<256x256xf32>
    %27 = arith.select %25, %22, %26 : vector<256x256xi1>, vector<256x256xf32>
    %c0_22 = arith.constant 0 : index
    %c0_23 = arith.constant 0 : index
    %28 = vector.load %arg7[%c0_22, %c0_23] : memref<256x1xf32, #tpu.memory_space<vmem>>, vector<256x1xf32>
    %cst_24 = arith.constant dense<0xFF800000> : vector<256xf32>
    %29 = vector.multi_reduction <maximumf>, %27, %cst_24 [1] : vector<256x256xf32> to vector<256xf32>
    %30 = vector.shape_cast %29 : vector<256xf32> to vector<256x1xf32>
    %31 = arith.maximumf %28, %30 : vector<256x1xf32>
    %32 = arith.subf %28, %31 : vector<256x1xf32>
    %33 = math.exp %32 : vector<256x1xf32>
    %34 = vector.broadcast %31 : vector<256x1xf32> to vector<256x256xf32>
    %35 = arith.subf %27, %34 : vector<256x256xf32>
    %36 = math.exp %35 : vector<256x256xf32>
    %c0_25 = arith.constant 0 : index
    %c0_26 = arith.constant 0 : index
    %37 = vector.load %arg8[%c0_25, %c0_26] : memref<256x1xf32, #tpu.memory_space<vmem>>, vector<256x1xf32>
    %38 = arith.mulf %33, %37 : vector<256x1xf32>
    %cst_27 = arith.constant dense<0.000000e+00> : vector<256xf32>
    %39 = vector.multi_reduction <add>, %36, %cst_27 [1] : vector<256x256xf32> to vector<256xf32>
    %40 = vector.shape_cast %39 : vector<256xf32> to vector<256x1xf32>
    %41 = arith.addf %38, %40 : vector<256x1xf32>
    %c0_28 = arith.constant 0 : index
    %c0_29 = arith.constant 0 : index
    %42 = vector.load %arg8[%c0_28, %c0_29] : memref<256x1xf32, #tpu.memory_space<vmem>>, vector<256x1xf32>
    tpu.vector_store %arg8[%c0_28, %c0_29], %41 {strides = array<i32>} : memref<256x1xf32, #tpu.memory_space<vmem>>, vector<256x1xf32>,
    %c0_30 = arith.constant 0 : index
    %c0_31 = arith.constant 0 : index
    %43 = vector.load %arg9[%c0_30, %c0_31] : memref<256x128xf32, #tpu.memory_space<vmem>>, vector<256x128xf32>
    %44 = vector.broadcast %33 : vector<256x1xf32> to vector<256x128xf32>
    %45 = arith.mulf %44, %43 : vector<256x128xf32>
    %46 = arith.truncf %36 : vector<256x256xf32> to vector<256x256xbf16>
    %cst_32 = arith.constant dense<0.000000e+00> : vector<256x128xf32>
    %47 = tpu.matmul %46, %21, %cst_32 {dimension_numbers = #tpu.dot_dimension_numbers<[1], [0], [0], [1], [0, 0, 1, 1], [], []>} : vector<256x256xbf16>, vector<256x128xbf16>, vector<256x128xf32> -> vector<256x128xf32>
    %48 = arith.addf %45, %47 : vector<256x128xf32>
    %c0_33 = arith.constant 0 : index
    %c0_34 = arith.constant 0 : index
    %49 = vector.load %arg9[%c0_33, %c0_34] : memref<256x128xf32, #tpu.memory_space<vmem>>, vector<256x128xf32>
    tpu.vector_store %arg9[%c0_33, %c0_34], %48 {strides = array<i32>} : memref<256x128xf32, #tpu.memory_space<vmem>>, vector<256x128xf32>,
    %c0_35 = arith.constant 0 : index
    %c0_36 = arith.constant 0 : index
    %50 = vector.load %arg7[%c0_35, %c0_36] : memref<256x1xf32, #tpu.memory_space<vmem>>, vector<256x1xf32>
    tpu.vector_store %arg7[%c0_35, %c0_36], %31 {strides = array<i32>} : memref<256x1xf32, #tpu.memory_space<vmem>>, vector<256x1xf32>,
    %c0_37 = arith.constant 0 : index
    %c0_38 = arith.constant 0 : index
    %51 = vector.load %arg9[%c0_37, %c0_38] : memref<256x128xf32, #tpu.memory_space<vmem>>, vector<256x128xf32>
    %c0_39 = arith.constant 0 : index
    %c0_40 = arith.constant 0 : index
    %52 = vector.load %arg8[%c0_39, %c0_40] : memref<256x1xf32, #tpu.memory_space<vmem>>, vector<256x1xf32>
    %53 = tpu.reciprocal %52 {approx = true} : vector<256x1xf32> -> vector<256x1xf32>
    %54 = vector.broadcast %53 : vector<256x1xf32> to vector<256x128xf32>
    %55 = arith.mulf %51, %54 : vector<256x128xf32>
    %56 = arith.truncf %55 : vector<256x128xf32> to vector<256x128xbf16>
    %c0_41 = arith.constant 0 : index
    %c0_42 = arith.constant 0 : index
    %c0_43 = arith.constant 0 : index
    %57 = vector.load %arg6[%c0_41, %c0_42, %c0_43] : memref<1x256x128xbf16, #tpu.memory_space<vmem>>, vector<1x256x128xbf16>
    %58 = vector.shape_cast %57 : vector<1x256x128xbf16> to vector<256x128xbf16>
    %59 = vector.shape_cast %56 : vector<256x128xbf16> to vector<1x256x128xbf16>
    tpu.vector_store %arg6[%c0_41, %c0_42, %c0_43], %59 {strides = array<i32>} : memref<1x256x128xbf16, #tpu.memory_space<vmem>>, vector<1x256x128xbf16>,
    return
  }
  func.func @transform_0(%arg0: i32, %arg1: i32, %arg2: i32) -> (i32, i32, i32) {
    %c0_i32 = arith.constant 0 : i32
    return %arg0, %arg2, %arg1 : i32, i32, i32
  }
  func.func @transform_1(%arg0: i32, %arg1: i32, %arg2: i32) -> (i32, i32, i32) {
    %c2_i32 = arith.constant 2 : i32
    %0 = arith.addi %c2_i32, %arg1 : i32
    %c0_i32 = arith.constant 0 : i32
    %c0_i32_0 = arith.constant 0 : i32
    return %arg0, %c0_i32, %0 : i32, i32, i32
  }
  func.func @transform_2(%arg0: i32, %arg1: i32, %arg2: i32) -> (i32, i32, i32) {
    %c4_i32 = arith.constant 4 : i32
    %0 = arith.addi %c4_i32, %arg1 : i32
    %c0_i32 = arith.constant 0 : i32
    %c0_i32_0 = arith.constant 0 : i32
    return %arg0, %c0_i32, %0 : i32, i32, i32
  }
  func.func @transform_3(%arg0: i32, %arg1: i32, %arg2: i32) -> (i32, i32, i32) {
    %c0_i32 = arith.constant 0 : i32
    return %arg0, %arg2, %arg1 : i32, i32, i32
  }
}

module attributes {stable_mosaic.version = 11 : i64} {
  func.func @_matmul_bias_kernel(%arg0: i32, %arg1: i32, %arg2: i32, %arg3: memref<512x256xf32, #tpu.memory_space<vmem>>, %arg4: memref<256x256xbf16, #tpu.memory_space<vmem>>, %arg5: memref<1x256xf32, #tpu.memory_space<vmem>>, %arg6: memref<512x256xbf16, #tpu.memory_space<vmem>>, %arg7: memref<512x256xf32, #tpu.memory_space<vmem>>) attributes {dimension_semantics = [#tpu.dimension_semantics<parallel>, #tpu.dimension_semantics<parallel>, #tpu.dimension_semantics<arbitrary>], iteration_bounds = array<i64: 2, 3, 1>, scalar_prefetch = 0 : i64, scratch_operands = 1 : i64, tpu.core_type = #tpu.core_type<tc>, window_params = [{transform_indices = @transform_0, window_bounds = array<i64: 512, 256>}, {transform_indices = @transform_1, window_bounds = array<i64: 256, 256>}, {transform_indices = @transform_2, window_bounds = array<i64: 1, 256>}, {transform_indices = @transform_3, window_bounds = array<i64: 512, 256>}]} {
    %c0 = arith.constant 0 : index
    %c0_0 = arith.constant 0 : index
    %0 = vector.load %arg3[%c0, %c0_0] : memref<512x256xf32, #tpu.memory_space<vmem>>, vector<512x256xf32>
    %1 = arith.truncf %0 : vector<512x256xf32> to vector<512x256xbf16>
    %c0_1 = arith.constant 0 : index
    %c0_2 = arith.constant 0 : index
    %2 = vector.load %arg4[%c0_1, %c0_2] : memref<256x256xbf16, #tpu.memory_space<vmem>>, vector<256x256xbf16>
    %cst = arith.constant dense<0.000000e+00> : vector<512x256xf32>
    %3 = tpu.matmul %1, %2, %cst {dimension_numbers = #tpu.dot_dimension_numbers<[1], [0], [0], [1], [0, 0, 1, 1], [], []>} : vector<512x256xbf16>, vector<256x256xbf16>, vector<512x256xf32> -> vector<512x256xf32>
    %c0_3 = arith.constant 0 : index
    %c0_4 = arith.constant 0 : index
    %4 = vector.load %arg5[%c0_3, %c0_4] : memref<1x256xf32, #tpu.memory_space<vmem>>, vector<1x256xf32>
    %5 = vector.broadcast %4 : vector<1x256xf32> to vector<512x256xf32>
    %6 = arith.addf %3, %5 : vector<512x256xf32>
    %7 = arith.truncf %6 : vector<512x256xf32> to vector<512x256xbf16>
    %c0_5 = arith.constant 0 : index
    %c0_6 = arith.constant 0 : index
    %8 = vector.load %arg6[%c0_5, %c0_6] : memref<512x256xbf16, #tpu.memory_space<vmem>>, vector<512x256xbf16>
    tpu.vector_store %arg6[%c0_5, %c0_6], %7 {strides = array<i32>} : memref<512x256xbf16, #tpu.memory_space<vmem>>, vector<512x256xbf16>,
    return
  }
  func.func @transform_0(%arg0: i32, %arg1: i32, %arg2: i32) -> (i32, i32) {
    %c0_i32 = arith.constant 0 : i32
    return %arg0, %arg2 : i32, i32
  }
  func.func @transform_1(%arg0: i32, %arg1: i32, %arg2: i32) -> (i32, i32) {
    %c0_i32 = arith.constant 0 : i32
    return %arg2, %arg1 : i32, i32
  }
  func.func @transform_2(%arg0: i32, %arg1: i32, %arg2: i32) -> (i32, i32) {
    %c0_i32 = arith.constant 0 : i32
    %c0_i32_0 = arith.constant 0 : i32
    return %c0_i32, %arg1 : i32, i32
  }
  func.func @transform_3(%arg0: i32, %arg1: i32, %arg2: i32) -> (i32, i32) {
    %c0_i32 = arith.constant 0 : i32
    return %arg0, %arg1 : i32, i32
  }
}

module attributes {stable_mosaic.version = 11 : i64} {
  func.func @_matmul_bias_kernel(%arg0: i32, %arg1: i32, %arg2: i32, %arg3: memref<512x256xbf16, #tpu.memory_space<vmem>>, %arg4: memref<256x256xbf16, #tpu.memory_space<vmem>>, %arg5: memref<1x256xf32, #tpu.memory_space<vmem>>, %arg6: memref<512x256xf32, #tpu.memory_space<vmem>>, %arg7: memref<512x256xf32, #tpu.memory_space<vmem>>) attributes {dimension_semantics = [#tpu.dimension_semantics<parallel>, #tpu.dimension_semantics<parallel>, #tpu.dimension_semantics<arbitrary>], iteration_bounds = array<i64: 2, 1, 1>, scalar_prefetch = 0 : i64, scratch_operands = 1 : i64, tpu.core_type = #tpu.core_type<tc>, window_params = [{transform_indices = @transform_0, window_bounds = array<i64: 512, 256>}, {transform_indices = @transform_1, window_bounds = array<i64: 256, 256>}, {transform_indices = @transform_2, window_bounds = array<i64: 1, 256>}, {transform_indices = @transform_3, window_bounds = array<i64: 512, 256>}]} {
    %c0 = arith.constant 0 : index
    %c0_0 = arith.constant 0 : index
    %0 = vector.load %arg3[%c0, %c0_0] : memref<512x256xbf16, #tpu.memory_space<vmem>>, vector<512x256xbf16>
    %c0_1 = arith.constant 0 : index
    %c0_2 = arith.constant 0 : index
    %1 = vector.load %arg4[%c0_1, %c0_2] : memref<256x256xbf16, #tpu.memory_space<vmem>>, vector<256x256xbf16>
    %cst = arith.constant dense<0.000000e+00> : vector<512x256xf32>
    %2 = tpu.matmul %0, %1, %cst {dimension_numbers = #tpu.dot_dimension_numbers<[1], [0], [0], [1], [0, 0, 1, 1], [], []>} : vector<512x256xbf16>, vector<256x256xbf16>, vector<512x256xf32> -> vector<512x256xf32>
    %c0_3 = arith.constant 0 : index
    %c0_4 = arith.constant 0 : index
    %3 = vector.load %arg5[%c0_3, %c0_4] : memref<1x256xf32, #tpu.memory_space<vmem>>, vector<1x256xf32>
    %4 = vector.broadcast %3 : vector<1x256xf32> to vector<512x256xf32>
    %5 = arith.addf %2, %4 : vector<512x256xf32>
    %c0_5 = arith.constant 0 : index
    %c0_6 = arith.constant 0 : index
    %6 = vector.load %arg6[%c0_5, %c0_6] : memref<512x256xf32, #tpu.memory_space<vmem>>, vector<512x256xf32>
    tpu.vector_store %arg6[%c0_5, %c0_6], %5 {strides = array<i32>} : memref<512x256xf32, #tpu.memory_space<vmem>>, vector<512x256xf32>,
    return
  }
  func.func @transform_0(%arg0: i32, %arg1: i32, %arg2: i32) -> (i32, i32) {
    %c0_i32 = arith.constant 0 : i32
    return %arg0, %arg2 : i32, i32
  }
  func.func @transform_1(%arg0: i32, %arg1: i32, %arg2: i32) -> (i32, i32) {
    %c0_i32 = arith.constant 0 : i32
    return %arg2, %arg1 : i32, i32
  }
  func.func @transform_2(%arg0: i32, %arg1: i32, %arg2: i32) -> (i32, i32) {
    %c0_i32 = arith.constant 0 : i32
    %c0_i32_0 = arith.constant 0 : i32
    return %c0_i32, %arg1 : i32, i32
  }
  func.func @transform_3(%arg0: i32, %arg1: i32, %arg2: i32) -> (i32, i32) {
    %c0_i32 = arith.constant 0 : i32
    return %arg0, %arg1 : i32, i32
  }
}

</mosaic_0001>

<bundles_post_ra>
// kernel: mha_causal_pallas.3
= control target key start
LH: loop header
LB: loop body
LE: loop exit
PB: predicated region body
PF: predicated region fallthrough
CT: control target
= control target key end

     0   :  { %s3241_s0 = inlined_call_operand.hbm [shape: f32[1024,256], index: 0, kind: input, shape index: {}]   ;;  %s3242_s1 = inlined_call_operand.hbm [shape: bf16[256,768], index: 1, kind: input, shape index: {}]   ;;  %s3243_s2 = inlined_call_operand.hbm [shape: f32[1,768], index: 2, kind: input, shape index: {}]   ;;  %s3244_s3 = inlined_call_operand.vmem [shape: bf16[1024,768], index: 3, kind: output, shape index: {}]  }
   0x1   :  { %3252 = sst [smem:[#allocation22_spill]] %s3242_s1 }
   0x2   :  { %3253 = sst [smem:[#allocation23_spill]] %s3244_s3 }
   0x3   :  { %8 = vsyncpa [#allocation4], 0 }
   0x4   :  { %10 = vsyncpa [#allocation4 + $0x1], 0 }
   0x5   :  { %11 = vsyncpa [#allocation6], 0 }
   0x6   :  { %13 = vsyncpa [#allocation6 + $0x1], 0  ;;  %s2462_s12 = smov 0   ;;  %s2464_s13 = smov 0  }
   0x7   :  { %s2466_s14 = smov 0   ;;  %s2468_s15 = smov 0  }
   0x8   :  { %s2470_s16 = smov 0   ;;  %s2472_s17 = smov 0  }
   0x9   :  { %s2474_s18 = smov 0   ;;  %s2476_s19 = smov 0  }
   0xa   :  { %s2478_s20 = smov 0   ;;  %s2480_s21 = smov 0  }
   0xb   :  { %s2482_s22 = smov 0   ;;  %s2484_s23 = smov 0  }
   0xc   :  { %s2486_s24 = smov 0  }
   0xd LB: > { %3254 = sst [smem:[#allocation11_spill]] %s2391_s13  ;;  %s34_s25 = sadd.s32 1, %s2427_s22  ;;  %s2435_s24 = sphi %s2486_s24, %s19_s24   ;;  %s2431_s23 = sphi %s2484_s23, %s3295_s23   ;;  %s2427_s22 = sphi %s2482_s22, %s3294_s22   ;;  %s2423_s21 = sphi %s2480_s21, %s3284_s21   ;;  %s2419_s20 = sphi %s2478_s20, %s3293_s20   ;;  %s2415_s19 = sphi %s2476_s19, %s3292_s19   ;;  %s2411_s18 = sphi %s2474_s18, %s3291_s18   ;;  %s2407_s17 = sphi %s2472_s17, %s3290_s17   ;;  %s2403_s16 = sphi %s2470_s16, %s3289_s16   ;;  %s2399_s15 = sphi %s2468_s15, %s3288_s15   ;;  %s2395_s14 = sphi %s2466_s14, %s3287_s14   ;;  %s2391_s13 = sphi %s2464_s13, %s3280_s13   ;;  %s2387_s12 = sphi %s2462_s12, %s3279_s12  }
   0xe   : > { %3255 = sst [smem:[#allocation12_spill]] %s2415_s19  ;;  %p55_p0 = scmp.eq.s32.totalorder %s2435_s24, 0 }
   0xf   : > { %3256 = sst [smem:[#allocation13_spill]] %s2419_s20  ;;  %p2531_p1 = scmp.ge.s32.totalorder %s34_s25, 3 }
  0x10   : > { %3257 = sst [smem:[#allocation14_spill]] %s2423_s21  ;;  %s75_s27 = sadd.s32 1, %s2403_s16 }
  0x11   : > { %3258 = sst [smem:[#allocation15_spill]] %s2431_s23  ;;  %p82_p2 = scmp.ne.s32.totalorder %s2403_s16, %s2399_s15 }
  0x12   : > { %p88_p3 = scmp.ne.s32.totalorder %s2399_s15, %s2395_s14  ;;  %p2125_p4 = scmp.lt.s32.totalorder %s2435_s24, 6 }
  0x13   : > { %p84_p5 = por %p82_p2, %p55_p0  ;;  %s191_s28 = sand.u32 1, %s2435_s24  }
  0x14   : > { %s3245_s29 = sand.u32 1, %s2403_s16   ;;  %s2075_s4 = sshll.u32 %s2427_s22, 3 }
  0x15   : > { %s1928_s30 = sshll.u32 %s3245_s29, 8  ;;  %s3260_s1 = sld [smem:[#allocation22_spill]] }
  0x16   : > { %s195_s9 = scalar_lea.vmem [#allocation5], %s1928_s30  ;;  %p2553_p6 = pnand %p2125_p4, %p84_p5 }
  0x17   : > { %s206_s10 = sshll.u32 %s195_s9, 4  ;;  %p1933_p7 = scmp.ge.s32.totalorder %s2435_s24, 1  ;;  %s207_s10 = int_to_ptr.vmem [resolvable:$true] %s206_s10 }
  0x18   : > { %s2437_s30 = smov 384   ;;  %s2438_s5 = smov 128  }
  0x19   : > { %s2439_s6 = smov 8   ;;  %p233_p8 = scmp.lt.s32.totalorder %s2435_s24, 7 }
  0x1a   : > { %s2569_s9 = sadd.s32 4294967295, %s2435_s24   ;;  %s3297_s25 = smov (%p2531_p1, %s34_s25), 0 }
  0x1b   : > { %s203_s7 = scalar_lea.hbm %s3260_s1, %s2075_s4  ;;  %s2558_s4 = scalar_lea.sflag [#allocation6], %s191_s28 }
  0x1c   : > { %s204_s8 = sshll.u32 %s203_s7, 4  ;;  %p2564_p9 = pnand %p1933_p7, %p233_p8  ;;  %s205_s8 = int_to_ptr.hbm [resolvable:$true] %s204_s8 }
  0x1d   : > { %2121 = dma.hbm_to_vmem [thread:$0]  (!%p2553_p6), %s205_s8, 4096, %s207_s10, %s2558_s4, %s2437_s30, %s2438_s5, %s2439_s6  }
  0x1e   : > { %s38_s28 = sadd.s32 1, %s2431_s23  ;;  %3263 = sst [smem:[#allocation16_spill]] %s3297_s25 }
  0x1f   : > { %s3299_s28 = smov (!%p2531_p1, %s38_s28), %s2431_s23  ;;  %s47_s8 = sadd.s32 1, %s2415_s19 }
  0x20   : > { %p54_p10 = scmp.ne.s32.totalorder %s2415_s19, %s2411_s18  ;;  %p40_p11 = scmp.ge.s32.totalorder %s3299_s28, 2 }
  0x21   : > { %p60_p12 = scmp.ne.s32.totalorder %s2411_s18, %s2407_s17  ;;  %p61_p2 = scmp.eq.s32.totalorder %s2569_s9, 0 }
  0x22   : > { %p2588_p13 = por %p55_p0, %p54_p10  ;;  %s3301_s28 = smov (%p40_p11, %s3299_s28), 0 }
  0x23   : > { %3265 = sst [smem:[#allocation17_spill]] %s3301_s28  ;;  %p2595_p1 = por %p61_p2, %p60_p12 }
  0x24   : > { %s71_s30 = ssub.s32 %s2427_s22, %s3297_s25  ;;  %s42_s5 = ssub.s32 %s2431_s23, %s3301_s28 }
  0x25   : > { %p73_p5 = scmp.eq.s32.totalorder %s71_s30, 0  ;;  %p45_p7 = scmp.eq.s32.totalorder %s42_s5, 0 }
  0x26   : > { %p2606_p0 = por %p88_p3, %p61_p2  ;;  %s126_s1 = sor.u32 %s71_s30, %s42_s5 }
  0x27   : > { %s2613_s6 = scalar_select %p73_p5, %s2403_s16, %s75_s27  }
  0x28   : > { %s2616_s29 = scalar_select %p45_p7, %s2415_s19, %s47_s8  }
  0x29   : > { %3268 = sst [smem:[#allocation18_spill]] %s2613_s6  ;;  %s129_s3 = sadd.s32 1, %s2391_s13 }
  0x2a   : > { %3269 = sst [smem:[#allocation19_spill]] %s2616_s29  ;;  %p127_p8 = scmp.eq.s32.totalorder %s126_s1, 0 }
  0x2b   : > { %p139_p10 = scmp.ne.s32.totalorder %s2391_s13, %s2387_s12  ;;  %p140_p11 = scmp.eq.s32.totalorder %s2569_s9, 5 }
  0x2c   : > { %s166_s28 = sand.u32 1, %s2415_s19   ;;  %s2074_s6 = sshll.u32 %s2431_s23, 10 }
  0x2d   : > { %s2624_s25 = scalar_select %p127_p8, %s2391_s13, %s129_s3  }
  0x2e   : > { %p2626_p3 = por %p140_p11, %p139_p10  ;;  %s1924_s27 = sshll.u32 %s166_s28, 10 }
  0x2f   : > { %3270 = sst [smem:[#allocation20_spill]] %s2624_s25  ;;  %s178_s30 = scalar_lea.hbm %s3241_s0, %s2074_s6 }
  0x30   : > { %s3271_s14 = scalar_select %p2626_p3, 1, 0 }
  0x31   : > { %s179_s5 = sshll.u32 %s178_s30, 4  ;;  %s170_s21 = scalar_lea.vmem [#allocation3], %s1924_s27  ;;  %s180_s5 = int_to_ptr.hbm [resolvable:$true] %s179_s5 }
  0x32   : > { %3272 = sst [smem:[#allocation21_spill]] %s3271_s14  ;;  %s181_s20 = sshll.u32 %s170_s21, 4  ;;  %s182_s20 = int_to_ptr.vmem [resolvable:$true] %s181_s20 }
  0x33   : > { %p2116_p12 = pnand %p2125_p4, %p2588_p13  ;;  %s3273_s1 = sand.u32 1, %s2403_s16  }
  0x34   : > { %s1931_s3 = sshll.u32 %s3273_s1, 1  ;;  %s167_s19 = scalar_lea.sflag [#allocation4], %s166_s28 }
  0x35   : > { %s2440_s25 = smov 256   ;;  %s2441_s13 = smov 16  }
  0x36   : > { %2118 = dma.hbm_to_vmem [thread:$0]  (!%p2116_p12), %s180_s5, 16384, %s182_s20, %s167_s19, %s2440_s25, %s2440_s25, %s2441_s13  }
  0x37   : > { %s1932_s23 = sshll.u32 %s2427_s22, 1  ;;  %s220_s14 = scalar_lea.vmem [#allocation7], %s1931_s3 }
  0x38   : > { %s228_s29 = sshll.u32 %s220_s14, 4  ;;  %s224_s21 = scalar_lea.hbm %s3243_s2, %s1932_s23  ;;  %s229_s29 = int_to_ptr.vmem [resolvable:$true] %s228_s29 }
  0x39   : > { %s226_s27 = sshll.u32 %s224_s21, 4  ;;  %237 = sbr.rel (%p2564_p9) target bundleno = 761 (0x2f9), region = 32  ;;  %s227_s27 = int_to_ptr.hbm [resolvable:$true] %s226_s27 }
  0x3a   : > { %2124 = dma.hbm_to_vmem [thread:$0]  (!%p2553_p6), %s227_s27, 32, %s229_s29, %s2558_s4  }
  0x3b   : > { %s239_s28 = sand.u32 (!%p2564_p9), 1, %s2411_s18  }
  0x3c   : > { %s1934_s10 = sshll.u32 (!%p2564_p9), %s239_s28, 10  ;;  %s240_s13 = scalar_lea.sflag (!%p2564_p9), [#allocation4], %s239_s28 }
  0x3d   : > { %s2650_s19 = scalar_lea.vmem (!%p2564_p9), [#allocation3], %s1934_s10 }
  0x3e   : > { %2378 = dma.done.wait (%p2595_p1), %s240_s13, 16384  }
  0x3f   : > { %2380 = vsyncadd (%p2595_p1), %s240_s13, 4294950912  ;;  %s249_s20 = sand.u32 1, %s2569_s9   ;;  %s251_s23 = sand.u32 1, %s2399_s15  }
  0x40   : > { %s1935_s25 = sshll.u32 %s251_s23, 8  ;;  %s250_s11 = scalar_lea.sflag [#allocation6], %s249_s20 }
  0x41   : > { %s2660_s4 = scalar_lea.vmem [#allocation5], %s1935_s25 }
  0x42   : > { %2382 = dma.done.wait (%p2606_p0), %s250_s11, 4128  }
  0x43   : > { %2384 = vsyncadd (%p2606_p0), %s250_s11, 4294963168  ;;  %v1996_v0 = vld [vmem:[%s2660_s4 + $0x70] sm:$0xf]  ;;  %v2091_v1 = vld [vmem:[%s2660_s4 + $0x74] sm:$0xf0]  ;;  %s1936_s7 = sshll.u32 %s251_s23, 1 }
  0x44   : > { %v2060_v2 = vld [vmem:[%s2660_s4 + $0xf0] sm:$0xf]  ;;  %v1997_v3 = vor.u32 %v2091_v1, %v1996_v0  ;;  %v2107_v4 = vld [vmem:[%s2660_s4 + $0xf4] sm:$0xf0]  ;;  %v2090_v5 = vld [vmem:[%s2660_s4 + $0x74] sm:$0xf] }
  0x45   : > { %v1998_v6 = vld [vmem:[%s2660_s4 + $0x78] sm:$0xf0]  ;;  %v2061_v7 = vor.u32 %v2107_v4, %v2060_v2  ;;  %v2106_v9 = vld [vmem:[%s2660_s4 + $0xf4] sm:$0xf]  ;;  %v1988_v11 = vld [vmem:[%s2660_s4 + $0x60] sm:$0xf] }
  0x46   : > { %v2001_v8 = vor.u32 %v2090_v5, %v1998_v6  ;;  %v2062_v10 = vld [vmem:[%s2660_s4 + $0xf8] sm:$0xf0]  ;;  %693 = vmatpush.bf16.msra.mxu0 %v1997_v3  ;;  %v2089_v13 = vld [vmem:[%s2660_s4 + $0x64] sm:$0xf0]  ;;  %v2052_v14 = vld [vmem:[%s2660_s4 + $0xe0] sm:$0xf] }
  0x47   : > { %v2065_v12 = vor.u32 %v2106_v9, %v2062_v10  ;;  %v2105_v15 = vld [vmem:[%s2660_s4 + $0xe4] sm:$0xf0]  ;;  %862 = vmatpush.bf16.msra.mxu1 %v2061_v7  ;;  %v1989_v16 = vor.u32 %v2089_v13, %v1988_v11  ;;  %v2088_v18 = vld [vmem:[%s2660_s4 + $0x64] sm:$0xf]  ;;  %v1990_v19 = vld [vmem:[%s2660_s4 + $0x68] sm:$0xf0] }
  0x48   : > { %1031 = vmatpush.bf16.msra.mxu2 %v2001_v8  ;;  %v2053_v17 = vor.u32 %v2105_v15, %v2052_v14  ;;  %v2104_v20 = vld [vmem:[%s2660_s4 + $0xe4] sm:$0xf]  ;;  %v1993_v21 = vor.u32 %v2088_v18, %v1990_v19  ;;  %v2054_v22 = vld [vmem:[%s2660_s4 + $0xe8] sm:$0xf0]  ;;  %v1980_v23 = vld [vmem:[%s2660_s4 + $0x50] sm:$0xf] }
  0x49   : > { %1200 = vmatpush.bf16.msra.mxu3 %v2065_v12  ;;  %v2087_v24 = vld [vmem:[%s2660_s4 + $0x54] sm:$0xf0]  ;;  %v2057_v25 = vor.u32 %v2104_v20, %v2054_v22  ;;  %v2044_v26 = vld [vmem:[%s2660_s4 + $0xd0] sm:$0xf]  ;;  %v2086_v28 = vld [vmem:[%s2660_s4 + $0x54] sm:$0xf] }
  0x4a   : > { %v2103_v27 = vld [vmem:[%s2660_s4 + $0xd4] sm:$0xf0]  ;;  %694 = vmatpush.bf16.msra.mxu0 %v1989_v16  ;;  %v1981_v29 = vor.u32 %v2087_v24, %v1980_v23  ;;  %v1982_v30 = vld [vmem:[%s2660_s4 + $0x58] sm:$0xf0]  ;;  %v2102_v31 = vld [vmem:[%s2660_s4 + $0xd4] sm:$0xf] }
  0x4b   : > { %v2046_v32 = vld [vmem:[%s2660_s4 + $0xd8] sm:$0xf0]  ;;  %863 = vmatpush.bf16.msra.mxu1 %v2053_v17  ;;  %v2045_v33 = vor.u32 %v2103_v27, %v2044_v26  ;;  %v1985_v34 = vor.u32 %v2086_v28, %v1982_v30  ;;  %v1972_v35 = vld [vmem:[%s2660_s4 + $0x40] sm:$0xf]  ;;  %v2085_v36 = vld [vmem:[%s2660_s4 + $0x44] sm:$0xf0] }
  0x4c   : > { %1032 = vmatpush.bf16.msra.mxu2 %v1993_v21  ;;  %v2036_v37 = vld [vmem:[%s2660_s4 + $0xc0] sm:$0xf]  ;;  %v2049_v38 = vor.u32 %v2102_v31, %v2046_v32  ;;  %v2101_v39 = vld [vmem:[%s2660_s4 + $0xc4] sm:$0xf0]  ;;  %v2084_v40 = vld [vmem:[%s2660_s4 + $0x44] sm:$0xf]  ;;  %v1973_v44 = vor.u32 %v2085_v36, %v1972_v35 }
  0x4d   : > { %1201 = vmatpush.bf16.msra.mxu3 %v2057_v25  ;;  %v1974_v41 = vld [vmem:[%s2660_s4 + $0x48] sm:$0xf0]  ;;  %v2100_v42 = vld [vmem:[%s2660_s4 + $0xc4] sm:$0xf]  ;;  %v2037_v45 = vor.u32 %v2101_v39, %v2036_v37  ;;  %v1964_v47 = vld [vmem:[%s2660_s4 + $0x30] sm:$0xf] }
  0x4e   : > { %v2038_v43 = vld [vmem:[%s2660_s4 + $0xc8] sm:$0xf0]  ;;  %695 = vmatpush.bf16.msra.mxu0 %v1981_v29  ;;  %v1977_v46 = vor.u32 %v2084_v40, %v1974_v41  ;;  %v2083_v48 = vld [vmem:[%s2660_s4 + $0x34] sm:$0xf0]  ;;  %v2028_v49 = vld [vmem:[%s2660_s4 + $0xb0] sm:$0xf] }
  0x4f   : > { %864 = vmatpush.bf16.msra.mxu1 %v2045_v33  ;;  %v2041_v50 = vor.u32 %v2100_v42, %v2038_v43  ;;  %v2099_v51 = vld [vmem:[%s2660_s4 + $0xb4] sm:$0xf0]  ;;  %v2082_v52 = vld [vmem:[%s2660_s4 + $0x34] sm:$0xf]  ;;  %v1966_v53 = vld [vmem:[%s2660_s4 + $0x38] sm:$0xf0]  ;;  %v1965_v56 = vor.u32 %v2083_v48, %v1964_v47 }
  0x50   : > { %1033 = vmatpush.bf16.msra.mxu2 %v1985_v34  ;;  %v2098_v54 = vld [vmem:[%s2660_s4 + $0xb4] sm:$0xf]  ;;  %v2030_v55 = vld [vmem:[%s2660_s4 + $0xb8] sm:$0xf0]  ;;  %v2029_v57 = vor.u32 %v2099_v51, %v2028_v49  ;;  %v1969_v58 = vor.u32 %v2082_v52, %v1966_v53  ;;  %v1956_v59 = vld [vmem:[%s2660_s4 + $0x20] sm:$0xf] }
  0x51   : > { %1202 = vmatpush.bf16.msra.mxu3 %v2049_v38  ;;  %v2081_v60 = vld [vmem:[%s2660_s4 + $0x24] sm:$0xf0]  ;;  %v2020_v61 = vld [vmem:[%s2660_s4 + $0xa0] sm:$0xf]  ;;  %v2033_v62 = vor.u32 %v2098_v54, %v2030_v55  ;;  %v2080_v0 = vld [vmem:[%s2660_s4 + $0x24] sm:$0xf] }
  0x52   : > { %696 = vmatpush.bf16.msra.mxu0 %v1973_v44  ;;  %v2097_v63 = vld [vmem:[%s2660_s4 + $0xa4] sm:$0xf0]  ;;  %v1958_v1 = vld [vmem:[%s2660_s4 + $0x28] sm:$0xf0]  ;;  %v2096_v2 = vld [vmem:[%s2660_s4 + $0xa4] sm:$0xf]  ;;  %v1957_v4 = vor.u32 %v2081_v60, %v1956_v59 }
  0x53   : > { %865 = vmatpush.bf16.msra.mxu1 %v2037_v45  ;;  %v2022_v3 = vld [vmem:[%s2660_s4 + $0xa8] sm:$0xf0]  ;;  %v2021_v5 = vor.u32 %v2097_v63, %v2020_v61  ;;  %v1961_v6 = vor.u32 %v2080_v0, %v1958_v1  ;;  %v1948_v7 = vld [vmem:[%s2660_s4 + $0x10] sm:$0xf]  ;;  %v2079_v8 = vld [vmem:[%s2660_s4 + $0x14] sm:$0xf0] }
  0x54   : > { %1034 = vmatpush.bf16.msra.mxu2 %v1977_v46  ;;  %v2012_v9 = vld [vmem:[%s2660_s4 + $0x90] sm:$0xf]  ;;  %v2025_v10 = vor.u32 %v2096_v2, %v2022_v3  ;;  %v2095_v11 = vld [vmem:[%s2660_s4 + $0x94] sm:$0xf0]  ;;  %v2078_v12 = vld [vmem:[%s2660_s4 + $0x14] sm:$0xf]  ;;  %v1949_v16 = vor.u32 %v2079_v8, %v1948_v7 }
  0x55   : > { %1203 = vmatpush.bf16.msra.mxu3 %v2041_v50  ;;  %v1950_v13 = vld [vmem:[%s2660_s4 + $0x18] sm:$0xf0]  ;;  %v2094_v14 = vld [vmem:[%s2660_s4 + $0x94] sm:$0xf]  ;;  %v2013_v17 = vor.u32 %v2095_v11, %v2012_v9  ;;  %v1940_v19 = vld [vmem:[%s2660_s4] sm:$0xf] }
  0x56   : > { %697 = vmatpush.bf16.msra.mxu0 %v1965_v56  ;;  %v2014_v15 = vld [vmem:[%s2660_s4 + $0x98] sm:$0xf0]  ;;  %v1953_v18 = vor.u32 %v2078_v12, %v1950_v13  ;;  %v2077_v20 = vld [vmem:[%s2660_s4 + $0x4] sm:$0xf0]  ;;  %v2004_v21 = vld [vmem:[%s2660_s4 + $0x80] sm:$0xf] }
  0x57   : > { %866 = vmatpush.bf16.msra.mxu1 %v2029_v57  ;;  %v2017_v22 = vor.u32 %v2094_v14, %v2014_v15  ;;  %v2093_v23 = vld [vmem:[%s2660_s4 + $0x84] sm:$0xf0]  ;;  %v2076_v24 = vld [vmem:[%s2660_s4 + $0x4] sm:$0xf]  ;;  %v1942_v25 = vld [vmem:[%s2660_s4 + $0x8] sm:$0xf0]  ;;  %v1941_v28 = vor.u32 %v2077_v20, %v1940_v19 }
  0x58   : > { %1035 = vmatpush.bf16.msra.mxu2 %v1969_v58  ;;  %v2092_v26 = vld [vmem:[%s2660_s4 + $0x84] sm:$0xf]  ;;  %v2006_v27 = vld [vmem:[%s2660_s4 + $0x88] sm:$0xf0]  ;;  %v305_v30 = vld [vmem:[%s2650_s19 + $0x10] sm:$0xff]  ;;  %v2005_v31 = vor.u32 %v2093_v23, %v2004_v21  ;;  %v1945_v32 = vor.u32 %v2076_v24, %v1942_v25  ;;  %s263_s9 = scalar_lea.vmem [#allocation7], %s1936_s7 }
  0x59   : > { %1204 = vmatpush.bf16.msra.mxu3 %v2033_v62  ;;  %v303_v29 = vld [vmem:[%s2650_s19] sm:$0xff]  ;;  %v304_v33 = vld [vmem:[%s2650_s19 + $0x8] sm:$0xff]  ;;  %v306_v34 = vld [vmem:[%s2650_s19 + $0x18] sm:$0xff]  ;;  %v2009_v35 = vor.u32 %v2092_v26, %v2006_v27  ;;  %s293_s26 = sand.u32 1, %s2387_s12   ;;  %s3275_s30 = sld [smem:[#allocation13_spill]] (%p2626_p3) }
  0x5a   : > { %698 = vmatpush.bf16.msra.mxu0 %v1957_v4  ;;  %v431_v36 = vpack.c.bf16 %v305_v30, %v303_v29  ;;  %v432_v37 = vpack.c.bf16 %v306_v34, %v304_v33  ;;  %v307_v38 = vld [vmem:[%s2650_s19 + $0x20] sm:$0xff]  ;;  %v309_v39 = vld [vmem:[%s2650_s19 + $0x30] sm:$0xff]  ;;  %v308_v40 = vld [vmem:[%s2650_s19 + $0x28] sm:$0xff]  ;;  %s1937_s17 = sshll.u32 %s293_s26, 9  ;;  %s3276_s5 = sld [smem:[#allocation14_spill]] (%p2626_p3) }
  0x5b   : > { %867 = vmatpush.bf16.msra.mxu1 %v2021_v5  ;;  %v310_v41 = vld [vmem:[%s2650_s19 + $0x38] sm:$0xff]  ;;  %v433_v42 = vpack.c.bf16 %v309_v39, %v307_v38  ;;  %v311_v44 = vld [vmem:[%s2650_s19 + $0x40] sm:$0xff]  ;;  %v313_v45 = vld [vmem:[%s2650_s19 + $0x50] sm:$0xff]  ;;  %s2779_s14 = scalar_lea.vmem [#allocation8], %s1937_s17  ;;  %s3277_s27 = sld [smem:[#allocation23_spill]] (%p2626_p3) }
  0x5c   : > { %1036 = vmatpush.bf16.msra.mxu2 %v1961_v6  ;;  %v434_v43 = vpack.c.bf16 %v310_v41, %v308_v40  ;;  %v312_v46 = vld [vmem:[%s2650_s19 + $0x48] sm:$0xff]  ;;  %v314_v47 = vld [vmem:[%s2650_s19 + $0x58] sm:$0xff]  ;;  %v435_v48 = vpack.c.bf16 %v313_v45, %v311_v44  ;;  %v315_v50 = vld [vmem:[%s2650_s19 + $0x60] sm:$0xff] }
  0x5d   : > { %1205 = vmatpush.bf16.msra.mxu3 %v2025_v10  ;;  %v436_v49 = vpack.c.bf16 %v314_v47, %v312_v46  ;;  %v317_v51 = vld [vmem:[%s2650_s19 + $0x70] sm:$0xff]  ;;  %v316_v52 = vld [vmem:[%s2650_s19 + $0x68] sm:$0xff]  ;;  %v318_v53 = vld [vmem:[%s2650_s19 + $0x78] sm:$0xff] }
  0x5e   : > { %699 = vmatpush.bf16.msra.mxu0 %v1949_v16  ;;  %v437_v54 = vpack.c.bf16 %v317_v51, %v315_v50  ;;  %v438_v55 = vpack.c.bf16 %v318_v53, %v316_v52  ;;  %v319_v56 = vld [vmem:[%s2650_s19 + $0x80] sm:$0xff]  ;;  %v321_v57 = vld [vmem:[%s2650_s19 + $0x90] sm:$0xff]  ;;  %v320_v58 = vld [vmem:[%s2650_s19 + $0x88] sm:$0xff] }
  0x5f   : > { %868 = vmatpush.bf16.msra.mxu1 %v2013_v17  ;;  %v322_v59 = vld [vmem:[%s2650_s19 + $0x98] sm:$0xff]  ;;  %v439_v60 = vpack.c.bf16 %v321_v57, %v319_v56  ;;  %v323_v62 = vld [vmem:[%s2650_s19 + $0xa0] sm:$0xff]  ;;  %v325_v63 = vld [vmem:[%s2650_s19 + $0xb0] sm:$0xff]  ;;  %s2068_s1 = sshll.u32 (%p2626_p3), %s3275_s30, 1 }
  0x60   : > { %1037 = vmatpush.bf16.msra.mxu2 %v1953_v18  ;;  %v440_v61 = vpack.c.bf16 %v322_v59, %v320_v58  ;;  %v324_v0 = vld [vmem:[%s2650_s19 + $0xa8] sm:$0xff]  ;;  %v326_v1 = vld [vmem:[%s2650_s19 + $0xb8] sm:$0xff]  ;;  %v441_v2 = vpack.c.bf16 %v325_v63, %v323_v62  ;;  %v327_v4 = vld [vmem:[%s2650_s19 + $0xc0] sm:$0xff]  ;;  %s2108_s3 = smul.u32 (%p2626_p3), 384, %s3276_s5 }
  0x61   : > { %1206 = vmatpush.bf16.msra.mxu3 %v2017_v22  ;;  %v442_v3 = vpack.c.bf16 %v326_v1, %v324_v0  ;;  %v329_v5 = vld [vmem:[%s2650_s19 + $0xd0] sm:$0xff]  ;;  %v328_v6 = vld [vmem:[%s2650_s19 + $0xc8] sm:$0xff]  ;;  %v330_v7 = vld [vmem:[%s2650_s19 + $0xd8] sm:$0xff] }
  0x62   : > { %700 = vmatpush.bf16.msra.mxu0 %v1941_v28  ;;  %v443_v8 = vpack.c.bf16 %v329_v5, %v327_v4  ;;  %v444_v9 = vpack.c.bf16 %v330_v7, %v328_v6  ;;  %v331_v10 = vld [vmem:[%s2650_s19 + $0xe0] sm:$0xff]  ;;  %v333_v11 = vld [vmem:[%s2650_s19 + $0xf0] sm:$0xff]  ;;  %v332_v12 = vld [vmem:[%s2650_s19 + $0xe8] sm:$0xff]  ;;  %s1507_s29 = sadd.s32 (%p2626_p3), %s2108_s3, %s2068_s1 }
  0x63   : > { %869 = vmatpush.bf16.msra.mxu1 %v2005_v31  ;;  %v334_v13 = vld [vmem:[%s2650_s19 + $0xf8] sm:$0xff]  ;;  %v445_v14 = vpack.c.bf16 %v333_v11, %v331_v10  ;;  %v335_v16 = vld [vmem:[%s2650_s19 + $0x100] sm:$0xff]  ;;  %v337_v17 = vld [vmem:[%s2650_s19 + $0x110] sm:$0xff]  ;;  %s2070_s6 = sshll.u32 (%p2626_p3), %s1507_s29, 2 }
  0x64   : > { %1038 = vmatpush.bf16.msra.mxu2 %v1945_v32  ;;  %v446_v15 = vpack.c.bf16 %v334_v13, %v332_v12  ;;  %v527_v18 = vld [vmem:[%s263_s9] sm:$0x3]  ;;  %v336_v19 = vld [vmem:[%s2650_s19 + $0x108] sm:$0xff]  ;;  %v338_v20 = vld [vmem:[%s2650_s19 + $0x118] sm:$0xff]  ;;  %v447_v21 = vpack.c.bf16 %v337_v17, %v335_v16  ;;  %s3068_s28 = scalar_lea.vmem (%p2626_p3), %s3277_s27, %s2070_s6 }
  0x65   : > { %1207 = vmatpush.bf16.msra.mxu3 %v2009_v35  ;;  %701 = vmatmul.bf16.vlgmr.msra.gmra.mxu0 %v431_v36  ;;  %v2768_v22 = vperm.slane %v527_v18, 0  ;;  %v448_v24 = vpack.c.bf16 %v338_v20, %v336_v19  ;;  %v2771_v27 = vperm.slane %v527_v18, 1  ;;  %v340_v38 = vld [vmem:[%s2650_s19 + $0x128] sm:$0xff]  ;;  %v342_v39 = vld [vmem:[%s2650_s19 + $0x138] sm:$0xff]  ;;  %v347_v20 = vld [vmem:[%s2650_s19 + $0x160] sm:$0xff] }
  0x66   : > { %870 = vmatmul.bf16.vlgmr.msra.gmra.mxu1 %v432_v37  ;;  %v450_v46 = vpack.c.bf16 %v342_v39, %v340_v38  ;;  %v344_v62 = vld [vmem:[%s2650_s19 + $0x148] sm:$0xff]  ;;  %v346_v63 = vld [vmem:[%s2650_s19 + $0x158] sm:$0xff] }
  0x67   : > { %1039 = vmatmul.bf16.vlgmr.msra.gmra.mxu2 %v431_v36  ;;  %v339_v36 = vld [vmem:[%s2650_s19 + $0x120] sm:$0xff]  ;;  %v452_v6 = vpack.c.bf16 %v346_v63, %v344_v62 }
  0x68   : > { %1208 = vmatmul.bf16.vlgmr.msra.gmra.mxu3 %v432_v37  ;;  %v341_v37 = vld [vmem:[%s2650_s19 + $0x130] sm:$0xff] }
  0x75   : > { %706 = vmatmul.bf16.gmra.mxu0 %v433_v42 }
  0x76   : > { %875 = vmatmul.bf16.gmra.mxu1 %v434_v43 }
  0x77   : > { %1044 = vmatmul.bf16.gmra.mxu2 %v433_v42  ;;  %v449_v42 = vpack.c.bf16 %v341_v37, %v339_v36 }
  0x78   : > { %1213 = vmatmul.bf16.gmra.mxu3 %v434_v43 }
  0x85   : > { %711 = vmatmul.bf16.gmra.mxu0 %v435_v48 }
  0x86   : > { %880 = vmatmul.bf16.gmra.mxu1 %v436_v49 }
  0x87   : > { %1049 = vmatmul.bf16.gmra.mxu2 %v435_v48 }
  0x88   : > { %1218 = vmatmul.bf16.gmra.mxu3 %v436_v49 }
  0x95   : > { %716 = vmatmul.bf16.gmra.mxu0 %v437_v54 }
  0x96   : > { %885 = vmatmul.bf16.gmra.mxu1 %v438_v55 }
  0x97   : > { %1054 = vmatmul.bf16.gmra.mxu2 %v437_v54 }
  0x98   : > { %1223 = vmatmul.bf16.gmra.mxu3 %v438_v55 }
  0xa5   : > { %721 = vmatmul.bf16.gmra.mxu0 %v439_v60 }
  0xa6   : > { %890 = vmatmul.bf16.gmra.mxu1 %v440_v61 }
  0xa7   : > { %1059 = vmatmul.bf16.gmra.mxu2 %v439_v60  ;;  %v343_v60 = vld [vmem:[%s2650_s19 + $0x140] sm:$0xff] }
  0xa8   : > { %1228 = vmatmul.bf16.gmra.mxu3 %v440_v61  ;;  %v345_v61 = vld [vmem:[%s2650_s19 + $0x150] sm:$0xff] }
  0xb5   : > { %726 = vmatmul.bf16.gmra.mxu0 %v441_v2 }
  0xb6   : > { %895 = vmatmul.bf16.gmra.mxu1 %v442_v3 }
  0xb7   : > { %1064 = vmatmul.bf16.gmra.mxu2 %v441_v2  ;;  %v451_v2 = vpack.c.bf16 %v345_v61, %v343_v60 }
  0xb8   : > { %1233 = vmatmul.bf16.gmra.mxu3 %v442_v3 }
  0xc5   : > { %731 = vmatmul.bf16.gmra.mxu0 %v443_v8 }
  0xc6   : > { %900 = vmatmul.bf16.gmra.mxu1 %v444_v9 }
  0xc7   : > { %1069 = vmatmul.bf16.gmra.mxu2 %v443_v8 }
  0xc8   : > { %1238 = vmatmul.bf16.gmra.mxu3 %v444_v9 }
  0xd5   : > { %736 = vmatmul.bf16.gmra.mxu0 %v445_v14 }
  0xd6   : > { %905 = vmatmul.bf16.gmra.mxu1 %v446_v15 }
  0xd7   : > { %1074 = vmatmul.bf16.gmra.mxu2 %v445_v14 }
  0xd8   : > { %1243 = vmatmul.bf16.gmra.mxu3 %v446_v15 }
  0xe2   : > { %v702_v23 = vpop.f32.mrf.mxu0 }
  0xe3   : > { %v871_v25 = vpop.f32.mrf.mxu1  ;;  %v703_v26 = vadd.f32 %v702_v23, %v2768_v22  ;;  %v348_v23 = vld [vmem:[%s2650_s19 + $0x168] sm:$0xff] }
  0xe5   : > { %741 = vmatmul.bf16.gmra.mxu0 %v447_v21  ;;  %v872_v29 = vadd.f32 %v871_v25, %v703_v26 }
  0xe6   : > { %910 = vmatmul.bf16.gmra.mxu1 %v448_v24 }
  0xe7   : > { %1079 = vmatmul.bf16.gmra.mxu2 %v447_v21  ;;  %v349_v21 = vld [vmem:[%s2650_s19 + $0x170] sm:$0xff] }
  0xe8   : > { %1248 = vmatmul.bf16.gmra.mxu3 %v448_v24  ;;  %v350_v24 = vld [vmem:[%s2650_s19 + $0x178] sm:$0xff] }
  0xea   : > { %v1040_v28 = vpop.f32.mrf.mxu2  ;;  %v704_v32 = vpop.f32.mrf.mxu0 }
  0xeb   : > { %v1041_v30 = vadd.f32 %v1040_v28, %v2771_v27  ;;  %v1209_v31 = vpop.f32.mrf.mxu3  ;;  %v873_v33 = vpop.f32.mrf.mxu1  ;;  %v705_v40 = vadd.f32 %v704_v32, %v2768_v22  ;;  %v453_v28 = vpack.c.bf16 %v349_v21, %v347_v20  ;;  %v454_v32 = vpack.c.bf16 %v350_v24, %v348_v23 }
  0xed   : > { %v1210_v34 = vadd.f32 %v1209_v31, %v1041_v30  ;;  %v874_v48 = vadd.f32 %v873_v33, %v705_v40 }
  0xef   : > { %v1369_v35 = vpack.c.bf16 %v1210_v34, %v872_v29 }
  0xf1   : > { %1433 = vst [vmem:[%s2779_s14] sm:$0xff] %v1369_v35 }
  0xf2   : > { %v1042_v41 = vpop.f32.mrf.mxu2  ;;  %v707_v45 = vpop.f32.mrf.mxu0 }
  0xf3   : > { %v1043_v43 = vadd.f32 %v1042_v41, %v2771_v27  ;;  %v1211_v44 = vpop.f32.mrf.mxu3  ;;  %v876_v47 = vpop.f32.mrf.mxu1  ;;  %v708_v51 = vadd.f32 %v707_v45, %v2768_v22 }
  0xf5   : > { %v1212_v49 = vadd.f32 %v1211_v44, %v1043_v43  ;;  %746 = vmatmul.bf16.gmra.mxu0 %v449_v42  ;;  %v877_v53 = vadd.f32 %v876_v47, %v708_v51  ;;  %v353_v47 = vld [vmem:[%s2650_s19 + $0x190] sm:$0xff] }
  0xf6   : > { %915 = vmatmul.bf16.gmra.mxu1 %v450_v46 }
  0xf7   : > { %v1370_v50 = vpack.c.bf16 %v1212_v49, %v874_v48  ;;  %1084 = vmatmul.bf16.gmra.mxu2 %v449_v42  ;;  %v352_v48 = vld [vmem:[%s2650_s19 + $0x188] sm:$0xff]  ;;  %v354_v49 = vld [vmem:[%s2650_s19 + $0x198] sm:$0xff] }
  0xf8   : > { %1253 = vmatmul.bf16.gmra.mxu3 %v450_v46  ;;  %v351_v46 = vld [vmem:[%s2650_s19 + $0x180] sm:$0xff] }
  0xf9   : > { %1434 = vst [vmem:[%s2779_s14 + $0x8] sm:$0xff] %v1370_v50 }
  0xfa   : > { %v1045_v52 = vpop.f32.mrf.mxu2  ;;  %v709_v56 = vpop.f32.mrf.mxu0 }
  0xfb   : > { %v1046_v54 = vadd.f32 %v1045_v52, %v2771_v27  ;;  %v1214_v55 = vpop.f32.mrf.mxu3  ;;  %v878_v57 = vpop.f32.mrf.mxu1  ;;  %v710_v0 = vadd.f32 %v709_v56, %v2768_v22  ;;  %v455_v52 = vpack.c.bf16 %v353_v47, %v351_v46  ;;  %v456_v56 = vpack.c.bf16 %v354_v49, %v352_v48 }
  0xfd   : > { %v1215_v58 = vadd.f32 %v1214_v55, %v1046_v54  ;;  %v879_v8 = vadd.f32 %v878_v57, %v710_v0 }
  0xff   : > { %v1371_v59 = vpack.c.bf16 %v1215_v58, %v877_v53 }
 0x101   : > { %1435 = vst [vmem:[%s2779_s14 + $0x10] sm:$0xff] %v1371_v59 }
 0x102   : > { %v1047_v1 = vpop.f32.mrf.mxu2  ;;  %v712_v5 = vpop.f32.mrf.mxu0 }
 0x103   : > { %v1048_v3 = vadd.f32 %v1047_v1, %v2771_v27  ;;  %v1216_v4 = vpop.f32.mrf.mxu3  ;;  %v881_v7 = vpop.f32.mrf.mxu1  ;;  %v713_v11 = vadd.f32 %v712_v5, %v2768_v22 }
 0x105   : > { %v1217_v9 = vadd.f32 %v1216_v4, %v1048_v3  ;;  %751 = vmatmul.bf16.gmra.mxu0 %v451_v2  ;;  %v882_v13 = vadd.f32 %v881_v7, %v713_v11  ;;  %v357_v7 = vld [vmem:[%s2650_s19 + $0x1b0] sm:$0xff] }
 0x106   : > { %920 = vmatmul.bf16.gmra.mxu1 %v452_v6 }
 0x107   : > { %v1372_v10 = vpack.c.bf16 %v1217_v9, %v879_v8  ;;  %1089 = vmatmul.bf16.gmra.mxu2 %v451_v2  ;;  %v356_v8 = vld [vmem:[%s2650_s19 + $0x1a8] sm:$0xff]  ;;  %v358_v9 = vld [vmem:[%s2650_s19 + $0x1b8] sm:$0xff] }
 0x108   : > { %1258 = vmatmul.bf16.gmra.mxu3 %v452_v6  ;;  %v355_v6 = vld [vmem:[%s2650_s19 + $0x1a0] sm:$0xff] }
 0x109   : > { %1436 = vst [vmem:[%s2779_s14 + $0x18] sm:$0xff] %v1372_v10 }
 0x10a   : > { %v1050_v12 = vpop.f32.mrf.mxu2  ;;  %v714_v16 = vpop.f32.mrf.mxu0 }
 0x10b   : > { %v1051_v14 = vadd.f32 %v1050_v12, %v2771_v27  ;;  %v1219_v15 = vpop.f32.mrf.mxu3  ;;  %v883_v17 = vpop.f32.mrf.mxu1  ;;  %v715_v25 = vadd.f32 %v714_v16, %v2768_v22  ;;  %v457_v12 = vpack.c.bf16 %v357_v7, %v355_v6  ;;  %v458_v16 = vpack.c.bf16 %v358_v9, %v356_v8 }
 0x10d   : > { %v1220_v18 = vadd.f32 %v1219_v15, %v1051_v14  ;;  %v884_v34 = vadd.f32 %v883_v17, %v715_v25 }
 0x10f   : > { %v1373_v19 = vpack.c.bf16 %v1220_v18, %v882_v13 }
 0x111   : > { %1437 = vst [vmem:[%s2779_s14 + $0x20] sm:$0xff] %v1373_v19 }
 0x112   : > { %v1052_v26 = vpop.f32.mrf.mxu2  ;;  %v717_v31 = vpop.f32.mrf.mxu0 }
 0x113   : > { %v1053_v29 = vadd.f32 %v1052_v26, %v2771_v27  ;;  %v1221_v30 = vpop.f32.mrf.mxu3  ;;  %v886_v33 = vpop.f32.mrf.mxu1  ;;  %v718_v37 = vadd.f32 %v717_v31, %v2768_v22 }
 0x115   : > { %v1222_v35 = vadd.f32 %v1221_v30, %v1053_v29  ;;  %756 = vmatmul.bf16.gmra.mxu0 %v453_v28  ;;  %v887_v39 = vadd.f32 %v886_v33, %v718_v37  ;;  %v361_v33 = vld [vmem:[%s2650_s19 + $0x1d0] sm:$0xff] }
 0x116   : > { %925 = vmatmul.bf16.gmra.mxu1 %v454_v32 }
 0x117   : > { %v1374_v36 = vpack.c.bf16 %v1222_v35, %v884_v34  ;;  %1094 = vmatmul.bf16.gmra.mxu2 %v453_v28  ;;  %v360_v34 = vld [vmem:[%s2650_s19 + $0x1c8] sm:$0xff]  ;;  %v362_v35 = vld [vmem:[%s2650_s19 + $0x1d8] sm:$0xff] }
 0x118   : > { %1263 = vmatmul.bf16.gmra.mxu3 %v454_v32  ;;  %v359_v32 = vld [vmem:[%s2650_s19 + $0x1c0] sm:$0xff] }
 0x119   : > { %1438 = vst [vmem:[%s2779_s14 + $0x28] sm:$0xff] %v1374_v36 }
 0x11a   : > { %v1055_v38 = vpop.f32.mrf.mxu2  ;;  %v719_v42 = vpop.f32.mrf.mxu0 }
 0x11b   : > { %v1056_v40 = vadd.f32 %v1055_v38, %v2771_v27  ;;  %v1224_v41 = vpop.f32.mrf.mxu3  ;;  %v888_v43 = vpop.f32.mrf.mxu1  ;;  %v720_v50 = vadd.f32 %v719_v42, %v2768_v22  ;;  %v459_v38 = vpack.c.bf16 %v361_v33, %v359_v32  ;;  %v460_v42 = vpack.c.bf16 %v362_v35, %v360_v34 }
 0x11d   : > { %v1225_v44 = vadd.f32 %v1224_v41, %v1056_v40  ;;  %v889_v58 = vadd.f32 %v888_v43, %v720_v50 }
 0x11f   : > { %v1375_v45 = vpack.c.bf16 %v1225_v44, %v887_v39 }
 0x121   : > { %1439 = vst [vmem:[%s2779_s14 + $0x30] sm:$0xff] %v1375_v45 }
 0x122   : > { %v1057_v51 = vpop.f32.mrf.mxu2  ;;  %v722_v55 = vpop.f32.mrf.mxu0 }
 0x123   : > { %v1058_v53 = vadd.f32 %v1057_v51, %v2771_v27  ;;  %v1226_v54 = vpop.f32.mrf.mxu3  ;;  %v891_v57 = vpop.f32.mrf.mxu1  ;;  %v723_v61 = vadd.f32 %v722_v55, %v2768_v22 }
 0x125   : > { %v1227_v59 = vadd.f32 %v1226_v54, %v1058_v53  ;;  %761 = vmatmul.bf16.gmra.mxu0 %v455_v52  ;;  %v892_v63 = vadd.f32 %v891_v57, %v723_v61  ;;  %v365_v57 = vld [vmem:[%s2650_s19 + $0x1f0] sm:$0xff] }
 0x126   : > { %930 = vmatmul.bf16.gmra.mxu1 %v456_v56 }
 0x127   : > { %v1376_v60 = vpack.c.bf16 %v1227_v59, %v889_v58  ;;  %1099 = vmatmul.bf16.gmra.mxu2 %v455_v52  ;;  %v364_v58 = vld [vmem:[%s2650_s19 + $0x1e8] sm:$0xff]  ;;  %v366_v59 = vld [vmem:[%s2650_s19 + $0x1f8] sm:$0xff] }
 0x128   : > { %1268 = vmatmul.bf16.gmra.mxu3 %v456_v56  ;;  %v363_v56 = vld [vmem:[%s2650_s19 + $0x1e0] sm:$0xff] }
 0x129   : > { %1440 = vst [vmem:[%s2779_s14 + $0x38] sm:$0xff] %v1376_v60 }
 0x12a   : > { %v1060_v62 = vpop.f32.mrf.mxu2  ;;  %v724_v2 = vpop.f32.mrf.mxu0 }
 0x12b   : > { %v1061_v0 = vadd.f32 %v1060_v62, %v2771_v27  ;;  %v1229_v1 = vpop.f32.mrf.mxu3  ;;  %v893_v3 = vpop.f32.mrf.mxu1  ;;  %v725_v10 = vadd.f32 %v724_v2, %v2768_v22  ;;  %v461_v62 = vpack.c.bf16 %v365_v57, %v363_v56  ;;  %v462_v2 = vpack.c.bf16 %v366_v59, %v364_v58 }
 0x12d   : > { %v1230_v4 = vadd.f32 %v1229_v1, %v1061_v0  ;;  %v894_v18 = vadd.f32 %v893_v3, %v725_v10 }
 0x12f   : > { %v1377_v5 = vpack.c.bf16 %v1230_v4, %v892_v63 }
 0x131   : > { %1441 = vst [vmem:[%s2779_s14 + $0x40] sm:$0xff] %v1377_v5 }
 0x132   : > { %v1062_v11 = vpop.f32.mrf.mxu2  ;;  %v727_v15 = vpop.f32.mrf.mxu0 }
 0x133   : > { %v1063_v13 = vadd.f32 %v1062_v11, %v2771_v27  ;;  %v1231_v14 = vpop.f32.mrf.mxu3  ;;  %v896_v17 = vpop.f32.mrf.mxu1  ;;  %v728_v21 = vadd.f32 %v727_v15, %v2768_v22 }
 0x135   : > { %v1232_v19 = vadd.f32 %v1231_v14, %v1063_v13  ;;  %766 = vmatmul.bf16.gmra.mxu0 %v457_v12  ;;  %v897_v24 = vadd.f32 %v896_v17, %v728_v21  ;;  %v369_v17 = vld [vmem:[%s2650_s19 + $0x210] sm:$0xff] }
 0x136   : > { %935 = vmatmul.bf16.gmra.mxu1 %v458_v16 }
 0x137   : > { %v1378_v20 = vpack.c.bf16 %v1232_v19, %v894_v18  ;;  %1104 = vmatmul.bf16.gmra.mxu2 %v457_v12  ;;  %v368_v18 = vld [vmem:[%s2650_s19 + $0x208] sm:$0xff]  ;;  %v370_v19 = vld [vmem:[%s2650_s19 + $0x218] sm:$0xff] }
 0x138   : > { %1273 = vmatmul.bf16.gmra.mxu3 %v458_v16  ;;  %v367_v16 = vld [vmem:[%s2650_s19 + $0x200] sm:$0xff] }
 0x139   : > { %1442 = vst [vmem:[%s2779_s14 + $0x48] sm:$0xff] %v1378_v20 }
 0x13a   : > { %v1065_v23 = vpop.f32.mrf.mxu2  ;;  %v729_v28 = vpop.f32.mrf.mxu0 }
 0x13b   : > { %v1066_v25 = vadd.f32 %v1065_v23, %v2771_v27  ;;  %v1234_v26 = vpop.f32.mrf.mxu3  ;;  %v898_v29 = vpop.f32.mrf.mxu1  ;;  %v730_v36 = vadd.f32 %v729_v28, %v2768_v22  ;;  %v463_v23 = vpack.c.bf16 %v369_v17, %v367_v16  ;;  %v464_v28 = vpack.c.bf16 %v370_v19, %v368_v18 }
 0x13d   : > { %v1235_v30 = vadd.f32 %v1234_v26, %v1066_v25  ;;  %v899_v44 = vadd.f32 %v898_v29, %v730_v36 }
 0x13f   : > { %v1379_v31 = vpack.c.bf16 %v1235_v30, %v897_v24 }
 0x141   : > { %1443 = vst [vmem:[%s2779_s14 + $0x50] sm:$0xff] %v1379_v31 }
 0x142   : > { %v1067_v37 = vpop.f32.mrf.mxu2  ;;  %v732_v41 = vpop.f32.mrf.mxu0 }
 0x143   : > { %v1068_v39 = vadd.f32 %v1067_v37, %v2771_v27  ;;  %v1236_v40 = vpop.f32.mrf.mxu3  ;;  %v901_v43 = vpop.f32.mrf.mxu1  ;;  %v733_v47 = vadd.f32 %v732_v41, %v2768_v22 }
 0x145   : > { %v1237_v45 = vadd.f32 %v1236_v40, %v1068_v39  ;;  %771 = vmatmul.bf16.gmra.mxu0 %v459_v38  ;;  %v902_v49 = vadd.f32 %v901_v43, %v733_v47  ;;  %v373_v43 = vld [vmem:[%s2650_s19 + $0x230] sm:$0xff] }
 0x146   : > { %940 = vmatmul.bf16.gmra.mxu1 %v460_v42 }
 0x147   : > { %v1380_v46 = vpack.c.bf16 %v1237_v45, %v899_v44  ;;  %1109 = vmatmul.bf16.gmra.mxu2 %v459_v38  ;;  %v372_v44 = vld [vmem:[%s2650_s19 + $0x228] sm:$0xff]  ;;  %v374_v45 = vld [vmem:[%s2650_s19 + $0x238] sm:$0xff] }
 0x148   : > { %1278 = vmatmul.bf16.gmra.mxu3 %v460_v42  ;;  %v371_v42 = vld [vmem:[%s2650_s19 + $0x220] sm:$0xff] }
 0x149   : > { %1444 = vst [vmem:[%s2779_s14 + $0x58] sm:$0xff] %v1380_v46 }
 0x14a   : > { %v1070_v48 = vpop.f32.mrf.mxu2  ;;  %v734_v52 = vpop.f32.mrf.mxu0 }
 0x14b   : > { %v1071_v50 = vadd.f32 %v1070_v48, %v2771_v27  ;;  %v1239_v51 = vpop.f32.mrf.mxu3  ;;  %v903_v53 = vpop.f32.mrf.mxu1  ;;  %v735_v60 = vadd.f32 %v734_v52, %v2768_v22  ;;  %v465_v48 = vpack.c.bf16 %v373_v43, %v371_v42  ;;  %v466_v52 = vpack.c.bf16 %v374_v45, %v372_v44 }
 0x14d   : > { %v1240_v54 = vadd.f32 %v1239_v51, %v1071_v50  ;;  %v904_v4 = vadd.f32 %v903_v53, %v735_v60 }
 0x14f   : > { %v1381_v55 = vpack.c.bf16 %v1240_v54, %v902_v49 }
 0x151   : > { %1445 = vst [vmem:[%s2779_s14 + $0x60] sm:$0xff] %v1381_v55 }
 0x152   : > { %v1072_v61 = vpop.f32.mrf.mxu2  ;;  %v737_v1 = vpop.f32.mrf.mxu0 }
 0x153   : > { %v1073_v63 = vadd.f32 %v1072_v61, %v2771_v27  ;;  %v1241_v0 = vpop.f32.mrf.mxu3  ;;  %v906_v3 = vpop.f32.mrf.mxu1  ;;  %v738_v7 = vadd.f32 %v737_v1, %v2768_v22 }
 0x155   : > { %v1242_v5 = vadd.f32 %v1241_v0, %v1073_v63  ;;  %776 = vmatmul.bf16.gmra.mxu0 %v461_v62  ;;  %v907_v9 = vadd.f32 %v906_v3, %v738_v7  ;;  %v377_v3 = vld [vmem:[%s2650_s19 + $0x250] sm:$0xff] }
 0x156   : > { %945 = vmatmul.bf16.gmra.mxu1 %v462_v2 }
 0x157   : > { %v1382_v6 = vpack.c.bf16 %v1242_v5, %v904_v4  ;;  %1114 = vmatmul.bf16.gmra.mxu2 %v461_v62  ;;  %v376_v4 = vld [vmem:[%s2650_s19 + $0x248] sm:$0xff]  ;;  %v378_v5 = vld [vmem:[%s2650_s19 + $0x258] sm:$0xff] }
 0x158   : > { %1283 = vmatmul.bf16.gmra.mxu3 %v462_v2  ;;  %v375_v2 = vld [vmem:[%s2650_s19 + $0x240] sm:$0xff] }
 0x159   : > { %1446 = vst [vmem:[%s2779_s14 + $0x68] sm:$0xff] %v1382_v6 }
 0x15a   : > { %v1075_v8 = vpop.f32.mrf.mxu2  ;;  %v739_v12 = vpop.f32.mrf.mxu0 }
 0x15b   : > { %v1076_v10 = vadd.f32 %v1075_v8, %v2771_v27  ;;  %v1244_v11 = vpop.f32.mrf.mxu3  ;;  %v908_v13 = vpop.f32.mrf.mxu1  ;;  %v740_v20 = vadd.f32 %v739_v12, %v2768_v22  ;;  %v467_v8 = vpack.c.bf16 %v377_v3, %v375_v2  ;;  %v468_v12 = vpack.c.bf16 %v378_v5, %v376_v4 }
 0x15d   : > { %v1245_v14 = vadd.f32 %v1244_v11, %v1076_v10  ;;  %v909_v30 = vadd.f32 %v908_v13, %v740_v20 }
 0x15f   : > { %v1383_v15 = vpack.c.bf16 %v1245_v14, %v907_v9 }
 0x161   : > { %1447 = vst [vmem:[%s2779_s14 + $0x70] sm:$0xff] %v1383_v15 }
 0x162   : > { %v1077_v21 = vpop.f32.mrf.mxu2  ;;  %v742_v26 = vpop.f32.mrf.mxu0 }
 0x163   : > { %v1078_v24 = vadd.f32 %v1077_v21, %v2771_v27  ;;  %v1246_v25 = vpop.f32.mrf.mxu3  ;;  %v911_v29 = vpop.f32.mrf.mxu1  ;;  %v743_v33 = vadd.f32 %v742_v26, %v2768_v22 }
 0x165   : > { %v1247_v31 = vadd.f32 %v1246_v25, %v1078_v24  ;;  %781 = vmatmul.bf16.gmra.mxu0 %v463_v23  ;;  %v912_v35 = vadd.f32 %v911_v29, %v743_v33  ;;  %v381_v29 = vld [vmem:[%s2650_s19 + $0x270] sm:$0xff] }
 0x166   : > { %950 = vmatmul.bf16.gmra.mxu1 %v464_v28 }
 0x167   : > { %v1384_v32 = vpack.c.bf16 %v1247_v31, %v909_v30  ;;  %1119 = vmatmul.bf16.gmra.mxu2 %v463_v23  ;;  %v380_v30 = vld [vmem:[%s2650_s19 + $0x268] sm:$0xff]  ;;  %v382_v31 = vld [vmem:[%s2650_s19 + $0x278] sm:$0xff] }
 0x168   : > { %1288 = vmatmul.bf16.gmra.mxu3 %v464_v28  ;;  %v379_v28 = vld [vmem:[%s2650_s19 + $0x260] sm:$0xff] }
 0x169   : > { %1448 = vst [vmem:[%s2779_s14 + $0x78] sm:$0xff] %v1384_v32 }
 0x16a   : > { %v1080_v34 = vpop.f32.mrf.mxu2  ;;  %v744_v38 = vpop.f32.mrf.mxu0 }
 0x16b   : > { %v1081_v36 = vadd.f32 %v1080_v34, %v2771_v27  ;;  %v1249_v37 = vpop.f32.mrf.mxu3  ;;  %v913_v39 = vpop.f32.mrf.mxu1  ;;  %v745_v46 = vadd.f32 %v744_v38, %v2768_v22  ;;  %v469_v34 = vpack.c.bf16 %v381_v29, %v379_v28  ;;  %v470_v38 = vpack.c.bf16 %v382_v31, %v380_v30 }
 0x16d   : > { %v1250_v40 = vadd.f32 %v1249_v37, %v1081_v36  ;;  %v914_v54 = vadd.f32 %v913_v39, %v745_v46 }
 0x16f   : > { %v1385_v41 = vpack.c.bf16 %v1250_v40, %v912_v35 }
 0x171   : > { %1449 = vst [vmem:[%s2779_s14 + $0x80] sm:$0xff] %v1385_v41 }
 0x172   : > { %v1082_v47 = vpop.f32.mrf.mxu2  ;;  %v747_v51 = vpop.f32.mrf.mxu0 }
 0x173   : > { %v1083_v49 = vadd.f32 %v1082_v47, %v2771_v27  ;;  %v1251_v50 = vpop.f32.mrf.mxu3  ;;  %v916_v53 = vpop.f32.mrf.mxu1  ;;  %v748_v57 = vadd.f32 %v747_v51, %v2768_v22 }
 0x175   : > { %v1252_v55 = vadd.f32 %v1251_v50, %v1083_v49  ;;  %786 = vmatmul.bf16.gmra.mxu0 %v465_v48  ;;  %v917_v59 = vadd.f32 %v916_v53, %v748_v57  ;;  %v385_v53 = vld [vmem:[%s2650_s19 + $0x290] sm:$0xff] }
 0x176   : > { %955 = vmatmul.bf16.gmra.mxu1 %v466_v52 }
 0x177   : > { %v1386_v56 = vpack.c.bf16 %v1252_v55, %v914_v54  ;;  %1124 = vmatmul.bf16.gmra.mxu2 %v465_v48  ;;  %v384_v54 = vld [vmem:[%s2650_s19 + $0x288] sm:$0xff]  ;;  %v386_v55 = vld [vmem:[%s2650_s19 + $0x298] sm:$0xff] }
 0x178   : > { %1293 = vmatmul.bf16.gmra.mxu3 %v466_v52  ;;  %v383_v52 = vld [vmem:[%s2650_s19 + $0x280] sm:$0xff] }
 0x179   : > { %1450 = vst [vmem:[%s2779_s14 + $0x88] sm:$0xff] %v1386_v56 }
 0x17a   : > { %v1085_v58 = vpop.f32.mrf.mxu2  ;;  %v749_v62 = vpop.f32.mrf.mxu0 }
 0x17b   : > { %v1086_v60 = vadd.f32 %v1085_v58, %v2771_v27  ;;  %v1254_v61 = vpop.f32.mrf.mxu3  ;;  %v918_v63 = vpop.f32.mrf.mxu1  ;;  %v750_v6 = vadd.f32 %v749_v62, %v2768_v22  ;;  %v471_v58 = vpack.c.bf16 %v385_v53, %v383_v52  ;;  %v472_v62 = vpack.c.bf16 %v386_v55, %v384_v54 }
 0x17d   : > { %v1255_v0 = vadd.f32 %v1254_v61, %v1086_v60  ;;  %v919_v14 = vadd.f32 %v918_v63, %v750_v6 }
 0x17f   : > { %v1387_v1 = vpack.c.bf16 %v1255_v0, %v917_v59 }
 0x181   : > { %1451 = vst [vmem:[%s2779_s14 + $0x90] sm:$0xff] %v1387_v1 }
 0x182   : > { %v1087_v7 = vpop.f32.mrf.mxu2  ;;  %v752_v11 = vpop.f32.mrf.mxu0 }
 0x183   : > { %v1088_v9 = vadd.f32 %v1087_v7, %v2771_v27  ;;  %v1256_v10 = vpop.f32.mrf.mxu3  ;;  %v921_v13 = vpop.f32.mrf.mxu1  ;;  %v753_v17 = vadd.f32 %v752_v11, %v2768_v22 }
 0x185   : > { %v1257_v15 = vadd.f32 %v1256_v10, %v1088_v9  ;;  %791 = vmatmul.bf16.gmra.mxu0 %v467_v8  ;;  %v922_v19 = vadd.f32 %v921_v13, %v753_v17  ;;  %v389_v13 = vld [vmem:[%s2650_s19 + $0x2b0] sm:$0xff] }
 0x186   : > { %960 = vmatmul.bf16.gmra.mxu1 %v468_v12 }
 0x187   : > { %v1388_v16 = vpack.c.bf16 %v1257_v15, %v919_v14  ;;  %1129 = vmatmul.bf16.gmra.mxu2 %v467_v8  ;;  %v388_v14 = vld [vmem:[%s2650_s19 + $0x2a8] sm:$0xff]  ;;  %v390_v15 = vld [vmem:[%s2650_s19 + $0x2b8] sm:$0xff] }
 0x188   : > { %1298 = vmatmul.bf16.gmra.mxu3 %v468_v12  ;;  %v387_v12 = vld [vmem:[%s2650_s19 + $0x2a0] sm:$0xff] }
 0x189   : > { %1452 = vst [vmem:[%s2779_s14 + $0x98] sm:$0xff] %v1388_v16 }
 0x18a   : > { %v1090_v18 = vpop.f32.mrf.mxu2  ;;  %v754_v23 = vpop.f32.mrf.mxu0 }
 0x18b   : > { %v1091_v20 = vadd.f32 %v1090_v18, %v2771_v27  ;;  %v1259_v21 = vpop.f32.mrf.mxu3  ;;  %v923_v24 = vpop.f32.mrf.mxu1  ;;  %v755_v32 = vadd.f32 %v754_v23, %v2768_v22  ;;  %v473_v18 = vpack.c.bf16 %v389_v13, %v387_v12  ;;  %v474_v23 = vpack.c.bf16 %v390_v15, %v388_v14 }
 0x18d   : > { %v1260_v25 = vadd.f32 %v1259_v21, %v1091_v20  ;;  %v924_v40 = vadd.f32 %v923_v24, %v755_v32 }
 0x18f   : > { %v1389_v26 = vpack.c.bf16 %v1260_v25, %v922_v19 }
 0x191   : > { %1453 = vst [vmem:[%s2779_s14 + $0xa0] sm:$0xff] %v1389_v26 }
 0x192   : > { %v1092_v33 = vpop.f32.mrf.mxu2  ;;  %v757_v37 = vpop.f32.mrf.mxu0 }
 0x193   : > { %v1093_v35 = vadd.f32 %v1092_v33, %v2771_v27  ;;  %v1261_v36 = vpop.f32.mrf.mxu3  ;;  %v926_v39 = vpop.f32.mrf.mxu1  ;;  %v758_v43 = vadd.f32 %v757_v37, %v2768_v22 }
 0x195   : > { %v1262_v41 = vadd.f32 %v1261_v36, %v1093_v35  ;;  %796 = vmatmul.bf16.gmra.mxu0 %v469_v34  ;;  %v927_v45 = vadd.f32 %v926_v39, %v758_v43  ;;  %v393_v39 = vld [vmem:[%s2650_s19 + $0x2d0] sm:$0xff] }
 0x196   : > { %965 = vmatmul.bf16.gmra.mxu1 %v470_v38 }
 0x197   : > { %v1390_v42 = vpack.c.bf16 %v1262_v41, %v924_v40  ;;  %1134 = vmatmul.bf16.gmra.mxu2 %v469_v34  ;;  %v392_v40 = vld [vmem:[%s2650_s19 + $0x2c8] sm:$0xff]  ;;  %v394_v41 = vld [vmem:[%s2650_s19 + $0x2d8] sm:$0xff] }
 0x198   : > { %1303 = vmatmul.bf16.gmra.mxu3 %v470_v38  ;;  %v391_v38 = vld [vmem:[%s2650_s19 + $0x2c0] sm:$0xff] }
 0x199   : > { %1454 = vst [vmem:[%s2779_s14 + $0xa8] sm:$0xff] %v1390_v42 }
 0x19a   : > { %v1095_v44 = vpop.f32.mrf.mxu2  ;;  %v759_v48 = vpop.f32.mrf.mxu0 }
 0x19b   : > { %v1096_v46 = vadd.f32 %v1095_v44, %v2771_v27  ;;  %v1264_v47 = vpop.f32.mrf.mxu3  ;;  %v928_v49 = vpop.f32.mrf.mxu1  ;;  %v760_v56 = vadd.f32 %v759_v48, %v2768_v22  ;;  %v475_v44 = vpack.c.bf16 %v393_v39, %v391_v38  ;;  %v476_v48 = vpack.c.bf16 %v394_v41, %v392_v40 }
 0x19d   : > { %v1265_v50 = vadd.f32 %v1264_v47, %v1096_v46  ;;  %v929_v0 = vadd.f32 %v928_v49, %v760_v56 }
 0x19f   : > { %v1391_v51 = vpack.c.bf16 %v1265_v50, %v927_v45 }
 0x1a1   : > { %1455 = vst [vmem:[%s2779_s14 + $0xb0] sm:$0xff] %v1391_v51 }
 0x1a2   : > { %v1097_v57 = vpop.f32.mrf.mxu2  ;;  %v762_v61 = vpop.f32.mrf.mxu0 }
 0x1a3   : > { %v1098_v59 = vadd.f32 %v1097_v57, %v2771_v27  ;;  %v1266_v60 = vpop.f32.mrf.mxu3  ;;  %v931_v63 = vpop.f32.mrf.mxu1  ;;  %v763_v3 = vadd.f32 %v762_v61, %v2768_v22 }
 0x1a5   : > { %v1267_v1 = vadd.f32 %v1266_v60, %v1098_v59  ;;  %801 = vmatmul.bf16.gmra.mxu0 %v471_v58  ;;  %v932_v5 = vadd.f32 %v931_v63, %v763_v3  ;;  %v397_v63 = vld [vmem:[%s2650_s19 + $0x2f0] sm:$0xff] }
 0x1a6   : > { %970 = vmatmul.bf16.gmra.mxu1 %v472_v62 }
 0x1a7   : > { %v1392_v2 = vpack.c.bf16 %v1267_v1, %v929_v0  ;;  %1139 = vmatmul.bf16.gmra.mxu2 %v471_v58  ;;  %v396_v0 = vld [vmem:[%s2650_s19 + $0x2e8] sm:$0xff]  ;;  %v398_v1 = vld [vmem:[%s2650_s19 + $0x2f8] sm:$0xff] }
 0x1a8   : > { %1308 = vmatmul.bf16.gmra.mxu3 %v472_v62  ;;  %v395_v62 = vld [vmem:[%s2650_s19 + $0x2e0] sm:$0xff] }
 0x1a9   : > { %1456 = vst [vmem:[%s2779_s14 + $0xb8] sm:$0xff] %v1392_v2 }
 0x1aa   : > { %v1100_v4 = vpop.f32.mrf.mxu2  ;;  %v764_v8 = vpop.f32.mrf.mxu0 }
 0x1ab   : > { %v1101_v6 = vadd.f32 %v1100_v4, %v2771_v27  ;;  %v1269_v7 = vpop.f32.mrf.mxu3  ;;  %v933_v9 = vpop.f32.mrf.mxu1  ;;  %v765_v16 = vadd.f32 %v764_v8, %v2768_v22  ;;  %v477_v4 = vpack.c.bf16 %v397_v63, %v395_v62  ;;  %v478_v8 = vpack.c.bf16 %v398_v1, %v396_v0 }
 0x1ad   : > { %v1270_v10 = vadd.f32 %v1269_v7, %v1101_v6  ;;  %v934_v25 = vadd.f32 %v933_v9, %v765_v16 }
 0x1af   : > { %v1393_v11 = vpack.c.bf16 %v1270_v10, %v932_v5 }
 0x1b1   : > { %1457 = vst [vmem:[%s2779_s14 + $0xc0] sm:$0xff] %v1393_v11 }
 0x1b2   : > { %v1102_v17 = vpop.f32.mrf.mxu2  ;;  %v767_v21 = vpop.f32.mrf.mxu0 }
 0x1b3   : > { %v1103_v19 = vadd.f32 %v1102_v17, %v2771_v27  ;;  %v1271_v20 = vpop.f32.mrf.mxu3  ;;  %v936_v24 = vpop.f32.mrf.mxu1  ;;  %v768_v29 = vadd.f32 %v767_v21, %v2768_v22 }
 0x1b5   : > { %v1272_v26 = vadd.f32 %v1271_v20, %v1103_v19  ;;  %806 = vmatmul.bf16.gmra.mxu0 %v473_v18  ;;  %v937_v31 = vadd.f32 %v936_v24, %v768_v29  ;;  %v401_v24 = vld [vmem:[%s2650_s19 + $0x310] sm:$0xff] }
 0x1b6   : > { %975 = vmatmul.bf16.gmra.mxu1 %v474_v23 }
 0x1b7   : > { %v1394_v28 = vpack.c.bf16 %v1272_v26, %v934_v25  ;;  %1144 = vmatmul.bf16.gmra.mxu2 %v473_v18  ;;  %v400_v25 = vld [vmem:[%s2650_s19 + $0x308] sm:$0xff]  ;;  %v402_v26 = vld [vmem:[%s2650_s19 + $0x318] sm:$0xff] }
 0x1b8   : > { %1313 = vmatmul.bf16.gmra.mxu3 %v474_v23  ;;  %v399_v23 = vld [vmem:[%s2650_s19 + $0x300] sm:$0xff] }
 0x1b9   : > { %1458 = vst [vmem:[%s2779_s14 + $0xc8] sm:$0xff] %v1394_v28 }
 0x1ba   : > { %v1105_v30 = vpop.f32.mrf.mxu2  ;;  %v769_v34 = vpop.f32.mrf.mxu0 }
 0x1bb   : > { %v1106_v32 = vadd.f32 %v1105_v30, %v2771_v27  ;;  %v1274_v33 = vpop.f32.mrf.mxu3  ;;  %v938_v35 = vpop.f32.mrf.mxu1  ;;  %v770_v42 = vadd.f32 %v769_v34, %v2768_v22  ;;  %v479_v30 = vpack.c.bf16 %v401_v24, %v399_v23  ;;  %v480_v34 = vpack.c.bf16 %v402_v26, %v400_v25 }
 0x1bd   : > { %v1275_v36 = vadd.f32 %v1274_v33, %v1106_v32  ;;  %v939_v50 = vadd.f32 %v938_v35, %v770_v42 }
 0x1bf   : > { %v1395_v37 = vpack.c.bf16 %v1275_v36, %v937_v31 }
 0x1c1   : > { %1459 = vst [vmem:[%s2779_s14 + $0xd0] sm:$0xff] %v1395_v37 }
 0x1c2   : > { %v1107_v43 = vpop.f32.mrf.mxu2  ;;  %v772_v47 = vpop.f32.mrf.mxu0 }
 0x1c3   : > { %v1108_v45 = vadd.f32 %v1107_v43, %v2771_v27  ;;  %v1276_v46 = vpop.f32.mrf.mxu3  ;;  %v941_v49 = vpop.f32.mrf.mxu1  ;;  %v773_v53 = vadd.f32 %v772_v47, %v2768_v22 }
 0x1c5   : > { %v1277_v51 = vadd.f32 %v1276_v46, %v1108_v45  ;;  %811 = vmatmul.bf16.gmra.mxu0 %v475_v44  ;;  %v942_v55 = vadd.f32 %v941_v49, %v773_v53  ;;  %v405_v49 = vld [vmem:[%s2650_s19 + $0x330] sm:$0xff] }
 0x1c6   : > { %980 = vmatmul.bf16.gmra.mxu1 %v476_v48 }
 0x1c7   : > { %v1396_v52 = vpack.c.bf16 %v1277_v51, %v939_v50  ;;  %1149 = vmatmul.bf16.gmra.mxu2 %v475_v44  ;;  %v404_v50 = vld [vmem:[%s2650_s19 + $0x328] sm:$0xff]  ;;  %v406_v51 = vld [vmem:[%s2650_s19 + $0x338] sm:$0xff] }
 0x1c8   : > { %1318 = vmatmul.bf16.gmra.mxu3 %v476_v48  ;;  %v403_v48 = vld [vmem:[%s2650_s19 + $0x320] sm:$0xff] }
 0x1c9   : > { %1460 = vst [vmem:[%s2779_s14 + $0xd8] sm:$0xff] %v1396_v52 }
 0x1ca   : > { %v1110_v54 = vpop.f32.mrf.mxu2  ;;  %v774_v58 = vpop.f32.mrf.mxu0 }
 0x1cb   : > { %v1111_v56 = vadd.f32 %v1110_v54, %v2771_v27  ;;  %v1279_v57 = vpop.f32.mrf.mxu3  ;;  %v943_v59 = vpop.f32.mrf.mxu1  ;;  %v775_v2 = vadd.f32 %v774_v58, %v2768_v22  ;;  %v481_v54 = vpack.c.bf16 %v405_v49, %v403_v48  ;;  %v482_v58 = vpack.c.bf16 %v406_v51, %v404_v50 }
 0x1cd   : > { %v1280_v60 = vadd.f32 %v1279_v57, %v1111_v56  ;;  %v944_v10 = vadd.f32 %v943_v59, %v775_v2 }
 0x1cf   : > { %v1397_v61 = vpack.c.bf16 %v1280_v60, %v942_v55 }
 0x1d1   : > { %1461 = vst [vmem:[%s2779_s14 + $0xe0] sm:$0xff] %v1397_v61 }
 0x1d2   : > { %v1112_v3 = vpop.f32.mrf.mxu2  ;;  %v777_v7 = vpop.f32.mrf.mxu0 }
 0x1d3   : > { %v1113_v5 = vadd.f32 %v1112_v3, %v2771_v27  ;;  %v1281_v6 = vpop.f32.mrf.mxu3  ;;  %v946_v9 = vpop.f32.mrf.mxu1  ;;  %v778_v13 = vadd.f32 %v777_v7, %v2768_v22 }
 0x1d5   : > { %v1282_v11 = vadd.f32 %v1281_v6, %v1113_v5  ;;  %816 = vmatmul.bf16.gmra.mxu0 %v477_v4  ;;  %v947_v15 = vadd.f32 %v946_v9, %v778_v13  ;;  %v409_v9 = vld [vmem:[%s2650_s19 + $0x350] sm:$0xff] }
 0x1d6   : > { %985 = vmatmul.bf16.gmra.mxu1 %v478_v8 }
 0x1d7   : > { %v1398_v12 = vpack.c.bf16 %v1282_v11, %v944_v10  ;;  %1154 = vmatmul.bf16.gmra.mxu2 %v477_v4  ;;  %v408_v10 = vld [vmem:[%s2650_s19 + $0x348] sm:$0xff]  ;;  %v410_v11 = vld [vmem:[%s2650_s19 + $0x358] sm:$0xff] }
 0x1d8   : > { %1323 = vmatmul.bf16.gmra.mxu3 %v478_v8  ;;  %v407_v8 = vld [vmem:[%s2650_s19 + $0x340] sm:$0xff] }
 0x1d9   : > { %1462 = vst [vmem:[%s2779_s14 + $0xe8] sm:$0xff] %v1398_v12 }
 0x1da   : > { %v1115_v14 = vpop.f32.mrf.mxu2  ;;  %v779_v18 = vpop.f32.mrf.mxu0 }
 0x1db   : > { %v1116_v16 = vadd.f32 %v1115_v14, %v2771_v27  ;;  %v1284_v17 = vpop.f32.mrf.mxu3  ;;  %v948_v19 = vpop.f32.mrf.mxu1  ;;  %v780_v28 = vadd.f32 %v779_v18, %v2768_v22  ;;  %v483_v14 = vpack.c.bf16 %v409_v9, %v407_v8  ;;  %v484_v18 = vpack.c.bf16 %v410_v11, %v408_v10 }
 0x1dd   : > { %v1285_v20 = vadd.f32 %v1284_v17, %v1116_v16  ;;  %v949_v36 = vadd.f32 %v948_v19, %v780_v28 }
 0x1df   : > { %v1399_v21 = vpack.c.bf16 %v1285_v20, %v947_v15 }
 0x1e1   : > { %1463 = vst [vmem:[%s2779_s14 + $0xf0] sm:$0xff] %v1399_v21 }
 0x1e2   : > { %v1117_v29 = vpop.f32.mrf.mxu2  ;;  %v782_v33 = vpop.f32.mrf.mxu0 }
 0x1e3   : > { %v1118_v31 = vadd.f32 %v1117_v29, %v2771_v27  ;;  %v1286_v32 = vpop.f32.mrf.mxu3  ;;  %v951_v35 = vpop.f32.mrf.mxu1  ;;  %v783_v39 = vadd.f32 %v782_v33, %v2768_v22 }
 0x1e5   : > { %v1287_v37 = vadd.f32 %v1286_v32, %v1118_v31  ;;  %821 = vmatmul.bf16.gmra.mxu0 %v479_v30  ;;  %v952_v41 = vadd.f32 %v951_v35, %v783_v39  ;;  %v413_v35 = vld [vmem:[%s2650_s19 + $0x370] sm:$0xff] }
 0x1e6   : > { %990 = vmatmul.bf16.gmra.mxu1 %v480_v34 }
 0x1e7   : > { %v1400_v38 = vpack.c.bf16 %v1287_v37, %v949_v36  ;;  %1159 = vmatmul.bf16.gmra.mxu2 %v479_v30  ;;  %v412_v36 = vld [vmem:[%s2650_s19 + $0x368] sm:$0xff]  ;;  %v414_v37 = vld [vmem:[%s2650_s19 + $0x378] sm:$0xff] }
 0x1e8   : > { %1328 = vmatmul.bf16.gmra.mxu3 %v480_v34  ;;  %v411_v34 = vld [vmem:[%s2650_s19 + $0x360] sm:$0xff] }
 0x1e9   : > { %1464 = vst [vmem:[%s2779_s14 + $0xf8] sm:$0xff] %v1400_v38 }
 0x1ea   : > { %v1120_v40 = vpop.f32.mrf.mxu2  ;;  %v784_v44 = vpop.f32.mrf.mxu0 }
 0x1eb   : > { %v1121_v42 = vadd.f32 %v1120_v40, %v2771_v27  ;;  %v1289_v43 = vpop.f32.mrf.mxu3  ;;  %v953_v45 = vpop.f32.mrf.mxu1  ;;  %v785_v52 = vadd.f32 %v784_v44, %v2768_v22  ;;  %v485_v40 = vpack.c.bf16 %v413_v35, %v411_v34  ;;  %v486_v44 = vpack.c.bf16 %v414_v37, %v412_v36 }
 0x1ed   : > { %v1290_v46 = vadd.f32 %v1289_v43, %v1121_v42  ;;  %v954_v60 = vadd.f32 %v953_v45, %v785_v52 }
 0x1ef   : > { %v1401_v47 = vpack.c.bf16 %v1290_v46, %v952_v41 }
 0x1f1   : > { %1465 = vst [vmem:[%s2779_s14 + $0x100] sm:$0xff] %v1401_v47 }
 0x1f2   : > { %v1122_v53 = vpop.f32.mrf.mxu2  ;;  %v787_v57 = vpop.f32.mrf.mxu0 }
 0x1f3   : > { %v1123_v55 = vadd.f32 %v1122_v53, %v2771_v27  ;;  %v1291_v56 = vpop.f32.mrf.mxu3  ;;  %v956_v59 = vpop.f32.mrf.mxu1  ;;  %v788_v63 = vadd.f32 %v787_v57, %v2768_v22 }
 0x1f5   : > { %v1292_v61 = vadd.f32 %v1291_v56, %v1123_v55  ;;  %826 = vmatmul.bf16.gmra.mxu0 %v481_v54  ;;  %v957_v1 = vadd.f32 %v956_v59, %v788_v63  ;;  %v417_v59 = vld [vmem:[%s2650_s19 + $0x390] sm:$0xff] }
 0x1f6   : > { %995 = vmatmul.bf16.gmra.mxu1 %v482_v58 }
 0x1f7   : > { %v1402_v62 = vpack.c.bf16 %v1292_v61, %v954_v60  ;;  %1164 = vmatmul.bf16.gmra.mxu2 %v481_v54  ;;  %v416_v60 = vld [vmem:[%s2650_s19 + $0x388] sm:$0xff]  ;;  %v418_v61 = vld [vmem:[%s2650_s19 + $0x398] sm:$0xff] }
 0x1f8   : > { %1333 = vmatmul.bf16.gmra.mxu3 %v482_v58  ;;  %v415_v58 = vld [vmem:[%s2650_s19 + $0x380] sm:$0xff] }
 0x1f9   : > { %1466 = vst [vmem:[%s2779_s14 + $0x108] sm:$0xff] %v1402_v62 }
 0x1fa   : > { %v1125_v0 = vpop.f32.mrf.mxu2  ;;  %v789_v4 = vpop.f32.mrf.mxu0 }
 0x1fb   : > { %v1126_v2 = vadd.f32 %v1125_v0, %v2771_v27  ;;  %v1294_v3 = vpop.f32.mrf.mxu3  ;;  %v958_v5 = vpop.f32.mrf.mxu1  ;;  %v790_v12 = vadd.f32 %v789_v4, %v2768_v22  ;;  %v487_v0 = vpack.c.bf16 %v417_v59, %v415_v58  ;;  %v488_v4 = vpack.c.bf16 %v418_v61, %v416_v60 }
 0x1fd   : > { %v1295_v6 = vadd.f32 %v1294_v3, %v1126_v2  ;;  %v959_v20 = vadd.f32 %v958_v5, %v790_v12 }
 0x1ff   : > { %v1403_v7 = vpack.c.bf16 %v1295_v6, %v957_v1 }
 0x201   : > { %1467 = vst [vmem:[%s2779_s14 + $0x110] sm:$0xff] %v1403_v7 }
 0x202   : > { %v1127_v13 = vpop.f32.mrf.mxu2  ;;  %v792_v17 = vpop.f32.mrf.mxu0 }
 0x203   : > { %v1128_v15 = vadd.f32 %v1127_v13, %v2771_v27  ;;  %v1296_v16 = vpop.f32.mrf.mxu3  ;;  %v961_v19 = vpop.f32.mrf.mxu1  ;;  %v793_v24 = vadd.f32 %v792_v17, %v2768_v22 }
 0x205   : > { %v1297_v21 = vadd.f32 %v1296_v16, %v1128_v15  ;;  %831 = vmatmul.bf16.gmra.mxu0 %v483_v14  ;;  %v962_v26 = vadd.f32 %v961_v19, %v793_v24  ;;  %v421_v19 = vld [vmem:[%s2650_s19 + $0x3b0] sm:$0xff] }
 0x206   : > { %1000 = vmatmul.bf16.gmra.mxu1 %v484_v18 }
 0x207   : > { %v1404_v23 = vpack.c.bf16 %v1297_v21, %v959_v20  ;;  %1169 = vmatmul.bf16.gmra.mxu2 %v483_v14  ;;  %v420_v20 = vld [vmem:[%s2650_s19 + $0x3a8] sm:$0xff]  ;;  %v422_v21 = vld [vmem:[%s2650_s19 + $0x3b8] sm:$0xff] }
 0x208   : > { %1338 = vmatmul.bf16.gmra.mxu3 %v484_v18  ;;  %v419_v18 = vld [vmem:[%s2650_s19 + $0x3a0] sm:$0xff] }
 0x209   : > { %1468 = vst [vmem:[%s2779_s14 + $0x118] sm:$0xff] %v1404_v23 }
 0x20a   : > { %v1130_v25 = vpop.f32.mrf.mxu2  ;;  %v794_v30 = vpop.f32.mrf.mxu0 }
 0x20b   : > { %v1131_v28 = vadd.f32 %v1130_v25, %v2771_v27  ;;  %v1299_v29 = vpop.f32.mrf.mxu3  ;;  %v963_v31 = vpop.f32.mrf.mxu1  ;;  %v795_v38 = vadd.f32 %v794_v30, %v2768_v22  ;;  %v489_v25 = vpack.c.bf16 %v421_v19, %v419_v18  ;;  %v490_v30 = vpack.c.bf16 %v422_v21, %v420_v20 }
 0x20d   : > { %v1300_v32 = vadd.f32 %v1299_v29, %v1131_v28  ;;  %v964_v46 = vadd.f32 %v963_v31, %v795_v38 }
 0x20f   : > { %v1405_v33 = vpack.c.bf16 %v1300_v32, %v962_v26 }
 0x211   : > { %1469 = vst [vmem:[%s2779_s14 + $0x120] sm:$0xff] %v1405_v33 }
 0x212   : > { %v1132_v39 = vpop.f32.mrf.mxu2  ;;  %v797_v43 = vpop.f32.mrf.mxu0 }
 0x213   : > { %v1133_v41 = vadd.f32 %v1132_v39, %v2771_v27  ;;  %v1301_v42 = vpop.f32.mrf.mxu3  ;;  %v966_v45 = vpop.f32.mrf.mxu1  ;;  %v798_v49 = vadd.f32 %v797_v43, %v2768_v22 }
 0x215   : > { %v1302_v47 = vadd.f32 %v1301_v42, %v1133_v41  ;;  %836 = vmatmul.bf16.gmra.mxu0 %v485_v40  ;;  %v967_v51 = vadd.f32 %v966_v45, %v798_v49  ;;  %v425_v45 = vld [vmem:[%s2650_s19 + $0x3d0] sm:$0xff] }
 0x216   : > { %1005 = vmatmul.bf16.gmra.mxu1 %v486_v44 }
 0x217   : > { %v1406_v48 = vpack.c.bf16 %v1302_v47, %v964_v46  ;;  %1174 = vmatmul.bf16.gmra.mxu2 %v485_v40  ;;  %v424_v46 = vld [vmem:[%s2650_s19 + $0x3c8] sm:$0xff]  ;;  %v426_v47 = vld [vmem:[%s2650_s19 + $0x3d8] sm:$0xff] }
 0x218   : > { %1343 = vmatmul.bf16.gmra.mxu3 %v486_v44  ;;  %v423_v44 = vld [vmem:[%s2650_s19 + $0x3c0] sm:$0xff] }
 0x219   : > { %1470 = vst [vmem:[%s2779_s14 + $0x128] sm:$0xff] %v1406_v48 }
 0x21a   : > { %v1135_v50 = vpop.f32.mrf.mxu2  ;;  %v799_v54 = vpop.f32.mrf.mxu0 }
 0x21b   : > { %v1136_v52 = vadd.f32 %v1135_v50, %v2771_v27  ;;  %v1304_v53 = vpop.f32.mrf.mxu3  ;;  %v968_v55 = vpop.f32.mrf.mxu1  ;;  %v800_v62 = vadd.f32 %v799_v54, %v2768_v22  ;;  %v491_v50 = vpack.c.bf16 %v425_v45, %v423_v44  ;;  %v492_v54 = vpack.c.bf16 %v426_v47, %v424_v46 }
 0x21d   : > { %v1305_v56 = vadd.f32 %v1304_v53, %v1136_v52  ;;  %v969_v6 = vadd.f32 %v968_v55, %v800_v62 }
 0x21f   : > { %v1407_v57 = vpack.c.bf16 %v1305_v56, %v967_v51 }
 0x221   : > { %1471 = vst [vmem:[%s2779_s14 + $0x130] sm:$0xff] %v1407_v57 }
 0x222   : > { %v1137_v63 = vpop.f32.mrf.mxu2  ;;  %v802_v3 = vpop.f32.mrf.mxu0 }
 0x223   : > { %v1138_v1 = vadd.f32 %v1137_v63, %v2771_v27  ;;  %v1306_v2 = vpop.f32.mrf.mxu3  ;;  %v971_v5 = vpop.f32.mrf.mxu1  ;;  %v803_v9 = vadd.f32 %v802_v3, %v2768_v22 }
 0x225   : > { %v1307_v7 = vadd.f32 %v1306_v2, %v1138_v1  ;;  %841 = vmatmul.bf16.gmra.mxu0 %v487_v0  ;;  %v972_v11 = vadd.f32 %v971_v5, %v803_v9  ;;  %v429_v5 = vld [vmem:[%s2650_s19 + $0x3f0] sm:$0xff] }
 0x226   : > { %1010 = vmatmul.bf16.gmra.mxu1 %v488_v4 }
 0x227   : > { %v1408_v8 = vpack.c.bf16 %v1307_v7, %v969_v6  ;;  %1179 = vmatmul.bf16.gmra.mxu2 %v487_v0  ;;  %v428_v6 = vld [vmem:[%s2650_s19 + $0x3e8] sm:$0xff]  ;;  %v430_v7 = vld [vmem:[%s2650_s19 + $0x3f8] sm:$0xff] }
 0x228   : > { %1348 = vmatmul.bf16.gmra.mxu3 %v488_v4  ;;  %v427_v4 = vld [vmem:[%s2650_s19 + $0x3e0] sm:$0xff] }
 0x229   : > { %1472 = vst [vmem:[%s2779_s14 + $0x138] sm:$0xff] %v1408_v8 }
 0x22a   : > { %v1140_v10 = vpop.f32.mrf.mxu2  ;;  %v804_v14 = vpop.f32.mrf.mxu0 }
 0x22b   : > { %v1141_v12 = vadd.f32 %v1140_v10, %v2771_v27  ;;  %v1309_v13 = vpop.f32.mrf.mxu3  ;;  %v973_v15 = vpop.f32.mrf.mxu1  ;;  %v805_v23 = vadd.f32 %v804_v14, %v2768_v22  ;;  %v493_v10 = vpack.c.bf16 %v429_v5, %v427_v4  ;;  %v494_v14 = vpack.c.bf16 %v430_v7, %v428_v6 }
 0x22d   : > { %v1310_v16 = vadd.f32 %v1309_v13, %v1141_v12  ;;  %v974_v32 = vadd.f32 %v973_v15, %v805_v23 }
 0x22f   : > { %v1409_v17 = vpack.c.bf16 %v1310_v16, %v972_v11 }
 0x231   : > { %1473 = vst [vmem:[%s2779_s14 + $0x140] sm:$0xff] %v1409_v17 }
 0x232   : > { %v1142_v24 = vpop.f32.mrf.mxu2  ;;  %v807_v29 = vpop.f32.mrf.mxu0 }
 0x233   : > { %v1143_v26 = vadd.f32 %v1142_v24, %v2771_v27  ;;  %v1311_v28 = vpop.f32.mrf.mxu3  ;;  %v976_v31 = vpop.f32.mrf.mxu1  ;;  %v808_v35 = vadd.f32 %v807_v29, %v2768_v22 }
 0x235   : > { %v1312_v33 = vadd.f32 %v1311_v28, %v1143_v26  ;;  %846 = vmatmul.bf16.gmra.mxu0 %v489_v25  ;;  %v977_v37 = vadd.f32 %v976_v31, %v808_v35 }
 0x236   : > { %1015 = vmatmul.bf16.gmra.mxu1 %v490_v30 }
 0x237   : > { %v1410_v34 = vpack.c.bf16 %v1312_v33, %v974_v32  ;;  %1184 = vmatmul.bf16.gmra.mxu2 %v489_v25 }
 0x238   : > { %1353 = vmatmul.bf16.gmra.mxu3 %v490_v30 }
 0x239   : > { %1474 = vst [vmem:[%s2779_s14 + $0x148] sm:$0xff] %v1410_v34 }
 0x23a   : > { %v1145_v36 = vpop.f32.mrf.mxu2  ;;  %v809_v40 = vpop.f32.mrf.mxu0 }
 0x23b   : > { %v1146_v38 = vadd.f32 %v1145_v36, %v2771_v27  ;;  %v1314_v39 = vpop.f32.mrf.mxu3  ;;  %v978_v41 = vpop.f32.mrf.mxu1  ;;  %v810_v48 = vadd.f32 %v809_v40, %v2768_v22 }
 0x23d   : > { %v1315_v42 = vadd.f32 %v1314_v39, %v1146_v38  ;;  %v979_v56 = vadd.f32 %v978_v41, %v810_v48 }
 0x23f   : > { %v1411_v43 = vpack.c.bf16 %v1315_v42, %v977_v37 }
 0x241   : > { %1475 = vst [vmem:[%s2779_s14 + $0x150] sm:$0xff] %v1411_v43 }
 0x242   : > { %v1147_v49 = vpop.f32.mrf.mxu2  ;;  %v812_v53 = vpop.f32.mrf.mxu0 }
 0x243   : > { %v1148_v51 = vadd.f32 %v1147_v49, %v2771_v27  ;;  %v1316_v52 = vpop.f32.mrf.mxu3  ;;  %v981_v55 = vpop.f32.mrf.mxu1  ;;  %v813_v59 = vadd.f32 %v812_v53, %v2768_v22 }
 0x245   : > { %v1317_v57 = vadd.f32 %v1316_v52, %v1148_v51  ;;  %851 = vmatmul.bf16.gmra.mxu0 %v491_v50  ;;  %v982_v61 = vadd.f32 %v981_v55, %v813_v59 }
 0x246   : > { %1020 = vmatmul.bf16.gmra.mxu1 %v492_v54 }
 0x247   : > { %v1412_v58 = vpack.c.bf16 %v1317_v57, %v979_v56  ;;  %1189 = vmatmul.bf16.gmra.mxu2 %v491_v50 }
 0x248   : > { %1358 = vmatmul.bf16.gmra.mxu3 %v492_v54 }
 0x249   : > { %1476 = vst [vmem:[%s2779_s14 + $0x158] sm:$0xff] %v1412_v58 }
 0x24a   : > { %v1150_v60 = vpop.f32.mrf.mxu2  ;;  %v814_v0 = vpop.f32.mrf.mxu0 }
 0x24b   : > { %v1151_v62 = vadd.f32 %v1150_v60, %v2771_v27  ;;  %v1319_v63 = vpop.f32.mrf.mxu3  ;;  %v983_v1 = vpop.f32.mrf.mxu1  ;;  %v815_v8 = vadd.f32 %v814_v0, %v2768_v22 }
 0x24d   : > { %v1320_v2 = vadd.f32 %v1319_v63, %v1151_v62  ;;  %v984_v16 = vadd.f32 %v983_v1, %v815_v8 }
 0x24f   : > { %v1413_v3 = vpack.c.bf16 %v1320_v2, %v982_v61 }
 0x251   : > { %1477 = vst [vmem:[%s2779_s14 + $0x160] sm:$0xff] %v1413_v3 }
 0x252   : > { %v1152_v9 = vpop.f32.mrf.mxu2  ;;  %v817_v13 = vpop.f32.mrf.mxu0 }
 0x253   : > { %v1153_v11 = vadd.f32 %v1152_v9, %v2771_v27  ;;  %v1321_v12 = vpop.f32.mrf.mxu3  ;;  %v986_v15 = vpop.f32.mrf.mxu1  ;;  %v818_v19 = vadd.f32 %v817_v13, %v2768_v22 }
 0x255   : > { %v1322_v17 = vadd.f32 %v1321_v12, %v1153_v11  ;;  %856 = vmatmul.bf16.gmra.mxu0 %v493_v10  ;;  %v987_v21 = vadd.f32 %v986_v15, %v818_v19 }
 0x256   : > { %1025 = vmatmul.bf16.gmra.mxu1 %v494_v14 }
 0x257   : > { %v1414_v18 = vpack.c.bf16 %v1322_v17, %v984_v16  ;;  %1194 = vmatmul.bf16.gmra.mxu2 %v493_v10 }
 0x258   : > { %1363 = vmatmul.bf16.gmra.mxu3 %v494_v14 }
 0x259   : > { %1478 = vst [vmem:[%s2779_s14 + $0x168] sm:$0xff] %v1414_v18 }
 0x25a   : > { %v1155_v20 = vpop.f32.mrf.mxu2  ;;  %v819_v25 = vpop.f32.mrf.mxu0 }
 0x25b   : > { %v1156_v23 = vadd.f32 %v1155_v20, %v2771_v27  ;;  %v1324_v24 = vpop.f32.mrf.mxu3  ;;  %v988_v26 = vpop.f32.mrf.mxu1  ;;  %v820_v30 = vadd.f32 %v819_v25, %v2768_v22 }
 0x25d   : > { %v1325_v28 = vadd.f32 %v1324_v24, %v1156_v23  ;;  %v989_v36 = vadd.f32 %v988_v26, %v820_v30 }
 0x25f   : > { %v1415_v29 = vpack.c.bf16 %v1325_v28, %v987_v21 }
 0x261   : > { %1479 = vst [vmem:[%s2779_s14 + $0x170] sm:$0xff] %v1415_v29 }
 0x262   : > { %v1157_v31 = vpop.f32.mrf.mxu2  ;;  %v822_v34 = vpop.f32.mrf.mxu0 }
 0x263   : > { %v1158_v32 = vadd.f32 %v1157_v31, %v2771_v27  ;;  %v1326_v33 = vpop.f32.mrf.mxu3  ;;  %v991_v35 = vpop.f32.mrf.mxu1  ;;  %v823_v39 = vadd.f32 %v822_v34, %v2768_v22 }
 0x265   : > { %v1327_v37 = vadd.f32 %v1326_v33, %v1158_v32  ;;  %v992_v41 = vadd.f32 %v991_v35, %v823_v39 }
 0x267   : > { %v1416_v38 = vpack.c.bf16 %v1327_v37, %v989_v36 }
 0x269   : > { %1480 = vst [vmem:[%s2779_s14 + $0x178] sm:$0xff] %v1416_v38 }
 0x26a   : > { %v1160_v40 = vpop.f32.mrf.mxu2  ;;  %v824_v44 = vpop.f32.mrf.mxu0 }
 0x26b   : > { %v1161_v42 = vadd.f32 %v1160_v40, %v2771_v27  ;;  %v1329_v43 = vpop.f32.mrf.mxu3  ;;  %v993_v45 = vpop.f32.mrf.mxu1  ;;  %v825_v48 = vadd.f32 %v824_v44, %v2768_v22 }
 0x26d   : > { %v1330_v46 = vadd.f32 %v1329_v43, %v1161_v42  ;;  %v994_v54 = vadd.f32 %v993_v45, %v825_v48 }
 0x26f   : > { %v1417_v47 = vpack.c.bf16 %v1330_v46, %v992_v41 }
 0x271   : > { %1481 = vst [vmem:[%s2779_s14 + $0x180] sm:$0xff] %v1417_v47 }
 0x272   : > { %v1162_v49 = vpop.f32.mrf.mxu2  ;;  %v827_v52 = vpop.f32.mrf.mxu0 }
 0x273   : > { %v1163_v50 = vadd.f32 %v1162_v49, %v2771_v27  ;;  %v1331_v51 = vpop.f32.mrf.mxu3  ;;  %v996_v53 = vpop.f32.mrf.mxu1  ;;  %v828_v57 = vadd.f32 %v827_v52, %v2768_v22 }
 0x275   : > { %v1332_v55 = vadd.f32 %v1331_v51, %v1163_v50  ;;  %v997_v59 = vadd.f32 %v996_v53, %v828_v57 }
 0x277   : > { %v1418_v56 = vpack.c.bf16 %v1332_v55, %v994_v54 }
 0x279   : > { %1482 = vst [vmem:[%s2779_s14 + $0x188] sm:$0xff] %v1418_v56 }
 0x27a   : > { %v1165_v58 = vpop.f32.mrf.mxu2  ;;  %v829_v62 = vpop.f32.mrf.mxu0 }
 0x27b   : > { %v1166_v60 = vadd.f32 %v1165_v58, %v2771_v27  ;;  %v1334_v61 = vpop.f32.mrf.mxu3  ;;  %v998_v63 = vpop.f32.mrf.mxu1  ;;  %v830_v2 = vadd.f32 %v829_v62, %v2768_v22 }
 0x27d   : > { %v1335_v0 = vadd.f32 %v1334_v61, %v1166_v60  ;;  %v999_v8 = vadd.f32 %v998_v63, %v830_v2 }
 0x27f   : > { %v1419_v1 = vpack.c.bf16 %v1335_v0, %v997_v59 }
 0x281   : > { %1483 = vst [vmem:[%s2779_s14 + $0x190] sm:$0xff] %v1419_v1 }
 0x282   : > { %v1167_v3 = vpop.f32.mrf.mxu2  ;;  %v832_v6 = vpop.f32.mrf.mxu0 }
 0x283   : > { %v1168_v4 = vadd.f32 %v1167_v3, %v2771_v27  ;;  %v1336_v5 = vpop.f32.mrf.mxu3  ;;  %v1001_v7 = vpop.f32.mrf.mxu1  ;;  %v833_v11 = vadd.f32 %v832_v6, %v2768_v22 }
 0x285   : > { %v1337_v9 = vadd.f32 %v1336_v5, %v1168_v4  ;;  %v1002_v13 = vadd.f32 %v1001_v7, %v833_v11 }
 0x287   : > { %v1420_v10 = vpack.c.bf16 %v1337_v9, %v999_v8 }
 0x289   : > { %1484 = vst [vmem:[%s2779_s14 + $0x198] sm:$0xff] %v1420_v10 }
 0x28a   : > { %v1170_v12 = vpop.f32.mrf.mxu2  ;;  %v834_v16 = vpop.f32.mrf.mxu0 }
 0x28b   : > { %v1171_v14 = vadd.f32 %v1170_v12, %v2771_v27  ;;  %v1339_v15 = vpop.f32.mrf.mxu3  ;;  %v1003_v17 = vpop.f32.mrf.mxu1  ;;  %v835_v20 = vadd.f32 %v834_v16, %v2768_v22 }
 0x28d   : > { %v1340_v18 = vadd.f32 %v1339_v15, %v1171_v14  ;;  %v1004_v28 = vadd.f32 %v1003_v17, %v835_v20 }
 0x28f   : > { %v1421_v19 = vpack.c.bf16 %v1340_v18, %v1002_v13 }
 0x291   : > { %1485 = vst [vmem:[%s2779_s14 + $0x1a0] sm:$0xff] %v1421_v19 }
 0x292   : > { %v1172_v21 = vpop.f32.mrf.mxu2  ;;  %v837_v25 = vpop.f32.mrf.mxu0 }
 0x293   : > { %v1173_v23 = vadd.f32 %v1172_v21, %v2771_v27  ;;  %v1341_v24 = vpop.f32.mrf.mxu3  ;;  %v1006_v26 = vpop.f32.mrf.mxu1  ;;  %v838_v31 = vadd.f32 %v837_v25, %v2768_v22 }
 0x295   : > { %v1342_v29 = vadd.f32 %v1341_v24, %v1173_v23  ;;  %v1007_v33 = vadd.f32 %v1006_v26, %v838_v31 }
 0x297   : > { %v1422_v30 = vpack.c.bf16 %v1342_v29, %v1004_v28 }
 0x299   : > { %1486 = vst [vmem:[%s2779_s14 + $0x1a8] sm:$0xff] %v1422_v30 }
 0x29a   : > { %v1175_v32 = vpop.f32.mrf.mxu2  ;;  %v839_v36 = vpop.f32.mrf.mxu0 }
 0x29b   : > { %v1176_v34 = vadd.f32 %v1175_v32, %v2771_v27  ;;  %v1344_v35 = vpop.f32.mrf.mxu3  ;;  %v1008_v37 = vpop.f32.mrf.mxu1  ;;  %v840_v40 = vadd.f32 %v839_v36, %v2768_v22 }
 0x29d   : > { %v1345_v38 = vadd.f32 %v1344_v35, %v1176_v34  ;;  %v1009_v46 = vadd.f32 %v1008_v37, %v840_v40 }
 0x29f   : > { %v1423_v39 = vpack.c.bf16 %v1345_v38, %v1007_v33 }
 0x2a1   : > { %1487 = vst [vmem:[%s2779_s14 + $0x1b0] sm:$0xff] %v1423_v39 }
 0x2a2   : > { %v1177_v41 = vpop.f32.mrf.mxu2  ;;  %v842_v44 = vpop.f32.mrf.mxu0 }
 0x2a3   : > { %v1178_v42 = vadd.f32 %v1177_v41, %v2771_v27  ;;  %v1346_v43 = vpop.f32.mrf.mxu3  ;;  %v1011_v45 = vpop.f32.mrf.mxu1  ;;  %v843_v49 = vadd.f32 %v842_v44, %v2768_v22 }
 0x2a5   : > { %v1347_v47 = vadd.f32 %v1346_v43, %v1178_v42  ;;  %v1012_v51 = vadd.f32 %v1011_v45, %v843_v49 }
 0x2a7   : > { %v1424_v48 = vpack.c.bf16 %v1347_v47, %v1009_v46 }
 0x2a9   : > { %1488 = vst [vmem:[%s2779_s14 + $0x1b8] sm:$0xff] %v1424_v48 }
 0x2aa   : > { %v1180_v50 = vpop.f32.mrf.mxu2  ;;  %v844_v54 = vpop.f32.mrf.mxu0 }
 0x2ab   : > { %v1181_v52 = vadd.f32 %v1180_v50, %v2771_v27  ;;  %v1349_v53 = vpop.f32.mrf.mxu3  ;;  %v1013_v55 = vpop.f32.mrf.mxu1  ;;  %v845_v58 = vadd.f32 %v844_v54, %v2768_v22 }
 0x2ad   : > { %v1350_v56 = vadd.f32 %v1349_v53, %v1181_v52  ;;  %v1014_v0 = vadd.f32 %v1013_v55, %v845_v58  ;;  %v1670_v58 = vld [vmem:[%s2779_s14 + $0x18] sm:$0xff] (%p2626_p3) }
 0x2ae   : > { %1671 = vst [vmem:[%s3068_s28 + $0x48] sm:$0xff] (%p2626_p3), %v1670_v58 }
 0x2af   : > { %v1425_v57 = vpack.c.bf16 %v1350_v56, %v1012_v51 }
 0x2b1   : > { %1489 = vst [vmem:[%s2779_s14 + $0x1c0] sm:$0xff] %v1425_v57  ;;  %v1668_v57 = vld [vmem:[%s2779_s14 + $0x10] sm:$0xff] (%p2626_p3) }
 0x2b2   : > { %v1182_v59 = vpop.f32.mrf.mxu2  ;;  %v847_v62 = vpop.f32.mrf.mxu0  ;;  %1669 = vst [vmem:[%s3068_s28 + $0x30] sm:$0xff] (%p2626_p3), %v1668_v57 }
 0x2b3   : > { %v1183_v60 = vadd.f32 %v1182_v59, %v2771_v27  ;;  %v1351_v61 = vpop.f32.mrf.mxu3  ;;  %v1016_v63 = vpop.f32.mrf.mxu1  ;;  %v848_v3 = vadd.f32 %v847_v62, %v2768_v22  ;;  %v1672_v59 = vld [vmem:[%s2779_s14 + $0x20] sm:$0xff] (%p2626_p3)  ;;  %v1678_v62 = vld [vmem:[%s2779_s14 + $0x38] sm:$0xff] (%p2626_p3) }
 0x2b4   : > { %1673 = vst [vmem:[%s3068_s28 + $0x60] sm:$0xff] (%p2626_p3), %v1672_v59 }
 0x2b5   : > { %v1352_v1 = vadd.f32 %v1351_v61, %v1183_v60  ;;  %v1017_v5 = vadd.f32 %v1016_v63, %v848_v3  ;;  %v1674_v60 = vld [vmem:[%s2779_s14 + $0x28] sm:$0xff] (%p2626_p3)  ;;  %v1676_v61 = vld [vmem:[%s2779_s14 + $0x30] sm:$0xff] (%p2626_p3)  ;;  %v1680_v63 = vld [vmem:[%s2779_s14 + $0x40] sm:$0xff] (%p2626_p3)  ;;  %1679 = vst [vmem:[%s3068_s28 + $0xa8] sm:$0xff] (%p2626_p3), %v1678_v62 }
 0x2b6   : > { %1675 = vst [vmem:[%s3068_s28 + $0x78] sm:$0xff] (%p2626_p3), %v1674_v60  ;;  %v1688_v3 = vld [vmem:[%s2779_s14 + $0x60] sm:$0xff] (%p2626_p3) }
 0x2b7   : > { %v1426_v2 = vpack.c.bf16 %v1352_v1, %v1014_v0  ;;  %1677 = vst [vmem:[%s3068_s28 + $0x90] sm:$0xff] (%p2626_p3), %v1676_v61  ;;  %v1682_v0 = vld [vmem:[%s2779_s14 + $0x48] sm:$0xff] (%p2626_p3)  ;;  %v1684_v1 = vld [vmem:[%s2779_s14 + $0x50] sm:$0xff] (%p2626_p3) }
 0x2b8   : > { %1681 = vst [vmem:[%s3068_s28 + $0xc0] sm:$0xff] (%p2626_p3), %v1680_v63 }
 0x2b9   : > { %1490 = vst [vmem:[%s2779_s14 + $0x1c8] sm:$0xff] %v1426_v2  ;;  %v1686_v2 = vld [vmem:[%s2779_s14 + $0x58] sm:$0xff] (%p2626_p3) }
 0x2ba   : > { %v1185_v4 = vpop.f32.mrf.mxu2  ;;  %v849_v8 = vpop.f32.mrf.mxu0  ;;  %1683 = vst [vmem:[%s3068_s28 + $0xd8] sm:$0xff] (%p2626_p3), %v1682_v0 }
 0x2bb   : > { %v1186_v6 = vadd.f32 %v1185_v4, %v2771_v27  ;;  %v1354_v7 = vpop.f32.mrf.mxu3  ;;  %v1018_v9 = vpop.f32.mrf.mxu1  ;;  %v850_v12 = vadd.f32 %v849_v8, %v2768_v22  ;;  %1685 = vst [vmem:[%s3068_s28 + $0xf0] sm:$0xff] (%p2626_p3), %v1684_v1  ;;  %v1690_v4 = vld [vmem:[%s2779_s14 + $0x68] sm:$0xff] (%p2626_p3) }
 0x2bc   : > { %1687 = vst [vmem:[%s3068_s28 + $0x108] sm:$0xff] (%p2626_p3), %v1686_v2  ;;  %v1698_v8 = vld [vmem:[%s2779_s14 + $0x88] sm:$0xff] (%p2626_p3) }
 0x2bd   : > { %v1355_v10 = vadd.f32 %v1354_v7, %v1186_v6  ;;  %v1019_v17 = vadd.f32 %v1018_v9, %v850_v12  ;;  %1689 = vst [vmem:[%s3068_s28 + $0x120] sm:$0xff] (%p2626_p3), %v1688_v3  ;;  %v1694_v6 = vld [vmem:[%s2779_s14 + $0x78] sm:$0xff] (%p2626_p3)  ;;  %v1696_v7 = vld [vmem:[%s2779_s14 + $0x80] sm:$0xff] (%p2626_p3)  ;;  %v1700_v9 = vld [vmem:[%s2779_s14 + $0x90] sm:$0xff] (%p2626_p3) }
 0x2be   : > { %1691 = vst [vmem:[%s3068_s28 + $0x138] sm:$0xff] (%p2626_p3), %v1690_v4  ;;  %v1706_v12 = vld [vmem:[%s2779_s14 + $0xa8] sm:$0xff] (%p2626_p3) }
 0x2bf   : > { %v1427_v11 = vpack.c.bf16 %v1355_v10, %v1017_v5  ;;  %v1692_v5 = vld [vmem:[%s2779_s14 + $0x70] sm:$0xff] (%p2626_p3)  ;;  %1695 = vst [vmem:[%s3068_s28 + $0x168] sm:$0xff] (%p2626_p3), %v1694_v6  ;;  %v1702_v10 = vld [vmem:[%s2779_s14 + $0x98] sm:$0xff] (%p2626_p3) }
 0x2c0   : > { %1693 = vst [vmem:[%s3068_s28 + $0x150] sm:$0xff] (%p2626_p3), %v1692_v5 }
 0x2c1   : > { %1491 = vst [vmem:[%s2779_s14 + $0x1d0] sm:$0xff] %v1427_v11  ;;  %v1704_v11 = vld [vmem:[%s2779_s14 + $0xa0] sm:$0xff] (%p2626_p3) }
 0x2c2   : > { %v1187_v13 = vpop.f32.mrf.mxu2  ;;  %v852_v16 = vpop.f32.mrf.mxu0  ;;  %1697 = vst [vmem:[%s3068_s28 + $0x180] sm:$0xff] (%p2626_p3), %v1696_v7 }
 0x2c3   : > { %v1188_v14 = vadd.f32 %v1187_v13, %v2771_v27  ;;  %v1356_v15 = vpop.f32.mrf.mxu3  ;;  %v1021_v19 = vpop.f32.mrf.mxu1  ;;  %v853_v21 = vadd.f32 %v852_v16, %v2768_v22  ;;  %1699 = vst [vmem:[%s3068_s28 + $0x198] sm:$0xff] (%p2626_p3), %v1698_v8  ;;  %v1708_v13 = vld [vmem:[%s2779_s14 + $0xb0] sm:$0xff] (%p2626_p3)  ;;  %v1714_v16 = vld [vmem:[%s2779_s14 + $0xc8] sm:$0xff] (%p2626_p3) }
 0x2c4   : > { %1701 = vst [vmem:[%s3068_s28 + $0x1b0] sm:$0xff] (%p2626_p3), %v1700_v9 }
 0x2c5   : > { %v1357_v18 = vadd.f32 %v1356_v15, %v1188_v14  ;;  %v1022_v24 = vadd.f32 %v1021_v19, %v853_v21  ;;  %1703 = vst [vmem:[%s3068_s28 + $0x1c8] sm:$0xff] (%p2626_p3), %v1702_v10  ;;  %v1710_v14 = vld [vmem:[%s2779_s14 + $0xb8] sm:$0xff] (%p2626_p3)  ;;  %v1712_v15 = vld [vmem:[%s2779_s14 + $0xc0] sm:$0xff] (%p2626_p3)  ;;  %v1724_v21 = vld [vmem:[%s2779_s14 + $0xf0] sm:$0xff] (%p2626_p3) }
 0x2c6   : > { %1705 = vst [vmem:[%s3068_s28 + $0x1e0] sm:$0xff] (%p2626_p3), %v1704_v11  ;;  %v1720_v19 = vld [vmem:[%s2779_s14 + $0xe0] sm:$0xff] (%p2626_p3) }
 0x2c7   : > { %v1428_v20 = vpack.c.bf16 %v1357_v18, %v1019_v17  ;;  %1707 = vst [vmem:[%s3068_s28 + $0x1f8] sm:$0xff] (%p2626_p3), %v1706_v12  ;;  %v1716_v17 = vld [vmem:[%s2779_s14 + $0xd0] sm:$0xff] (%p2626_p3)  ;;  %v1718_v18 = vld [vmem:[%s2779_s14 + $0xd8] sm:$0xff] (%p2626_p3) }
 0x2c8   : > { %1709 = vst [vmem:[%s3068_s28 + $0x210] sm:$0xff] (%p2626_p3), %v1708_v13 }
 0x2c9   : > { %1492 = vst [vmem:[%s2779_s14 + $0x1d8] sm:$0xff] %v1428_v20  ;;  %v1722_v20 = vld [vmem:[%s2779_s14 + $0xe8] sm:$0xff] (%p2626_p3) }
 0x2ca   : > { %v1190_v23 = vpop.f32.mrf.mxu2  ;;  %v854_v28 = vpop.f32.mrf.mxu0  ;;  %1711 = vst [vmem:[%s3068_s28 + $0x228] sm:$0xff] (%p2626_p3), %v1710_v14 }
 0x2cb   : > { %v1191_v25 = vadd.f32 %v1190_v23, %v2771_v27  ;;  %v1359_v26 = vpop.f32.mrf.mxu3  ;;  %v1023_v31 = vpop.f32.mrf.mxu1  ;;  %v855_v32 = vadd.f32 %v854_v28, %v2768_v22  ;;  %1713 = vst [vmem:[%s3068_s28 + $0x240] sm:$0xff] (%p2626_p3), %v1712_v15  ;;  %v1726_v23 = vld [vmem:[%s2779_s14 + $0xf8] sm:$0xff] (%p2626_p3) }
 0x2cc   : > { %1715 = vst [vmem:[%s3068_s28 + $0x258] sm:$0xff] (%p2626_p3), %v1714_v16  ;;  %v1734_v28 = vld [vmem:[%s2779_s14 + $0x118] sm:$0xff] (%p2626_p3) }
 0x2cd   : > { %v1360_v29 = vadd.f32 %v1359_v26, %v1191_v25  ;;  %v1024_v37 = vadd.f32 %v1023_v31, %v855_v32  ;;  %1717 = vst [vmem:[%s3068_s28 + $0x270] sm:$0xff] (%p2626_p3), %v1716_v17  ;;  %v1730_v25 = vld [vmem:[%s2779_s14 + $0x108] sm:$0xff] (%p2626_p3)  ;;  %v1732_v26 = vld [vmem:[%s2779_s14 + $0x110] sm:$0xff] (%p2626_p3)  ;;  %v1742_v32 = vld [vmem:[%s2779_s14 + $0x138] sm:$0xff] (%p2626_p3) }
 0x2ce   : > { %1719 = vst [vmem:[%s3068_s28 + $0x288] sm:$0xff] (%p2626_p3), %v1718_v18  ;;  %v1740_v31 = vld [vmem:[%s2779_s14 + $0x130] sm:$0xff] (%p2626_p3) }
 0x2cf   : > { %v1429_v30 = vpack.c.bf16 %v1360_v29, %v1022_v24  ;;  %1721 = vst [vmem:[%s3068_s28 + $0x2a0] sm:$0xff] (%p2626_p3), %v1720_v19  ;;  %v1728_v24 = vld [vmem:[%s2779_s14 + $0x100] sm:$0xff] (%p2626_p3) }
 0x2d0   : > { %1723 = vst [vmem:[%s3068_s28 + $0x2b8] sm:$0xff] (%p2626_p3), %v1722_v20  ;;  %v1736_v29 = vld [vmem:[%s2779_s14 + $0x120] sm:$0xff] (%p2626_p3) }
 0x2d1   : > { %1493 = vst [vmem:[%s2779_s14 + $0x1e0] sm:$0xff] %v1429_v30  ;;  %v1738_v30 = vld [vmem:[%s2779_s14 + $0x128] sm:$0xff] (%p2626_p3) }
 0x2d2   : > { %v1192_v33 = vpop.f32.mrf.mxu2  ;;  %v857_v36 = vpop.f32.mrf.mxu0  ;;  %1725 = vst [vmem:[%s3068_s28 + $0x2d0] sm:$0xff] (%p2626_p3), %v1724_v21 }
 0x2d3   : > { %v1193_v34 = vadd.f32 %v1192_v33, %v2771_v27  ;;  %v1361_v35 = vpop.f32.mrf.mxu3  ;;  %v858_v40 = vadd.f32 %v857_v36, %v2768_v22  ;;  %v1026_v41 = vpop.f32.mrf.mxu1  ;;  %1727 = vst [vmem:[%s3068_s28 + $0x2e8] sm:$0xff] (%p2626_p3), %v1726_v23  ;;  %v1744_v33 = vld [vmem:[%s2779_s14 + $0x140] sm:$0xff] (%p2626_p3)  ;;  %v1750_v36 = vld [vmem:[%s2779_s14 + $0x158] sm:$0xff] (%p2626_p3) }
 0x2d4   : > { %1729 = vst [vmem:[%s3068_s28 + $0x300] sm:$0xff] (%p2626_p3), %v1728_v24 }
 0x2d5   : > { %v1362_v38 = vadd.f32 %v1361_v35, %v1193_v34  ;;  %v1027_v43 = vadd.f32 %v1026_v41, %v858_v40  ;;  %1731 = vst [vmem:[%s3068_s28 + $0x318] sm:$0xff] (%p2626_p3), %v1730_v25  ;;  %v1746_v34 = vld [vmem:[%s2779_s14 + $0x148] sm:$0xff] (%p2626_p3)  ;;  %v1748_v35 = vld [vmem:[%s2779_s14 + $0x150] sm:$0xff] (%p2626_p3)  ;;  %v1758_v40 = vld [vmem:[%s2779_s14 + $0x178] sm:$0xff] (%p2626_p3) }
 0x2d6   : > { %1733 = vst [vmem:[%s3068_s28 + $0x330] sm:$0xff] (%p2626_p3), %v1732_v26  ;;  %v1760_v41 = vld [vmem:[%s2779_s14 + $0x180] sm:$0xff] (%p2626_p3) }
 0x2d7   : > { %v1430_v39 = vpack.c.bf16 %v1362_v38, %v1024_v37  ;;  %1735 = vst [vmem:[%s3068_s28 + $0x348] sm:$0xff] (%p2626_p3), %v1734_v28  ;;  %v1752_v37 = vld [vmem:[%s2779_s14 + $0x160] sm:$0xff] (%p2626_p3)  ;;  %v1754_v38 = vld [vmem:[%s2779_s14 + $0x168] sm:$0xff] (%p2626_p3) }
 0x2d8   : > { %1737 = vst [vmem:[%s3068_s28 + $0x360] sm:$0xff] (%p2626_p3), %v1736_v29 }
 0x2d9   : > { %1494 = vst [vmem:[%s2779_s14 + $0x1e8] sm:$0xff] %v1430_v39  ;;  %v1756_v39 = vld [vmem:[%s2779_s14 + $0x170] sm:$0xff] (%p2626_p3) }
 0x2da   : > { %v1195_v42 = vpop.f32.mrf.mxu2  ;;  %v859_v47 = vpop.f32.mrf.mxu0  ;;  %1739 = vst [vmem:[%s3068_s28 + $0x378] sm:$0xff] (%p2626_p3), %v1738_v30 }
 0x2db   : > { %v1196_v44 = vadd.f32 %v1195_v42, %v2771_v27  ;;  %v1364_v45 = vpop.f32.mrf.mxu3  ;;  %v860_v49 = vadd.f32 %v859_v47, %v2768_v22  ;;  %v1028_v52 = vpop.f32.mrf.mxu1  ;;  %v1664_v22 = vld [vmem:[%s2779_s14] sm:$0xff] (%p2626_p3)  ;;  %1741 = vst [vmem:[%s3068_s28 + $0x390] sm:$0xff] (%p2626_p3), %v1740_v31  ;;  %v1762_v42 = vld [vmem:[%s2779_s14 + $0x188] sm:$0xff] (%p2626_p3)  ;;  %v1772_v47 = vld [vmem:[%s2779_s14 + $0x1b0] sm:$0xff] (%p2626_p3) }
 0x2dc   : > { %1665 = vst [vmem:[%s3068_s28] sm:$0xff] (%p2626_p3), %v1664_v22 }
 0x2dd   : > { %v1365_v46 = vadd.f32 %v1364_v45, %v1196_v44  ;;  %v1029_v54 = vadd.f32 %v1028_v52, %v860_v49  ;;  %1743 = vst [vmem:[%s3068_s28 + $0x3a8] sm:$0xff] (%p2626_p3), %v1742_v32  ;;  %v1766_v44 = vld [vmem:[%s2779_s14 + $0x198] sm:$0xff] (%p2626_p3)  ;;  %v1768_v45 = vld [vmem:[%s2779_s14 + $0x1a0] sm:$0xff] (%p2626_p3) }
 0x2de   : > { %1745 = vst [vmem:[%s3068_s28 + $0x3c0] sm:$0xff] (%p2626_p3), %v1744_v33  ;;  %v1776_v49 = vld [vmem:[%s2779_s14 + $0x1c0] sm:$0xff] (%p2626_p3)  ;;  %v1782_v52 = vld [vmem:[%s2779_s14 + $0x1d8] sm:$0xff] (%p2626_p3) }
 0x2df   : > { %v1431_v48 = vpack.c.bf16 %v1365_v46, %v1027_v43  ;;  %1747 = vst [vmem:[%s3068_s28 + $0x3d8] sm:$0xff] (%p2626_p3), %v1746_v34  ;;  %v1764_v43 = vld [vmem:[%s2779_s14 + $0x190] sm:$0xff] (%p2626_p3)  ;;  %v1770_v46 = vld [vmem:[%s2779_s14 + $0x1a8] sm:$0xff] (%p2626_p3) }
 0x2e0   : > { %1749 = vst [vmem:[%s3068_s28 + $0x3f0] sm:$0xff] (%p2626_p3), %v1748_v35 }
 0x2e1   : > { %1495 = vst [vmem:[%s2779_s14 + $0x1f0] sm:$0xff] %v1431_v48  ;;  %v1774_v48 = vld [vmem:[%s2779_s14 + $0x1b8] sm:$0xff] (%p2626_p3) }
 0x2e2   : > { %v1197_v50 = vpop.f32.mrf.mxu2  ;;  %1751 = vst [vmem:[%s3068_s28 + $0x408] sm:$0xff] (%p2626_p3), %v1750_v36 }
 0x2e3   : > { %v1198_v51 = vadd.f32 %v1197_v50, %v2771_v27  ;;  %v1366_v53 = vpop.f32.mrf.mxu3  ;;  %v1666_v27 = vld [vmem:[%s2779_s14 + $0x8] sm:$0xff] (%p2626_p3)  ;;  %1753 = vst [vmem:[%s3068_s28 + $0x420] sm:$0xff] (%p2626_p3), %v1752_v37 }
 0x2e4   : > { %1667 = vst [vmem:[%s3068_s28 + $0x18] sm:$0xff] (%p2626_p3), %v1666_v27  ;;  %v1778_v50 = vld [vmem:[%s2779_s14 + $0x1c8] sm:$0xff] (%p2626_p3) }
 0x2e5   : > { %v1367_v55 = vadd.f32 %v1366_v53, %v1198_v51  ;;  %1503 = sbr.rel (!%p2626_p3) target bundleno = 761 (0x2f9), region = 48  ;;  %1755 = vst [vmem:[%s3068_s28 + $0x438] sm:$0xff] (%p2626_p3), %v1754_v38  ;;  %v1780_v51 = vld [vmem:[%s2779_s14 + $0x1d0] sm:$0xff] (%p2626_p3)  ;;  %v1784_v53 = vld [vmem:[%s2779_s14 + $0x1e0] sm:$0xff] (%p2626_p3) }
 0x2e6   : > { %1757 = vst [vmem:[%s3068_s28 + $0x450] sm:$0xff] (%p2626_p3), %v1756_v39 }
 0x2e7   : > { %v1432_v56 = vpack.c.bf16 %v1367_v55, %v1029_v54  ;;  %1759 = vst [vmem:[%s3068_s28 + $0x468] sm:$0xff] (%p2626_p3), %v1758_v40  ;;  %v1786_v54 = vld [vmem:[%s2779_s14 + $0x1e8] sm:$0xff] (%p2626_p3) }
 0x2e8   : > { %1761 = vst [vmem:[%s3068_s28 + $0x480] sm:$0xff] (%p2626_p3), %v1760_v41  ;;  %v1788_v55 = vld [vmem:[%s2779_s14 + $0x1f0] sm:$0xff] (%p2626_p3) }
 0x2e9   : > { %1496 = vst [vmem:[%s2779_s14 + $0x1f8] sm:$0xff] %v1432_v56 }
 0x2ea   : > { %1763 = vst [vmem:[%s3068_s28 + $0x498] sm:$0xff] %v1762_v42 }
 0x2eb   : > { %1765 = vst [vmem:[%s3068_s28 + $0x4b0] sm:$0xff] %v1764_v43 }
 0x2ec   : > { %1767 = vst [vmem:[%s3068_s28 + $0x4c8] sm:$0xff] %v1766_v44 }
 0x2ed   : > { %1769 = vst [vmem:[%s3068_s28 + $0x4e0] sm:$0xff] %v1768_v45 }
 0x2ee   : > { %1771 = vst [vmem:[%s3068_s28 + $0x4f8] sm:$0xff] %v1770_v46 }
 0x2ef   : > { %1773 = vst [vmem:[%s3068_s28 + $0x510] sm:$0xff] %v1772_v47 }
 0x2f0   : > { %1775 = vst [vmem:[%s3068_s28 + $0x528] sm:$0xff] %v1774_v48  ;;  %v1790_v56 = vld [vmem:[%s2779_s14 + $0x1f8] sm:$0xff] }
 0x2f1   : > { %1777 = vst [vmem:[%s3068_s28 + $0x540] sm:$0xff] %v1776_v49 }
 0x2f2   : > { %1779 = vst [vmem:[%s3068_s28 + $0x558] sm:$0xff] %v1778_v50 }
 0x2f3   : > { %1781 = vst [vmem:[%s3068_s28 + $0x570] sm:$0xff] %v1780_v51 }
 0x2f4   : > { %1783 = vst [vmem:[%s3068_s28 + $0x588] sm:$0xff] %v1782_v52 }
 0x2f5   : > { %1785 = vst [vmem:[%s3068_s28 + $0x5a0] sm:$0xff] %v1784_v53 }
 0x2f6   : > { %1787 = vst [vmem:[%s3068_s28 + $0x5b8] sm:$0xff] %v1786_v54 }
 0x2f7   : > { %1789 = vst [vmem:[%s3068_s28 + $0x5d0] sm:$0xff] %v1788_v55 }
 0x2f8   : > { %1791 = vst [vmem:[%s3068_s28 + $0x5e8] sm:$0xff] %v1790_v56 }
 0x2f9 PF: > { %s19_s24 = sadd.s32 1, %s2435_s24   ;;  %s3279_s12 = sld [smem:[#allocation11_spill]] }
 0x2fa   : > { %p3197_p4 = scmp.ge.s32.totalorder %s19_s24, 8   ;;  %s3280_s13 = sld [smem:[#allocation20_spill]] }
 0x2fb   : > { %s3281_s19 = sld [smem:[#allocation18_spill]]  ;;  %s3287_s14 = smov %s2399_s15 }
 0x2fc   : > { %s3282_s20 = sld [smem:[#allocation12_spill]]  ;;  %s3288_s15 = smov %s2403_s16 }
 0x2fd   : > { %s3283_s23 = sld [smem:[#allocation19_spill]]  ;;  %s3290_s17 = smov %s2411_s18 }
 0x2fe   : > { %s3284_s21 = sld [smem:[#allocation15_spill]] }
 0x2ff   : > { %s3285_s25 = sld [smem:[#allocation16_spill]] }
 0x300   : > { %s3286_s11 = sld [smem:[#allocation17_spill]] }
 0x301   : > { %s3289_s16 = smov %s3281_s19 }
 0x302   : > { %s3291_s18 = smov %s3282_s20  ;;  %s3293_s20 = smov %s2427_s22 }
 0x303   : > { %s3292_s19 = smov %s3283_s23  ;;  %18 = sbr.rel (!%p3197_p4) target bundleno = 13 (0xd), region = 134 }
 0x305   : > { %s3294_s22 = smov %s3285_s25 }
 0x306   : > { %s3295_s23 = smov %s3286_s11 }
 0x308   :  { %1807 = vsyncpa [#allocation4], 1 }
 0x309   :  { %1809 = vsyncpa [#allocation4 + $0x1], 1 }
 0x30a   :  { %1810 = vsyncpa [#allocation6], 1 }
 0x30b   :  { %1812 = vsyncpa [#allocation6 + $0x1], 1 }

// kernel: mha_causal_pallas.5
= control target key start
LH: loop header
LB: loop body
LE: loop exit
PB: predicated region body
PF: predicated region fallthrough
CT: control target
= control target key end

     0   :  { %8 = vsyncpa [#allocation4], 0  ;;  %s3140_s0 = inlined_call_operand.vmem [shape: bf16[1024,256], index: 0, kind: input, shape index: {}]   ;;  %s3141_s1 = inlined_call_operand.vmem [shape: bf16[256,256], index: 1, kind: input, shape index: {}]   ;;  %s3142_s2 = inlined_call_operand.vmem [shape: f32[1,256], index: 2, kind: input, shape index: {}]   ;;  %s3143_s3 = inlined_call_operand.hbm [shape: f32[1024,256], index: 3, kind: output, shape index: {}]  }
   0x1   :  { %10 = vsyncpa [#allocation4 + $0x1], 0  ;;  %s2452_s12 = smov 0   ;;  %s2454_s13 = smov 0  }
   0x2   :  { %s2456_s14 = smov 0   ;;  %s2458_s15 = smov 0  }
   0x3   :  { %s2460_s16 = smov 0   ;;  %s2462_s17 = smov 0  }
   0x4 LB: > { %s1793_s18 = sadd.s32 4294967295, %s2428_s17   ;;  %s1794_s19 = sadd.s32 4294967294, %s2428_s17   ;;  %s2428_s17 = sphi %s2462_s17, %s16_s17   ;;  %s2424_s16 = sphi %s2460_s16, %s3150_s16   ;;  %s2420_s15 = sphi %s2458_s15, %s3149_s15   ;;  %s2416_s14 = sphi %s2456_s14, %s3148_s14   ;;  %s2412_s13 = sphi %s2454_s13, %s3147_s13   ;;  %s2408_s12 = sphi %s2452_s12, %s3146_s12  }
   0x5   : > { %s35_s20 = sadd.s32 1, %s2424_s16  ;;  %s126_s21 = sadd.s32 1, %s2416_s14 }
   0x6   : > { %p37_p0 = scmp.ge.s32.totalorder %s35_s20, 2  ;;  %p136_p1 = scmp.ne.s32.totalorder %s2416_s14, %s2412_s13 }
   0x7   : > { %p137_p2 = scmp.eq.s32.totalorder %s1793_s18, 1  ;;  %p142_p3 = scmp.ne.s32.totalorder %s2412_s13, %s2408_s12 }
   0x8   : > { %s3152_s20 = smov (%p37_p0, %s35_s20), 0  ;;  %p143_p5 = scmp.eq.s32.totalorder %s1794_s19, 1 }
   0x9   : > { %p2492_p4 = por %p137_p2, %p136_p1  ;;  %s121_s23 = ssub.s32 %s2424_s16, %s3152_s20 }
   0xa   : > { %p1799_p6 = scmp.ge.s32.totalorder %s2428_s17, 1  ;;  %p124_p7 = scmp.eq.s32.totalorder %s121_s23, 0 }
   0xb   : > { %p2499_p8 = por %p143_p5, %p142_p3  ;;  %p199_p9 = scmp.lt.s32.totalorder %s2428_s17, 3 }
   0xc   : > { %s2505_s25 = scalar_select %p124_p7, %s2416_s14, %s126_s21  }
   0xd   : > { %p200_p10 = pnand %p1799_p6, %p199_p9 }
   0xe   : > { %s1801_s5 = sshll.u32 (!%p200_p10), %s2420_s15, 6  ;;  %s239_s23 = sand.u32 (!%p200_p10), 1, %s2412_s13  }
   0xf   : > { %203 = sbr.rel (%p200_p10) target bundleno = 699 (0x2bb), region = 32  ;;  %p244_p11 = scmp.lt.s32.totalorder (!%p200_p10), %s1801_s5, 127 }
  0x10   : > { %s1800_s26 = sshll.u32 (!%p200_p10), %s239_s23, 10  ;;  %s2292_s28 = sshll.u32 (!%p200_p10), %s2420_s15, 10 }
  0x11   : > { %s2752_s27 = scalar_lea.vmem (!%p200_p10), [#allocation3], %s1800_s26  ;;  %s1674_s4 = scalar_lea.hbm (!%p200_p10), %s3143_s3, %s2292_s28 }
  0x12   : > { %s1675_s6 = sshll.u32 (!%p200_p10), %s2752_s27, 4  ;;  %s1677_s7 = sshll.u32 (!%p200_p10), %s1674_s4, 4  ;;  %s1676_s6 = int_to_ptr.vmem [resolvable:$true] %s1675_s6  ;;  %s1678_s7 = int_to_ptr.hbm [resolvable:$true] %s1677_s7 }
  0x13   : > { %s1660_s15 = scalar_lea.sflag (!%p200_p10), [#allocation4], %s239_s23  ;;  %s2364_s8 = sshra.s32 (!%p200_p10), %s1678_s7, 4  ;;  %s2365_s8 = int_to_ptr.hbm [resolvable:$true] %s2364_s8 }
  0x14   : > { %v2118_v0 = vld [vmem:[%s3141_s1 + $0x70] sm:$0xf]  ;;  %v2274_v1 = vld [vmem:[%s3141_s1 + $0x74] sm:$0xf0]  ;;  %v2273_v5 = vld [vmem:[%s3141_s1 + $0x74] sm:$0xf]  ;;  %p2371_p1 = scmp.lt.s32.totalorder %s2365_s8, %s3143_s3 }
  0x15   : > { %v2182_v2 = vld [vmem:[%s3141_s1 + $0xf0] sm:$0xf]  ;;  %v2119_v3 = vor.u32 %v2274_v1, %v2118_v0  ;;  %v2290_v4 = vld [vmem:[%s3141_s1 + $0xf4] sm:$0xf0]  ;;  %v2120_v6 = vld [vmem:[%s3141_s1 + $0x78] sm:$0xf0] }
  0x16   : > { %v2183_v7 = vor.u32 %v2290_v4, %v2182_v2  ;;  %v2123_v8 = vor.u32 %v2273_v5, %v2120_v6  ;;  %v2289_v9 = vld [vmem:[%s3141_s1 + $0xf4] sm:$0xf]  ;;  %v2184_v10 = vld [vmem:[%s3141_s1 + $0xf8] sm:$0xf0]  ;;  %v2110_v11 = vld [vmem:[%s3141_s1 + $0x60] sm:$0xf] }
  0x17   : > { %855 = vmatpush.bf16.msra.mxu0 %v2119_v3  ;;  %v2187_v12 = vor.u32 %v2289_v9, %v2184_v10  ;;  %v2272_v13 = vld [vmem:[%s3141_s1 + $0x64] sm:$0xf0]  ;;  %v2174_v14 = vld [vmem:[%s3141_s1 + $0xe0] sm:$0xf]  ;;  %v2271_v18 = vld [vmem:[%s3141_s1 + $0x64] sm:$0xf] }
  0x18   : > { %v2288_v15 = vld [vmem:[%s3141_s1 + $0xe4] sm:$0xf0]  ;;  %1024 = vmatpush.bf16.msra.mxu1 %v2183_v7  ;;  %1193 = vmatpush.bf16.msra.mxu2 %v2123_v8  ;;  %v2111_v16 = vor.u32 %v2272_v13, %v2110_v11  ;;  %v2112_v19 = vld [vmem:[%s3141_s1 + $0x68] sm:$0xf0]  ;;  %v2287_v20 = vld [vmem:[%s3141_s1 + $0xe4] sm:$0xf] }
  0x19   : > { %v2175_v17 = vor.u32 %v2288_v15, %v2174_v14  ;;  %1362 = vmatpush.bf16.msra.mxu3 %v2187_v12  ;;  %v2115_v21 = vor.u32 %v2271_v18, %v2112_v19  ;;  %v2176_v22 = vld [vmem:[%s3141_s1 + $0xe8] sm:$0xf0]  ;;  %v2102_v23 = vld [vmem:[%s3141_s1 + $0x50] sm:$0xf]  ;;  %v2270_v24 = vld [vmem:[%s3141_s1 + $0x54] sm:$0xf0] }
  0x1a   : > { %v2179_v25 = vor.u32 %v2287_v20, %v2176_v22  ;;  %v2166_v26 = vld [vmem:[%s3141_s1 + $0xd0] sm:$0xf]  ;;  %v2286_v27 = vld [vmem:[%s3141_s1 + $0xd4] sm:$0xf0]  ;;  %v2269_v28 = vld [vmem:[%s3141_s1 + $0x54] sm:$0xf]  ;;  %v2103_v29 = vor.u32 %v2270_v24, %v2102_v23 }
  0x1b   : > { %856 = vmatpush.bf16.msra.mxu0 %v2111_v16  ;;  %v2104_v30 = vld [vmem:[%s3141_s1 + $0x58] sm:$0xf0]  ;;  %v2285_v31 = vld [vmem:[%s3141_s1 + $0xd4] sm:$0xf]  ;;  %v2167_v33 = vor.u32 %v2286_v27, %v2166_v26  ;;  %v2094_v35 = vld [vmem:[%s3141_s1 + $0x40] sm:$0xf] }
  0x1c   : > { %v2168_v32 = vld [vmem:[%s3141_s1 + $0xd8] sm:$0xf0]  ;;  %1025 = vmatpush.bf16.msra.mxu1 %v2175_v17  ;;  %1194 = vmatpush.bf16.msra.mxu2 %v2115_v21  ;;  %v2107_v34 = vor.u32 %v2269_v28, %v2104_v30  ;;  %v2268_v36 = vld [vmem:[%s3141_s1 + $0x44] sm:$0xf0]  ;;  %v2158_v37 = vld [vmem:[%s3141_s1 + $0xc0] sm:$0xf] }
  0x1d   : > { %1363 = vmatpush.bf16.msra.mxu3 %v2179_v25  ;;  %v2171_v38 = vor.u32 %v2285_v31, %v2168_v32  ;;  %v2284_v39 = vld [vmem:[%s3141_s1 + $0xc4] sm:$0xf0]  ;;  %v2267_v40 = vld [vmem:[%s3141_s1 + $0x44] sm:$0xf]  ;;  %v2096_v41 = vld [vmem:[%s3141_s1 + $0x48] sm:$0xf0]  ;;  %v2095_v44 = vor.u32 %v2268_v36, %v2094_v35 }
  0x1e   : > { %v2283_v42 = vld [vmem:[%s3141_s1 + $0xc4] sm:$0xf]  ;;  %v2160_v43 = vld [vmem:[%s3141_s1 + $0xc8] sm:$0xf0]  ;;  %v2159_v45 = vor.u32 %v2284_v39, %v2158_v37  ;;  %v2099_v46 = vor.u32 %v2267_v40, %v2096_v41  ;;  %v2086_v47 = vld [vmem:[%s3141_s1 + $0x30] sm:$0xf] }
  0x1f   : > { %857 = vmatpush.bf16.msra.mxu0 %v2103_v29  ;;  %v2266_v48 = vld [vmem:[%s3141_s1 + $0x34] sm:$0xf0]  ;;  %v2150_v49 = vld [vmem:[%s3141_s1 + $0xb0] sm:$0xf]  ;;  %v2163_v50 = vor.u32 %v2283_v42, %v2160_v43  ;;  %v2265_v52 = vld [vmem:[%s3141_s1 + $0x34] sm:$0xf] }
  0x20   : > { %1026 = vmatpush.bf16.msra.mxu1 %v2167_v33  ;;  %1195 = vmatpush.bf16.msra.mxu2 %v2107_v34  ;;  %v2282_v51 = vld [vmem:[%s3141_s1 + $0xb4] sm:$0xf0]  ;;  %v2088_v53 = vld [vmem:[%s3141_s1 + $0x38] sm:$0xf0]  ;;  %v2281_v54 = vld [vmem:[%s3141_s1 + $0xb4] sm:$0xf]  ;;  %v2087_v56 = vor.u32 %v2266_v48, %v2086_v47 }
  0x21   : > { %1364 = vmatpush.bf16.msra.mxu3 %v2171_v38  ;;  %v2152_v55 = vld [vmem:[%s3141_s1 + $0xb8] sm:$0xf0]  ;;  %v2151_v57 = vor.u32 %v2282_v51, %v2150_v49  ;;  %v2091_v58 = vor.u32 %v2265_v52, %v2088_v53  ;;  %v2078_v59 = vld [vmem:[%s3141_s1 + $0x20] sm:$0xf]  ;;  %v2264_v60 = vld [vmem:[%s3141_s1 + $0x24] sm:$0xf0] }
  0x22   : > { %v2142_v61 = vld [vmem:[%s3141_s1 + $0xa0] sm:$0xf]  ;;  %v2155_v62 = vor.u32 %v2281_v54, %v2152_v55  ;;  %v2280_v63 = vld [vmem:[%s3141_s1 + $0xa4] sm:$0xf0]  ;;  %v2263_v0 = vld [vmem:[%s3141_s1 + $0x24] sm:$0xf]  ;;  %v2079_v4 = vor.u32 %v2264_v60, %v2078_v59 }
  0x23   : > { %858 = vmatpush.bf16.msra.mxu0 %v2095_v44  ;;  %v2080_v1 = vld [vmem:[%s3141_s1 + $0x28] sm:$0xf0]  ;;  %v2279_v2 = vld [vmem:[%s3141_s1 + $0xa4] sm:$0xf]  ;;  %v2070_v5 = vld [vmem:[%s3141_s1 + $0x10] sm:$0xf]  ;;  %v2143_v6 = vor.u32 %v2280_v63, %v2142_v61 }
  0x24   : > { %1027 = vmatpush.bf16.msra.mxu1 %v2159_v45  ;;  %1196 = vmatpush.bf16.msra.mxu2 %v2099_v46  ;;  %v2144_v3 = vld [vmem:[%s3141_s1 + $0xa8] sm:$0xf0]  ;;  %v2083_v7 = vor.u32 %v2263_v0, %v2080_v1  ;;  %v2262_v8 = vld [vmem:[%s3141_s1 + $0x14] sm:$0xf0]  ;;  %v2134_v9 = vld [vmem:[%s3141_s1 + $0x90] sm:$0xf] }
  0x25   : > { %1365 = vmatpush.bf16.msra.mxu3 %v2163_v50  ;;  %v2278_v10 = vld [vmem:[%s3141_s1 + $0x94] sm:$0xf0]  ;;  %v2147_v11 = vor.u32 %v2279_v2, %v2144_v3  ;;  %v2261_v12 = vld [vmem:[%s3141_s1 + $0x14] sm:$0xf]  ;;  %v2072_v13 = vld [vmem:[%s3141_s1 + $0x18] sm:$0xf0]  ;;  %v2071_v16 = vor.u32 %v2262_v8, %v2070_v5 }
  0x26   : > { %v2277_v14 = vld [vmem:[%s3141_s1 + $0x94] sm:$0xf]  ;;  %v2136_v15 = vld [vmem:[%s3141_s1 + $0x98] sm:$0xf0]  ;;  %v2062_v17 = vld [vmem:[%s3141_s1] sm:$0xf]  ;;  %v2135_v18 = vor.u32 %v2278_v10, %v2134_v9  ;;  %v2075_v19 = vor.u32 %v2261_v12, %v2072_v13 }
  0x27   : > { %859 = vmatpush.bf16.msra.mxu0 %v2087_v56  ;;  %v2260_v20 = vld [vmem:[%s3141_s1 + $0x4] sm:$0xf0]  ;;  %v2126_v21 = vld [vmem:[%s3141_s1 + $0x80] sm:$0xf]  ;;  %s3154_s5 = smov (!%p244_p11, %s1801_s5), 127  ;;  %v2139_v22 = vor.u32 %v2277_v14, %v2136_v15  ;;  %s2366_s9 = scalar_lea.hbm %s2365_s8, 1024 }
  0x28   : > { %1028 = vmatpush.bf16.msra.mxu1 %v2151_v57  ;;  %1197 = vmatpush.bf16.msra.mxu2 %v2091_v58  ;;  %v2276_v23 = vld [vmem:[%s3141_s1 + $0x84] sm:$0xf0]  ;;  %v2259_v24 = vld [vmem:[%s3141_s1 + $0x4] sm:$0xf]  ;;  %v2064_v25 = vld [vmem:[%s3141_s1 + $0x8] sm:$0xf0]  ;;  %v2063_v28 = vor.u32 %v2260_v20, %v2062_v17  ;;  %p2367_p12 = scmp.ne.s32.totalorder %s2365_s8, %s2366_s9 }
  0x29   : > { %1366 = vmatpush.bf16.msra.mxu3 %v2155_v62  ;;  %v2275_v26 = vld [vmem:[%s3141_s1 + $0x84] sm:$0xf]  ;;  %v2128_v27 = vld [vmem:[%s3141_s1 + $0x88] sm:$0xf0]  ;;  %s2194_s10 = sshll.u32 %s3154_s5, 3  ;;  %v2127_v29 = vor.u32 %v2276_v23, %v2126_v21  ;;  %v2067_v30 = vor.u32 %v2259_v24, %v2064_v25  ;;  %s2370_s18 = scalar_lea.hbm %s3143_s3, 2048 }
  0x2a   : > { %s2703_s19 = scalar_lea.vmem %s3140_s0, %s2194_s10  ;;  %v2131_v34 = vor.u32 %v2275_v26, %v2128_v27  ;;  %p2368_p13 = pnand %p2367_p12, %p2492_p4 }
  0x2b   : > { %860 = vmatpush.bf16.msra.mxu0 %v2079_v4  ;;  %v1806_v31 = vld [vmem:[%s2703_s19] sm:$0xf]  ;;  %v2196_v32 = vld [vmem:[%s2703_s19 + $0x4] sm:$0xf0]  ;;  %v2195_v33 = vld [vmem:[%s2703_s19 + $0x4] sm:$0xf]  ;;  %p2372_p2 = scmp.lt.s32.totalorder %s2370_s18, %s2366_s9 }
  0x2c   : > { %1029 = vmatpush.bf16.msra.mxu1 %v2143_v6  ;;  %1198 = vmatpush.bf16.msra.mxu2 %v2083_v7  ;;  %v1808_v35 = vld [vmem:[%s2703_s19 + $0x8] sm:$0xf0]  ;;  %v1807_v36 = vor.u32 %v2196_v32, %v1806_v31  ;;  %v1814_v38 = vld [vmem:[%s2703_s19 + $0x10] sm:$0xf]  ;;  %v2198_v39 = vld [vmem:[%s2703_s19 + $0x14] sm:$0xf0]  ;;  %p2369_p0 = pneg %p2368_p13 }
  0x2d   : > { %1367 = vmatpush.bf16.msra.mxu3 %v2147_v11  ;;  %v1811_v37 = vor.u32 %v2195_v33, %v1808_v35  ;;  %v2197_v40 = vld [vmem:[%s2703_s19 + $0x14] sm:$0xf]  ;;  %v1816_v41 = vld [vmem:[%s2703_s19 + $0x18] sm:$0xf0]  ;;  %v1815_v42 = vor.u32 %v2198_v39, %v1814_v38  ;;  %v1822_v44 = vld [vmem:[%s2703_s19 + $0x20] sm:$0xf]  ;;  %p2373_p3 = por %p2372_p2, %p2371_p1 }
  0x2e   : > { %v1819_v43 = vor.u32 %v2197_v40, %v1816_v41  ;;  %v2200_v45 = vld [vmem:[%s2703_s19 + $0x24] sm:$0xf0]  ;;  %v2199_v46 = vld [vmem:[%s2703_s19 + $0x24] sm:$0xf]  ;;  %v1824_v47 = vld [vmem:[%s2703_s19 + $0x28] sm:$0xf0] }
  0x2f   : > { %861 = vmatpush.bf16.msra.mxu0 %v2071_v16  ;;  %v1823_v48 = vor.u32 %v2200_v45, %v1822_v44  ;;  %v1827_v49 = vor.u32 %v2199_v46, %v1824_v47  ;;  %v1830_v50 = vld [vmem:[%s2703_s19 + $0x30] sm:$0xf]  ;;  %v2202_v51 = vld [vmem:[%s2703_s19 + $0x34] sm:$0xf0]  ;;  %v2201_v52 = vld [vmem:[%s2703_s19 + $0x34] sm:$0xf]  ;;  %p2374_p5 = pnand %p2373_p3, %p2369_p0 }
  0x30   : > { %1030 = vmatpush.bf16.msra.mxu1 %v2135_v18  ;;  %1199 = vmatpush.bf16.msra.mxu2 %v2075_v19  ;;  %v1832_v53 = vld [vmem:[%s2703_s19 + $0x38] sm:$0xf0]  ;;  %v1831_v54 = vor.u32 %v2202_v51, %v1830_v50  ;;  %v1838_v56 = vld [vmem:[%s2703_s19 + $0x40] sm:$0xf]  ;;  %v2204_v57 = vld [vmem:[%s2703_s19 + $0x44] sm:$0xf0] }
  0x31   : > { %1368 = vmatpush.bf16.msra.mxu3 %v2139_v22  ;;  %v1835_v55 = vor.u32 %v2201_v52, %v1832_v53  ;;  %v2203_v58 = vld [vmem:[%s2703_s19 + $0x44] sm:$0xf]  ;;  %v1840_v59 = vld [vmem:[%s2703_s19 + $0x48] sm:$0xf0]  ;;  %v1839_v60 = vor.u32 %v2204_v57, %v1838_v56  ;;  %v1846_v62 = vld [vmem:[%s2703_s19 + $0x50] sm:$0xf] }
  0x32   : > { %v1843_v61 = vor.u32 %v2203_v58, %v1840_v59  ;;  %v2206_v63 = vld [vmem:[%s2703_s19 + $0x54] sm:$0xf0]  ;;  %v2205_v0 = vld [vmem:[%s2703_s19 + $0x54] sm:$0xf]  ;;  %v1848_v1 = vld [vmem:[%s2703_s19 + $0x58] sm:$0xf0] }
  0x33   : > { %862 = vmatpush.bf16.msra.mxu0 %v2063_v28  ;;  %v1847_v2 = vor.u32 %v2206_v63, %v1846_v62  ;;  %v1851_v3 = vor.u32 %v2205_v0, %v1848_v1  ;;  %v1854_v4 = vld [vmem:[%s2703_s19 + $0x60] sm:$0xf]  ;;  %v2208_v5 = vld [vmem:[%s2703_s19 + $0x64] sm:$0xf0]  ;;  %v2207_v6 = vld [vmem:[%s2703_s19 + $0x64] sm:$0xf] }
  0x34   : > { %1031 = vmatpush.bf16.msra.mxu1 %v2127_v29  ;;  %1200 = vmatpush.bf16.msra.mxu2 %v2067_v30  ;;  %v1856_v7 = vld [vmem:[%s2703_s19 + $0x68] sm:$0xf0]  ;;  %v1855_v8 = vor.u32 %v2208_v5, %v1854_v4  ;;  %v1862_v10 = vld [vmem:[%s2703_s19 + $0x70] sm:$0xf]  ;;  %v2210_v11 = vld [vmem:[%s2703_s19 + $0x74] sm:$0xf0] }
  0x35   : > { %1369 = vmatpush.bf16.msra.mxu3 %v2131_v34  ;;  %v1859_v9 = vor.u32 %v2207_v6, %v1856_v7  ;;  %v2209_v12 = vld [vmem:[%s2703_s19 + $0x74] sm:$0xf]  ;;  %v1864_v13 = vld [vmem:[%s2703_s19 + $0x78] sm:$0xf0]  ;;  %v1863_v14 = vor.u32 %v2210_v11, %v1862_v10  ;;  %v369_v16 = vld [vmem:[%s3142_s2] sm:$0x3] }
  0x36   : > { %863 = vmatmul.bf16.vlgmr.msra.gmra.mxu0 %v1807_v36  ;;  %v1867_v15 = vor.u32 %v2209_v12, %v1864_v13  ;;  %v1870_v17 = vld [vmem:[%s2703_s19 + $0x80] sm:$0xf]  ;;  %v2212_v18 = vld [vmem:[%s2703_s19 + $0x84] sm:$0xf0]  ;;  %v2743_v19 = vperm.slane %v369_v16, 0  ;;  %v2750_v28 = vperm.slane %v369_v16, 1 }
  0x37   : > { %1032 = vmatmul.bf16.vlgmr.msra.gmra.mxu1 %v1811_v37  ;;  %1201 = vmatmul.bf16.vlgmr.msra.gmra.mxu2 %v1807_v36  ;;  %v2211_v20 = vld [vmem:[%s2703_s19 + $0x84] sm:$0xf]  ;;  %v1872_v21 = vld [vmem:[%s2703_s19 + $0x88] sm:$0xf0]  ;;  %v1871_v22 = vor.u32 %v2212_v18, %v1870_v17  ;;  %v2214_v38 = vld [vmem:[%s2703_s19 + $0x94] sm:$0xf0] }
  0x38   : > { %1370 = vmatmul.bf16.vlgmr.msra.gmra.mxu3 %v1811_v37  ;;  %v1875_v24 = vor.u32 %v2211_v20, %v1872_v21  ;;  %v1878_v37 = vld [vmem:[%s2703_s19 + $0x90] sm:$0xf]  ;;  %v2213_v39 = vld [vmem:[%s2703_s19 + $0x94] sm:$0xf]  ;;  %v1880_v40 = vld [vmem:[%s2703_s19 + $0x98] sm:$0xf0] }
  0x39   : > { %v1883_v46 = vor.u32 %v2213_v39, %v1880_v40  ;;  %v1886_v59 = vld [vmem:[%s2703_s19 + $0xa0] sm:$0xf]  ;;  %v1888_v62 = vld [vmem:[%s2703_s19 + $0xa8] sm:$0xf0]  ;;  %v1894_v17 = vld [vmem:[%s2703_s19 + $0xb0] sm:$0xf] }
  0x3a   : > { %v2218_v18 = vld [vmem:[%s2703_s19 + $0xb4] sm:$0xf0]  ;;  %v2217_v20 = vld [vmem:[%s2703_s19 + $0xb4] sm:$0xf]  ;;  %v1896_v21 = vld [vmem:[%s2703_s19 + $0xb8] sm:$0xf0] }
  0x46   : > { %868 = vmatmul.bf16.gmra.mxu0 %v1815_v42 }
  0x47   : > { %1037 = vmatmul.bf16.gmra.mxu1 %v1819_v43  ;;  %1206 = vmatmul.bf16.gmra.mxu2 %v1815_v42  ;;  %v1879_v42 = vor.u32 %v2214_v38, %v1878_v37 }
  0x48   : > { %1375 = vmatmul.bf16.gmra.mxu3 %v1819_v43 }
  0x56   : > { %873 = vmatmul.bf16.gmra.mxu0 %v1823_v48 }
  0x57   : > { %1042 = vmatmul.bf16.gmra.mxu1 %v1827_v49  ;;  %1211 = vmatmul.bf16.gmra.mxu2 %v1823_v48 }
  0x58   : > { %1380 = vmatmul.bf16.gmra.mxu3 %v1827_v49 }
  0x66   : > { %878 = vmatmul.bf16.gmra.mxu0 %v1831_v54 }
  0x67   : > { %1047 = vmatmul.bf16.gmra.mxu1 %v1835_v55  ;;  %1216 = vmatmul.bf16.gmra.mxu2 %v1831_v54 }
  0x68   : > { %1385 = vmatmul.bf16.gmra.mxu3 %v1835_v55 }
  0x76   : > { %883 = vmatmul.bf16.gmra.mxu0 %v1839_v60 }
  0x77   : > { %1052 = vmatmul.bf16.gmra.mxu1 %v1843_v61  ;;  %1221 = vmatmul.bf16.gmra.mxu2 %v1839_v60  ;;  %v2216_v60 = vld [vmem:[%s2703_s19 + $0xa4] sm:$0xf0] }
  0x78   : > { %1390 = vmatmul.bf16.gmra.mxu3 %v1843_v61  ;;  %v2215_v61 = vld [vmem:[%s2703_s19 + $0xa4] sm:$0xf]  ;;  %v1887_v0 = vor.u32 %v2216_v60, %v1886_v59 }
  0x79   : > { %v1891_v4 = vor.u32 %v2215_v61, %v1888_v62 }
  0x86   : > { %888 = vmatmul.bf16.gmra.mxu0 %v1847_v2 }
  0x87   : > { %1057 = vmatmul.bf16.gmra.mxu1 %v1851_v3  ;;  %1226 = vmatmul.bf16.gmra.mxu2 %v1847_v2 }
  0x88   : > { %1395 = vmatmul.bf16.gmra.mxu3 %v1851_v3 }
  0x96   : > { %893 = vmatmul.bf16.gmra.mxu0 %v1855_v8 }
  0x97   : > { %1062 = vmatmul.bf16.gmra.mxu1 %v1859_v9  ;;  %1231 = vmatmul.bf16.gmra.mxu2 %v1855_v8 }
  0x98   : > { %1400 = vmatmul.bf16.gmra.mxu3 %v1859_v9 }
  0xa6   : > { %898 = vmatmul.bf16.gmra.mxu0 %v1863_v14 }
  0xa7   : > { %1067 = vmatmul.bf16.gmra.mxu1 %v1867_v15  ;;  %1236 = vmatmul.bf16.gmra.mxu2 %v1863_v14 }
  0xa8   : > { %1405 = vmatmul.bf16.gmra.mxu3 %v1867_v15 }
  0xb3   : > { %v864_v23 = vpop.f32.mrf.mxu0 }
  0xb4   : > { %v865_v25 = vadd.f32 %v864_v23, %v2743_v19  ;;  %v1033_v26 = vpop.f32.mrf.mxu1  ;;  %v1895_v23 = vor.u32 %v2218_v18, %v1894_v17 }
  0xb6   : > { %v1034_v27 = vadd.f32 %v1033_v26, %v865_v25  ;;  %903 = vmatmul.bf16.gmra.mxu0 %v1871_v22 }
  0xb7   : > { %1072 = vmatmul.bf16.gmra.mxu1 %v1875_v24  ;;  %1241 = vmatmul.bf16.gmra.mxu2 %v1871_v22 }
  0xb8   : > { %1531 = vst [vmem:[%s2752_s27] sm:$0xff] %v1034_v27  ;;  %1410 = vmatmul.bf16.gmra.mxu3 %v1875_v24  ;;  %v1899_v27 = vor.u32 %v2217_v20, %v1896_v21 }
  0xba   : > { %v1202_v29 = vpop.f32.mrf.mxu2 }
  0xbb   : > { %v1203_v30 = vadd.f32 %v1202_v29, %v2750_v28  ;;  %v1371_v31 = vpop.f32.mrf.mxu3  ;;  %v866_v32 = vpop.f32.mrf.mxu0 }
  0xbc   : > { %v867_v33 = vadd.f32 %v866_v32, %v2743_v19  ;;  %v1035_v34 = vpop.f32.mrf.mxu1 }
  0xbd   : > { %v1372_v35 = vadd.f32 %v1371_v31, %v1203_v30 }
  0xbe   : > { %v1036_v36 = vadd.f32 %v1035_v34, %v867_v33 }
  0xbf   : > { %1532 = vst [vmem:[%s2752_s27 + $0x8] sm:$0xff] %v1372_v35 }
  0xc0   : > { %1533 = vst [vmem:[%s2752_s27 + $0x10] sm:$0xff] %v1036_v36 }
  0xc2   : > { %v1204_v41 = vpop.f32.mrf.mxu2 }
  0xc3   : > { %v1205_v43 = vadd.f32 %v1204_v41, %v2750_v28  ;;  %v1373_v44 = vpop.f32.mrf.mxu3  ;;  %v869_v45 = vpop.f32.mrf.mxu0  ;;  %v1902_v41 = vld [vmem:[%s2703_s19 + $0xc0] sm:$0xf] }
  0xc4   : > { %v870_v47 = vadd.f32 %v869_v45, %v2743_v19  ;;  %v1038_v48 = vpop.f32.mrf.mxu1 }
  0xc5   : > { %v1374_v49 = vadd.f32 %v1373_v44, %v1205_v43  ;;  %v2219_v43 = vld [vmem:[%s2703_s19 + $0xc4] sm:$0xf]  ;;  %v1904_v44 = vld [vmem:[%s2703_s19 + $0xc8] sm:$0xf0] }
  0xc6   : > { %v1039_v50 = vadd.f32 %v1038_v48, %v870_v47  ;;  %908 = vmatmul.bf16.gmra.mxu0 %v1879_v42 }
  0xc7   : > { %1534 = vst [vmem:[%s2752_s27 + $0x18] sm:$0xff] %v1374_v49  ;;  %1077 = vmatmul.bf16.gmra.mxu1 %v1883_v46  ;;  %1246 = vmatmul.bf16.gmra.mxu2 %v1879_v42  ;;  %v2220_v42 = vld [vmem:[%s2703_s19 + $0xc4] sm:$0xf0] }
  0xc8   : > { %1535 = vst [vmem:[%s2752_s27 + $0x20] sm:$0xff] %v1039_v50  ;;  %1415 = vmatmul.bf16.gmra.mxu3 %v1883_v46  ;;  %v1903_v46 = vor.u32 %v2220_v42, %v1902_v41  ;;  %v1907_v50 = vor.u32 %v2219_v43, %v1904_v44 }
  0xca   : > { %v1207_v51 = vpop.f32.mrf.mxu2 }
  0xcb   : > { %v1208_v52 = vadd.f32 %v1207_v51, %v2750_v28  ;;  %v1376_v53 = vpop.f32.mrf.mxu3  ;;  %v871_v54 = vpop.f32.mrf.mxu0 }
  0xcc   : > { %v872_v55 = vadd.f32 %v871_v54, %v2743_v19  ;;  %v1040_v56 = vpop.f32.mrf.mxu1 }
  0xcd   : > { %v1377_v57 = vadd.f32 %v1376_v53, %v1208_v52 }
  0xce   : > { %v1041_v58 = vadd.f32 %v1040_v56, %v872_v55 }
  0xcf   : > { %1536 = vst [vmem:[%s2752_s27 + $0x28] sm:$0xff] %v1377_v57 }
  0xd0   : > { %1537 = vst [vmem:[%s2752_s27 + $0x30] sm:$0xff] %v1041_v58 }
  0xd2   : > { %v1209_v63 = vpop.f32.mrf.mxu2 }
  0xd3   : > { %v1210_v1 = vadd.f32 %v1209_v63, %v2750_v28  ;;  %v1378_v2 = vpop.f32.mrf.mxu3  ;;  %v874_v3 = vpop.f32.mrf.mxu0  ;;  %v1910_v63 = vld [vmem:[%s2703_s19 + $0xd0] sm:$0xf] }
  0xd4   : > { %v875_v5 = vadd.f32 %v874_v3, %v2743_v19  ;;  %v1043_v6 = vpop.f32.mrf.mxu1 }
  0xd5   : > { %v1379_v7 = vadd.f32 %v1378_v2, %v1210_v1  ;;  %v2221_v1 = vld [vmem:[%s2703_s19 + $0xd4] sm:$0xf]  ;;  %v1912_v2 = vld [vmem:[%s2703_s19 + $0xd8] sm:$0xf0] }
  0xd6   : > { %v1044_v8 = vadd.f32 %v1043_v6, %v875_v5  ;;  %913 = vmatmul.bf16.gmra.mxu0 %v1887_v0 }
  0xd7   : > { %1538 = vst [vmem:[%s2752_s27 + $0x38] sm:$0xff] %v1379_v7  ;;  %1082 = vmatmul.bf16.gmra.mxu1 %v1891_v4  ;;  %1251 = vmatmul.bf16.gmra.mxu2 %v1887_v0  ;;  %v2222_v0 = vld [vmem:[%s2703_s19 + $0xd4] sm:$0xf0] }
  0xd8   : > { %1539 = vst [vmem:[%s2752_s27 + $0x40] sm:$0xff] %v1044_v8  ;;  %1420 = vmatmul.bf16.gmra.mxu3 %v1891_v4  ;;  %v1911_v4 = vor.u32 %v2222_v0, %v1910_v63  ;;  %v1915_v8 = vor.u32 %v2221_v1, %v1912_v2 }
  0xda   : > { %v1212_v9 = vpop.f32.mrf.mxu2 }
  0xdb   : > { %v1213_v10 = vadd.f32 %v1212_v9, %v2750_v28  ;;  %v1381_v11 = vpop.f32.mrf.mxu3  ;;  %v876_v12 = vpop.f32.mrf.mxu0 }
  0xdc   : > { %v877_v13 = vadd.f32 %v876_v12, %v2743_v19  ;;  %v1045_v14 = vpop.f32.mrf.mxu1 }
  0xdd   : > { %v1382_v15 = vadd.f32 %v1381_v11, %v1213_v10 }
  0xde   : > { %v1046_v16 = vadd.f32 %v1045_v14, %v877_v13 }
  0xdf   : > { %1540 = vst [vmem:[%s2752_s27 + $0x48] sm:$0xff] %v1382_v15 }
  0xe0   : > { %1541 = vst [vmem:[%s2752_s27 + $0x50] sm:$0xff] %v1046_v16 }
  0xe2   : > { %v1214_v22 = vpop.f32.mrf.mxu2 }
  0xe3   : > { %v1215_v24 = vadd.f32 %v1214_v22, %v2750_v28  ;;  %v1383_v25 = vpop.f32.mrf.mxu3  ;;  %v879_v26 = vpop.f32.mrf.mxu0  ;;  %v1918_v22 = vld [vmem:[%s2703_s19 + $0xe0] sm:$0xf] }
  0xe4   : > { %v880_v29 = vadd.f32 %v879_v26, %v2743_v19  ;;  %v1048_v30 = vpop.f32.mrf.mxu1 }
  0xe5   : > { %v1384_v31 = vadd.f32 %v1383_v25, %v1215_v24  ;;  %v2223_v24 = vld [vmem:[%s2703_s19 + $0xe4] sm:$0xf]  ;;  %v1920_v25 = vld [vmem:[%s2703_s19 + $0xe8] sm:$0xf0] }
  0xe6   : > { %v1049_v32 = vadd.f32 %v1048_v30, %v880_v29  ;;  %918 = vmatmul.bf16.gmra.mxu0 %v1895_v23 }
  0xe7   : > { %1542 = vst [vmem:[%s2752_s27 + $0x58] sm:$0xff] %v1384_v31  ;;  %1087 = vmatmul.bf16.gmra.mxu1 %v1899_v27  ;;  %1256 = vmatmul.bf16.gmra.mxu2 %v1895_v23  ;;  %v2224_v23 = vld [vmem:[%s2703_s19 + $0xe4] sm:$0xf0] }
  0xe8   : > { %1543 = vst [vmem:[%s2752_s27 + $0x60] sm:$0xff] %v1049_v32  ;;  %1425 = vmatmul.bf16.gmra.mxu3 %v1899_v27  ;;  %v1919_v27 = vor.u32 %v2224_v23, %v1918_v22  ;;  %v1923_v32 = vor.u32 %v2223_v24, %v1920_v25 }
  0xea   : > { %v1217_v33 = vpop.f32.mrf.mxu2 }
  0xeb   : > { %v1218_v34 = vadd.f32 %v1217_v33, %v2750_v28  ;;  %v1386_v35 = vpop.f32.mrf.mxu3  ;;  %v881_v36 = vpop.f32.mrf.mxu0 }
  0xec   : > { %v882_v37 = vadd.f32 %v881_v36, %v2743_v19  ;;  %v1050_v38 = vpop.f32.mrf.mxu1 }
  0xed   : > { %v1387_v39 = vadd.f32 %v1386_v35, %v1218_v34 }
  0xee   : > { %v1051_v40 = vadd.f32 %v1050_v38, %v882_v37 }
  0xef   : > { %1544 = vst [vmem:[%s2752_s27 + $0x68] sm:$0xff] %v1387_v39 }
  0xf0   : > { %1545 = vst [vmem:[%s2752_s27 + $0x70] sm:$0xff] %v1051_v40 }
  0xf2   : > { %v1219_v45 = vpop.f32.mrf.mxu2 }
  0xf3   : > { %v1220_v47 = vadd.f32 %v1219_v45, %v2750_v28  ;;  %v1388_v48 = vpop.f32.mrf.mxu3  ;;  %v884_v49 = vpop.f32.mrf.mxu0  ;;  %v1926_v45 = vld [vmem:[%s2703_s19 + $0xf0] sm:$0xf] }
  0xf4   : > { %v885_v51 = vadd.f32 %v884_v49, %v2743_v19  ;;  %v1053_v52 = vpop.f32.mrf.mxu1 }
  0xf5   : > { %v1389_v53 = vadd.f32 %v1388_v48, %v1220_v47  ;;  %v2225_v47 = vld [vmem:[%s2703_s19 + $0xf4] sm:$0xf]  ;;  %v1928_v48 = vld [vmem:[%s2703_s19 + $0xf8] sm:$0xf0] }
  0xf6   : > { %v1054_v54 = vadd.f32 %v1053_v52, %v885_v51  ;;  %923 = vmatmul.bf16.gmra.mxu0 %v1903_v46 }
  0xf7   : > { %1546 = vst [vmem:[%s2752_s27 + $0x78] sm:$0xff] %v1389_v53  ;;  %1092 = vmatmul.bf16.gmra.mxu1 %v1907_v50  ;;  %1261 = vmatmul.bf16.gmra.mxu2 %v1903_v46  ;;  %v2226_v46 = vld [vmem:[%s2703_s19 + $0xf4] sm:$0xf0] }
  0xf8   : > { %1547 = vst [vmem:[%s2752_s27 + $0x80] sm:$0xff] %v1054_v54  ;;  %1430 = vmatmul.bf16.gmra.mxu3 %v1907_v50  ;;  %v1927_v50 = vor.u32 %v2226_v46, %v1926_v45  ;;  %v1931_v54 = vor.u32 %v2225_v47, %v1928_v48 }
  0xfa   : > { %v1222_v55 = vpop.f32.mrf.mxu2 }
  0xfb   : > { %v1223_v56 = vadd.f32 %v1222_v55, %v2750_v28  ;;  %v1391_v57 = vpop.f32.mrf.mxu3  ;;  %v886_v58 = vpop.f32.mrf.mxu0 }
  0xfc   : > { %v887_v59 = vadd.f32 %v886_v58, %v2743_v19  ;;  %v1055_v60 = vpop.f32.mrf.mxu1 }
  0xfd   : > { %v1392_v61 = vadd.f32 %v1391_v57, %v1223_v56 }
  0xfe   : > { %v1056_v62 = vadd.f32 %v1055_v60, %v887_v59 }
  0xff   : > { %1548 = vst [vmem:[%s2752_s27 + $0x88] sm:$0xff] %v1392_v61 }
 0x100   : > { %1549 = vst [vmem:[%s2752_s27 + $0x90] sm:$0xff] %v1056_v62 }
 0x102   : > { %v1224_v3 = vpop.f32.mrf.mxu2 }
 0x103   : > { %v1225_v5 = vadd.f32 %v1224_v3, %v2750_v28  ;;  %v1393_v6 = vpop.f32.mrf.mxu3  ;;  %v889_v7 = vpop.f32.mrf.mxu0  ;;  %v1934_v3 = vld [vmem:[%s2703_s19 + $0x100] sm:$0xf] }
 0x104   : > { %v890_v9 = vadd.f32 %v889_v7, %v2743_v19  ;;  %v1058_v10 = vpop.f32.mrf.mxu1 }
 0x105   : > { %v1394_v11 = vadd.f32 %v1393_v6, %v1225_v5  ;;  %v2227_v5 = vld [vmem:[%s2703_s19 + $0x104] sm:$0xf]  ;;  %v1936_v6 = vld [vmem:[%s2703_s19 + $0x108] sm:$0xf0] }
 0x106   : > { %v1059_v12 = vadd.f32 %v1058_v10, %v890_v9  ;;  %928 = vmatmul.bf16.gmra.mxu0 %v1911_v4 }
 0x107   : > { %1550 = vst [vmem:[%s2752_s27 + $0x98] sm:$0xff] %v1394_v11  ;;  %1097 = vmatmul.bf16.gmra.mxu1 %v1915_v8  ;;  %1266 = vmatmul.bf16.gmra.mxu2 %v1911_v4  ;;  %v2228_v4 = vld [vmem:[%s2703_s19 + $0x104] sm:$0xf0] }
 0x108   : > { %1551 = vst [vmem:[%s2752_s27 + $0xa0] sm:$0xff] %v1059_v12  ;;  %1435 = vmatmul.bf16.gmra.mxu3 %v1915_v8  ;;  %v1935_v8 = vor.u32 %v2228_v4, %v1934_v3  ;;  %v1939_v12 = vor.u32 %v2227_v5, %v1936_v6 }
 0x10a   : > { %v1227_v13 = vpop.f32.mrf.mxu2 }
 0x10b   : > { %v1228_v14 = vadd.f32 %v1227_v13, %v2750_v28  ;;  %v1396_v15 = vpop.f32.mrf.mxu3  ;;  %v891_v16 = vpop.f32.mrf.mxu0 }
 0x10c   : > { %v892_v17 = vadd.f32 %v891_v16, %v2743_v19  ;;  %v1060_v18 = vpop.f32.mrf.mxu1 }
 0x10d   : > { %v1397_v20 = vadd.f32 %v1396_v15, %v1228_v14 }
 0x10e   : > { %v1061_v21 = vadd.f32 %v1060_v18, %v892_v17 }
 0x10f   : > { %1552 = vst [vmem:[%s2752_s27 + $0xa8] sm:$0xff] %v1397_v20 }
 0x110   : > { %1553 = vst [vmem:[%s2752_s27 + $0xb0] sm:$0xff] %v1061_v21 }
 0x112   : > { %v1229_v26 = vpop.f32.mrf.mxu2 }
 0x113   : > { %v1230_v29 = vadd.f32 %v1229_v26, %v2750_v28  ;;  %v1398_v30 = vpop.f32.mrf.mxu3  ;;  %v894_v31 = vpop.f32.mrf.mxu0  ;;  %v1942_v26 = vld [vmem:[%s2703_s19 + $0x110] sm:$0xf] }
 0x114   : > { %v895_v33 = vadd.f32 %v894_v31, %v2743_v19  ;;  %v1063_v34 = vpop.f32.mrf.mxu1 }
 0x115   : > { %v1399_v35 = vadd.f32 %v1398_v30, %v1230_v29  ;;  %v2229_v29 = vld [vmem:[%s2703_s19 + $0x114] sm:$0xf]  ;;  %v1944_v30 = vld [vmem:[%s2703_s19 + $0x118] sm:$0xf0] }
 0x116   : > { %v1064_v36 = vadd.f32 %v1063_v34, %v895_v33  ;;  %933 = vmatmul.bf16.gmra.mxu0 %v1919_v27 }
 0x117   : > { %1554 = vst [vmem:[%s2752_s27 + $0xb8] sm:$0xff] %v1399_v35  ;;  %1102 = vmatmul.bf16.gmra.mxu1 %v1923_v32  ;;  %1271 = vmatmul.bf16.gmra.mxu2 %v1919_v27  ;;  %v2230_v27 = vld [vmem:[%s2703_s19 + $0x114] sm:$0xf0] }
 0x118   : > { %1555 = vst [vmem:[%s2752_s27 + $0xc0] sm:$0xff] %v1064_v36  ;;  %1440 = vmatmul.bf16.gmra.mxu3 %v1923_v32  ;;  %v1943_v32 = vor.u32 %v2230_v27, %v1942_v26  ;;  %v1947_v36 = vor.u32 %v2229_v29, %v1944_v30 }
 0x11a   : > { %v1232_v37 = vpop.f32.mrf.mxu2 }
 0x11b   : > { %v1233_v38 = vadd.f32 %v1232_v37, %v2750_v28  ;;  %v1401_v39 = vpop.f32.mrf.mxu3  ;;  %v896_v40 = vpop.f32.mrf.mxu0 }
 0x11c   : > { %v897_v41 = vadd.f32 %v896_v40, %v2743_v19  ;;  %v1065_v42 = vpop.f32.mrf.mxu1 }
 0x11d   : > { %v1402_v43 = vadd.f32 %v1401_v39, %v1233_v38 }
 0x11e   : > { %v1066_v44 = vadd.f32 %v1065_v42, %v897_v41 }
 0x11f   : > { %1556 = vst [vmem:[%s2752_s27 + $0xc8] sm:$0xff] %v1402_v43 }
 0x120   : > { %1557 = vst [vmem:[%s2752_s27 + $0xd0] sm:$0xff] %v1066_v44 }
 0x122   : > { %v1234_v49 = vpop.f32.mrf.mxu2 }
 0x123   : > { %v1235_v51 = vadd.f32 %v1234_v49, %v2750_v28  ;;  %v1403_v52 = vpop.f32.mrf.mxu3  ;;  %v899_v53 = vpop.f32.mrf.mxu0  ;;  %v1950_v49 = vld [vmem:[%s2703_s19 + $0x120] sm:$0xf] }
 0x124   : > { %v900_v55 = vadd.f32 %v899_v53, %v2743_v19  ;;  %v1068_v56 = vpop.f32.mrf.mxu1 }
 0x125   : > { %v1404_v57 = vadd.f32 %v1403_v52, %v1235_v51  ;;  %v2231_v51 = vld [vmem:[%s2703_s19 + $0x124] sm:$0xf]  ;;  %v1952_v52 = vld [vmem:[%s2703_s19 + $0x128] sm:$0xf0] }
 0x126   : > { %v1069_v58 = vadd.f32 %v1068_v56, %v900_v55  ;;  %938 = vmatmul.bf16.gmra.mxu0 %v1927_v50 }
 0x127   : > { %1558 = vst [vmem:[%s2752_s27 + $0xd8] sm:$0xff] %v1404_v57  ;;  %1107 = vmatmul.bf16.gmra.mxu1 %v1931_v54  ;;  %1276 = vmatmul.bf16.gmra.mxu2 %v1927_v50  ;;  %v2232_v50 = vld [vmem:[%s2703_s19 + $0x124] sm:$0xf0] }
 0x128   : > { %1559 = vst [vmem:[%s2752_s27 + $0xe0] sm:$0xff] %v1069_v58  ;;  %1445 = vmatmul.bf16.gmra.mxu3 %v1931_v54  ;;  %v1951_v54 = vor.u32 %v2232_v50, %v1950_v49  ;;  %v1955_v58 = vor.u32 %v2231_v51, %v1952_v52 }
 0x12a   : > { %v1237_v59 = vpop.f32.mrf.mxu2 }
 0x12b   : > { %v1238_v60 = vadd.f32 %v1237_v59, %v2750_v28  ;;  %v1406_v61 = vpop.f32.mrf.mxu3  ;;  %v901_v62 = vpop.f32.mrf.mxu0 }
 0x12c   : > { %v902_v63 = vadd.f32 %v901_v62, %v2743_v19  ;;  %v1070_v0 = vpop.f32.mrf.mxu1 }
 0x12d   : > { %v1407_v1 = vadd.f32 %v1406_v61, %v1238_v60 }
 0x12e   : > { %v1071_v2 = vadd.f32 %v1070_v0, %v902_v63 }
 0x12f   : > { %1560 = vst [vmem:[%s2752_s27 + $0xe8] sm:$0xff] %v1407_v1 }
 0x130   : > { %1561 = vst [vmem:[%s2752_s27 + $0xf0] sm:$0xff] %v1071_v2 }
 0x132   : > { %v1239_v7 = vpop.f32.mrf.mxu2 }
 0x133   : > { %v1240_v9 = vadd.f32 %v1239_v7, %v2750_v28  ;;  %v1408_v10 = vpop.f32.mrf.mxu3  ;;  %v904_v11 = vpop.f32.mrf.mxu0  ;;  %v1958_v7 = vld [vmem:[%s2703_s19 + $0x130] sm:$0xf] }
 0x134   : > { %v905_v13 = vadd.f32 %v904_v11, %v2743_v19  ;;  %v1073_v14 = vpop.f32.mrf.mxu1 }
 0x135   : > { %v1409_v15 = vadd.f32 %v1408_v10, %v1240_v9  ;;  %v2233_v9 = vld [vmem:[%s2703_s19 + $0x134] sm:$0xf]  ;;  %v1960_v10 = vld [vmem:[%s2703_s19 + $0x138] sm:$0xf0] }
 0x136   : > { %v1074_v16 = vadd.f32 %v1073_v14, %v905_v13  ;;  %943 = vmatmul.bf16.gmra.mxu0 %v1935_v8 }
 0x137   : > { %1562 = vst [vmem:[%s2752_s27 + $0xf8] sm:$0xff] %v1409_v15  ;;  %1112 = vmatmul.bf16.gmra.mxu1 %v1939_v12  ;;  %1281 = vmatmul.bf16.gmra.mxu2 %v1935_v8  ;;  %v2234_v8 = vld [vmem:[%s2703_s19 + $0x134] sm:$0xf0] }
 0x138   : > { %1563 = vst [vmem:[%s2752_s27 + $0x100] sm:$0xff] %v1074_v16  ;;  %1450 = vmatmul.bf16.gmra.mxu3 %v1939_v12  ;;  %v1959_v12 = vor.u32 %v2234_v8, %v1958_v7  ;;  %v1963_v16 = vor.u32 %v2233_v9, %v1960_v10 }
 0x13a   : > { %v1242_v17 = vpop.f32.mrf.mxu2 }
 0x13b   : > { %v1243_v18 = vadd.f32 %v1242_v17, %v2750_v28  ;;  %v1411_v20 = vpop.f32.mrf.mxu3  ;;  %v906_v21 = vpop.f32.mrf.mxu0 }
 0x13c   : > { %v907_v22 = vadd.f32 %v906_v21, %v2743_v19  ;;  %v1075_v23 = vpop.f32.mrf.mxu1 }
 0x13d   : > { %v1412_v24 = vadd.f32 %v1411_v20, %v1243_v18 }
 0x13e   : > { %v1076_v25 = vadd.f32 %v1075_v23, %v907_v22 }
 0x13f   : > { %1564 = vst [vmem:[%s2752_s27 + $0x108] sm:$0xff] %v1412_v24 }
 0x140   : > { %1565 = vst [vmem:[%s2752_s27 + $0x110] sm:$0xff] %v1076_v25 }
 0x142   : > { %v1244_v31 = vpop.f32.mrf.mxu2 }
 0x143   : > { %v1245_v33 = vadd.f32 %v1244_v31, %v2750_v28  ;;  %v1413_v34 = vpop.f32.mrf.mxu3  ;;  %v909_v35 = vpop.f32.mrf.mxu0  ;;  %v1966_v31 = vld [vmem:[%s2703_s19 + $0x140] sm:$0xf] }
 0x144   : > { %v910_v37 = vadd.f32 %v909_v35, %v2743_v19  ;;  %v1078_v38 = vpop.f32.mrf.mxu1 }
 0x145   : > { %v1414_v39 = vadd.f32 %v1413_v34, %v1245_v33  ;;  %v2235_v33 = vld [vmem:[%s2703_s19 + $0x144] sm:$0xf]  ;;  %v1968_v34 = vld [vmem:[%s2703_s19 + $0x148] sm:$0xf0] }
 0x146   : > { %v1079_v40 = vadd.f32 %v1078_v38, %v910_v37  ;;  %948 = vmatmul.bf16.gmra.mxu0 %v1943_v32 }
 0x147   : > { %1566 = vst [vmem:[%s2752_s27 + $0x118] sm:$0xff] %v1414_v39  ;;  %1117 = vmatmul.bf16.gmra.mxu1 %v1947_v36  ;;  %1286 = vmatmul.bf16.gmra.mxu2 %v1943_v32  ;;  %v2236_v32 = vld [vmem:[%s2703_s19 + $0x144] sm:$0xf0] }
 0x148   : > { %1567 = vst [vmem:[%s2752_s27 + $0x120] sm:$0xff] %v1079_v40  ;;  %1455 = vmatmul.bf16.gmra.mxu3 %v1947_v36  ;;  %v1967_v36 = vor.u32 %v2236_v32, %v1966_v31  ;;  %v1971_v40 = vor.u32 %v2235_v33, %v1968_v34 }
 0x14a   : > { %v1247_v41 = vpop.f32.mrf.mxu2 }
 0x14b   : > { %v1248_v42 = vadd.f32 %v1247_v41, %v2750_v28  ;;  %v1416_v43 = vpop.f32.mrf.mxu3  ;;  %v911_v44 = vpop.f32.mrf.mxu0 }
 0x14c   : > { %v912_v45 = vadd.f32 %v911_v44, %v2743_v19  ;;  %v1080_v46 = vpop.f32.mrf.mxu1 }
 0x14d   : > { %v1417_v47 = vadd.f32 %v1416_v43, %v1248_v42 }
 0x14e   : > { %v1081_v48 = vadd.f32 %v1080_v46, %v912_v45 }
 0x14f   : > { %1568 = vst [vmem:[%s2752_s27 + $0x128] sm:$0xff] %v1417_v47 }
 0x150   : > { %1569 = vst [vmem:[%s2752_s27 + $0x130] sm:$0xff] %v1081_v48 }
 0x152   : > { %v1249_v53 = vpop.f32.mrf.mxu2 }
 0x153   : > { %v1250_v55 = vadd.f32 %v1249_v53, %v2750_v28  ;;  %v1418_v56 = vpop.f32.mrf.mxu3  ;;  %v914_v57 = vpop.f32.mrf.mxu0  ;;  %v1974_v53 = vld [vmem:[%s2703_s19 + $0x150] sm:$0xf] }
 0x154   : > { %v915_v59 = vadd.f32 %v914_v57, %v2743_v19  ;;  %v1083_v60 = vpop.f32.mrf.mxu1 }
 0x155   : > { %v1419_v61 = vadd.f32 %v1418_v56, %v1250_v55  ;;  %v2237_v55 = vld [vmem:[%s2703_s19 + $0x154] sm:$0xf]  ;;  %v1976_v56 = vld [vmem:[%s2703_s19 + $0x158] sm:$0xf0] }
 0x156   : > { %v1084_v62 = vadd.f32 %v1083_v60, %v915_v59  ;;  %953 = vmatmul.bf16.gmra.mxu0 %v1951_v54 }
 0x157   : > { %1570 = vst [vmem:[%s2752_s27 + $0x138] sm:$0xff] %v1419_v61  ;;  %1122 = vmatmul.bf16.gmra.mxu1 %v1955_v58  ;;  %1291 = vmatmul.bf16.gmra.mxu2 %v1951_v54  ;;  %v2238_v54 = vld [vmem:[%s2703_s19 + $0x154] sm:$0xf0] }
 0x158   : > { %1571 = vst [vmem:[%s2752_s27 + $0x140] sm:$0xff] %v1084_v62  ;;  %1460 = vmatmul.bf16.gmra.mxu3 %v1955_v58  ;;  %v1975_v58 = vor.u32 %v2238_v54, %v1974_v53  ;;  %v1979_v62 = vor.u32 %v2237_v55, %v1976_v56 }
 0x15a   : > { %v1252_v63 = vpop.f32.mrf.mxu2 }
 0x15b   : > { %v1253_v0 = vadd.f32 %v1252_v63, %v2750_v28  ;;  %v1421_v1 = vpop.f32.mrf.mxu3  ;;  %v916_v2 = vpop.f32.mrf.mxu0 }
 0x15c   : > { %v917_v3 = vadd.f32 %v916_v2, %v2743_v19  ;;  %v1085_v4 = vpop.f32.mrf.mxu1 }
 0x15d   : > { %v1422_v5 = vadd.f32 %v1421_v1, %v1253_v0 }
 0x15e   : > { %v1086_v6 = vadd.f32 %v1085_v4, %v917_v3 }
 0x15f   : > { %1572 = vst [vmem:[%s2752_s27 + $0x148] sm:$0xff] %v1422_v5 }
 0x160   : > { %1573 = vst [vmem:[%s2752_s27 + $0x150] sm:$0xff] %v1086_v6 }
 0x162   : > { %v1254_v11 = vpop.f32.mrf.mxu2 }
 0x163   : > { %v1255_v13 = vadd.f32 %v1254_v11, %v2750_v28  ;;  %v1423_v14 = vpop.f32.mrf.mxu3  ;;  %v919_v15 = vpop.f32.mrf.mxu0  ;;  %v1982_v11 = vld [vmem:[%s2703_s19 + $0x160] sm:$0xf] }
 0x164   : > { %v920_v17 = vadd.f32 %v919_v15, %v2743_v19  ;;  %v1088_v18 = vpop.f32.mrf.mxu1 }
 0x165   : > { %v1424_v20 = vadd.f32 %v1423_v14, %v1255_v13  ;;  %v2239_v13 = vld [vmem:[%s2703_s19 + $0x164] sm:$0xf]  ;;  %v1984_v14 = vld [vmem:[%s2703_s19 + $0x168] sm:$0xf0] }
 0x166   : > { %v1089_v21 = vadd.f32 %v1088_v18, %v920_v17  ;;  %958 = vmatmul.bf16.gmra.mxu0 %v1959_v12 }
 0x167   : > { %1574 = vst [vmem:[%s2752_s27 + $0x158] sm:$0xff] %v1424_v20  ;;  %1127 = vmatmul.bf16.gmra.mxu1 %v1963_v16  ;;  %1296 = vmatmul.bf16.gmra.mxu2 %v1959_v12  ;;  %v2240_v12 = vld [vmem:[%s2703_s19 + $0x164] sm:$0xf0] }
 0x168   : > { %1575 = vst [vmem:[%s2752_s27 + $0x160] sm:$0xff] %v1089_v21  ;;  %1465 = vmatmul.bf16.gmra.mxu3 %v1963_v16  ;;  %v1983_v16 = vor.u32 %v2240_v12, %v1982_v11  ;;  %v1987_v21 = vor.u32 %v2239_v13, %v1984_v14 }
 0x16a   : > { %v1257_v22 = vpop.f32.mrf.mxu2 }
 0x16b   : > { %v1258_v23 = vadd.f32 %v1257_v22, %v2750_v28  ;;  %v1426_v24 = vpop.f32.mrf.mxu3  ;;  %v921_v25 = vpop.f32.mrf.mxu0 }
 0x16c   : > { %v922_v26 = vadd.f32 %v921_v25, %v2743_v19  ;;  %v1090_v27 = vpop.f32.mrf.mxu1 }
 0x16d   : > { %v1427_v29 = vadd.f32 %v1426_v24, %v1258_v23 }
 0x16e   : > { %v1091_v30 = vadd.f32 %v1090_v27, %v922_v26 }
 0x16f   : > { %1576 = vst [vmem:[%s2752_s27 + $0x168] sm:$0xff] %v1427_v29 }
 0x170   : > { %1577 = vst [vmem:[%s2752_s27 + $0x170] sm:$0xff] %v1091_v30 }
 0x172   : > { %v1259_v35 = vpop.f32.mrf.mxu2 }
 0x173   : > { %v1260_v37 = vadd.f32 %v1259_v35, %v2750_v28  ;;  %v1428_v38 = vpop.f32.mrf.mxu3  ;;  %v924_v39 = vpop.f32.mrf.mxu0  ;;  %v1990_v35 = vld [vmem:[%s2703_s19 + $0x170] sm:$0xf] }
 0x174   : > { %v925_v41 = vadd.f32 %v924_v39, %v2743_v19  ;;  %v1093_v42 = vpop.f32.mrf.mxu1 }
 0x175   : > { %v1429_v43 = vadd.f32 %v1428_v38, %v1260_v37  ;;  %v2241_v37 = vld [vmem:[%s2703_s19 + $0x174] sm:$0xf]  ;;  %v1992_v38 = vld [vmem:[%s2703_s19 + $0x178] sm:$0xf0] }
 0x176   : > { %v1094_v44 = vadd.f32 %v1093_v42, %v925_v41  ;;  %963 = vmatmul.bf16.gmra.mxu0 %v1967_v36 }
 0x177   : > { %1578 = vst [vmem:[%s2752_s27 + $0x178] sm:$0xff] %v1429_v43  ;;  %1132 = vmatmul.bf16.gmra.mxu1 %v1971_v40  ;;  %1301 = vmatmul.bf16.gmra.mxu2 %v1967_v36  ;;  %v2242_v36 = vld [vmem:[%s2703_s19 + $0x174] sm:$0xf0] }
 0x178   : > { %1579 = vst [vmem:[%s2752_s27 + $0x180] sm:$0xff] %v1094_v44  ;;  %1470 = vmatmul.bf16.gmra.mxu3 %v1971_v40  ;;  %v1991_v40 = vor.u32 %v2242_v36, %v1990_v35  ;;  %v1995_v44 = vor.u32 %v2241_v37, %v1992_v38 }
 0x17a   : > { %v1262_v45 = vpop.f32.mrf.mxu2 }
 0x17b   : > { %v1263_v46 = vadd.f32 %v1262_v45, %v2750_v28  ;;  %v1431_v47 = vpop.f32.mrf.mxu3  ;;  %v926_v48 = vpop.f32.mrf.mxu0 }
 0x17c   : > { %v927_v49 = vadd.f32 %v926_v48, %v2743_v19  ;;  %v1095_v50 = vpop.f32.mrf.mxu1 }
 0x17d   : > { %v1432_v51 = vadd.f32 %v1431_v47, %v1263_v46 }
 0x17e   : > { %v1096_v52 = vadd.f32 %v1095_v50, %v927_v49 }
 0x17f   : > { %1580 = vst [vmem:[%s2752_s27 + $0x188] sm:$0xff] %v1432_v51 }
 0x180   : > { %1581 = vst [vmem:[%s2752_s27 + $0x190] sm:$0xff] %v1096_v52 }
 0x182   : > { %v1264_v57 = vpop.f32.mrf.mxu2 }
 0x183   : > { %v1265_v59 = vadd.f32 %v1264_v57, %v2750_v28  ;;  %v1433_v60 = vpop.f32.mrf.mxu3  ;;  %v929_v61 = vpop.f32.mrf.mxu0  ;;  %v1998_v57 = vld [vmem:[%s2703_s19 + $0x180] sm:$0xf] }
 0x184   : > { %v930_v63 = vadd.f32 %v929_v61, %v2743_v19  ;;  %v1098_v0 = vpop.f32.mrf.mxu1 }
 0x185   : > { %v1434_v1 = vadd.f32 %v1433_v60, %v1265_v59  ;;  %v2243_v59 = vld [vmem:[%s2703_s19 + $0x184] sm:$0xf]  ;;  %v2000_v60 = vld [vmem:[%s2703_s19 + $0x188] sm:$0xf0] }
 0x186   : > { %v1099_v2 = vadd.f32 %v1098_v0, %v930_v63  ;;  %968 = vmatmul.bf16.gmra.mxu0 %v1975_v58 }
 0x187   : > { %1582 = vst [vmem:[%s2752_s27 + $0x198] sm:$0xff] %v1434_v1  ;;  %1137 = vmatmul.bf16.gmra.mxu1 %v1979_v62  ;;  %1306 = vmatmul.bf16.gmra.mxu2 %v1975_v58  ;;  %v2244_v58 = vld [vmem:[%s2703_s19 + $0x184] sm:$0xf0] }
 0x188   : > { %1583 = vst [vmem:[%s2752_s27 + $0x1a0] sm:$0xff] %v1099_v2  ;;  %1475 = vmatmul.bf16.gmra.mxu3 %v1979_v62  ;;  %v1999_v62 = vor.u32 %v2244_v58, %v1998_v57  ;;  %v2003_v2 = vor.u32 %v2243_v59, %v2000_v60 }
 0x18a   : > { %v1267_v3 = vpop.f32.mrf.mxu2 }
 0x18b   : > { %v1268_v4 = vadd.f32 %v1267_v3, %v2750_v28  ;;  %v1436_v5 = vpop.f32.mrf.mxu3  ;;  %v931_v6 = vpop.f32.mrf.mxu0 }
 0x18c   : > { %v932_v7 = vadd.f32 %v931_v6, %v2743_v19  ;;  %v1100_v8 = vpop.f32.mrf.mxu1 }
 0x18d   : > { %v1437_v9 = vadd.f32 %v1436_v5, %v1268_v4 }
 0x18e   : > { %v1101_v10 = vadd.f32 %v1100_v8, %v932_v7 }
 0x18f   : > { %1584 = vst [vmem:[%s2752_s27 + $0x1a8] sm:$0xff] %v1437_v9 }
 0x190   : > { %1585 = vst [vmem:[%s2752_s27 + $0x1b0] sm:$0xff] %v1101_v10 }
 0x192   : > { %v1269_v15 = vpop.f32.mrf.mxu2 }
 0x193   : > { %v1270_v17 = vadd.f32 %v1269_v15, %v2750_v28  ;;  %v1438_v18 = vpop.f32.mrf.mxu3  ;;  %v934_v20 = vpop.f32.mrf.mxu0  ;;  %v2006_v15 = vld [vmem:[%s2703_s19 + $0x190] sm:$0xf] }
 0x194   : > { %v935_v22 = vadd.f32 %v934_v20, %v2743_v19  ;;  %v1103_v23 = vpop.f32.mrf.mxu1 }
 0x195   : > { %v1439_v24 = vadd.f32 %v1438_v18, %v1270_v17  ;;  %v2245_v17 = vld [vmem:[%s2703_s19 + $0x194] sm:$0xf]  ;;  %v2008_v18 = vld [vmem:[%s2703_s19 + $0x198] sm:$0xf0] }
 0x196   : > { %v1104_v25 = vadd.f32 %v1103_v23, %v935_v22  ;;  %973 = vmatmul.bf16.gmra.mxu0 %v1983_v16 }
 0x197   : > { %1586 = vst [vmem:[%s2752_s27 + $0x1b8] sm:$0xff] %v1439_v24  ;;  %1142 = vmatmul.bf16.gmra.mxu1 %v1987_v21  ;;  %1311 = vmatmul.bf16.gmra.mxu2 %v1983_v16  ;;  %v2246_v16 = vld [vmem:[%s2703_s19 + $0x194] sm:$0xf0] }
 0x198   : > { %1587 = vst [vmem:[%s2752_s27 + $0x1c0] sm:$0xff] %v1104_v25  ;;  %1480 = vmatmul.bf16.gmra.mxu3 %v1987_v21  ;;  %v2007_v21 = vor.u32 %v2246_v16, %v2006_v15  ;;  %v2011_v25 = vor.u32 %v2245_v17, %v2008_v18 }
 0x19a   : > { %v1272_v26 = vpop.f32.mrf.mxu2 }
 0x19b   : > { %v1273_v27 = vadd.f32 %v1272_v26, %v2750_v28  ;;  %v1441_v29 = vpop.f32.mrf.mxu3  ;;  %v936_v30 = vpop.f32.mrf.mxu0 }
 0x19c   : > { %v937_v31 = vadd.f32 %v936_v30, %v2743_v19  ;;  %v1105_v32 = vpop.f32.mrf.mxu1 }
 0x19d   : > { %v1442_v33 = vadd.f32 %v1441_v29, %v1273_v27 }
 0x19e   : > { %v1106_v34 = vadd.f32 %v1105_v32, %v937_v31 }
 0x19f   : > { %1588 = vst [vmem:[%s2752_s27 + $0x1c8] sm:$0xff] %v1442_v33 }
 0x1a0   : > { %1589 = vst [vmem:[%s2752_s27 + $0x1d0] sm:$0xff] %v1106_v34 }
 0x1a2   : > { %v1274_v39 = vpop.f32.mrf.mxu2 }
 0x1a3   : > { %v1275_v41 = vadd.f32 %v1274_v39, %v2750_v28  ;;  %v1443_v42 = vpop.f32.mrf.mxu3  ;;  %v939_v43 = vpop.f32.mrf.mxu0  ;;  %v2014_v39 = vld [vmem:[%s2703_s19 + $0x1a0] sm:$0xf] }
 0x1a4   : > { %v940_v45 = vadd.f32 %v939_v43, %v2743_v19  ;;  %v1108_v46 = vpop.f32.mrf.mxu1 }
 0x1a5   : > { %v1444_v47 = vadd.f32 %v1443_v42, %v1275_v41  ;;  %v2247_v41 = vld [vmem:[%s2703_s19 + $0x1a4] sm:$0xf]  ;;  %v2016_v42 = vld [vmem:[%s2703_s19 + $0x1a8] sm:$0xf0] }
 0x1a6   : > { %v1109_v48 = vadd.f32 %v1108_v46, %v940_v45  ;;  %978 = vmatmul.bf16.gmra.mxu0 %v1991_v40 }
 0x1a7   : > { %1590 = vst [vmem:[%s2752_s27 + $0x1d8] sm:$0xff] %v1444_v47  ;;  %1147 = vmatmul.bf16.gmra.mxu1 %v1995_v44  ;;  %1316 = vmatmul.bf16.gmra.mxu2 %v1991_v40  ;;  %v2248_v40 = vld [vmem:[%s2703_s19 + $0x1a4] sm:$0xf0] }
 0x1a8   : > { %1591 = vst [vmem:[%s2752_s27 + $0x1e0] sm:$0xff] %v1109_v48  ;;  %1485 = vmatmul.bf16.gmra.mxu3 %v1995_v44  ;;  %v2015_v44 = vor.u32 %v2248_v40, %v2014_v39  ;;  %v2019_v48 = vor.u32 %v2247_v41, %v2016_v42 }
 0x1aa   : > { %v1277_v49 = vpop.f32.mrf.mxu2 }
 0x1ab   : > { %v1278_v50 = vadd.f32 %v1277_v49, %v2750_v28  ;;  %v1446_v51 = vpop.f32.mrf.mxu3  ;;  %v941_v52 = vpop.f32.mrf.mxu0 }
 0x1ac   : > { %v942_v53 = vadd.f32 %v941_v52, %v2743_v19  ;;  %v1110_v54 = vpop.f32.mrf.mxu1 }
 0x1ad   : > { %v1447_v55 = vadd.f32 %v1446_v51, %v1278_v50 }
 0x1ae   : > { %v1111_v56 = vadd.f32 %v1110_v54, %v942_v53 }
 0x1af   : > { %1592 = vst [vmem:[%s2752_s27 + $0x1e8] sm:$0xff] %v1447_v55 }
 0x1b0   : > { %1593 = vst [vmem:[%s2752_s27 + $0x1f0] sm:$0xff] %v1111_v56 }
 0x1b2   : > { %v1279_v61 = vpop.f32.mrf.mxu2 }
 0x1b3   : > { %v1280_v63 = vadd.f32 %v1279_v61, %v2750_v28  ;;  %v1448_v0 = vpop.f32.mrf.mxu3  ;;  %v944_v1 = vpop.f32.mrf.mxu0  ;;  %v2022_v61 = vld [vmem:[%s2703_s19 + $0x1b0] sm:$0xf] }
 0x1b4   : > { %v945_v3 = vadd.f32 %v944_v1, %v2743_v19  ;;  %v1113_v4 = vpop.f32.mrf.mxu1 }
 0x1b5   : > { %v1449_v5 = vadd.f32 %v1448_v0, %v1280_v63  ;;  %v2249_v63 = vld [vmem:[%s2703_s19 + $0x1b4] sm:$0xf]  ;;  %v2024_v0 = vld [vmem:[%s2703_s19 + $0x1b8] sm:$0xf0] }
 0x1b6   : > { %v1114_v6 = vadd.f32 %v1113_v4, %v945_v3  ;;  %983 = vmatmul.bf16.gmra.mxu0 %v1999_v62 }
 0x1b7   : > { %1594 = vst [vmem:[%s2752_s27 + $0x1f8] sm:$0xff] %v1449_v5  ;;  %1152 = vmatmul.bf16.gmra.mxu1 %v2003_v2  ;;  %1321 = vmatmul.bf16.gmra.mxu2 %v1999_v62  ;;  %v2250_v62 = vld [vmem:[%s2703_s19 + $0x1b4] sm:$0xf0] }
 0x1b8   : > { %1595 = vst [vmem:[%s2752_s27 + $0x200] sm:$0xff] %v1114_v6  ;;  %1490 = vmatmul.bf16.gmra.mxu3 %v2003_v2  ;;  %v2023_v2 = vor.u32 %v2250_v62, %v2022_v61  ;;  %v2027_v6 = vor.u32 %v2249_v63, %v2024_v0 }
 0x1ba   : > { %v1282_v7 = vpop.f32.mrf.mxu2 }
 0x1bb   : > { %v1283_v8 = vadd.f32 %v1282_v7, %v2750_v28  ;;  %v1451_v9 = vpop.f32.mrf.mxu3  ;;  %v946_v10 = vpop.f32.mrf.mxu0 }
 0x1bc   : > { %v947_v11 = vadd.f32 %v946_v10, %v2743_v19  ;;  %v1115_v12 = vpop.f32.mrf.mxu1 }
 0x1bd   : > { %v1452_v13 = vadd.f32 %v1451_v9, %v1283_v8 }
 0x1be   : > { %v1116_v14 = vadd.f32 %v1115_v12, %v947_v11 }
 0x1bf   : > { %1596 = vst [vmem:[%s2752_s27 + $0x208] sm:$0xff] %v1452_v13 }
 0x1c0   : > { %1597 = vst [vmem:[%s2752_s27 + $0x210] sm:$0xff] %v1116_v14 }
 0x1c2   : > { %v1284_v20 = vpop.f32.mrf.mxu2 }
 0x1c3   : > { %v1285_v22 = vadd.f32 %v1284_v20, %v2750_v28  ;;  %v1453_v23 = vpop.f32.mrf.mxu3  ;;  %v949_v24 = vpop.f32.mrf.mxu0  ;;  %v2030_v20 = vld [vmem:[%s2703_s19 + $0x1c0] sm:$0xf] }
 0x1c4   : > { %v950_v26 = vadd.f32 %v949_v24, %v2743_v19  ;;  %v1118_v27 = vpop.f32.mrf.mxu1 }
 0x1c5   : > { %v1454_v29 = vadd.f32 %v1453_v23, %v1285_v22  ;;  %v2251_v22 = vld [vmem:[%s2703_s19 + $0x1c4] sm:$0xf]  ;;  %v2032_v23 = vld [vmem:[%s2703_s19 + $0x1c8] sm:$0xf0] }
 0x1c6   : > { %v1119_v30 = vadd.f32 %v1118_v27, %v950_v26  ;;  %988 = vmatmul.bf16.gmra.mxu0 %v2007_v21 }
 0x1c7   : > { %1598 = vst [vmem:[%s2752_s27 + $0x218] sm:$0xff] %v1454_v29  ;;  %1157 = vmatmul.bf16.gmra.mxu1 %v2011_v25  ;;  %1326 = vmatmul.bf16.gmra.mxu2 %v2007_v21  ;;  %v2252_v21 = vld [vmem:[%s2703_s19 + $0x1c4] sm:$0xf0] }
 0x1c8   : > { %1599 = vst [vmem:[%s2752_s27 + $0x220] sm:$0xff] %v1119_v30  ;;  %1495 = vmatmul.bf16.gmra.mxu3 %v2011_v25  ;;  %v2031_v25 = vor.u32 %v2252_v21, %v2030_v20  ;;  %v2035_v30 = vor.u32 %v2251_v22, %v2032_v23 }
 0x1ca   : > { %v1287_v31 = vpop.f32.mrf.mxu2 }
 0x1cb   : > { %v1288_v32 = vadd.f32 %v1287_v31, %v2750_v28  ;;  %v1456_v33 = vpop.f32.mrf.mxu3  ;;  %v951_v34 = vpop.f32.mrf.mxu0 }
 0x1cc   : > { %v952_v35 = vadd.f32 %v951_v34, %v2743_v19  ;;  %v1120_v36 = vpop.f32.mrf.mxu1 }
 0x1cd   : > { %v1457_v37 = vadd.f32 %v1456_v33, %v1288_v32 }
 0x1ce   : > { %v1121_v38 = vadd.f32 %v1120_v36, %v952_v35 }
 0x1cf   : > { %1600 = vst [vmem:[%s2752_s27 + $0x228] sm:$0xff] %v1457_v37 }
 0x1d0   : > { %1601 = vst [vmem:[%s2752_s27 + $0x230] sm:$0xff] %v1121_v38 }
 0x1d2   : > { %v1289_v43 = vpop.f32.mrf.mxu2 }
 0x1d3   : > { %v1290_v45 = vadd.f32 %v1289_v43, %v2750_v28  ;;  %v1458_v46 = vpop.f32.mrf.mxu3  ;;  %v954_v47 = vpop.f32.mrf.mxu0  ;;  %v2038_v43 = vld [vmem:[%s2703_s19 + $0x1d0] sm:$0xf] }
 0x1d4   : > { %v955_v49 = vadd.f32 %v954_v47, %v2743_v19  ;;  %v1123_v50 = vpop.f32.mrf.mxu1 }
 0x1d5   : > { %v1459_v51 = vadd.f32 %v1458_v46, %v1290_v45  ;;  %v2253_v45 = vld [vmem:[%s2703_s19 + $0x1d4] sm:$0xf]  ;;  %v2040_v46 = vld [vmem:[%s2703_s19 + $0x1d8] sm:$0xf0] }
 0x1d6   : > { %v1124_v52 = vadd.f32 %v1123_v50, %v955_v49  ;;  %993 = vmatmul.bf16.gmra.mxu0 %v2015_v44 }
 0x1d7   : > { %1602 = vst [vmem:[%s2752_s27 + $0x238] sm:$0xff] %v1459_v51  ;;  %1162 = vmatmul.bf16.gmra.mxu1 %v2019_v48  ;;  %1331 = vmatmul.bf16.gmra.mxu2 %v2015_v44  ;;  %v2254_v44 = vld [vmem:[%s2703_s19 + $0x1d4] sm:$0xf0] }
 0x1d8   : > { %1603 = vst [vmem:[%s2752_s27 + $0x240] sm:$0xff] %v1124_v52  ;;  %1500 = vmatmul.bf16.gmra.mxu3 %v2019_v48  ;;  %v2039_v48 = vor.u32 %v2254_v44, %v2038_v43  ;;  %v2043_v52 = vor.u32 %v2253_v45, %v2040_v46 }
 0x1da   : > { %v1292_v53 = vpop.f32.mrf.mxu2 }
 0x1db   : > { %v1293_v54 = vadd.f32 %v1292_v53, %v2750_v28  ;;  %v1461_v55 = vpop.f32.mrf.mxu3  ;;  %v956_v56 = vpop.f32.mrf.mxu0 }
 0x1dc   : > { %v957_v57 = vadd.f32 %v956_v56, %v2743_v19  ;;  %v1125_v58 = vpop.f32.mrf.mxu1 }
 0x1dd   : > { %v1462_v59 = vadd.f32 %v1461_v55, %v1293_v54 }
 0x1de   : > { %v1126_v60 = vadd.f32 %v1125_v58, %v957_v57 }
 0x1df   : > { %1604 = vst [vmem:[%s2752_s27 + $0x248] sm:$0xff] %v1462_v59 }
 0x1e0   : > { %1605 = vst [vmem:[%s2752_s27 + $0x250] sm:$0xff] %v1126_v60 }
 0x1e2   : > { %v1294_v1 = vpop.f32.mrf.mxu2 }
 0x1e3   : > { %v1295_v3 = vadd.f32 %v1294_v1, %v2750_v28  ;;  %v1463_v4 = vpop.f32.mrf.mxu3  ;;  %v959_v5 = vpop.f32.mrf.mxu0  ;;  %v2046_v1 = vld [vmem:[%s2703_s19 + $0x1e0] sm:$0xf] }
 0x1e4   : > { %v960_v7 = vadd.f32 %v959_v5, %v2743_v19  ;;  %v1128_v8 = vpop.f32.mrf.mxu1 }
 0x1e5   : > { %v1464_v9 = vadd.f32 %v1463_v4, %v1295_v3  ;;  %v2255_v3 = vld [vmem:[%s2703_s19 + $0x1e4] sm:$0xf]  ;;  %v2048_v4 = vld [vmem:[%s2703_s19 + $0x1e8] sm:$0xf0] }
 0x1e6   : > { %v1129_v10 = vadd.f32 %v1128_v8, %v960_v7  ;;  %998 = vmatmul.bf16.gmra.mxu0 %v2023_v2 }
 0x1e7   : > { %1606 = vst [vmem:[%s2752_s27 + $0x258] sm:$0xff] %v1464_v9  ;;  %1167 = vmatmul.bf16.gmra.mxu1 %v2027_v6  ;;  %1336 = vmatmul.bf16.gmra.mxu2 %v2023_v2  ;;  %v2256_v2 = vld [vmem:[%s2703_s19 + $0x1e4] sm:$0xf0] }
 0x1e8   : > { %1607 = vst [vmem:[%s2752_s27 + $0x260] sm:$0xff] %v1129_v10  ;;  %1505 = vmatmul.bf16.gmra.mxu3 %v2027_v6  ;;  %v2047_v6 = vor.u32 %v2256_v2, %v2046_v1  ;;  %v2051_v10 = vor.u32 %v2255_v3, %v2048_v4 }
 0x1ea   : > { %v1297_v11 = vpop.f32.mrf.mxu2 }
 0x1eb   : > { %v1298_v12 = vadd.f32 %v1297_v11, %v2750_v28  ;;  %v1466_v13 = vpop.f32.mrf.mxu3  ;;  %v961_v14 = vpop.f32.mrf.mxu0 }
 0x1ec   : > { %v962_v15 = vadd.f32 %v961_v14, %v2743_v19  ;;  %v1130_v16 = vpop.f32.mrf.mxu1 }
 0x1ed   : > { %v1467_v17 = vadd.f32 %v1466_v13, %v1298_v12 }
 0x1ee   : > { %v1131_v18 = vadd.f32 %v1130_v16, %v962_v15 }
 0x1ef   : > { %1608 = vst [vmem:[%s2752_s27 + $0x268] sm:$0xff] %v1467_v17 }
 0x1f0   : > { %1609 = vst [vmem:[%s2752_s27 + $0x270] sm:$0xff] %v1131_v18 }
 0x1f2   : > { %v1299_v24 = vpop.f32.mrf.mxu2 }
 0x1f3   : > { %v1300_v26 = vadd.f32 %v1299_v24, %v2750_v28  ;;  %v1468_v27 = vpop.f32.mrf.mxu3  ;;  %v964_v29 = vpop.f32.mrf.mxu0  ;;  %v2054_v24 = vld [vmem:[%s2703_s19 + $0x1f0] sm:$0xf] }
 0x1f4   : > { %v965_v31 = vadd.f32 %v964_v29, %v2743_v19  ;;  %v1133_v32 = vpop.f32.mrf.mxu1 }
 0x1f5   : > { %v1469_v33 = vadd.f32 %v1468_v27, %v1300_v26  ;;  %v2257_v26 = vld [vmem:[%s2703_s19 + $0x1f4] sm:$0xf]  ;;  %v2056_v27 = vld [vmem:[%s2703_s19 + $0x1f8] sm:$0xf0] }
 0x1f6   : > { %v1134_v34 = vadd.f32 %v1133_v32, %v965_v31  ;;  %1003 = vmatmul.bf16.gmra.mxu0 %v2031_v25 }
 0x1f7   : > { %1610 = vst [vmem:[%s2752_s27 + $0x278] sm:$0xff] %v1469_v33  ;;  %1172 = vmatmul.bf16.gmra.mxu1 %v2035_v30  ;;  %1341 = vmatmul.bf16.gmra.mxu2 %v2031_v25  ;;  %v2258_v25 = vld [vmem:[%s2703_s19 + $0x1f4] sm:$0xf0] }
 0x1f8   : > { %1611 = vst [vmem:[%s2752_s27 + $0x280] sm:$0xff] %v1134_v34  ;;  %1510 = vmatmul.bf16.gmra.mxu3 %v2035_v30  ;;  %v2055_v30 = vor.u32 %v2258_v25, %v2054_v24  ;;  %v2059_v34 = vor.u32 %v2257_v26, %v2056_v27 }
 0x1fa   : > { %v1302_v35 = vpop.f32.mrf.mxu2 }
 0x1fb   : > { %v1303_v36 = vadd.f32 %v1302_v35, %v2750_v28  ;;  %v1471_v37 = vpop.f32.mrf.mxu3  ;;  %v966_v38 = vpop.f32.mrf.mxu0 }
 0x1fc   : > { %v967_v39 = vadd.f32 %v966_v38, %v2743_v19  ;;  %v1135_v40 = vpop.f32.mrf.mxu1 }
 0x1fd   : > { %v1472_v41 = vadd.f32 %v1471_v37, %v1303_v36 }
 0x1fe   : > { %v1136_v42 = vadd.f32 %v1135_v40, %v967_v39 }
 0x1ff   : > { %1612 = vst [vmem:[%s2752_s27 + $0x288] sm:$0xff] %v1472_v41 }
 0x200   : > { %1613 = vst [vmem:[%s2752_s27 + $0x290] sm:$0xff] %v1136_v42 }
 0x202   : > { %v1304_v47 = vpop.f32.mrf.mxu2 }
 0x203   : > { %v1305_v49 = vadd.f32 %v1304_v47, %v2750_v28  ;;  %v1473_v50 = vpop.f32.mrf.mxu3  ;;  %v969_v51 = vpop.f32.mrf.mxu0 }
 0x204   : > { %v970_v53 = vadd.f32 %v969_v51, %v2743_v19  ;;  %v1138_v54 = vpop.f32.mrf.mxu1 }
 0x205   : > { %v1474_v55 = vadd.f32 %v1473_v50, %v1305_v49 }
 0x206   : > { %v1139_v56 = vadd.f32 %v1138_v54, %v970_v53  ;;  %1008 = vmatmul.bf16.gmra.mxu0 %v2039_v48 }
 0x207   : > { %1614 = vst [vmem:[%s2752_s27 + $0x298] sm:$0xff] %v1474_v55  ;;  %1177 = vmatmul.bf16.gmra.mxu1 %v2043_v52  ;;  %1346 = vmatmul.bf16.gmra.mxu2 %v2039_v48 }
 0x208   : > { %1615 = vst [vmem:[%s2752_s27 + $0x2a0] sm:$0xff] %v1139_v56  ;;  %1515 = vmatmul.bf16.gmra.mxu3 %v2043_v52 }
 0x20a   : > { %v1307_v57 = vpop.f32.mrf.mxu2 }
 0x20b   : > { %v1308_v58 = vadd.f32 %v1307_v57, %v2750_v28  ;;  %v1476_v59 = vpop.f32.mrf.mxu3  ;;  %v971_v60 = vpop.f32.mrf.mxu0 }
 0x20c   : > { %v972_v61 = vadd.f32 %v971_v60, %v2743_v19  ;;  %v1140_v62 = vpop.f32.mrf.mxu1 }
 0x20d   : > { %v1477_v63 = vadd.f32 %v1476_v59, %v1308_v58 }
 0x20e   : > { %v1141_v0 = vadd.f32 %v1140_v62, %v972_v61 }
 0x20f   : > { %1616 = vst [vmem:[%s2752_s27 + $0x2a8] sm:$0xff] %v1477_v63 }
 0x210   : > { %1617 = vst [vmem:[%s2752_s27 + $0x2b0] sm:$0xff] %v1141_v0 }
 0x212   : > { %v1309_v5 = vpop.f32.mrf.mxu2 }
 0x213   : > { %v1310_v7 = vadd.f32 %v1309_v5, %v2750_v28  ;;  %v1478_v8 = vpop.f32.mrf.mxu3  ;;  %v974_v9 = vpop.f32.mrf.mxu0 }
 0x214   : > { %v975_v11 = vadd.f32 %v974_v9, %v2743_v19  ;;  %v1143_v12 = vpop.f32.mrf.mxu1 }
 0x215   : > { %v1479_v13 = vadd.f32 %v1478_v8, %v1310_v7 }
 0x216   : > { %v1144_v14 = vadd.f32 %v1143_v12, %v975_v11  ;;  %1013 = vmatmul.bf16.gmra.mxu0 %v2047_v6 }
 0x217   : > { %1618 = vst [vmem:[%s2752_s27 + $0x2b8] sm:$0xff] %v1479_v13  ;;  %1182 = vmatmul.bf16.gmra.mxu1 %v2051_v10  ;;  %1351 = vmatmul.bf16.gmra.mxu2 %v2047_v6 }
 0x218   : > { %1619 = vst [vmem:[%s2752_s27 + $0x2c0] sm:$0xff] %v1144_v14  ;;  %1520 = vmatmul.bf16.gmra.mxu3 %v2051_v10 }
 0x21a   : > { %v1312_v15 = vpop.f32.mrf.mxu2 }
 0x21b   : > { %v1313_v16 = vadd.f32 %v1312_v15, %v2750_v28  ;;  %v1481_v17 = vpop.f32.mrf.mxu3  ;;  %v976_v18 = vpop.f32.mrf.mxu0 }
 0x21c   : > { %v977_v20 = vadd.f32 %v976_v18, %v2743_v19  ;;  %v1145_v21 = vpop.f32.mrf.mxu1 }
 0x21d   : > { %v1482_v22 = vadd.f32 %v1481_v17, %v1313_v16 }
 0x21e   : > { %v1146_v23 = vadd.f32 %v1145_v21, %v977_v20 }
 0x21f   : > { %1620 = vst [vmem:[%s2752_s27 + $0x2c8] sm:$0xff] %v1482_v22 }
 0x220   : > { %1621 = vst [vmem:[%s2752_s27 + $0x2d0] sm:$0xff] %v1146_v23 }
 0x222   : > { %v1314_v29 = vpop.f32.mrf.mxu2 }
 0x223   : > { %v1315_v31 = vadd.f32 %v1314_v29, %v2750_v28  ;;  %v1483_v32 = vpop.f32.mrf.mxu3  ;;  %v979_v33 = vpop.f32.mrf.mxu0 }
 0x224   : > { %v980_v35 = vadd.f32 %v979_v33, %v2743_v19  ;;  %v1148_v36 = vpop.f32.mrf.mxu1 }
 0x225   : > { %v1484_v37 = vadd.f32 %v1483_v32, %v1315_v31 }
 0x226   : > { %v1149_v38 = vadd.f32 %v1148_v36, %v980_v35  ;;  %1018 = vmatmul.bf16.gmra.mxu0 %v2055_v30 }
 0x227   : > { %1622 = vst [vmem:[%s2752_s27 + $0x2d8] sm:$0xff] %v1484_v37  ;;  %1187 = vmatmul.bf16.gmra.mxu1 %v2059_v34  ;;  %1356 = vmatmul.bf16.gmra.mxu2 %v2055_v30 }
 0x228   : > { %1623 = vst [vmem:[%s2752_s27 + $0x2e0] sm:$0xff] %v1149_v38  ;;  %1525 = vmatmul.bf16.gmra.mxu3 %v2059_v34 }
 0x22a   : > { %v1317_v39 = vpop.f32.mrf.mxu2 }
 0x22b   : > { %v1318_v40 = vadd.f32 %v1317_v39, %v2750_v28  ;;  %v1486_v41 = vpop.f32.mrf.mxu3  ;;  %v981_v42 = vpop.f32.mrf.mxu0 }
 0x22c   : > { %v982_v43 = vadd.f32 %v981_v42, %v2743_v19  ;;  %v1150_v44 = vpop.f32.mrf.mxu1 }
 0x22d   : > { %v1487_v45 = vadd.f32 %v1486_v41, %v1318_v40 }
 0x22e   : > { %v1151_v46 = vadd.f32 %v1150_v44, %v982_v43 }
 0x22f   : > { %1624 = vst [vmem:[%s2752_s27 + $0x2e8] sm:$0xff] %v1487_v45 }
 0x230   : > { %1625 = vst [vmem:[%s2752_s27 + $0x2f0] sm:$0xff] %v1151_v46 }
 0x232   : > { %v1319_v47 = vpop.f32.mrf.mxu2 }
 0x233   : > { %v1320_v48 = vadd.f32 %v1319_v47, %v2750_v28  ;;  %v1488_v49 = vpop.f32.mrf.mxu3  ;;  %v984_v50 = vpop.f32.mrf.mxu0 }
 0x234   : > { %v985_v51 = vadd.f32 %v984_v50, %v2743_v19  ;;  %v1153_v52 = vpop.f32.mrf.mxu1 }
 0x235   : > { %v1489_v53 = vadd.f32 %v1488_v49, %v1320_v48 }
 0x236   : > { %v1154_v54 = vadd.f32 %v1153_v52, %v985_v51 }
 0x237   : > { %1626 = vst [vmem:[%s2752_s27 + $0x2f8] sm:$0xff] %v1489_v53 }
 0x238   : > { %1627 = vst [vmem:[%s2752_s27 + $0x300] sm:$0xff] %v1154_v54 }
 0x23a   : > { %v1322_v55 = vpop.f32.mrf.mxu2 }
 0x23b   : > { %v1323_v56 = vadd.f32 %v1322_v55, %v2750_v28  ;;  %v1491_v57 = vpop.f32.mrf.mxu3  ;;  %v986_v58 = vpop.f32.mrf.mxu0 }
 0x23c   : > { %v987_v59 = vadd.f32 %v986_v58, %v2743_v19  ;;  %v1155_v60 = vpop.f32.mrf.mxu1 }
 0x23d   : > { %v1492_v61 = vadd.f32 %v1491_v57, %v1323_v56 }
 0x23e   : > { %v1156_v62 = vadd.f32 %v1155_v60, %v987_v59 }
 0x23f   : > { %1628 = vst [vmem:[%s2752_s27 + $0x308] sm:$0xff] %v1492_v61 }
 0x240   : > { %1629 = vst [vmem:[%s2752_s27 + $0x310] sm:$0xff] %v1156_v62 }
 0x242   : > { %v1324_v63 = vpop.f32.mrf.mxu2 }
 0x243   : > { %v1325_v0 = vadd.f32 %v1324_v63, %v2750_v28  ;;  %v1493_v1 = vpop.f32.mrf.mxu3  ;;  %v989_v2 = vpop.f32.mrf.mxu0 }
 0x244   : > { %v990_v3 = vadd.f32 %v989_v2, %v2743_v19  ;;  %v1158_v4 = vpop.f32.mrf.mxu1 }
 0x245   : > { %v1494_v5 = vadd.f32 %v1493_v1, %v1325_v0 }
 0x246   : > { %v1159_v6 = vadd.f32 %v1158_v4, %v990_v3 }
 0x247   : > { %1630 = vst [vmem:[%s2752_s27 + $0x318] sm:$0xff] %v1494_v5 }
 0x248   : > { %1631 = vst [vmem:[%s2752_s27 + $0x320] sm:$0xff] %v1159_v6 }
 0x24a   : > { %v1327_v7 = vpop.f32.mrf.mxu2 }
 0x24b   : > { %v1328_v8 = vadd.f32 %v1327_v7, %v2750_v28  ;;  %v1496_v9 = vpop.f32.mrf.mxu3  ;;  %v991_v10 = vpop.f32.mrf.mxu0 }
 0x24c   : > { %v992_v11 = vadd.f32 %v991_v10, %v2743_v19  ;;  %v1160_v12 = vpop.f32.mrf.mxu1 }
 0x24d   : > { %v1497_v13 = vadd.f32 %v1496_v9, %v1328_v8 }
 0x24e   : > { %v1161_v14 = vadd.f32 %v1160_v12, %v992_v11 }
 0x24f   : > { %1632 = vst [vmem:[%s2752_s27 + $0x328] sm:$0xff] %v1497_v13 }
 0x250   : > { %1633 = vst [vmem:[%s2752_s27 + $0x330] sm:$0xff] %v1161_v14 }
 0x252   : > { %v1329_v15 = vpop.f32.mrf.mxu2 }
 0x253   : > { %v1330_v16 = vadd.f32 %v1329_v15, %v2750_v28  ;;  %v1498_v17 = vpop.f32.mrf.mxu3  ;;  %v994_v18 = vpop.f32.mrf.mxu0 }
 0x254   : > { %v995_v20 = vadd.f32 %v994_v18, %v2743_v19  ;;  %v1163_v21 = vpop.f32.mrf.mxu1 }
 0x255   : > { %v1499_v22 = vadd.f32 %v1498_v17, %v1330_v16 }
 0x256   : > { %v1164_v23 = vadd.f32 %v1163_v21, %v995_v20 }
 0x257   : > { %1634 = vst [vmem:[%s2752_s27 + $0x338] sm:$0xff] %v1499_v22 }
 0x258   : > { %1635 = vst [vmem:[%s2752_s27 + $0x340] sm:$0xff] %v1164_v23 }
 0x25a   : > { %v1332_v24 = vpop.f32.mrf.mxu2 }
 0x25b   : > { %v1333_v25 = vadd.f32 %v1332_v24, %v2750_v28  ;;  %v1501_v26 = vpop.f32.mrf.mxu3  ;;  %v996_v27 = vpop.f32.mrf.mxu0 }
 0x25c   : > { %v997_v29 = vadd.f32 %v996_v27, %v2743_v19  ;;  %v1165_v30 = vpop.f32.mrf.mxu1 }
 0x25d   : > { %v1502_v31 = vadd.f32 %v1501_v26, %v1333_v25 }
 0x25e   : > { %v1166_v32 = vadd.f32 %v1165_v30, %v997_v29 }
 0x25f   : > { %1636 = vst [vmem:[%s2752_s27 + $0x348] sm:$0xff] %v1502_v31 }
 0x260   : > { %1637 = vst [vmem:[%s2752_s27 + $0x350] sm:$0xff] %v1166_v32 }
 0x262   : > { %v1334_v33 = vpop.f32.mrf.mxu2 }
 0x263   : > { %v1335_v34 = vadd.f32 %v1334_v33, %v2750_v28  ;;  %v1503_v35 = vpop.f32.mrf.mxu3  ;;  %v999_v36 = vpop.f32.mrf.mxu0 }
 0x264   : > { %v1000_v37 = vadd.f32 %v999_v36, %v2743_v19  ;;  %v1168_v38 = vpop.f32.mrf.mxu1 }
 0x265   : > { %v1504_v39 = vadd.f32 %v1503_v35, %v1335_v34 }
 0x266   : > { %v1169_v40 = vadd.f32 %v1168_v38, %v1000_v37 }
 0x267   : > { %1638 = vst [vmem:[%s2752_s27 + $0x358] sm:$0xff] %v1504_v39 }
 0x268   : > { %1639 = vst [vmem:[%s2752_s27 + $0x360] sm:$0xff] %v1169_v40 }
 0x26a   : > { %v1337_v41 = vpop.f32.mrf.mxu2 }
 0x26b   : > { %v1338_v42 = vadd.f32 %v1337_v41, %v2750_v28  ;;  %v1506_v43 = vpop.f32.mrf.mxu3  ;;  %v1001_v44 = vpop.f32.mrf.mxu0 }
 0x26c   : > { %v1002_v45 = vadd.f32 %v1001_v44, %v2743_v19  ;;  %v1170_v46 = vpop.f32.mrf.mxu1 }
 0x26d   : > { %v1507_v47 = vadd.f32 %v1506_v43, %v1338_v42 }
 0x26e   : > { %v1171_v48 = vadd.f32 %v1170_v46, %v1002_v45 }
 0x26f   : > { %1640 = vst [vmem:[%s2752_s27 + $0x368] sm:$0xff] %v1507_v47 }
 0x270   : > { %1641 = vst [vmem:[%s2752_s27 + $0x370] sm:$0xff] %v1171_v48 }
 0x272   : > { %v1339_v49 = vpop.f32.mrf.mxu2 }
 0x273   : > { %v1340_v50 = vadd.f32 %v1339_v49, %v2750_v28  ;;  %v1508_v51 = vpop.f32.mrf.mxu3  ;;  %v1004_v52 = vpop.f32.mrf.mxu0 }
 0x274   : > { %v1005_v53 = vadd.f32 %v1004_v52, %v2743_v19  ;;  %v1173_v54 = vpop.f32.mrf.mxu1 }
 0x275   : > { %v1509_v55 = vadd.f32 %v1508_v51, %v1340_v50 }
 0x276   : > { %v1174_v56 = vadd.f32 %v1173_v54, %v1005_v53 }
 0x277   : > { %1642 = vst [vmem:[%s2752_s27 + $0x378] sm:$0xff] %v1509_v55 }
 0x278   : > { %1643 = vst [vmem:[%s2752_s27 + $0x380] sm:$0xff] %v1174_v56 }
 0x27a   : > { %v1342_v57 = vpop.f32.mrf.mxu2 }
 0x27b   : > { %v1343_v58 = vadd.f32 %v1342_v57, %v2750_v28  ;;  %v1511_v59 = vpop.f32.mrf.mxu3  ;;  %v1006_v60 = vpop.f32.mrf.mxu0 }
 0x27c   : > { %v1007_v61 = vadd.f32 %v1006_v60, %v2743_v19  ;;  %v1175_v62 = vpop.f32.mrf.mxu1 }
 0x27d   : > { %v1512_v63 = vadd.f32 %v1511_v59, %v1343_v58 }
 0x27e   : > { %v1176_v0 = vadd.f32 %v1175_v62, %v1007_v61 }
 0x27f   : > { %1644 = vst [vmem:[%s2752_s27 + $0x388] sm:$0xff] %v1512_v63 }
 0x280   : > { %1645 = vst [vmem:[%s2752_s27 + $0x390] sm:$0xff] %v1176_v0 }
 0x282   : > { %v1344_v1 = vpop.f32.mrf.mxu2 }
 0x283   : > { %v1345_v2 = vadd.f32 %v1344_v1, %v2750_v28  ;;  %v1513_v3 = vpop.f32.mrf.mxu3  ;;  %v1009_v4 = vpop.f32.mrf.mxu0 }
 0x284   : > { %v1010_v5 = vadd.f32 %v1009_v4, %v2743_v19  ;;  %v1178_v6 = vpop.f32.mrf.mxu1 }
 0x285   : > { %v1514_v7 = vadd.f32 %v1513_v3, %v1345_v2 }
 0x286   : > { %v1179_v8 = vadd.f32 %v1178_v6, %v1010_v5 }
 0x287   : > { %1646 = vst [vmem:[%s2752_s27 + $0x398] sm:$0xff] %v1514_v7 }
 0x288   : > { %1647 = vst [vmem:[%s2752_s27 + $0x3a0] sm:$0xff] %v1179_v8 }
 0x28a   : > { %v1347_v9 = vpop.f32.mrf.mxu2 }
 0x28b   : > { %v1348_v10 = vadd.f32 %v1347_v9, %v2750_v28  ;;  %v1516_v11 = vpop.f32.mrf.mxu3  ;;  %v1011_v12 = vpop.f32.mrf.mxu0 }
 0x28c   : > { %v1012_v13 = vadd.f32 %v1011_v12, %v2743_v19  ;;  %v1180_v14 = vpop.f32.mrf.mxu1 }
 0x28d   : > { %v1517_v15 = vadd.f32 %v1516_v11, %v1348_v10 }
 0x28e   : > { %v1181_v16 = vadd.f32 %v1180_v14, %v1012_v13 }
 0x28f   : > { %1648 = vst [vmem:[%s2752_s27 + $0x3a8] sm:$0xff] %v1517_v15 }
 0x290   : > { %1649 = vst [vmem:[%s2752_s27 + $0x3b0] sm:$0xff] %v1181_v16 }
 0x292   : > { %v1349_v17 = vpop.f32.mrf.mxu2 }
 0x293   : > { %v1350_v18 = vadd.f32 %v1349_v17, %v2750_v28  ;;  %v1518_v20 = vpop.f32.mrf.mxu3  ;;  %v1014_v21 = vpop.f32.mrf.mxu0 }
 0x294   : > { %v1015_v22 = vadd.f32 %v1014_v21, %v2743_v19  ;;  %v1183_v23 = vpop.f32.mrf.mxu1 }
 0x295   : > { %v1519_v24 = vadd.f32 %v1518_v20, %v1350_v18 }
 0x296   : > { %v1184_v25 = vadd.f32 %v1183_v23, %v1015_v22 }
 0x297   : > { %1650 = vst [vmem:[%s2752_s27 + $0x3b8] sm:$0xff] %v1519_v24 }
 0x298   : > { %1651 = vst [vmem:[%s2752_s27 + $0x3c0] sm:$0xff] %v1184_v25 }
 0x29a   : > { %v1352_v26 = vpop.f32.mrf.mxu2 }
 0x29b   : > { %v1353_v27 = vadd.f32 %v1352_v26, %v2750_v28  ;;  %v1521_v29 = vpop.f32.mrf.mxu3  ;;  %v1016_v30 = vpop.f32.mrf.mxu0 }
 0x29c   : > { %v1017_v31 = vadd.f32 %v1016_v30, %v2743_v19  ;;  %v1185_v32 = vpop.f32.mrf.mxu1 }
 0x29d   : > { %v1522_v33 = vadd.f32 %v1521_v29, %v1353_v27 }
 0x29e   : > { %v1186_v34 = vadd.f32 %v1185_v32, %v1017_v31 }
 0x29f   : > { %1652 = vst [vmem:[%s2752_s27 + $0x3c8] sm:$0xff] %v1522_v33 }
 0x2a0   : > { %1653 = vst [vmem:[%s2752_s27 + $0x3d0] sm:$0xff] %v1186_v34 }
 0x2a2   : > { %v1354_v35 = vpop.f32.mrf.mxu2 }
 0x2a3   : > { %v1355_v36 = vadd.f32 %v1354_v35, %v2750_v28  ;;  %v1523_v37 = vpop.f32.mrf.mxu3  ;;  %v1019_v38 = vpop.f32.mrf.mxu0 }
 0x2a4   : > { %v1020_v39 = vadd.f32 %v1019_v38, %v2743_v19  ;;  %v1188_v40 = vpop.f32.mrf.mxu1 }
 0x2a5   : > { %v1524_v41 = vadd.f32 %v1523_v37, %v1355_v36 }
 0x2a6   : > { %v1189_v42 = vadd.f32 %v1188_v40, %v1020_v39 }
 0x2a7   : > { %1654 = vst [vmem:[%s2752_s27 + $0x3d8] sm:$0xff] %v1524_v41 }
 0x2a8   : > { %1655 = vst [vmem:[%s2752_s27 + $0x3e0] sm:$0xff] %v1189_v42 }
 0x2aa   : > { %v1357_v43 = vpop.f32.mrf.mxu2 }
 0x2ab   : > { %v1358_v44 = vadd.f32 %v1357_v43, %v2750_v28  ;;  %v1526_v45 = vpop.f32.mrf.mxu3  ;;  %v1021_v46 = vpop.f32.mrf.mxu0 }
 0x2ac   : > { %v1022_v47 = vadd.f32 %v1021_v46, %v2743_v19  ;;  %v1190_v49 = vpop.f32.mrf.mxu1 }
 0x2ad   : > { %v1527_v48 = vadd.f32 %v1526_v45, %v1358_v44 }
 0x2ae   : > { %v1191_v50 = vadd.f32 %v1190_v49, %v1022_v47 }
 0x2af   : > { %1656 = vst [vmem:[%s2752_s27 + $0x3e8] sm:$0xff] %v1527_v48 }
 0x2b0   : > { %1657 = vst [vmem:[%s2752_s27 + $0x3f0] sm:$0xff] %v1191_v50 }
 0x2b2   : > { %v1359_v51 = vpop.f32.mrf.mxu2 }
 0x2b3   : > { %v1360_v52 = vadd.f32 %v1359_v51, %v2750_v28  ;;  %v1528_v53 = vpop.f32.mrf.mxu3 }
 0x2b5   : > { %v1529_v19 = vadd.f32 %v1528_v53, %v1360_v52 }
 0x2b7   : > { %1658 = vst [vmem:[%s2752_s27 + $0x3f8] sm:$0xff] %v1529_v19 }
 0x2b8   : > { %2377 = shalt.err (!%p2374_p5)
}
 0x2b9   : > { %s2430_s21 = smov 256   ;;  %s2431_s23 = smov 16  }
 0x2ba   : > { %2293 = dma.vmem_to_hbm [thread:$0]  (%p2492_p4), %s1676_s6, 16384, %s1678_s7, %s1660_s15, %s2430_s21, %s2430_s21, %s2431_s23  }
 0x2bb PF: > { %p2299_p6 = scmp.ge.s32.totalorder %s2428_s17, 2  ;;  %s1692_s26 = sand.u32 1, %s2408_s12  }
 0x2bc   : > { %s1693_s27 = scalar_lea.sflag [#allocation4], %s1692_s26 }
 0x2bd   : > { %p2296_p7 = pnand %p2299_p6, %p2499_p8 }
 0x2bf   : > { %p2297_p9 = pneg %p2296_p7 }
 0x2c1   : > { %2403 = dma.done.wait (%p2297_p9), %s1693_s27, 16384  }
 0x2c2   : > { %2405 = vsyncadd (%p2297_p9), %s1693_s27, 4294950912  ;;  %s16_s17 = sadd.s32 1, %s2428_s17   ;;  %s3146_s12 = smov %s2412_s13 }
 0x2c3   : > { %p13_p10 = scmp.ge.s32.totalorder %s16_s17, 4   ;;  %s3147_s13 = smov %s2416_s14 }
 0x2c4   : > { %s3148_s14 = smov %s2505_s25  ;;  %s3149_s15 = smov %s2424_s16 }
 0x2c5   : > { %s3150_s16 = smov %s3152_s20  ;;  %15 = sbr.rel (!%p13_p10) target bundleno = 4 (0x4), region = 73 }
 0x2ca   :  { %1699 = vsyncpa [#allocation4], 1 }
 0x2cb   :  { %1701 = vsyncpa [#allocation4 + $0x1], 1 }

// kernel: mha_causal_pallas.4
= control target key start
LH: loop header
LB: loop body
LE: loop exit
PB: predicated region body
PF: predicated region fallthrough
CT: control target
= control target key end

     0   :  { %s10342_s0 = inlined_call_operand.vmem [shape: bf16[2,512,768], index: 0, kind: input, shape index: {}, may-alias: {0,1,2}]   ;;  %s10343_s1 = inlined_call_operand.vmem [shape: bf16[2,512,768], index: 1, kind: input, shape index: {}, may-alias: {0,1,2}]   ;;  %s10344_s2 = inlined_call_operand.vmem [shape: bf16[2,512,768], index: 2, kind: input, shape index: {}, may-alias: {0,1,2}]   ;;  %s10345_s3 = inlined_call_operand.vmem [shape: bf16[2,512,256], index: 3, kind: output, shape index: {}]  }
   0x1   :  { %10460 = sst [smem:[#allocation136_spill]] %s10344_s2 }
   0x2   :  { %10461 = sst [smem:[#allocation137_spill]] %s10345_s3 }
   0x3   :  { %s7225_s12 = smov 0   ;;  %s7227_s13 = smov 0  }
   0x4   :  { %s7229_s14 = smov 0   ;;  %s7231_s15 = smov 0  }
   0x5   :  { %s7233_s16 = smov 0   ;;  %s7235_s17 = smov 0  }
   0x6   :  { %s7237_s18 = smov 0   ;;  %s7239_s19 = smov 0  }
   0x7   :  { %s7241_s20 = smov 0   ;;  %s7243_s21 = smov 0  }
   0x8   :  { %s7245_s22 = smov 0   ;;  %s7247_s23 = smov 0  }
   0x9   :  { %s7249_s24 = smov 0  }
   0xa LB: > { %10462 = sst [smem:[#allocation9_spill]] %s7155_s14  ;;  %s25_s26 = sadd.s32 1, %s7183_s21  ;;  %s7195_s24 = sphi %s7249_s24, %s13_s24   ;;  %s7191_s23 = sphi %s7247_s23, %s10846_s23   ;;  %s7187_s22 = sphi %s7245_s22, %s10845_s22   ;;  %s7183_s21 = sphi %s7243_s21, %s10844_s21   ;;  %s7179_s20 = sphi %s7241_s20, %s10843_s20   ;;  %s7175_s19 = sphi %s7239_s19, %s10842_s19   ;;  %s7171_s18 = sphi %s7237_s18, %s10841_s18   ;;  %s7167_s17 = sphi %s7235_s17, %s10840_s17   ;;  %s7163_s16 = sphi %s7233_s16, %s10839_s16   ;;  %s7159_s15 = sphi %s7231_s15, %s10838_s15   ;;  %s7155_s14 = sphi %s7229_s14, %s10837_s14   ;;  %s7151_s13 = sphi %s7227_s13, %s10836_s13   ;;  %s7147_s12 = sphi %s7225_s12, %s10835_s12  }
   0xb   : > { %10463 = sst [smem:[#allocation10_spill]] %s7171_s18  ;;  %p26_p0 = scmp.ge.s32.totalorder %s25_s26, 2 }
   0xc   : > { %10464 = sst [smem:[#allocation11_spill]] %s7175_s19  ;;  %s28_s27 = sadd.s32 1, %s7187_s22 }
   0xd   : > { %10465 = sst [smem:[#allocation12_spill]] %s7179_s20  ;;  %s32_s28 = sadd.s32 1, %s7191_s23 }
   0xe   : > { %s10848_s26 = smov (%p26_p0, %s25_s26), 0  ;;  %s10850_s27 = smov (!%p26_p0, %s28_s27), %s7187_s22 }
   0xf   : > { %10466 = sst [smem:[#allocation13_spill]] %s10848_s26  ;;  %s37_s30 = ssub.s32 %s7183_s21, %s10848_s26 }
  0x10   : > { %p50_p1 = scmp.ne.s32.totalorder %s7167_s17, %s7163_s16  ;;  %p30_p2 = scmp.ge.s32.totalorder %s10850_s27, 2 }
  0x11   : > { %p51_p3 = scmp.eq.s32.totalorder %s7195_s24, 0  ;;  %s66_s4 = sadd.s32 2, %s7187_s22 }
  0x12   : > { %s73_s5 = sadd.s32 1, %s7159_s15  ;;  %s10852_s27 = smov (%p30_p2, %s10850_s27), 0 }
  0x13   : > { %10467 = sst [smem:[#allocation14_spill]] %s10852_s27  ;;  %s10854_s28 = smov (!%p30_p2, %s32_s28), %s7191_s23 }
  0x14   : > { %s39_s6 = ssub.s32 %s7187_s22, %s10852_s27  ;;  %p7315_p4 = por %p51_p3, %p50_p1 }
  0x15   : > { %p34_p5 = scmp.ge.s32.totalorder %s10854_s28, 2  ;;  %s67_s8 = sadd.s32 2, %s10852_s27 }
  0x16   : > { %s69_s9 = ssub.s32 %s66_s4, %s67_s8  ;;  %p80_p6 = scmp.ne.s32.totalorder %s7159_s15, %s7155_s14 }
  0x17   : > { %s10856_s28 = smov (%p34_p5, %s10854_s28), 0  ;;  %s96_s11 = sadd.s32 4, %s7187_s22 }
  0x18   : > { %10469 = sst [smem:[#allocation15_spill]] %s10856_s28  ;;  %p7326_p7 = por %p80_p6, %p51_p3 }
  0x19   : > { %s36_s25 = ssub.s32 %s7191_s23, %s10856_s28  ;;  %s97_s29 = sadd.s32 4, %s10852_s27 }
  0x1a   : > { %s38_s4 = sor.u32 %s37_s30, %s36_s25  ;;  %s70_s8 = sor.u32 %s69_s9, %s36_s25 }
  0x1b   : > { %s40_s26 = sor.u32 %s39_s6, %s38_s4  ;;  %p71_p8 = scmp.eq.s32.totalorder %s70_s8, 0 }
  0x1c   : > { %p41_p9 = scmp.eq.s32.totalorder %s40_s26, 0  ;;  %s99_s3 = ssub.s32 %s96_s11, %s97_s29 }
  0x1d   : > { %s7335_s19 = scalar_select %p71_p8, %s7159_s15, %s73_s5  }
  0x1e   : > { %s10471_s20 = sadd.s32 1, %s7167_s17  ;;  %s100_s14 = sor.u32 %s99_s3, %s36_s25 }
  0x1f   : > { %s7340_s18 = scalar_select %p41_p9, %s7167_s17, %s10471_s20  }
  0x20   : > { %s103_s2 = sadd.s32 1, %s7151_s13  ;;  %p101_p10 = scmp.eq.s32.totalorder %s100_s14, 0 }
  0x21   : > { %p110_p11 = scmp.ne.s32.totalorder %s7151_s13, %s7147_s12  ;;  %s10472_s28 = sadd.s32 4294967295, %s7195_s24  }
  0x22   : > { %p144_p12 = scmp.eq.s32.totalorder %s10472_s28, 7  ;;  %p5780_p2 = scmp.ge.s32.totalorder %s7195_s24, 8 }
  0x23   : > { %s7348_s27 = scalar_select %p101_p10, %s7151_s13, %s103_s2  }
  0x24   : > { %p7352_p13 = por %p110_p11, %p51_p3  ;;  %p7359_p0 = por %p144_p12, %p50_p1 }
  0x25   : > { %166 = sbr.rel (%p5780_p2) target bundleno = 227 (0xe3), region = 16 }
  0x2a   : > { %169 = sbr.rel (!%p7315_p4) target bundleno = 82 (0x52), region = 20  ;;  %s171_s2 = sand.u32 (%p7315_p4), 1, %s7167_s17  }
  0x2b   : > { %s6512_s3 = smul.u32 (%p7315_p4), 192, %s7183_s21  ;;  %s5781_s14 = sshll.u32 (%p7315_p4), %s171_s2, 7 }
  0x2c   : > { %s6513_s20 = smul.u32 (%p7315_p4), 384, %s7191_s23  ;;  %s7378_s7 = scalar_lea.vmem (%p7315_p4), [#allocation5], %s5781_s14 }
  0x2d   : > { %s176_s25 = sadd.s32 (%p7315_p4), %s7187_s22, %s6512_s3 }
  0x2e   : > { %s178_s28 = sadd.s32 (%p7315_p4), %s6513_s20, %s176_s25 }
  0x2f   : > { %s5784_s29 = sshll.u32 %s178_s28, 2 }
  0x30   : > { %s7373_s9 = scalar_lea.vmem %s10342_s0, %s5784_s29 }
  0x31   : > { %v197_v0 = vld [vmem:[%s7373_s9] sm:$0xf]  ;;  %v199_v1 = vld [vmem:[%s7373_s9 + $0x18] sm:$0xf]  ;;  %v201_v2 = vld [vmem:[%s7373_s9 + $0x30] sm:$0xf] }
  0x32   : > { %198 = vst [vmem:[%s7378_s7] sm:$0xf] %v197_v0  ;;  %v203_v3 = vld [vmem:[%s7373_s9 + $0x48] sm:$0xf]  ;;  %v205_v4 = vld [vmem:[%s7373_s9 + $0x60] sm:$0xf] }
  0x33   : > { %200 = vst [vmem:[%s7378_s7 + $0x4] sm:$0xf] %v199_v1  ;;  %v207_v5 = vld [vmem:[%s7373_s9 + $0x78] sm:$0xf]  ;;  %v209_v6 = vld [vmem:[%s7373_s9 + $0x90] sm:$0xf] }
  0x34   : > { %202 = vst [vmem:[%s7378_s7 + $0x8] sm:$0xf] %v201_v2  ;;  %v211_v7 = vld [vmem:[%s7373_s9 + $0xa8] sm:$0xf]  ;;  %v213_v8 = vld [vmem:[%s7373_s9 + $0xc0] sm:$0xf] }
  0x35   : > { %204 = vst [vmem:[%s7378_s7 + $0xc] sm:$0xf] %v203_v3  ;;  %v215_v9 = vld [vmem:[%s7373_s9 + $0xd8] sm:$0xf]  ;;  %v217_v10 = vld [vmem:[%s7373_s9 + $0xf0] sm:$0xf] }
  0x36   : > { %206 = vst [vmem:[%s7378_s7 + $0x10] sm:$0xf] %v205_v4  ;;  %v219_v11 = vld [vmem:[%s7373_s9 + $0x108] sm:$0xf]  ;;  %v221_v12 = vld [vmem:[%s7373_s9 + $0x120] sm:$0xf] }
  0x37   : > { %208 = vst [vmem:[%s7378_s7 + $0x14] sm:$0xf] %v207_v5  ;;  %v223_v13 = vld [vmem:[%s7373_s9 + $0x138] sm:$0xf]  ;;  %v225_v14 = vld [vmem:[%s7373_s9 + $0x150] sm:$0xf] }
  0x38   : > { %210 = vst [vmem:[%s7378_s7 + $0x18] sm:$0xf] %v209_v6  ;;  %v227_v15 = vld [vmem:[%s7373_s9 + $0x168] sm:$0xf]  ;;  %v229_v16 = vld [vmem:[%s7373_s9 + $0x180] sm:$0xf] }
  0x39   : > { %212 = vst [vmem:[%s7378_s7 + $0x1c] sm:$0xf] %v211_v7  ;;  %v231_v17 = vld [vmem:[%s7373_s9 + $0x198] sm:$0xf]  ;;  %v233_v18 = vld [vmem:[%s7373_s9 + $0x1b0] sm:$0xf] }
  0x3a   : > { %214 = vst [vmem:[%s7378_s7 + $0x20] sm:$0xf] %v213_v8  ;;  %v235_v19 = vld [vmem:[%s7373_s9 + $0x1c8] sm:$0xf]  ;;  %v237_v20 = vld [vmem:[%s7373_s9 + $0x1e0] sm:$0xf] }
  0x3b   : > { %216 = vst [vmem:[%s7378_s7 + $0x24] sm:$0xf] %v215_v9  ;;  %v239_v21 = vld [vmem:[%s7373_s9 + $0x1f8] sm:$0xf]  ;;  %v241_v22 = vld [vmem:[%s7373_s9 + $0x210] sm:$0xf] }
  0x3c   : > { %218 = vst [vmem:[%s7378_s7 + $0x28] sm:$0xf] %v217_v10  ;;  %v243_v23 = vld [vmem:[%s7373_s9 + $0x228] sm:$0xf]  ;;  %v245_v24 = vld [vmem:[%s7373_s9 + $0x240] sm:$0xf] }
  0x3d   : > { %220 = vst [vmem:[%s7378_s7 + $0x2c] sm:$0xf] %v219_v11  ;;  %v247_v25 = vld [vmem:[%s7373_s9 + $0x258] sm:$0xf]  ;;  %v249_v26 = vld [vmem:[%s7373_s9 + $0x270] sm:$0xf] }
  0x3e   : > { %222 = vst [vmem:[%s7378_s7 + $0x30] sm:$0xf] %v221_v12  ;;  %v251_v27 = vld [vmem:[%s7373_s9 + $0x288] sm:$0xf]  ;;  %v253_v28 = vld [vmem:[%s7373_s9 + $0x2a0] sm:$0xf] }
  0x3f   : > { %224 = vst [vmem:[%s7378_s7 + $0x34] sm:$0xf] %v223_v13  ;;  %v255_v29 = vld [vmem:[%s7373_s9 + $0x2b8] sm:$0xf]  ;;  %v257_v30 = vld [vmem:[%s7373_s9 + $0x2d0] sm:$0xf] }
  0x40   : > { %226 = vst [vmem:[%s7378_s7 + $0x38] sm:$0xf] %v225_v14  ;;  %v259_v31 = vld [vmem:[%s7373_s9 + $0x2e8] sm:$0xf] }
  0x41   : > { %228 = vst [vmem:[%s7378_s7 + $0x3c] sm:$0xf] %v227_v15 }
  0x42   : > { %230 = vst [vmem:[%s7378_s7 + $0x40] sm:$0xf] %v229_v16 }
  0x43   : > { %232 = vst [vmem:[%s7378_s7 + $0x44] sm:$0xf] %v231_v17 }
  0x44   : > { %234 = vst [vmem:[%s7378_s7 + $0x48] sm:$0xf] %v233_v18 }
  0x45   : > { %236 = vst [vmem:[%s7378_s7 + $0x4c] sm:$0xf] %v235_v19 }
  0x46   : > { %238 = vst [vmem:[%s7378_s7 + $0x50] sm:$0xf] %v237_v20 }
  0x47   : > { %240 = vst [vmem:[%s7378_s7 + $0x54] sm:$0xf] %v239_v21 }
  0x48   : > { %242 = vst [vmem:[%s7378_s7 + $0x58] sm:$0xf] %v241_v22 }
  0x49   : > { %244 = vst [vmem:[%s7378_s7 + $0x5c] sm:$0xf] %v243_v23 }
  0x4a   : > { %246 = vst [vmem:[%s7378_s7 + $0x60] sm:$0xf] %v245_v24 }
  0x4b   : > { %248 = vst [vmem:[%s7378_s7 + $0x64] sm:$0xf] %v247_v25 }
  0x4c   : > { %250 = vst [vmem:[%s7378_s7 + $0x68] sm:$0xf] %v249_v26 }
  0x4d   : > { %252 = vst [vmem:[%s7378_s7 + $0x6c] sm:$0xf] %v251_v27 }
  0x4e   : > { %254 = vst [vmem:[%s7378_s7 + $0x70] sm:$0xf] %v253_v28 }
  0x4f   : > { %256 = vst [vmem:[%s7378_s7 + $0x74] sm:$0xf] %v255_v29 }
  0x50   : > { %258 = vst [vmem:[%s7378_s7 + $0x78] sm:$0xf] %v257_v30 }
  0x51   : > { %260 = vst [vmem:[%s7378_s7 + $0x7c] sm:$0xf] %v259_v31 }
  0x52 PF: > { %348 = sbr.rel (!%p7326_p7) target bundleno = 153 (0x99), region = 61  ;;  %s350_s11 = sand.u32 (%p7326_p7), 1, %s7159_s15  }
  0x53   : > { %s5662_s4 = smul.u32 (%p7326_p7), 384, %s7191_s23  ;;  %s5785_s8 = sshll.u32 (%p7326_p7), %s350_s11, 8 }
  0x54   : > { %s7454_s10 = scalar_lea.vmem (%p7326_p7), [#allocation6], %s5785_s8 }
  0x55   : > { %s5663_s2 = sadd.s32 (%p7326_p7), %s7187_s22, %s5662_s4 }
  0x56   : > { %s5786_s3 = sshll.u32 (%p7326_p7), %s5663_s2, 2 }
  0x57   : > { %s7449_s25 = scalar_lea.vmem %s10343_s1, %s5786_s3 }
  0x58   : > { %v5787_v32 = vld [vmem:[%s7449_s25 + $0x8] sm:$0xf]  ;;  %v5788_v33 = vld [vmem:[%s7449_s25 + $0x20] sm:$0xf]  ;;  %v5789_v34 = vld [vmem:[%s7449_s25 + $0x38] sm:$0xf] }
  0x59   : > { %375 = vst [vmem:[%s7454_s10] sm:$0xf] %v5787_v32  ;;  %v5790_v35 = vld [vmem:[%s7449_s25 + $0x50] sm:$0xf]  ;;  %v5791_v36 = vld [vmem:[%s7449_s25 + $0x68] sm:$0xf] }
  0x5a   : > { %377 = vst [vmem:[%s7454_s10 + $0x4] sm:$0xf] %v5788_v33  ;;  %v5792_v37 = vld [vmem:[%s7449_s25 + $0x80] sm:$0xf]  ;;  %v5793_v38 = vld [vmem:[%s7449_s25 + $0x98] sm:$0xf] }
  0x5b   : > { %379 = vst [vmem:[%s7454_s10 + $0x8] sm:$0xf] %v5789_v34  ;;  %v5794_v39 = vld [vmem:[%s7449_s25 + $0xb0] sm:$0xf]  ;;  %v5795_v40 = vld [vmem:[%s7449_s25 + $0xc8] sm:$0xf] }
  0x5c   : > { %381 = vst [vmem:[%s7454_s10 + $0xc] sm:$0xf] %v5790_v35  ;;  %v5796_v41 = vld [vmem:[%s7449_s25 + $0xe0] sm:$0xf]  ;;  %v5797_v42 = vld [vmem:[%s7449_s25 + $0xf8] sm:$0xf] }
  0x5d   : > { %383 = vst [vmem:[%s7454_s10 + $0x10] sm:$0xf] %v5791_v36  ;;  %v5798_v43 = vld [vmem:[%s7449_s25 + $0x110] sm:$0xf]  ;;  %v5799_v44 = vld [vmem:[%s7449_s25 + $0x128] sm:$0xf] }
  0x5e   : > { %385 = vst [vmem:[%s7454_s10 + $0x14] sm:$0xf] %v5792_v37  ;;  %v5800_v45 = vld [vmem:[%s7449_s25 + $0x140] sm:$0xf]  ;;  %v5801_v46 = vld [vmem:[%s7449_s25 + $0x158] sm:$0xf] }
  0x5f   : > { %387 = vst [vmem:[%s7454_s10 + $0x18] sm:$0xf] %v5793_v38  ;;  %v5802_v47 = vld [vmem:[%s7449_s25 + $0x170] sm:$0xf]  ;;  %v5803_v48 = vld [vmem:[%s7449_s25 + $0x188] sm:$0xf] }
  0x60   : > { %389 = vst [vmem:[%s7454_s10 + $0x1c] sm:$0xf] %v5794_v39  ;;  %v5804_v49 = vld [vmem:[%s7449_s25 + $0x1a0] sm:$0xf]  ;;  %v5805_v50 = vld [vmem:[%s7449_s25 + $0x1b8] sm:$0xf] }
  0x61   : > { %391 = vst [vmem:[%s7454_s10 + $0x20] sm:$0xf] %v5795_v40  ;;  %v5806_v51 = vld [vmem:[%s7449_s25 + $0x1d0] sm:$0xf]  ;;  %v5807_v52 = vld [vmem:[%s7449_s25 + $0x1e8] sm:$0xf] }
  0x62   : > { %393 = vst [vmem:[%s7454_s10 + $0x24] sm:$0xf] %v5796_v41  ;;  %v5808_v53 = vld [vmem:[%s7449_s25 + $0x200] sm:$0xf]  ;;  %v5809_v54 = vld [vmem:[%s7449_s25 + $0x218] sm:$0xf] }
  0x63   : > { %395 = vst [vmem:[%s7454_s10 + $0x28] sm:$0xf] %v5797_v42  ;;  %v5810_v55 = vld [vmem:[%s7449_s25 + $0x230] sm:$0xf]  ;;  %v5811_v56 = vld [vmem:[%s7449_s25 + $0x248] sm:$0xf] }
  0x64   : > { %397 = vst [vmem:[%s7454_s10 + $0x2c] sm:$0xf] %v5798_v43  ;;  %v5812_v57 = vld [vmem:[%s7449_s25 + $0x260] sm:$0xf]  ;;  %v5813_v58 = vld [vmem:[%s7449_s25 + $0x278] sm:$0xf] }
  0x65   : > { %399 = vst [vmem:[%s7454_s10 + $0x30] sm:$0xf] %v5799_v44  ;;  %v5814_v59 = vld [vmem:[%s7449_s25 + $0x290] sm:$0xf]  ;;  %v5815_v60 = vld [vmem:[%s7449_s25 + $0x2a8] sm:$0xf] }
  0x66   : > { %401 = vst [vmem:[%s7454_s10 + $0x34] sm:$0xf] %v5800_v45  ;;  %v5816_v61 = vld [vmem:[%s7449_s25 + $0x2c0] sm:$0xf]  ;;  %v5817_v62 = vld [vmem:[%s7449_s25 + $0x2d8] sm:$0xf] }
  0x67   : > { %403 = vst [vmem:[%s7454_s10 + $0x38] sm:$0xf] %v5801_v46  ;;  %v5818_v63 = vld [vmem:[%s7449_s25 + $0x2f0] sm:$0xf]  ;;  %v5819_v0 = vld [vmem:[%s7449_s25 + $0x308] sm:$0xf] }
  0x68   : > { %405 = vst [vmem:[%s7454_s10 + $0x3c] sm:$0xf] %v5802_v47  ;;  %v5820_v1 = vld [vmem:[%s7449_s25 + $0x320] sm:$0xf]  ;;  %v5821_v2 = vld [vmem:[%s7449_s25 + $0x338] sm:$0xf] }
  0x69   : > { %407 = vst [vmem:[%s7454_s10 + $0x40] sm:$0xf] %v5803_v48  ;;  %v5822_v3 = vld [vmem:[%s7449_s25 + $0x350] sm:$0xf]  ;;  %v5823_v4 = vld [vmem:[%s7449_s25 + $0x368] sm:$0xf] }
  0x6a   : > { %409 = vst [vmem:[%s7454_s10 + $0x44] sm:$0xf] %v5804_v49  ;;  %v5824_v5 = vld [vmem:[%s7449_s25 + $0x380] sm:$0xf]  ;;  %v5825_v6 = vld [vmem:[%s7449_s25 + $0x398] sm:$0xf] }
  0x6b   : > { %411 = vst [vmem:[%s7454_s10 + $0x48] sm:$0xf] %v5805_v50  ;;  %v5826_v7 = vld [vmem:[%s7449_s25 + $0x3b0] sm:$0xf]  ;;  %v5827_v8 = vld [vmem:[%s7449_s25 + $0x3c8] sm:$0xf] }
  0x6c   : > { %413 = vst [vmem:[%s7454_s10 + $0x4c] sm:$0xf] %v5806_v51  ;;  %v5828_v9 = vld [vmem:[%s7449_s25 + $0x3e0] sm:$0xf]  ;;  %v5829_v10 = vld [vmem:[%s7449_s25 + $0x3f8] sm:$0xf] }
  0x6d   : > { %415 = vst [vmem:[%s7454_s10 + $0x50] sm:$0xf] %v5807_v52  ;;  %v5830_v11 = vld [vmem:[%s7449_s25 + $0x410] sm:$0xf]  ;;  %v5831_v12 = vld [vmem:[%s7449_s25 + $0x428] sm:$0xf] }
  0x6e   : > { %417 = vst [vmem:[%s7454_s10 + $0x54] sm:$0xf] %v5808_v53  ;;  %v5832_v13 = vld [vmem:[%s7449_s25 + $0x440] sm:$0xf]  ;;  %v5833_v14 = vld [vmem:[%s7449_s25 + $0x458] sm:$0xf] }
  0x6f   : > { %419 = vst [vmem:[%s7454_s10 + $0x58] sm:$0xf] %v5809_v54  ;;  %v5834_v15 = vld [vmem:[%s7449_s25 + $0x470] sm:$0xf]  ;;  %v5835_v16 = vld [vmem:[%s7449_s25 + $0x488] sm:$0xf] }
  0x70   : > { %421 = vst [vmem:[%s7454_s10 + $0x5c] sm:$0xf] %v5810_v55  ;;  %v5836_v17 = vld [vmem:[%s7449_s25 + $0x4a0] sm:$0xf]  ;;  %v5837_v18 = vld [vmem:[%s7449_s25 + $0x4b8] sm:$0xf] }
  0x71   : > { %423 = vst [vmem:[%s7454_s10 + $0x60] sm:$0xf] %v5811_v56  ;;  %v5838_v19 = vld [vmem:[%s7449_s25 + $0x4d0] sm:$0xf]  ;;  %v5839_v20 = vld [vmem:[%s7449_s25 + $0x4e8] sm:$0xf] }
  0x72   : > { %425 = vst [vmem:[%s7454_s10 + $0x64] sm:$0xf] %v5812_v57  ;;  %v5840_v21 = vld [vmem:[%s7449_s25 + $0x500] sm:$0xf]  ;;  %v5841_v22 = vld [vmem:[%s7449_s25 + $0x518] sm:$0xf] }
  0x73   : > { %427 = vst [vmem:[%s7454_s10 + $0x68] sm:$0xf] %v5813_v58  ;;  %v5842_v23 = vld [vmem:[%s7449_s25 + $0x530] sm:$0xf]  ;;  %v5843_v24 = vld [vmem:[%s7449_s25 + $0x548] sm:$0xf] }
  0x74   : > { %429 = vst [vmem:[%s7454_s10 + $0x6c] sm:$0xf] %v5814_v59  ;;  %v5844_v25 = vld [vmem:[%s7449_s25 + $0x560] sm:$0xf]  ;;  %v5845_v26 = vld [vmem:[%s7449_s25 + $0x578] sm:$0xf] }
  0x75   : > { %431 = vst [vmem:[%s7454_s10 + $0x70] sm:$0xf] %v5815_v60  ;;  %v5846_v27 = vld [vmem:[%s7449_s25 + $0x590] sm:$0xf]  ;;  %v5847_v28 = vld [vmem:[%s7449_s25 + $0x5a8] sm:$0xf] }
  0x76   : > { %433 = vst [vmem:[%s7454_s10 + $0x74] sm:$0xf] %v5816_v61  ;;  %v5848_v29 = vld [vmem:[%s7449_s25 + $0x5c0] sm:$0xf]  ;;  %v5849_v30 = vld [vmem:[%s7449_s25 + $0x5d8] sm:$0xf] }
  0x77   : > { %435 = vst [vmem:[%s7454_s10 + $0x78] sm:$0xf] %v5817_v62  ;;  %v5850_v31 = vld [vmem:[%s7449_s25 + $0x5f0] sm:$0xf] }
  0x78   : > { %437 = vst [vmem:[%s7454_s10 + $0x7c] sm:$0xf] %v5818_v63 }
  0x79   : > { %439 = vst [vmem:[%s7454_s10 + $0x80] sm:$0xf] %v5819_v0 }
  0x7a   : > { %441 = vst [vmem:[%s7454_s10 + $0x84] sm:$0xf] %v5820_v1 }
  0x7b   : > { %443 = vst [vmem:[%s7454_s10 + $0x88] sm:$0xf] %v5821_v2 }
  0x7c   : > { %445 = vst [vmem:[%s7454_s10 + $0x8c] sm:$0xf] %v5822_v3 }
  0x7d   : > { %447 = vst [vmem:[%s7454_s10 + $0x90] sm:$0xf] %v5823_v4 }
  0x7e   : > { %449 = vst [vmem:[%s7454_s10 + $0x94] sm:$0xf] %v5824_v5 }
  0x7f   : > { %451 = vst [vmem:[%s7454_s10 + $0x98] sm:$0xf] %v5825_v6 }
  0x80   : > { %453 = vst [vmem:[%s7454_s10 + $0x9c] sm:$0xf] %v5826_v7 }
  0x81   : > { %455 = vst [vmem:[%s7454_s10 + $0xa0] sm:$0xf] %v5827_v8 }
  0x82   : > { %457 = vst [vmem:[%s7454_s10 + $0xa4] sm:$0xf] %v5828_v9 }
  0x83   : > { %459 = vst [vmem:[%s7454_s10 + $0xa8] sm:$0xf] %v5829_v10 }
  0x84   : > { %461 = vst [vmem:[%s7454_s10 + $0xac] sm:$0xf] %v5830_v11 }
  0x85   : > { %463 = vst [vmem:[%s7454_s10 + $0xb0] sm:$0xf] %v5831_v12 }
  0x86   : > { %465 = vst [vmem:[%s7454_s10 + $0xb4] sm:$0xf] %v5832_v13 }
  0x87   : > { %467 = vst [vmem:[%s7454_s10 + $0xb8] sm:$0xf] %v5833_v14 }
  0x88   : > { %469 = vst [vmem:[%s7454_s10 + $0xbc] sm:$0xf] %v5834_v15 }
  0x89   : > { %471 = vst [vmem:[%s7454_s10 + $0xc0] sm:$0xf] %v5835_v16 }
  0x8a   : > { %473 = vst [vmem:[%s7454_s10 + $0xc4] sm:$0xf] %v5836_v17 }
  0x8b   : > { %475 = vst [vmem:[%s7454_s10 + $0xc8] sm:$0xf] %v5837_v18 }
  0x8c   : > { %477 = vst [vmem:[%s7454_s10 + $0xcc] sm:$0xf] %v5838_v19 }
  0x8d   : > { %479 = vst [vmem:[%s7454_s10 + $0xd0] sm:$0xf] %v5839_v20 }
  0x8e   : > { %481 = vst [vmem:[%s7454_s10 + $0xd4] sm:$0xf] %v5840_v21 }
  0x8f   : > { %483 = vst [vmem:[%s7454_s10 + $0xd8] sm:$0xf] %v5841_v22 }
  0x90   : > { %485 = vst [vmem:[%s7454_s10 + $0xdc] sm:$0xf] %v5842_v23 }
  0x91   : > { %487 = vst [vmem:[%s7454_s10 + $0xe0] sm:$0xf] %v5843_v24 }
  0x92   : > { %489 = vst [vmem:[%s7454_s10 + $0xe4] sm:$0xf] %v5844_v25 }
  0x93   : > { %491 = vst [vmem:[%s7454_s10 + $0xe8] sm:$0xf] %v5845_v26 }
  0x94   : > { %493 = vst [vmem:[%s7454_s10 + $0xec] sm:$0xf] %v5846_v27 }
  0x95   : > { %495 = vst [vmem:[%s7454_s10 + $0xf0] sm:$0xf] %v5847_v28 }
  0x96   : > { %497 = vst [vmem:[%s7454_s10 + $0xf4] sm:$0xf] %v5848_v29 }
  0x97   : > { %499 = vst [vmem:[%s7454_s10 + $0xf8] sm:$0xf] %v5849_v30 }
  0x98   : > { %501 = vst [vmem:[%s7454_s10 + $0xfc] sm:$0xf] %v5850_v31 }
  0x99 PF: > { %653 = sbr.rel (!%p7352_p13) target bundleno = 227 (0xe3), region = 102  ;;  %s655_s28 = sand.u32 (%p7352_p13), 1, %s7151_s13  }
  0x9a   : > { %s5669_s29 = smul.u32 (%p7352_p13), 384, %s7191_s23  ;;  %s5851_s5 = sshll.u32 (%p7352_p13), %s655_s28, 8 }
  0x9b   : > { %s10475_s4 = sld [smem:[#allocation136_spill]] (%p7352_p13)  ;;  %s7594_s30 = scalar_lea.vmem (%p7352_p13), [#allocation7], %s5851_s5 }
  0x9c   : > { %s5670_s6 = sadd.s32 (%p7352_p13), %s7187_s22, %s5669_s29 }
  0x9d   : > { %s5852_s9 = sshll.u32 (%p7352_p13), %s5670_s6, 2 }
  0xa1   : > { %s7589_s8 = scalar_lea.vmem %s10475_s4, %s5852_s9 }
  0xa2   : > { %v5853_v32 = vld [vmem:[%s7589_s8 + $0x10] sm:$0xf]  ;;  %v5854_v33 = vld [vmem:[%s7589_s8 + $0x28] sm:$0xf]  ;;  %v5855_v34 = vld [vmem:[%s7589_s8 + $0x40] sm:$0xf] }
  0xa3   : > { %680 = vst [vmem:[%s7594_s30] sm:$0xf] %v5853_v32  ;;  %v5856_v35 = vld [vmem:[%s7589_s8 + $0x58] sm:$0xf]  ;;  %v5857_v36 = vld [vmem:[%s7589_s8 + $0x70] sm:$0xf] }
  0xa4   : > { %682 = vst [vmem:[%s7594_s30 + $0x4] sm:$0xf] %v5854_v33  ;;  %v5858_v37 = vld [vmem:[%s7589_s8 + $0x88] sm:$0xf]  ;;  %v5859_v38 = vld [vmem:[%s7589_s8 + $0xa0] sm:$0xf] }
  0xa5   : > { %684 = vst [vmem:[%s7594_s30 + $0x8] sm:$0xf] %v5855_v34  ;;  %v5860_v39 = vld [vmem:[%s7589_s8 + $0xb8] sm:$0xf]  ;;  %v5861_v40 = vld [vmem:[%s7589_s8 + $0xd0] sm:$0xf] }
  0xa6   : > { %686 = vst [vmem:[%s7594_s30 + $0xc] sm:$0xf] %v5856_v35  ;;  %v5862_v41 = vld [vmem:[%s7589_s8 + $0xe8] sm:$0xf]  ;;  %v5863_v42 = vld [vmem:[%s7589_s8 + $0x100] sm:$0xf] }
  0xa7   : > { %688 = vst [vmem:[%s7594_s30 + $0x10] sm:$0xf] %v5857_v36  ;;  %v5864_v43 = vld [vmem:[%s7589_s8 + $0x118] sm:$0xf]  ;;  %v5865_v44 = vld [vmem:[%s7589_s8 + $0x130] sm:$0xf] }
  0xa8   : > { %690 = vst [vmem:[%s7594_s30 + $0x14] sm:$0xf] %v5858_v37  ;;  %v5866_v45 = vld [vmem:[%s7589_s8 + $0x148] sm:$0xf]  ;;  %v5867_v46 = vld [vmem:[%s7589_s8 + $0x160] sm:$0xf] }
  0xa9   : > { %692 = vst [vmem:[%s7594_s30 + $0x18] sm:$0xf] %v5859_v38  ;;  %v5868_v47 = vld [vmem:[%s7589_s8 + $0x178] sm:$0xf]  ;;  %v5869_v48 = vld [vmem:[%s7589_s8 + $0x190] sm:$0xf] }
  0xaa   : > { %694 = vst [vmem:[%s7594_s30 + $0x1c] sm:$0xf] %v5860_v39  ;;  %v5870_v49 = vld [vmem:[%s7589_s8 + $0x1a8] sm:$0xf]  ;;  %v5871_v50 = vld [vmem:[%s7589_s8 + $0x1c0] sm:$0xf] }
  0xab   : > { %696 = vst [vmem:[%s7594_s30 + $0x20] sm:$0xf] %v5861_v40  ;;  %v5872_v51 = vld [vmem:[%s7589_s8 + $0x1d8] sm:$0xf]  ;;  %v5873_v52 = vld [vmem:[%s7589_s8 + $0x1f0] sm:$0xf] }
  0xac   : > { %698 = vst [vmem:[%s7594_s30 + $0x24] sm:$0xf] %v5862_v41  ;;  %v5874_v53 = vld [vmem:[%s7589_s8 + $0x208] sm:$0xf]  ;;  %v5875_v54 = vld [vmem:[%s7589_s8 + $0x220] sm:$0xf] }
  0xad   : > { %700 = vst [vmem:[%s7594_s30 + $0x28] sm:$0xf] %v5863_v42  ;;  %v5876_v55 = vld [vmem:[%s7589_s8 + $0x238] sm:$0xf]  ;;  %v5877_v56 = vld [vmem:[%s7589_s8 + $0x250] sm:$0xf] }
  0xae   : > { %702 = vst [vmem:[%s7594_s30 + $0x2c] sm:$0xf] %v5864_v43  ;;  %v5878_v57 = vld [vmem:[%s7589_s8 + $0x268] sm:$0xf]  ;;  %v5879_v58 = vld [vmem:[%s7589_s8 + $0x280] sm:$0xf] }
  0xaf   : > { %704 = vst [vmem:[%s7594_s30 + $0x30] sm:$0xf] %v5865_v44  ;;  %v5880_v59 = vld [vmem:[%s7589_s8 + $0x298] sm:$0xf]  ;;  %v5881_v60 = vld [vmem:[%s7589_s8 + $0x2b0] sm:$0xf] }
  0xb0   : > { %706 = vst [vmem:[%s7594_s30 + $0x34] sm:$0xf] %v5866_v45  ;;  %v5882_v61 = vld [vmem:[%s7589_s8 + $0x2c8] sm:$0xf]  ;;  %v5883_v62 = vld [vmem:[%s7589_s8 + $0x2e0] sm:$0xf] }
  0xb1   : > { %708 = vst [vmem:[%s7594_s30 + $0x38] sm:$0xf] %v5867_v46  ;;  %v5884_v63 = vld [vmem:[%s7589_s8 + $0x2f8] sm:$0xf]  ;;  %v5885_v0 = vld [vmem:[%s7589_s8 + $0x310] sm:$0xf] }
  0xb2   : > { %710 = vst [vmem:[%s7594_s30 + $0x3c] sm:$0xf] %v5868_v47  ;;  %v5886_v1 = vld [vmem:[%s7589_s8 + $0x328] sm:$0xf]  ;;  %v5887_v2 = vld [vmem:[%s7589_s8 + $0x340] sm:$0xf] }
  0xb3   : > { %712 = vst [vmem:[%s7594_s30 + $0x40] sm:$0xf] %v5869_v48  ;;  %v5888_v3 = vld [vmem:[%s7589_s8 + $0x358] sm:$0xf]  ;;  %v5889_v4 = vld [vmem:[%s7589_s8 + $0x370] sm:$0xf] }
  0xb4   : > { %714 = vst [vmem:[%s7594_s30 + $0x44] sm:$0xf] %v5870_v49  ;;  %v5890_v5 = vld [vmem:[%s7589_s8 + $0x388] sm:$0xf]  ;;  %v5891_v6 = vld [vmem:[%s7589_s8 + $0x3a0] sm:$0xf] }
  0xb5   : > { %716 = vst [vmem:[%s7594_s30 + $0x48] sm:$0xf] %v5871_v50  ;;  %v5892_v7 = vld [vmem:[%s7589_s8 + $0x3b8] sm:$0xf]  ;;  %v5893_v8 = vld [vmem:[%s7589_s8 + $0x3d0] sm:$0xf] }
  0xb6   : > { %718 = vst [vmem:[%s7594_s30 + $0x4c] sm:$0xf] %v5872_v51  ;;  %v5894_v9 = vld [vmem:[%s7589_s8 + $0x3e8] sm:$0xf]  ;;  %v5895_v10 = vld [vmem:[%s7589_s8 + $0x400] sm:$0xf] }
  0xb7   : > { %720 = vst [vmem:[%s7594_s30 + $0x50] sm:$0xf] %v5873_v52  ;;  %v5896_v11 = vld [vmem:[%s7589_s8 + $0x418] sm:$0xf]  ;;  %v5897_v12 = vld [vmem:[%s7589_s8 + $0x430] sm:$0xf] }
  0xb8   : > { %722 = vst [vmem:[%s7594_s30 + $0x54] sm:$0xf] %v5874_v53  ;;  %v5898_v13 = vld [vmem:[%s7589_s8 + $0x448] sm:$0xf]  ;;  %v5899_v14 = vld [vmem:[%s7589_s8 + $0x460] sm:$0xf] }
  0xb9   : > { %724 = vst [vmem:[%s7594_s30 + $0x58] sm:$0xf] %v5875_v54  ;;  %v5900_v15 = vld [vmem:[%s7589_s8 + $0x478] sm:$0xf]  ;;  %v5901_v16 = vld [vmem:[%s7589_s8 + $0x490] sm:$0xf] }
  0xba   : > { %726 = vst [vmem:[%s7594_s30 + $0x5c] sm:$0xf] %v5876_v55  ;;  %v5902_v17 = vld [vmem:[%s7589_s8 + $0x4a8] sm:$0xf]  ;;  %v5903_v18 = vld [vmem:[%s7589_s8 + $0x4c0] sm:$0xf] }
  0xbb   : > { %728 = vst [vmem:[%s7594_s30 + $0x60] sm:$0xf] %v5877_v56  ;;  %v5904_v19 = vld [vmem:[%s7589_s8 + $0x4d8] sm:$0xf]  ;;  %v5905_v20 = vld [vmem:[%s7589_s8 + $0x4f0] sm:$0xf] }
  0xbc   : > { %730 = vst [vmem:[%s7594_s30 + $0x64] sm:$0xf] %v5878_v57  ;;  %v5906_v21 = vld [vmem:[%s7589_s8 + $0x508] sm:$0xf]  ;;  %v5907_v22 = vld [vmem:[%s7589_s8 + $0x520] sm:$0xf] }
  0xbd   : > { %732 = vst [vmem:[%s7594_s30 + $0x68] sm:$0xf] %v5879_v58  ;;  %v5908_v23 = vld [vmem:[%s7589_s8 + $0x538] sm:$0xf]  ;;  %v5909_v24 = vld [vmem:[%s7589_s8 + $0x550] sm:$0xf] }
  0xbe   : > { %734 = vst [vmem:[%s7594_s30 + $0x6c] sm:$0xf] %v5880_v59  ;;  %v5910_v25 = vld [vmem:[%s7589_s8 + $0x568] sm:$0xf]  ;;  %v5911_v26 = vld [vmem:[%s7589_s8 + $0x580] sm:$0xf] }
  0xbf   : > { %736 = vst [vmem:[%s7594_s30 + $0x70] sm:$0xf] %v5881_v60  ;;  %v5912_v27 = vld [vmem:[%s7589_s8 + $0x598] sm:$0xf]  ;;  %v5913_v28 = vld [vmem:[%s7589_s8 + $0x5b0] sm:$0xf] }
  0xc0   : > { %738 = vst [vmem:[%s7594_s30 + $0x74] sm:$0xf] %v5882_v61  ;;  %v5914_v29 = vld [vmem:[%s7589_s8 + $0x5c8] sm:$0xf]  ;;  %v5915_v30 = vld [vmem:[%s7589_s8 + $0x5e0] sm:$0xf] }
  0xc1   : > { %740 = vst [vmem:[%s7594_s30 + $0x78] sm:$0xf] %v5883_v62  ;;  %v5916_v31 = vld [vmem:[%s7589_s8 + $0x5f8] sm:$0xf] }
  0xc2   : > { %742 = vst [vmem:[%s7594_s30 + $0x7c] sm:$0xf] %v5884_v63 }
  0xc3   : > { %744 = vst [vmem:[%s7594_s30 + $0x80] sm:$0xf] %v5885_v0 }
  0xc4   : > { %746 = vst [vmem:[%s7594_s30 + $0x84] sm:$0xf] %v5886_v1 }
  0xc5   : > { %748 = vst [vmem:[%s7594_s30 + $0x88] sm:$0xf] %v5887_v2 }
  0xc6   : > { %750 = vst [vmem:[%s7594_s30 + $0x8c] sm:$0xf] %v5888_v3 }
  0xc7   : > { %752 = vst [vmem:[%s7594_s30 + $0x90] sm:$0xf] %v5889_v4 }
  0xc8   : > { %754 = vst [vmem:[%s7594_s30 + $0x94] sm:$0xf] %v5890_v5 }
  0xc9   : > { %756 = vst [vmem:[%s7594_s30 + $0x98] sm:$0xf] %v5891_v6 }
  0xca   : > { %758 = vst [vmem:[%s7594_s30 + $0x9c] sm:$0xf] %v5892_v7 }
  0xcb   : > { %760 = vst [vmem:[%s7594_s30 + $0xa0] sm:$0xf] %v5893_v8 }
  0xcc   : > { %762 = vst [vmem:[%s7594_s30 + $0xa4] sm:$0xf] %v5894_v9 }
  0xcd   : > { %764 = vst [vmem:[%s7594_s30 + $0xa8] sm:$0xf] %v5895_v10 }
  0xce   : > { %766 = vst [vmem:[%s7594_s30 + $0xac] sm:$0xf] %v5896_v11 }
  0xcf   : > { %768 = vst [vmem:[%s7594_s30 + $0xb0] sm:$0xf] %v5897_v12 }
  0xd0   : > { %770 = vst [vmem:[%s7594_s30 + $0xb4] sm:$0xf] %v5898_v13 }
  0xd1   : > { %772 = vst [vmem:[%s7594_s30 + $0xb8] sm:$0xf] %v5899_v14 }
  0xd2   : > { %774 = vst [vmem:[%s7594_s30 + $0xbc] sm:$0xf] %v5900_v15 }
  0xd3   : > { %776 = vst [vmem:[%s7594_s30 + $0xc0] sm:$0xf] %v5901_v16 }
  0xd4   : > { %778 = vst [vmem:[%s7594_s30 + $0xc4] sm:$0xf] %v5902_v17 }
  0xd5   : > { %780 = vst [vmem:[%s7594_s30 + $0xc8] sm:$0xf] %v5903_v18 }
  0xd6   : > { %782 = vst [vmem:[%s7594_s30 + $0xcc] sm:$0xf] %v5904_v19 }
  0xd7   : > { %784 = vst [vmem:[%s7594_s30 + $0xd0] sm:$0xf] %v5905_v20 }
  0xd8   : > { %786 = vst [vmem:[%s7594_s30 + $0xd4] sm:$0xf] %v5906_v21 }
  0xd9   : > { %788 = vst [vmem:[%s7594_s30 + $0xd8] sm:$0xf] %v5907_v22 }
  0xda   : > { %790 = vst [vmem:[%s7594_s30 + $0xdc] sm:$0xf] %v5908_v23 }
  0xdb   : > { %792 = vst [vmem:[%s7594_s30 + $0xe0] sm:$0xf] %v5909_v24 }
  0xdc   : > { %794 = vst [vmem:[%s7594_s30 + $0xe4] sm:$0xf] %v5910_v25 }
  0xdd   : > { %796 = vst [vmem:[%s7594_s30 + $0xe8] sm:$0xf] %v5911_v26 }
  0xde   : > { %798 = vst [vmem:[%s7594_s30 + $0xec] sm:$0xf] %v5912_v27 }
  0xdf   : > { %800 = vst [vmem:[%s7594_s30 + $0xf0] sm:$0xf] %v5913_v28 }
  0xe0   : > { %802 = vst [vmem:[%s7594_s30 + $0xf4] sm:$0xf] %v5914_v29 }
  0xe1   : > { %804 = vst [vmem:[%s7594_s30 + $0xf8] sm:$0xf] %v5915_v30 }
  0xe2   : > { %806 = vst [vmem:[%s7594_s30 + $0xfc] sm:$0xf] %v5916_v31 }
  0xe3 PF: > { %p5917_p1 = scmp.ge.s32.totalorder %s7195_s24, 1  ;;  %p957_p3 = scmp.lt.s32.totalorder %s7195_s24, 9 }
  0xe5   : > { %p958_p4 = pnand %p5917_p1, %p957_p3 }
  0xe7   : > { %961 = sbr.rel (%p958_p4) target bundleno = 3358 (0xd1e), region = 143 }
  0xec   : > { %s10476_s2 = sld [smem:[#allocation9_spill]]  ;;  %s964_s3 = sand.u32 1, %s7163_s16   ;;  %vm1044_vm0 = vcmask 7168   ;;  %v10350_v32 = vmov -1e+30  }
  0xed   : > { %s7725_s20 = sshll.u32 %s964_s3, 7  ;;  %1045 = vst.msk [vmem:[#allocation2] sm:$0xff] %vm1044_vm0, %v10350_v32  ;;  %s978_s10 = sand.u32 1, %s7147_s12  }
  0xee   : > { %1046 = vst.msk [vmem:[#allocation2 + $0x8] sm:$0xff] %vm1044_vm0, %v10350_v32  ;;  %s7735_s28 = scalar_lea.vmem [#allocation5], %s7725_s20  ;;  %s7743_s12 = sshll.u32 %s978_s10, 8 }
  0xef   : > { %v7738_v33 = vld [vmem:[%s7735_s28] sm:$0xf]  ;;  %v7746_v35 = vld [vmem:[%s7735_s28] sm:$0xf0]  ;;  %1047 = vst.msk [vmem:[#allocation2 + $0x10] sm:$0xff] %vm1044_vm0, %v10350_v32  ;;  %s980_s29 = scalar_lea.vmem [#allocation7], %s7743_s12 }
  0xf0   : > { %10477 = vst [vmem:[#allocation16_spill] sm:$0xff] %v7738_v33  ;;  %v7741_v34 = vld [vmem:[%s7735_s28] sm:$0xf]  ;;  %v7749_v36 = vld [vmem:[%s7735_s28] sm:$0xf0]  ;;  %s8090_s5 = scalar_lea.vmem [#allocation8], %s7725_s20 }
  0xf1   : > { %10478 = vst [vmem:[#allocation17_spill] sm:$0xff] %v7741_v34  ;;  %v7754_v37 = vld [vmem:[%s7735_s28 + $0x8] sm:$0xf]  ;;  %v7762_v39 = vld [vmem:[%s7735_s28 + $0x8] sm:$0xf0]  ;;  %s10542_s6 = sld [smem:[#allocation10_spill]] }
  0xf2   : > { %s971_s14 = sand.u32 1, %s10476_s2   ;;  %10479 = vst [vmem:[#allocation18_spill] sm:$0xff] %v7746_v35  ;;  %v7757_v38 = vld [vmem:[%s7735_s28 + $0x8] sm:$0xf]  ;;  %v7765_v40 = vld [vmem:[%s7735_s28 + $0x8] sm:$0xf0] }
  0xf3   : > { %s7727_s25 = sshll.u32 %s971_s14, 8  ;;  %10480 = vst [vmem:[#allocation19_spill] sm:$0xff] %v7749_v36  ;;  %v7768_v41 = vld [vmem:[%s7735_s28 + $0x10] sm:$0xf]  ;;  %v7774_v43 = vld [vmem:[%s7735_s28 + $0x10] sm:$0xf0] }
  0xf4   : > { %10481 = vst [vmem:[#allocation20_spill] sm:$0xff] %v7754_v37  ;;  %v7771_v42 = vld [vmem:[%s7735_s28 + $0x10] sm:$0xf]  ;;  %v7777_v44 = vld [vmem:[%s7735_s28 + $0x10] sm:$0xf0]  ;;  %s973_s16 = scalar_lea.vmem [#allocation6], %s7727_s25 }
  0xf5   : > { %10482 = vst [vmem:[#allocation21_spill] sm:$0xff] %v7757_v38  ;;  %v7780_v45 = vld [vmem:[%s7735_s28 + $0x18] sm:$0xf]  ;;  %v7786_v47 = vld [vmem:[%s7735_s28 + $0x18] sm:$0xf0] }
  0xf6   : > { %1048 = vst.msk [vmem:[#allocation2 + $0x18] sm:$0xff] %vm1044_vm0, %v10350_v32  ;;  %v7783_v46 = vld [vmem:[%s7735_s28 + $0x18] sm:$0xf]  ;;  %v7789_v48 = vld [vmem:[%s7735_s28 + $0x18] sm:$0xf0] }
  0xf7   : > { %10483 = vst [vmem:[#allocation22_spill] sm:$0xff] %v7762_v39  ;;  %v7792_v49 = vld [vmem:[%s7735_s28 + $0x20] sm:$0xf]  ;;  %v7798_v51 = vld [vmem:[%s7735_s28 + $0x20] sm:$0xf0]  ;;  %p5922_p5 = scmp.le.s32.totalorder %s10542_s6, 0 }
  0xf8   : > { %10484 = vst [vmem:[#allocation23_spill] sm:$0xff] %v7765_v40  ;;  %v7795_v50 = vld [vmem:[%s7735_s28 + $0x20] sm:$0xf]  ;;  %v7801_v52 = vld [vmem:[%s7735_s28 + $0x20] sm:$0xf0]  ;;  %s8093_s9 = smov (!%p5922_p5), 0  }
  0xf9   : > { %10485 = vst [vmem:[#allocation24_spill] sm:$0xff] %v7768_v41  ;;  %v7804_v53 = vld [vmem:[%s7735_s28 + $0x28] sm:$0xf]  ;;  %v7810_v55 = vld [vmem:[%s7735_s28 + $0x28] sm:$0xf0] }
  0xfa   : > { %10486 = vst [vmem:[#allocation25_spill] sm:$0xff] %v7771_v42  ;;  %v7807_v54 = vld [vmem:[%s7735_s28 + $0x28] sm:$0xf]  ;;  %v7813_v56 = vld [vmem:[%s7735_s28 + $0x28] sm:$0xf0] }
  0xfb   : > { %10487 = vst [vmem:[#allocation26_spill] sm:$0xff] %v7774_v43  ;;  %v7816_v57 = vld [vmem:[%s7735_s28 + $0x30] sm:$0xf]  ;;  %v7822_v59 = vld [vmem:[%s7735_s28 + $0x30] sm:$0xf0] }
  0xfc   : > { %10488 = vst [vmem:[#allocation27_spill] sm:$0xff] %v7777_v44  ;;  %v7819_v58 = vld [vmem:[%s7735_s28 + $0x30] sm:$0xf]  ;;  %v7825_v60 = vld [vmem:[%s7735_s28 + $0x30] sm:$0xf0] }
  0xfd   : > { %10489 = vst [vmem:[#allocation28_spill] sm:$0xff] %v7780_v45  ;;  %v7828_v61 = vld [vmem:[%s7735_s28 + $0x38] sm:$0xf]  ;;  %v7834_v63 = vld [vmem:[%s7735_s28 + $0x38] sm:$0xf0] }
  0xfe   : > { %10490 = vst [vmem:[#allocation29_spill] sm:$0xff] %v7783_v46  ;;  %v7831_v62 = vld [vmem:[%s7735_s28 + $0x38] sm:$0xf]  ;;  %v7837_v0 = vld [vmem:[%s7735_s28 + $0x38] sm:$0xf0] }
  0xff   : > { %10491 = vst [vmem:[#allocation30_spill] sm:$0xff] %v7786_v47  ;;  %v7840_v1 = vld [vmem:[%s7735_s28 + $0x40] sm:$0xf]  ;;  %v7846_v3 = vld [vmem:[%s7735_s28 + $0x40] sm:$0xf0] }
 0x100   : > { %10492 = vst [vmem:[#allocation31_spill] sm:$0xff] %v7789_v48  ;;  %v7843_v2 = vld [vmem:[%s7735_s28 + $0x40] sm:$0xf]  ;;  %v7849_v4 = vld [vmem:[%s7735_s28 + $0x40] sm:$0xf0] }
 0x101   : > { %10493 = vst [vmem:[#allocation32_spill] sm:$0xff] %v7792_v49  ;;  %v7852_v5 = vld [vmem:[%s7735_s28 + $0x48] sm:$0xf]  ;;  %v7858_v7 = vld [vmem:[%s7735_s28 + $0x48] sm:$0xf0] }
 0x102   : > { %10494 = vst [vmem:[#allocation33_spill] sm:$0xff] %v7795_v50  ;;  %v7855_v6 = vld [vmem:[%s7735_s28 + $0x48] sm:$0xf]  ;;  %v7861_v8 = vld [vmem:[%s7735_s28 + $0x48] sm:$0xf0] }
 0x103   : > { %10495 = vst [vmem:[#allocation34_spill] sm:$0xff] %v7798_v51  ;;  %v7864_v9 = vld [vmem:[%s7735_s28 + $0x50] sm:$0xf]  ;;  %v7870_v11 = vld [vmem:[%s7735_s28 + $0x50] sm:$0xf0] }
 0x104   : > { %10496 = vst [vmem:[#allocation35_spill] sm:$0xff] %v7801_v52  ;;  %v7867_v10 = vld [vmem:[%s7735_s28 + $0x50] sm:$0xf]  ;;  %v7873_v12 = vld [vmem:[%s7735_s28 + $0x50] sm:$0xf0] }
 0x105   : > { %10497 = vst [vmem:[#allocation36_spill] sm:$0xff] %v7804_v53  ;;  %v7876_v13 = vld [vmem:[%s7735_s28 + $0x58] sm:$0xf]  ;;  %v7882_v15 = vld [vmem:[%s7735_s28 + $0x58] sm:$0xf0] }
 0x106   : > { %10498 = vst [vmem:[#allocation37_spill] sm:$0xff] %v7807_v54  ;;  %v7879_v14 = vld [vmem:[%s7735_s28 + $0x58] sm:$0xf]  ;;  %v7885_v16 = vld [vmem:[%s7735_s28 + $0x58] sm:$0xf0] }
 0x107   : > { %10499 = vst [vmem:[#allocation38_spill] sm:$0xff] %v7810_v55  ;;  %v7888_v17 = vld [vmem:[%s7735_s28 + $0x60] sm:$0xf]  ;;  %v7894_v19 = vld [vmem:[%s7735_s28 + $0x60] sm:$0xf0] }
 0x108   : > { %10500 = vst [vmem:[#allocation39_spill] sm:$0xff] %v7813_v56  ;;  %v7891_v18 = vld [vmem:[%s7735_s28 + $0x60] sm:$0xf]  ;;  %v7897_v20 = vld [vmem:[%s7735_s28 + $0x60] sm:$0xf0] }
 0x109   : > { %10501 = vst [vmem:[#allocation40_spill] sm:$0xff] %v7816_v57  ;;  %v7900_v21 = vld [vmem:[%s7735_s28 + $0x68] sm:$0xf]  ;;  %v7906_v23 = vld [vmem:[%s7735_s28 + $0x68] sm:$0xf0] }
 0x10a   : > { %10502 = vst [vmem:[#allocation41_spill] sm:$0xff] %v7819_v58  ;;  %v7903_v22 = vld [vmem:[%s7735_s28 + $0x68] sm:$0xf]  ;;  %v7909_v24 = vld [vmem:[%s7735_s28 + $0x68] sm:$0xf0] }
 0x10b   : > { %10503 = vst [vmem:[#allocation42_spill] sm:$0xff] %v7822_v59  ;;  %v7912_v25 = vld [vmem:[%s7735_s28 + $0x70] sm:$0xf]  ;;  %v7918_v27 = vld [vmem:[%s7735_s28 + $0x70] sm:$0xf0] }
 0x10c   : > { %10504 = vst [vmem:[#allocation43_spill] sm:$0xff] %v7825_v60  ;;  %v7915_v26 = vld [vmem:[%s7735_s28 + $0x70] sm:$0xf]  ;;  %v7921_v28 = vld [vmem:[%s7735_s28 + $0x70] sm:$0xf0] }
 0x10d   : > { %10505 = vst [vmem:[#allocation44_spill] sm:$0xff] %v7828_v61  ;;  %v7924_v29 = vld [vmem:[%s7735_s28 + $0x78] sm:$0xf]  ;;  %v7930_v31 = vld [vmem:[%s7735_s28 + $0x78] sm:$0xf0] }
 0x10e   : > { %10506 = vst [vmem:[#allocation45_spill] sm:$0xff] %v7831_v62  ;;  %v7927_v30 = vld [vmem:[%s7735_s28 + $0x78] sm:$0xf]  ;;  %v7933_v32 = vld [vmem:[%s7735_s28 + $0x78] sm:$0xf0] }
 0x10f   : > { %10507 = vst [vmem:[#allocation46_spill] sm:$0xff] %v7834_v63 }
 0x110   : > { %10508 = vst [vmem:[#allocation47_spill] sm:$0xff] %v7837_v0 }
 0x111   : > { %10509 = vst [vmem:[#allocation48_spill] sm:$0xff] %v7840_v1 }
 0x112   : > { %10510 = vst [vmem:[#allocation49_spill] sm:$0xff] %v7843_v2 }
 0x113   : > { %10511 = vst [vmem:[#allocation50_spill] sm:$0xff] %v7846_v3 }
 0x114   : > { %10512 = vst [vmem:[#allocation51_spill] sm:$0xff] %v7849_v4 }
 0x115   : > { %10513 = vst [vmem:[#allocation52_spill] sm:$0xff] %v7852_v5 }
 0x116   : > { %10514 = vst [vmem:[#allocation53_spill] sm:$0xff] %v7855_v6 }
 0x117   : > { %10515 = vst [vmem:[#allocation54_spill] sm:$0xff] %v7858_v7 }
 0x118   : > { %10516 = vst [vmem:[#allocation55_spill] sm:$0xff] %v7861_v8 }
 0x119   : > { %10517 = vst [vmem:[#allocation56_spill] sm:$0xff] %v7864_v9 }
 0x11a   : > { %10518 = vst [vmem:[#allocation57_spill] sm:$0xff] %v7867_v10 }
 0x11b   : > { %10519 = vst [vmem:[#allocation58_spill] sm:$0xff] %v7870_v11 }
 0x11c   : > { %10520 = vst [vmem:[#allocation59_spill] sm:$0xff] %v7873_v12 }
 0x11d   : > { %10521 = vst [vmem:[#allocation60_spill] sm:$0xff] %v7876_v13 }
 0x11e   : > { %10522 = vst [vmem:[#allocation61_spill] sm:$0xff] %v7879_v14 }
 0x11f   : > { %10523 = vst [vmem:[#allocation62_spill] sm:$0xff] %v7882_v15 }
 0x120   : > { %10524 = vst [vmem:[#allocation63_spill] sm:$0xff] %v7885_v16 }
 0x121   : > { %10525 = vst [vmem:[#allocation64_spill] sm:$0xff] %v7888_v17 }
 0x122   : > { %10526 = vst [vmem:[#allocation65_spill] sm:$0xff] %v7891_v18 }
 0x123   : > { %10527 = vst [vmem:[#allocation66_spill] sm:$0xff] %v7894_v19 }
 0x124   : > { %10528 = vst [vmem:[#allocation67_spill] sm:$0xff] %v7897_v20 }
 0x125   : > { %10529 = vst [vmem:[#allocation68_spill] sm:$0xff] %v7900_v21  ;;  %v10541_v21 = vmov -1e+30  }
 0x126   : > { %10530 = vst [vmem:[#allocation69_spill] sm:$0xff] %v7903_v22 }
 0x127   : > { %10531 = vst [vmem:[#allocation70_spill] sm:$0xff] %v7906_v23 }
 0x128   : > { %10532 = vst [vmem:[#allocation71_spill] sm:$0xff] %v7909_v24 }
 0x129   : > { %10533 = vst [vmem:[#allocation72_spill] sm:$0xff] %v7912_v25 }
 0x12a   : > { %10534 = vst [vmem:[#allocation73_spill] sm:$0xff] %v7915_v26 }
 0x12b   : > { %10535 = vst [vmem:[#allocation74_spill] sm:$0xff] %v7918_v27 }
 0x12c   : > { %10536 = vst [vmem:[#allocation75_spill] sm:$0xff] %v7921_v28 }
 0x12d   : > { %10537 = vst [vmem:[#allocation76_spill] sm:$0xff] %v7924_v29 }
 0x12e   : > { %10538 = vst [vmem:[#allocation77_spill] sm:$0xff] %v7927_v30 }
 0x12f   : > { %10539 = vst [vmem:[#allocation78_spill] sm:$0xff] %v7930_v31  ;;  %v7202_v31 = vmov 0.0  }
 0x130   : > { %10540 = vst [vmem:[#allocation79_spill] sm:$0xff] %v7933_v32 }
 0x131   : > { %1049 = vst.msk [vmem:[#allocation2 + $0x20] sm:$0xff] %vm1044_vm0, %v10541_v21 }
 0x132   : > { %1050 = vst.msk [vmem:[#allocation2 + $0x28] sm:$0xff] %vm1044_vm0, %v10541_v21 }
 0x133   : > { %1051 = vst.msk [vmem:[#allocation2 + $0x30] sm:$0xff] %vm1044_vm0, %v10541_v21 }
 0x134   : > { %1052 = vst.msk [vmem:[#allocation2 + $0x38] sm:$0xff] %vm1044_vm0, %v10541_v21 }
 0x135   : > { %1053 = vst.msk [vmem:[#allocation2 + $0x40] sm:$0xff] %vm1044_vm0, %v10541_v21 }
 0x136   : > { %1054 = vst.msk [vmem:[#allocation2 + $0x48] sm:$0xff] %vm1044_vm0, %v10541_v21 }
 0x137   : > { %1055 = vst.msk [vmem:[#allocation2 + $0x50] sm:$0xff] %vm1044_vm0, %v10541_v21 }
 0x138   : > { %1056 = vst.msk [vmem:[#allocation2 + $0x58] sm:$0xff] %vm1044_vm0, %v10541_v21 }
 0x139   : > { %1057 = vst.msk [vmem:[#allocation2 + $0x60] sm:$0xff] %vm1044_vm0, %v10541_v21 }
 0x13a   : > { %1058 = vst.msk [vmem:[#allocation2 + $0x68] sm:$0xff] %vm1044_vm0, %v10541_v21 }
 0x13b   : > { %1059 = vst.msk [vmem:[#allocation2 + $0x70] sm:$0xff] %vm1044_vm0, %v10541_v21 }
 0x13c   : > { %1060 = vst.msk [vmem:[#allocation2 + $0x78] sm:$0xff] %vm1044_vm0, %v10541_v21 }
 0x13d   : > { %1061 = vst.msk [vmem:[#allocation2 + $0x80] sm:$0xff] %vm1044_vm0, %v10541_v21 }
 0x13e   : > { %1062 = vst.msk [vmem:[#allocation2 + $0x88] sm:$0xff] %vm1044_vm0, %v10541_v21 }
 0x13f   : > { %1063 = vst.msk [vmem:[#allocation2 + $0x90] sm:$0xff] %vm1044_vm0, %v10541_v21 }
 0x140   : > { %1064 = vst.msk [vmem:[#allocation2 + $0x98] sm:$0xff] %vm1044_vm0, %v10541_v21 }
 0x141   : > { %1065 = vst.msk [vmem:[#allocation2 + $0xa0] sm:$0xff] %vm1044_vm0, %v10541_v21 }
 0x142   : > { %1066 = vst.msk [vmem:[#allocation2 + $0xa8] sm:$0xff] %vm1044_vm0, %v10541_v21 }
 0x143   : > { %1067 = vst.msk [vmem:[#allocation2 + $0xb0] sm:$0xff] %vm1044_vm0, %v10541_v21 }
 0x144   : > { %1068 = vst.msk [vmem:[#allocation2 + $0xb8] sm:$0xff] %vm1044_vm0, %v10541_v21 }
 0x145   : > { %1069 = vst.msk [vmem:[#allocation2 + $0xc0] sm:$0xff] %vm1044_vm0, %v10541_v21 }
 0x146   : > { %1070 = vst.msk [vmem:[#allocation2 + $0xc8] sm:$0xff] %vm1044_vm0, %v10541_v21 }
 0x147   : > { %1071 = vst.msk [vmem:[#allocation2 + $0xd0] sm:$0xff] %vm1044_vm0, %v10541_v21 }
 0x148   : > { %1072 = vst.msk [vmem:[#allocation2 + $0xd8] sm:$0xff] %vm1044_vm0, %v10541_v21 }
 0x149   : > { %1073 = vst.msk [vmem:[#allocation2 + $0xe0] sm:$0xff] %vm1044_vm0, %v10541_v21 }
 0x14a   : > { %1074 = vst.msk [vmem:[#allocation2 + $0xe8] sm:$0xff] %vm1044_vm0, %v10541_v21 }
 0x14b   : > { %1075 = vst.msk [vmem:[#allocation2 + $0xf0] sm:$0xff] %vm1044_vm0, %v10541_v21 }
 0x14c   : > { %1076 = vst.msk [vmem:[#allocation2 + $0xf8] sm:$0xff] %vm1044_vm0, %v10541_v21 }
 0x14d   : > { %1077 = vst.msk [vmem:[#allocation3] sm:$0xff] %vm1044_vm0, %v7202_v31 }
 0x14e   : > { %1078 = vst.msk [vmem:[#allocation3 + $0x8] sm:$0xff] %vm1044_vm0, %v7202_v31 }
 0x14f   : > { %1079 = vst.msk [vmem:[#allocation3 + $0x10] sm:$0xff] %vm1044_vm0, %v7202_v31 }
 0x150   : > { %1080 = vst.msk [vmem:[#allocation3 + $0x18] sm:$0xff] %vm1044_vm0, %v7202_v31 }
 0x151   : > { %1081 = vst.msk [vmem:[#allocation3 + $0x20] sm:$0xff] %vm1044_vm0, %v7202_v31 }
 0x152   : > { %1082 = vst.msk [vmem:[#allocation3 + $0x28] sm:$0xff] %vm1044_vm0, %v7202_v31 }
 0x153   : > { %1083 = vst.msk [vmem:[#allocation3 + $0x30] sm:$0xff] %vm1044_vm0, %v7202_v31 }
 0x154   : > { %1084 = vst.msk [vmem:[#allocation3 + $0x38] sm:$0xff] %vm1044_vm0, %v7202_v31 }
 0x155   : > { %1085 = vst.msk [vmem:[#allocation3 + $0x40] sm:$0xff] %vm1044_vm0, %v7202_v31 }
 0x156   : > { %1086 = vst.msk [vmem:[#allocation3 + $0x48] sm:$0xff] %vm1044_vm0, %v7202_v31 }
 0x157   : > { %1087 = vst.msk [vmem:[#allocation3 + $0x50] sm:$0xff] %vm1044_vm0, %v7202_v31 }
 0x158   : > { %1088 = vst.msk [vmem:[#allocation3 + $0x58] sm:$0xff] %vm1044_vm0, %v7202_v31 }
 0x159   : > { %1089 = vst.msk [vmem:[#allocation3 + $0x60] sm:$0xff] %vm1044_vm0, %v7202_v31 }
 0x15a   : > { %1090 = vst.msk [vmem:[#allocation3 + $0x68] sm:$0xff] %vm1044_vm0, %v7202_v31 }
 0x15b   : > { %1091 = vst.msk [vmem:[#allocation3 + $0x70] sm:$0xff] %vm1044_vm0, %v7202_v31 }
 0x15c   : > { %1092 = vst.msk [vmem:[#allocation3 + $0x78] sm:$0xff] %vm1044_vm0, %v7202_v31 }
 0x15d   : > { %1093 = vst.msk [vmem:[#allocation3 + $0x80] sm:$0xff] %vm1044_vm0, %v7202_v31 }
 0x15e   : > { %1094 = vst.msk [vmem:[#allocation3 + $0x88] sm:$0xff] %vm1044_vm0, %v7202_v31 }
 0x15f   : > { %1095 = vst.msk [vmem:[#allocation3 + $0x90] sm:$0xff] %vm1044_vm0, %v7202_v31 }
 0x160   : > { %1096 = vst.msk [vmem:[#allocation3 + $0x98] sm:$0xff] %vm1044_vm0, %v7202_v31 }
 0x161   : > { %1097 = vst.msk [vmem:[#allocation3 + $0xa0] sm:$0xff] %vm1044_vm0, %v7202_v31 }
 0x162   : > { %1098 = vst.msk [vmem:[#allocation3 + $0xa8] sm:$0xff] %vm1044_vm0, %v7202_v31 }
 0x163   : > { %1099 = vst.msk [vmem:[#allocation3 + $0xb0] sm:$0xff] %vm1044_vm0, %v7202_v31 }
 0x164   : > { %1100 = vst.msk [vmem:[#allocation3 + $0xb8] sm:$0xff] %vm1044_vm0, %v7202_v31 }
 0x165   : > { %1101 = vst.msk [vmem:[#allocation3 + $0xc0] sm:$0xff] %vm1044_vm0, %v7202_v31 }
 0x166   : > { %1102 = vst.msk [vmem:[#allocation3 + $0xc8] sm:$0xff] %vm1044_vm0, %v7202_v31 }
 0x167   : > { %1103 = vst.msk [vmem:[#allocation3 + $0xd0] sm:$0xff] %vm1044_vm0, %v7202_v31 }
 0x168   : > { %1104 = vst.msk [vmem:[#allocation3 + $0xd8] sm:$0xff] %vm1044_vm0, %v7202_v31 }
 0x169   : > { %1105 = vst.msk [vmem:[#allocation3 + $0xe0] sm:$0xff] %vm1044_vm0, %v7202_v31 }
 0x16a   : > { %1106 = vst.msk [vmem:[#allocation3 + $0xe8] sm:$0xff] %vm1044_vm0, %v7202_v31 }
 0x16b   : > { %1107 = vst.msk [vmem:[#allocation3 + $0xf0] sm:$0xff] %vm1044_vm0, %v7202_v31 }
 0x16c   : > { %1108 = vst.msk [vmem:[#allocation3 + $0xf8] sm:$0xff] %vm1044_vm0, %v7202_v31 }
 0x16d   : > { %1109 = vst [vmem:[#allocation4 + $0xb0] sm:$0xff] %v7202_v31 }
 0x16e   : > { %1110 = vst [vmem:[#allocation4] sm:$0xff] %v7202_v31 }
 0x16f   : > { %1111 = vst [vmem:[#allocation4 + $0xd8] sm:$0xff] %v7202_v31 }
 0x170   : > { %1112 = vst [vmem:[#allocation4 + $0x18] sm:$0xff] %v7202_v31 }
 0x171   : > { %1113 = vst [vmem:[#allocation4 + $0x50] sm:$0xff] %v7202_v31 }
 0x172   : > { %1114 = vst [vmem:[#allocation4 + $0x68] sm:$0xff] %v7202_v31 }
 0x173   : > { %1115 = vst [vmem:[#allocation4 + $0x30] sm:$0xff] %v7202_v31 }
 0x174   : > { %1116 = vst [vmem:[#allocation4 + $0x48] sm:$0xff] %v7202_v31 }
 0x175   : > { %1117 = vst [vmem:[#allocation4 + $0x80] sm:$0xff] %v7202_v31 }
 0x176   : > { %1118 = vst [vmem:[#allocation4 + $0x88] sm:$0xff] %v7202_v31 }
 0x177   : > { %1119 = vst [vmem:[#allocation4 + $0xe8] sm:$0xff] %v7202_v31 }
 0x178   : > { %1120 = vst [vmem:[#allocation4 + $0xb8] sm:$0xff] %v7202_v31 }
 0x179   : > { %1121 = vst [vmem:[#allocation4 + $0x60] sm:$0xff] %v7202_v31 }
 0x17a   : > { %1122 = vst [vmem:[#allocation4 + $0xf0] sm:$0xff] %v7202_v31 }
 0x17b   : > { %1123 = vst [vmem:[#allocation4 + $0x8] sm:$0xff] %v7202_v31 }
 0x17c   : > { %1124 = vst [vmem:[#allocation4 + $0x78] sm:$0xff] %v7202_v31 }
 0x17d   : > { %1125 = vst [vmem:[#allocation4 + $0x38] sm:$0xff] %v7202_v31 }
 0x17e   : > { %1126 = vst [vmem:[#allocation4 + $0x58] sm:$0xff] %v7202_v31 }
 0x17f   : > { %1127 = vst [vmem:[#allocation4 + $0x40] sm:$0xff] %v7202_v31 }
 0x180   : > { %1128 = vst [vmem:[#allocation4 + $0xc8] sm:$0xff] %v7202_v31 }
 0x181   : > { %1129 = vst [vmem:[#allocation4 + $0xe0] sm:$0xff] %v7202_v31 }
 0x182   : > { %1130 = vst [vmem:[#allocation4 + $0x90] sm:$0xff] %v7202_v31 }
 0x183   : > { %1131 = vst [vmem:[#allocation4 + $0x70] sm:$0xff] %v7202_v31 }
 0x184   : > { %1132 = vst [vmem:[#allocation4 + $0xc0] sm:$0xff] %v7202_v31 }
 0x185   : > { %1133 = vst [vmem:[#allocation4 + $0xa8] sm:$0xff] %v7202_v31 }
 0x186   : > { %1134 = vst [vmem:[#allocation4 + $0xd0] sm:$0xff] %v7202_v31 }
 0x187   : > { %1135 = vst [vmem:[#allocation4 + $0x10] sm:$0xff] %v7202_v31 }
 0x188   : > { %1136 = vst [vmem:[#allocation4 + $0x28] sm:$0xff] %v7202_v31  ;;  %5724 = sbr.rel (%p5922_p5) target bundleno = 1671 (0x687), region = 252 }
 0x189   : > { %1137 = vst [vmem:[#allocation4 + $0xa0] sm:$0xff] %v7202_v31 }
 0x18a   : > { %1138 = vst [vmem:[#allocation4 + $0xf8] sm:$0xff] %v7202_v31 }
 0x18b   : > { %1139 = vst [vmem:[#allocation4 + $0x20] sm:$0xff] %v7202_v31 }
 0x18c   : > { %1140 = vst [vmem:[#allocation4 + $0x98] sm:$0xff] %v7202_v31 }
 0x18d LB: >> { %s5923_s7 = sshll.u32 %s7199_s9, 8  ;;  %v10543_v34 = vld [vmem:[#allocation17_spill] sm:$0xff]  ;;  %v10544_v36 = vld [vmem:[#allocation19_spill] sm:$0xff]  ;;  %s1144_s9 = sadd.s32 1, %s7199_s9   ;;  %s7199_s9 = sphi %s8093_s9, %s1144_s9  }
 0x18e   : >> { %s8099_s11 = sshra.s32 %s5923_s7, 3  ;;  %v10545_v38 = vld [vmem:[#allocation21_spill] sm:$0xff]  ;;  %v10546_v40 = vld [vmem:[#allocation23_spill] sm:$0xff]  ;;  %s10697_s2 = sld [smem:[#allocation10_spill]] }
 0x18f   : >> { %s5924_s4 = sshll.u32 %s8099_s11, 2  ;;  %v10547_v42 = vld [vmem:[#allocation25_spill] sm:$0xff]  ;;  %v10548_v44 = vld [vmem:[#allocation27_spill] sm:$0xff] }
 0x190   : >> { %s1151_s8 = scalar_lea.vmem %s973_s16, %s5924_s4 [#allocation6]  ;;  %v10549_v46 = vld [vmem:[#allocation29_spill] sm:$0xff]  ;;  %v10550_v48 = vld [vmem:[#allocation31_spill] sm:$0xff]  ;;  %s8327_s30 = scalar_lea.vmem %s980_s29, %s5924_s4 [#allocation7] }
 0x191   : >> { %v6359_v21 = vld [vmem:[%s1151_s8 + $0x38] sm:$0xff]  ;;  %v6358_v29 = vld [vmem:[%s1151_s8 + $0x30] sm:$0xff]  ;;  %v6357_v25 = vld [vmem:[%s1151_s8 + $0x28] sm:$0xff] }
 0x192   : >> { %v6367_v31 = vld [vmem:[%s1151_s8 + $0x78] sm:$0xff]  ;;  %1410 = vmatpush.bf16.xpose.msra.mxu0 %v6359_v21  ;;  %v6366_v27 = vld [vmem:[%s1151_s8 + $0x70] sm:$0xff]  ;;  %v6365_v23 = vld [vmem:[%s1151_s8 + $0x68] sm:$0xff] }
 0x193   : >> { %1499 = vmatpush.bf16.xpose.msra.mxu1 %v6367_v31  ;;  %v6356_v19 = vld [vmem:[%s1151_s8 + $0x20] sm:$0xff]  ;;  %v6355_v15 = vld [vmem:[%s1151_s8 + $0x18] sm:$0xff]  ;;  %v6354_v11 = vld [vmem:[%s1151_s8 + $0x10] sm:$0xff] }
 0x194   : >> { %v6364_v17 = vld [vmem:[%s1151_s8 + $0x60] sm:$0xff]  ;;  %v6363_v13 = vld [vmem:[%s1151_s8 + $0x58] sm:$0xff]  ;;  %v6362_v9 = vld [vmem:[%s1151_s8 + $0x50] sm:$0xff]  ;;  %p1143_p6 = scmp.ge.s32.totalorder %s1144_s9, %s10697_s2 }
 0x195   : >> { %v6353_v21 = vld [vmem:[%s1151_s8 + $0x8] sm:$0xff]  ;;  %v10552_v52 = vld [vmem:[#allocation35_spill] sm:$0xff] }
 0x196   : >> { %v6361_v31 = vld [vmem:[%s1151_s8 + $0x48] sm:$0xff]  ;;  %v10554_v56 = vld [vmem:[#allocation39_spill] sm:$0xff] }
 0x197   : >> { %v10551_v50 = vld [vmem:[#allocation33_spill] sm:$0xff]  ;;  %v10556_v60 = vld [vmem:[#allocation43_spill] sm:$0xff] }
 0x198   : >> { %v10553_v54 = vld [vmem:[#allocation37_spill] sm:$0xff]  ;;  %v10558_v0 = vld [vmem:[#allocation47_spill] sm:$0xff] }
 0x199   : >> { %v10555_v58 = vld [vmem:[#allocation41_spill] sm:$0xff]  ;;  %v10560_v4 = vld [vmem:[#allocation51_spill] sm:$0xff] }
 0x19a   : >> { %1411 = vmatpush.bf16.xpose.msra.mxu0 %v6358_v29  ;;  %v6360_v29 = vld [vmem:[%s1151_s8 + $0x40] sm:$0xff]  ;;  %v10557_v62 = vld [vmem:[#allocation45_spill] sm:$0xff]  ;;  %v10562_v8 = vld [vmem:[#allocation55_spill] sm:$0xff] }
 0x19b   : >> { %1500 = vmatpush.bf16.xpose.msra.mxu1 %v6366_v27  ;;  %v6352_v27 = vld [vmem:[%s1151_s8] sm:$0xff]  ;;  %v10559_v2 = vld [vmem:[#allocation49_spill] sm:$0xff]  ;;  %v10564_v12 = vld [vmem:[#allocation59_spill] sm:$0xff] }
 0x19c   : >> { %v10561_v6 = vld [vmem:[#allocation53_spill] sm:$0xff]  ;;  %v10570_v16 = vld [vmem:[#allocation63_spill] sm:$0xff] }
 0x19d   : >> { %v10563_v10 = vld [vmem:[#allocation57_spill] sm:$0xff]  ;;  %v10573_v20 = vld [vmem:[#allocation67_spill] sm:$0xff] }
 0x19e   : >> { %v10569_v14 = vld [vmem:[#allocation61_spill] sm:$0xff]  ;;  %v8273_v43 = vld [vmem:[#allocation2 + $0x38] sm:$0xff] }
 0x19f   : >> { %v5973_v63 = vor.u32 %v10570_v16, %v10569_v14  ;;  %v10572_v18 = vld [vmem:[#allocation65_spill] sm:$0xff]  ;;  %v10591_v24 = vld [vmem:[#allocation71_spill] sm:$0xff] }
 0x1a0   : >> { %v8295_v33 = vld [vmem:[#allocation2 + $0x48] sm:$0xff]  ;;  %v10603_v28 = vld [vmem:[#allocation75_spill] sm:$0xff] }
 0x1a1   : >> { %10578 = vst [vmem:[#allocation89_spill] sm:$0xff] %v8295_v33  ;;  %v10590_v22 = vld [vmem:[#allocation69_spill] sm:$0xff]  ;;  %v10605_v32 = vld [vmem:[#allocation79_spill] sm:$0xff] }
 0x1a2   : >> { %1412 = vmatpush.bf16.xpose.msra.mxu0 %v6357_v25  ;;  %v5957_v25 = vor.u32 %v10558_v0, %v10557_v62  ;;  %v10602_v26 = vld [vmem:[#allocation73_spill] sm:$0xff] }
 0x1a3   : >> { %1501 = vmatpush.bf16.xpose.msra.mxu1 %v6365_v23  ;;  %v5953_v23 = vor.u32 %v10556_v60, %v10555_v58  ;;  %v10604_v30 = vld [vmem:[#allocation77_spill] sm:$0xff] }
 0x1aa   : >> { %1413 = vmatpush.bf16.xpose.msra.mxu0 %v6356_v19  ;;  %v5929_v19 = vor.u32 %v10544_v36, %v10543_v34 }
 0x1ab   : >> { %1502 = vmatpush.bf16.xpose.msra.mxu1 %v6364_v17  ;;  %v5949_v17 = vor.u32 %v10554_v56, %v10553_v54 }
 0x1b2   : >> { %1414 = vmatpush.bf16.xpose.msra.mxu0 %v6355_v15  ;;  %v5945_v15 = vor.u32 %v10552_v52, %v10551_v50  ;;  %v5969_v50 = vor.u32 %v10564_v12, %v10563_v10 }
 0x1b3   : >> { %1503 = vmatpush.bf16.xpose.msra.mxu1 %v6363_v13  ;;  %v5933_v13 = vor.u32 %v10546_v40, %v10545_v38 }
 0x1ba   : >> { %1415 = vmatpush.bf16.xpose.msra.mxu0 %v6354_v11  ;;  %v5941_v11 = vor.u32 %v10550_v48, %v10549_v46 }
 0x1bb   : >> { %1504 = vmatpush.bf16.xpose.msra.mxu1 %v6362_v9  ;;  %v5937_v9 = vor.u32 %v10548_v44, %v10547_v42 }
 0x1c2   : >> { %1416 = vmatpush.bf16.xpose.msra.mxu0 %v6353_v21  ;;  %v5961_v21 = vor.u32 %v10560_v4, %v10559_v2 }
 0x1c3   : >> { %1505 = vmatpush.bf16.xpose.msra.mxu1 %v6361_v31 }
 0x1ca   : >> { %1417 = vmatpush.bf16.xpose.msra.mxu0 %v6352_v27 }
 0x1cb   : >> { %1506 = vmatpush.bf16.xpose.msra.mxu1 %v6360_v29 }
 0x1d1   : >> { %1418 = vmatmul.bf16.vlgmr.msra.gmra.mxu0 %v5929_v19 }
 0x1d2   : >> { %1507 = vmatmul.bf16.vlgmr.msra.gmra.mxu1 %v5929_v19 }
 0x1e1   : >> { %1423 = vmatmul.bf16.gmra.mxu0 %v5933_v13 }
 0x1e2   : >> { %1512 = vmatmul.bf16.gmra.mxu1 %v5933_v13 }
 0x1f1   : >> { %1428 = vmatmul.bf16.gmra.mxu0 %v5937_v9 }
 0x1f2   : >> { %1517 = vmatmul.bf16.gmra.mxu1 %v5937_v9 }
 0x201   : >> { %1433 = vmatmul.bf16.gmra.mxu0 %v5941_v11 }
 0x202   : >> { %1522 = vmatmul.bf16.gmra.mxu1 %v5941_v11 }
 0x211   : >> { %1438 = vmatmul.bf16.gmra.mxu0 %v5945_v15 }
 0x212   : >> { %1527 = vmatmul.bf16.gmra.mxu1 %v5945_v15 }
 0x221   : >> { %1443 = vmatmul.bf16.gmra.mxu0 %v5949_v17 }
 0x222   : >> { %1532 = vmatmul.bf16.gmra.mxu1 %v5949_v17 }
 0x231   : >> { %1448 = vmatmul.bf16.gmra.mxu0 %v5953_v23 }
 0x232   : >> { %1537 = vmatmul.bf16.gmra.mxu1 %v5953_v23 }
 0x241   : >> { %1453 = vmatmul.bf16.gmra.mxu0 %v5957_v25 }
 0x242   : >> { %1542 = vmatmul.bf16.gmra.mxu1 %v5957_v25 }
 0x24e   : >> { %v8124_v31 = vpop.f32.mrf.mxu0 }
 0x24f   : >> { %v8126_v27 = vpop.f32.mrf.mxu1 }
 0x250   : >> { %v1620_v29 = vmax.f32 %v8124_v31, %v8126_v27 }
 0x251   : >> { %1458 = vmatmul.bf16.gmra.mxu0 %v5961_v21 }
 0x252   : >> { %1547 = vmatmul.bf16.gmra.mxu1 %v5961_v21  ;;  %1621 = vmax.xlane.f32.xlu0 %v1620_v29  ;;  %v5965_v21 = vor.u32 %v10562_v8, %v10561_v6 }
 0x256   : >> { %v8130_v19 = vpop.f32.mrf.mxu0 }
 0x257   : >> { %v8132_v13 = vpop.f32.mrf.mxu1 }
 0x258   : >> { %v1623_v9 = vmax.f32 %v8130_v19, %v8132_v13 }
 0x25a   : >> { %1624 = vmax.xlane.f32.xlu0 %v1623_v9 }
 0x25e   : >> { %v8136_v11 = vpop.f32.mrf.mxu0 }
 0x25f   : >> { %v8138_v15 = vpop.f32.mrf.mxu1 }
 0x260   : >> { %v1626_v17 = vmax.f32 %v8136_v11, %v8138_v15 }
 0x261   : >> { %1463 = vmatmul.bf16.gmra.mxu0 %v5965_v21 }
 0x262   : >> { %1627 = vmax.xlane.f32.xlu1 %v1626_v17  ;;  %1552 = vmatmul.bf16.gmra.mxu1 %v5965_v21 }
 0x266   : >> { %v8142_v23 = vpop.f32.mrf.mxu0 }
 0x267   : >> { %v8144_v25 = vpop.f32.mrf.mxu1 }
 0x268   : >> { %v1629_v29 = vmax.f32 %v8142_v23, %v8144_v25 }
 0x26a   : >> { %1630 = vmax.xlane.f32.xlu1 %v1629_v29 }
 0x26e   : >> { %v8150_v9 = vpop.f32.mrf.mxu0 }
 0x26f   : >> { %v8152_v0 = vpop.f32.mrf.mxu1 }
 0x270   : >> { %v1632_v17 = vmax.f32 %v8150_v9, %v8152_v0 }
 0x271   : >> { %1468 = vmatmul.bf16.gmra.mxu0 %v5969_v50 }
 0x272   : >> { %1633 = vmax.xlane.f32.xlu2 %v1632_v17  ;;  %1557 = vmatmul.bf16.gmra.mxu1 %v5969_v50  ;;  %v7203_v50 = vmov 0  }
 0x273   : >> { %6630 = vset.pattern.permute.xlu2 %v7203_v50  ;;  %6631 = vset.pattern.permute.xlu0 %v7203_v50 }
 0x274   : >> { %6632 = vset.pattern.permute.xlu1 %v7203_v50  ;;  %v8225_v50 = vld [vmem:[#allocation2 + $0x8] sm:$0xff] }
 0x276   : >> { %v8156_v2 = vpop.f32.mrf.mxu0 }
 0x277   : >> { %v8158_v4 = vpop.f32.mrf.mxu1 }
 0x278   : >> { %v1635_v6 = vmax.f32 %v8156_v2, %v8158_v4 }
 0x27a   : >> { %1636 = vmax.xlane.f32.xlu2 %v1635_v6 }
 0x27e   : >> { %v8162_v8 = vpop.f32.mrf.mxu0 }
 0x27f   : >> { %v8164_v21 = vpop.f32.mrf.mxu1 }
 0x280   : >> { %v1638_v29 = vmax.f32 %v8162_v8, %v8164_v21 }
 0x281   : >> { %1473 = vmatmul.bf16.gmra.mxu0 %v5973_v63 }
 0x282   : >> { %1639 = vmax.xlane.f32.xlu0 %v1638_v29  ;;  %1562 = vmatmul.bf16.gmra.mxu1 %v5973_v63  ;;  %v8239_v63 = vld [vmem:[#allocation2 + $0x18] sm:$0xff] }
 0x286   : >> { %v8168_v34 = vpop.f32.mrf.mxu0 }
 0x287   : >> { %v8170_v36 = vpop.f32.mrf.mxu1 }
 0x288   : >> { %v1641_v17 = vmax.f32 %v8168_v34, %v8170_v36 }
 0x28a   : >> { %1642 = vmax.xlane.f32.xlu1 %v1641_v17 }
 0x28e   : >> { %v8174_v38 = vpop.f32.mrf.mxu0 }
 0x28f   : >> { %v8176_v40 = vpop.f32.mrf.mxu1 }
 0x290   : >> { %v1644_v6 = vmax.f32 %v8174_v38, %v8176_v40 }
 0x292   : >> { %1645 = vmax.xlane.f32.xlu2 %v1644_v6 }
 0x296   : >> { %v8180_v42 = vpop.f32.mrf.mxu0 }
 0x297   : >> { %v8182_v44 = vpop.f32.mrf.mxu1 }
 0x298   : >> { %v1647_v29 = vmax.f32 %v8180_v42, %v8182_v44 }
 0x29a   : >> { %1648 = vmax.xlane.f32.xlu0 %v1647_v29 }
 0x29e   : >> { %v8186_v46 = vpop.f32.mrf.mxu0 }
 0x29f   : >> { %v8188_v48 = vpop.f32.mrf.mxu1 }
 0x2a0   : >> { %v1650_v17 = vmax.f32 %v8186_v46, %v8188_v48 }
 0x2a2   : >> { %1651 = vmax.xlane.f32.xlu1 %v1650_v17 }
 0x2a6   : >> { %v8194_v6 = vpop.f32.mrf.mxu0 }
 0x2a7   : >> { %v8196_v52 = vpop.f32.mrf.mxu1 }
 0x2a8   : >> { %v1653_v29 = vmax.f32 %v8194_v6, %v8196_v52 }
 0x2aa   : >> { %1654 = vmax.xlane.f32.xlu2 %v1653_v29 }
 0x2ae   : >> { %v8200_v54 = vpop.f32.mrf.mxu0 }
 0x2af   : >> { %v8202_v56 = vpop.f32.mrf.mxu1 }
 0x2b0   : >> { %v1656_v17 = vmax.f32 %v8200_v54, %v8202_v56 }
 0x2b2   : >> { %1657 = vmax.xlane.f32.xlu0 %v1656_v17  ;;  %v1588_v17 = vld [vmem:[#allocation2] sm:$0xff] }
 0x2b6   : >> { %v8206_v58 = vpop.f32.mrf.mxu0 }
 0x2b7   : >> { %v8208_v10 = vpop.f32.mrf.mxu1 }
 0x2b8   : >> { %v1659_v12 = vmax.f32 %v8206_v58, %v8208_v10 }
 0x2ba   : >> { %1660 = vmax.xlane.f32.xlu1 %v1659_v12 }
 0x2be   : >> { %v8212_v29 = vpop.f32.mrf.mxu0 }
 0x2bf   : >> { %10565 = vst [vmem:[#allocation80_spill] sm:$0xff] %v8212_v29  ;;  %v8214_v60 = vpop.f32.mrf.mxu1 }
 0x2c0   : >> { %10566 = vst [vmem:[#allocation81_spill] sm:$0xff] %v8214_v60  ;;  %v1662_v62 = vmax.f32 %v8212_v29, %v8214_v60  ;;  %v5985_v29 = vor.u32 %v10603_v28, %v10602_v26  ;;  %v8479_v28 = vld [vmem:[#allocation2 + $0x98] sm:$0xff] }
 0x2c1   : >> { %10611 = vst [vmem:[#allocation116_spill] sm:$0xff] %v8479_v28 }
 0x2c2   : >> { %1663 = vmax.xlane.f32.xlu2 %v1662_v62 }
 0x2c5   : >> { %v1622_v7 = vpop.xlane.xlu0 %1621 }
 0x2c6   : >> { %v1716_v5 = vmax.f32 %v1588_v17, %v1622_v7  ;;  %v8218_v3 = vpop.f32.mrf.mxu0 }
 0x2c7   : >> { %10567 = vst [vmem:[#allocation82_spill] sm:$0xff] %v8218_v3  ;;  %v8220_v1 = vpop.f32.mrf.mxu1 }
 0x2c8   : >> { %10568 = vst [vmem:[#allocation83_spill] sm:$0xff] %v8220_v1  ;;  %v1665_v12 = vmax.f32 %v8218_v3, %v8220_v1 }
 0x2c9   : >> { %3014 = vst.msk [vmem:[#allocation2] sm:$0xff] %vm1044_vm0, %v1716_v5 }
 0x2ca   : >> { %1666 = vmax.xlane.f32.xlu0 %v1665_v12  ;;  %v1590_v12 = vld [vmem:[#allocation2 + $0x10] sm:$0xff] }
 0x2cd   : >> { %v1625_v61 = vpop.xlane.xlu0 %1624 }
 0x2ce   : >> { %v1717_v62 = vmax.f32 %v8225_v50, %v1625_v61  ;;  %v8230_v7 = vpop.f32.mrf.mxu0  ;;  %v1748_v61 = vsub.f32 %v1588_v17, %v1716_v5 }
 0x2cf   : >> { %v8232_v59 = vpop.f32.mrf.mxu1 }
 0x2d0   : >> { %v1668_v57 = vmax.f32 %v8230_v7, %v8232_v59  ;;  %v1749_v55 = vsub.f32 %v8225_v50, %v1717_v62  ;;  %3015 = vst.msk [vmem:[#allocation2 + $0x8] sm:$0xff] %vm1044_vm0, %v1717_v62  ;;  %v1780_v49 = vmul.f32 1.442695, %v1748_v61  ;;  %v1592_v50 = vld [vmem:[#allocation2 + $0x20] sm:$0xff] }
 0x2d2   : >> { %1669 = vmax.xlane.f32.xlu1 %v1668_v57  ;;  %6633 = vpow2.f32 %v1780_v49  ;;  %v8260_v49 = vld [vmem:[#allocation2 + $0x30] sm:$0xff] }
 0x2d5   : >> { %v1628_v53 = vpop.xlane.xlu1 %1627 }
 0x2d6   : >> { %v1718_v14 = vmax.f32 %v1590_v12, %v1628_v53 }
 0x2d7   : >> { %v8271_v45 = vpop.f32.mrf.mxu1 }
 0x2d8   : >> { %3016 = vst.msk [vmem:[#allocation2 + $0x10] sm:$0xff] %vm1044_vm0, %v1718_v14  ;;  %v8250_v53 = vpop.eup %6633  ;;  %v1750_v1 = vsub.f32 %v1590_v12, %v1718_v14 }
 0x2d9   : >> { %10571 = vst [vmem:[#allocation84_spill] sm:$0xff] %v8250_v53 }
 0x2da   : >> { %1846 = vperm.xlu2 %6630, %v1716_v5   ;;  %v8253_v5 = vld [vmem:[#allocation2 + $0x28] sm:$0xff]  ;;  %10575 = vst [vmem:[#allocation86_spill] sm:$0xff] %v8271_v45 }
 0x2dd   : >> { %v1631_v16 = vpop.xlane.xlu1 %1630 }
 0x2de   : >> { %v8242_v51 = vmax.f32 %v8239_v63, %v1631_v16  ;;  %1851 = vperm.xlu0 %6631, %v1717_v62   ;;  %v5977_v62 = vor.u32 %v10573_v20, %v10572_v18  ;;  %v8286_v20 = vld [vmem:[#allocation2 + $0x40] sm:$0xff] }
 0x2e0   : >> { %3017 = vst.msk [vmem:[#allocation2 + $0x18] sm:$0xff] %vm1044_vm0, %v8242_v51  ;;  %1478 = vmatmul.bf16.gmra.mxu0 %v5977_v62  ;;  %1567 = vmatmul.bf16.gmra.mxu1 %v5977_v62 }
 0x2e5   : >> { %v1634_v57 = vpop.xlane.xlu2 %1633 }
 0x2e6   : >> { %v8246_v47 = vmax.f32 %v1592_v50, %v1634_v57 }
 0x2e8   : >> { %3018 = vst.msk [vmem:[#allocation2 + $0x20] sm:$0xff] %vm1044_vm0, %v8246_v47 }
 0x2eb   : >> { %2454 = vperm.xlu1 %6632, %v8250_v53  }
 0x2ed   : >> { %v1637_v16 = vpop.xlane.xlu2 %1636 }
 0x2ee   : >> { %v8256_v17 = vmax.f32 %v8253_v5, %v1637_v16  ;;  %v8269_v16 = vpop.f32.mrf.mxu0 }
 0x2ef   : >> { %10574 = vst [vmem:[#allocation85_spill] sm:$0xff] %v8269_v16  ;;  %v1671_v62 = vmax.f32 %v8269_v16, %v8271_v45 }
 0x2f0   : >> { %3019 = vst.msk [vmem:[#allocation2 + $0x28] sm:$0xff] %vm1044_vm0, %v8256_v17 }
 0x2f3   : >> { %1856 = vperm.xlu1 %6632, %v1718_v14  }
 0x2f5   : >> { %v1640_v61 = vpop.xlane.xlu0 %1639 }
 0x2f6   : >> { %v8265_v57 = vmax.f32 %v8260_v49, %v1640_v61  ;;  %v8282_v61 = vpop.f32.mrf.mxu1  ;;  %v8284_v18 = vpop.f32.mrf.mxu0 }
 0x2f7   : >> { %10576 = vst [vmem:[#allocation87_spill] sm:$0xff] %v8282_v61  ;;  %v1674_v37 = vmax.f32 %v8284_v18, %v8282_v61  ;;  %v1784_v61 = vmul.f32 1.442695, %v1750_v1 }
 0x2f8   : >> { %3020 = vst.msk [vmem:[#allocation2 + $0x30] sm:$0xff] %vm1044_vm0, %v8265_v57 }
 0x2f9   : >> { %10577 = vst [vmem:[#allocation88_spill] sm:$0xff] %v8284_v18 }
 0x2fd   : >> { %v1643_v41 = vpop.xlane.xlu1 %1642 }
 0x2fe   : >> { %v8276_v39 = vmax.f32 %v8273_v43, %v1643_v41 }
 0x300   : >> { %3021 = vst.msk [vmem:[#allocation2 + $0x38] sm:$0xff] %vm1044_vm0, %v8276_v39 }
 0x303   : >> { %1672 = vmax.xlane.f32.xlu2 %v1671_v62  ;;  %v1782_v62 = vmul.f32 1.442695, %v1749_v55  ;;  %v8310_v55 = vpop.f32.mrf.mxu0 }
 0x304   : >> { %10581 = vst [vmem:[#allocation92_spill] sm:$0xff] %v8310_v55 }
 0x305   : >> { %v1646_v35 = vpop.xlane.xlu2 %1645  ;;  %6635 = vpow2.f32 %v1782_v62 }
 0x306   : >> { %v8291_v41 = vmax.f32 %v8286_v20, %v1646_v35  ;;  %v8302_v35 = vld [vmem:[#allocation2 + $0x50] sm:$0xff]  ;;  %6637 = vpow2.f32 %v1784_v61  ;;  %v8319_v61 = vld [vmem:[#allocation2 + $0x58] sm:$0xff] }
 0x307   : >> { %10580 = vst [vmem:[#allocation91_spill] sm:$0xff] %v8302_v35 }
 0x308   : >> { %3022 = vst.msk [vmem:[#allocation2 + $0x40] sm:$0xff] %vm1044_vm0, %v8291_v41  ;;  %1675 = vmax.xlane.f32.xlu0 %v1674_v37  ;;  %v1752_v37 = vsub.f32 %v1592_v50, %v8246_v47 }
 0x309   : >> { %10585 = vst [vmem:[#allocation96_spill] sm:$0xff] %v8319_v61 }
 0x30a   : >> { %v1788_v1 = vmul.f32 1.442695, %v1752_v37  ;;  %v6375_v37 = vld [vmem:[%s8327_s30 + $0x38] sm:$0xff] }
 0x30b   : >> { %v8314_v12 = vpop.eup %6635  ;;  %2772 = vmatpush.bf16.msra.mxu2 %v6375_v37  ;;  %v6373_v37 = vld [vmem:[%s8327_s30 + $0x28] sm:$0xff] }
 0x30c   : >> { %10583 = vst [vmem:[#allocation94_spill] sm:$0xff] %v8314_v12  ;;  %6639 = vpow2.f32 %v1788_v1  ;;  %v8342_v1 = vld [vmem:[#allocation2 + $0x60] sm:$0xff] }
 0x30d   : >> { %v1649_v3 = vpop.xlane.xlu0 %1648  ;;  %10588 = vst [vmem:[#allocation99_spill] sm:$0xff] %v8342_v1 }
 0x30e   : >> { %v8298_v45 = vmax.f32 %v8295_v33, %v1649_v3  ;;  %v8312_v3 = vpop.f32.mrf.mxu1  ;;  %v8316_v33 = vpop.eup %6637 }
 0x30f   : >> { %10582 = vst [vmem:[#allocation93_spill] sm:$0xff] %v8312_v3 }
 0x310   : >> { %10579 = vst [vmem:[#allocation90_spill] sm:$0xff] %v8298_v45 }
 0x311   : >> { %3023 = vst.msk [vmem:[#allocation2 + $0x48] sm:$0xff] %vm1044_vm0, %v8298_v45 }
 0x312   : >> { %10584 = vst [vmem:[#allocation95_spill] sm:$0xff] %v8316_v33 }
 0x315   : >> { %v1652_v18 = vpop.xlane.xlu1 %1651 }
 0x316   : >> { %v8306_v14 = vmax.f32 %v8302_v35, %v1652_v18  ;;  %v1677_v18 = vmax.f32 %v8310_v55, %v8312_v3  ;;  %v6383_v35 = vld [vmem:[%s8327_s30 + $0x78] sm:$0xff]  ;;  %v6382_v3 = vld [vmem:[%s8327_s30 + $0x70] sm:$0xff]  ;;  %v8339_v55 = vpop.eup %6639 }
 0x317   : >> { %2861 = vmatpush.bf16.msra.mxu3 %v6383_v35  ;;  %10587 = vst [vmem:[#allocation98_spill] sm:$0xff] %v8339_v55  ;;  %v6381_v35 = vld [vmem:[%s8327_s30 + $0x68] sm:$0xff] }
 0x318   : >> { %3024 = vst.msk [vmem:[#allocation2 + $0x50] sm:$0xff] %vm1044_vm0, %v8306_v14 }
 0x31b   : >> { %2459 = vperm.xlu2 %6630, %v8314_v12   ;;  %v6374_v12 = vld [vmem:[%s8327_s30 + $0x30] sm:$0xff]  ;;  %2862 = vmatpush.bf16.msra.mxu3 %v6382_v3  ;;  %v6372_v3 = vld [vmem:[%s8327_s30 + $0x20] sm:$0xff] }
 0x31c   : >> { %2464 = vperm.xlu0 %6631, %v8316_v33   ;;  %2773 = vmatpush.bf16.msra.mxu2 %v6374_v12  ;;  %v1751_v33 = vsub.f32 %v8239_v63, %v8242_v51  ;;  %v6380_v12 = vld [vmem:[%s8327_s30 + $0x60] sm:$0xff]  ;;  %v6371_v63 = vld [vmem:[%s8327_s30 + $0x18] sm:$0xff] }
 0x31d   : >> { %v1655_v50 = vpop.xlane.xlu2 %1654  ;;  %1678 = vmax.xlane.f32.xlu1 %v1677_v18 }
 0x31e   : >> { %v8331_v62 = vmax.f32 %v8319_v61, %v1655_v50  ;;  %v5981_v61 = vor.u32 %v10591_v24, %v10590_v22  ;;  %v8359_v22 = vld [vmem:[#allocation2 + $0x68] sm:$0xff] }
 0x31f   : >> { %2863 = vmatpush.bf16.msra.mxu3 %v6381_v35  ;;  %10592 = vst [vmem:[#allocation101_spill] sm:$0xff] %v8359_v22 }
 0x320   : >> { %10586 = vst [vmem:[#allocation97_spill] sm:$0xff] %v8331_v62  ;;  %2774 = vmatpush.bf16.msra.mxu2 %v6373_v37  ;;  %1483 = vmatmul.bf16.gmra.mxu0 %v5981_v61  ;;  %v6379_v37 = vld [vmem:[%s8327_s30 + $0x58] sm:$0xff] }
 0x321   : >> { %3025 = vst.msk [vmem:[#allocation2 + $0x58] sm:$0xff] %vm1044_vm0, %v8331_v62  ;;  %1572 = vmatmul.bf16.gmra.mxu1 %v5981_v61  ;;  %v8370_v61 = vld [vmem:[#allocation2 + $0x70] sm:$0xff] }
 0x322   : >> { %10593 = vst [vmem:[#allocation102_spill] sm:$0xff] %v8370_v61 }
 0x323   : >> { %1861 = vperm.xlu2 %6630, %v8242_v51   ;;  %2864 = vmatpush.bf16.msra.mxu3 %v6380_v12  ;;  %v6369_v12 = vld [vmem:[%s8327_s30 + $0x8] sm:$0xff] }
 0x324   : >> { %2474 = vperm.xlu0 %6631, %v8339_v55   ;;  %2775 = vmatpush.bf16.msra.mxu2 %v6372_v3 }
 0x325   : >> { %v1658_v18 = vpop.xlane.xlu0 %1657 }
 0x326   : >> { %v8346_v50 = vmax.f32 %v8342_v1, %v1658_v18  ;;  %v1786_v18 = vmul.f32 1.442695, %v1751_v33  ;;  %v6370_v33 = vld [vmem:[%s8327_s30 + $0x10] sm:$0xff]  ;;  %v8384_v1 = vld [vmem:[#allocation2 + $0x78] sm:$0xff] }
 0x327   : >> { %2865 = vmatpush.bf16.msra.mxu3 %v6379_v37  ;;  %v6376_v37 = vld [vmem:[%s8327_s30 + $0x40] sm:$0xff]  ;;  %10596 = vst [vmem:[#allocation105_spill] sm:$0xff] %v8384_v1 }
 0x328   : >> { %10589 = vst [vmem:[#allocation100_spill] sm:$0xff] %v8346_v50  ;;  %6641 = vpow2.f32 %v1786_v18  ;;  %2776 = vmatpush.bf16.msra.mxu2 %v6371_v63  ;;  %v6377_v18 = vld [vmem:[%s8327_s30 + $0x48] sm:$0xff]  ;;  %v6368_v63 = vld [vmem:[%s8327_s30] sm:$0xff] }
 0x329   : >> { %3026 = vst.msk [vmem:[#allocation2 + $0x60] sm:$0xff] %vm1044_vm0, %v8346_v50 }
 0x32b   : >> { %1866 = vperm.xlu2 %6630, %v8246_v47   ;;  %v6378_v47 = vld [vmem:[%s8327_s30 + $0x50] sm:$0xff] }
 0x32c   : >> { %2777 = vmatpush.bf16.msra.mxu2 %v6370_v33  ;;  %2866 = vmatpush.bf16.msra.mxu3 %v6378_v47  ;;  %v8386_v33 = vpop.f32.mrf.mxu0 }
 0x32d   : >> { %v1661_v24 = vpop.xlane.xlu1 %1660 }
 0x32e   : >> { %v8362_v51 = vmax.f32 %v8359_v22, %v1661_v24  ;;  %v8372_v35 = vpop.eup %6641  ;;  %v8388_v22 = vpop.f32.mrf.mxu1 }
 0x32f   : >> { %10594 = vst [vmem:[#allocation103_spill] sm:$0xff] %v8372_v35 }
 0x330   : >> { %3027 = vst.msk [vmem:[#allocation2 + $0x68] sm:$0xff] %vm1044_vm0, %v8362_v51  ;;  %2778 = vmatpush.bf16.msra.mxu2 %v6369_v12  ;;  %2867 = vmatpush.bf16.msra.mxu3 %v6377_v18 }
 0x331   : >> { %10597 = vst [vmem:[#allocation106_spill] sm:$0xff] %v8388_v22  ;;  %1488 = vmatmul.bf16.gmra.mxu0 %v5985_v29  ;;  %1577 = vmatmul.bf16.gmra.mxu1 %v5985_v29 }
 0x334   : >> { %2779 = vmatpush.bf16.msra.mxu2 %v6368_v63  ;;  %2868 = vmatpush.bf16.msra.mxu3 %v6376_v37  ;;  %v8398_v63 = vld [vmem:[#allocation2 + $0x80] sm:$0xff] }
 0x335   : >> { %v1664_v24 = vpop.xlane.xlu2 %1663  ;;  %10598 = vst [vmem:[#allocation107_spill] sm:$0xff] %v8398_v63 }
 0x336   : >> { %v8375_v3 = vmax.f32 %v8370_v61, %v1664_v24  ;;  %2469 = vperm.xlu1 %6632, %v8372_v35   ;;  %v8406_v37 = vpop.f32.mrf.mxu1 }
 0x337   : >> { %10601 = vst [vmem:[#allocation110_spill] sm:$0xff] %v8406_v37 }
 0x338   : >> { %10595 = vst [vmem:[#allocation104_spill] sm:$0xff] %v8375_v3 }
 0x339   : >> { %3028 = vst.msk [vmem:[#allocation2 + $0x70] sm:$0xff] %vm1044_vm0, %v8375_v3 }
 0x33d   : >> { %v1847_v47 = vpop.permute.xlu2 %1846  ;;  %v1667_v24 = vpop.xlane.xlu0 %1666 }
 0x33e   : >> { %v2004_v61 = vsub.f32 %v8124_v31, %v1847_v47  ;;  %v2005_v35 = vsub.f32 %v8126_v27, %v1847_v47  ;;  %v8393_v55 = vmax.f32 %v8384_v1, %v1667_v24  ;;  %1871 = vperm.xlu1 %6632, %v8256_v17   ;;  %v8404_v27 = vpop.f32.mrf.mxu0 }
 0x33f   : >> { %10600 = vst [vmem:[#allocation109_spill] sm:$0xff] %v8404_v27 }
 0x340   : >> { %v2068_v12 = vmul.f32 1.442695, %v2004_v61  ;;  %v2070_v18 = vmul.f32 1.442695, %v2005_v35  ;;  %3029 = vst.msk [vmem:[#allocation2 + $0x78] sm:$0xff] %vm1044_vm0, %v8393_v55  ;;  %v1683_v35 = vmax.f32 %v8404_v27, %v8406_v37 }
 0x342   : >> { %6643 = vpow2.f32 %v2068_v12 }
 0x343   : >> { %6645 = vpow2.f32 %v2070_v18 }
 0x345   : >> { %v1670_v16 = vpop.xlane.xlu1 %1669 }
 0x346   : >> { %1881 = vperm.xlu1 %6632, %v8276_v39   ;;  %v8402_v31 = vmax.f32 %v8398_v63, %v1670_v16  ;;  %v1680_v16 = vmax.f32 %v8386_v33, %v8388_v22 }
 0x348   : >> { %10599 = vst [vmem:[#allocation108_spill] sm:$0xff] %v8402_v31  ;;  %v6644_v47 = vpop.eup %6643 }
 0x349   : >> { %3030 = vst.msk [vmem:[#allocation2 + $0x80] sm:$0xff] %vm1044_vm0, %v8402_v31  ;;  %v6646_v61 = vpop.eup %6645 }
 0x34a   : >> { %v8412_v24 = vadd.f32 %v6646_v61, %v6644_v47 }
 0x34e   : >> { %1684 = vmax.xlane.f32.xlu0 %v1683_v35  ;;  %v1755_v35 = vsub.f32 %v8273_v43, %v8276_v39 }
 0x350   : >> { %v1852_v12 = vpop.permute.xlu0 %1851 }
 0x351   : >> { %v2006_v18 = vsub.f32 %v8130_v19, %v1852_v12  ;;  %v2007_v1 = vsub.f32 %v8132_v13, %v1852_v12 }
 0x353   : >> { %v2072_v63 = vmul.f32 1.442695, %v2006_v18  ;;  %v2074_v60 = vmul.f32 1.442695, %v2007_v1  ;;  %v1794_v1 = vmul.f32 1.442695, %v1755_v35 }
 0x354   : >> { %1681 = vmax.xlane.f32.xlu2 %v1680_v16  ;;  %v8448_v18 = vld [vmem:[#allocation2 + $0x88] sm:$0xff] }
 0x355   : >> { %6647 = vpow2.f32 %v2072_v63  ;;  %10606 = vst [vmem:[#allocation111_spill] sm:$0xff] %v8448_v18 }
 0x356   : >> { %6649 = vpow2.f32 %v2074_v60  ;;  %v1753_v60 = vsub.f32 %v8253_v5, %v8256_v17 }
 0x357   : >> { %6651 = vpow2.f32 %v1794_v1  ;;  %v8455_v1 = vld [vmem:[#allocation2 + $0x90] sm:$0xff] }
 0x358   : >> { %10607 = vst [vmem:[#allocation112_spill] sm:$0xff] %v8455_v1 }
 0x35b   : >> { %v6648_v37 = vpop.eup %6647 }
 0x35c   : >> { %v6650_v27 = vpop.eup %6649  ;;  %v2644_v53 = vpack.c.bf16 %v6648_v37, %v6644_v47 }
 0x35d   : >> { %v8422_v22 = vpop.permute.xlu1 %2454  ;;  %v2645_v19 = vpack.c.bf16 %v6650_v27, %v6646_v61  ;;  %v8424_v13 = vadd.f32 %v6650_v27, %v6648_v37  ;;  %v8431_v12 = vpop.eup %6651  ;;  %v1790_v27 = vmul.f32 1.442695, %v1753_v60  ;;  %v1754_v60 = vsub.f32 %v8260_v49, %v8265_v57 }
 0x35e   : >> { %2780 = vmatmul.bf16.vlgmr.msra.gmra.mxu2 %v2644_v53  ;;  %v8434_v53 = vpop.f32.mrf.mxu1  ;;  %v8436_v37 = vpop.f32.mrf.mxu0 }
 0x35f   : >> { %2869 = vmatmul.bf16.vlgmr.msra.gmra.mxu3 %v2645_v19 }
 0x362   : >> { %1886 = vperm.xlu0 %6631, %v8291_v41  }
 0x365   : >> { %v1857_v63 = vpop.permute.xlu1 %1856 }
 0x366   : >> { %v2008_v39 = vsub.f32 %v8136_v11, %v1857_v63  ;;  %v2009_v43 = vsub.f32 %v8138_v15, %v1857_v63  ;;  %v1686_v11 = vmax.f32 %v8436_v37, %v8434_v53  ;;  %v5989_v15 = vor.u32 %v10605_v32, %v10604_v30 }
 0x368   : >> { %v2076_v29 = vmul.f32 1.442695, %v2008_v39  ;;  %v2078_v47 = vmul.f32 1.442695, %v2009_v43  ;;  %1493 = vmatmul.bf16.gmra.mxu0 %v5989_v15  ;;  %1582 = vmatmul.bf16.gmra.mxu1 %v5989_v15  ;;  %v1792_v43 = vmul.f32 1.442695, %v1754_v60 }
 0x36a   : >> { %6653 = vpow2.f32 %v2076_v29  ;;  %2489 = vperm.xlu0 %6631, %v8431_v12  }
 0x36b   : >> { %6655 = vpow2.f32 %v2078_v47  ;;  %v8466_v47 = vpop.f32.mrf.mxu0 }
 0x36c   : >> { %1876 = vperm.xlu2 %6630, %v8265_v57   ;;  %6657 = vpow2.f32 %v1790_v27  ;;  %v8468_v27 = vpop.f32.mrf.mxu1 }
 0x36d   : >> { %6659 = vpow2.f32 %v1792_v43 }
 0x370   : >> { %v6654_v5 = vpop.eup %6653  ;;  %1687 = vmax.xlane.f32.xlu1 %v1686_v11 }
 0x371   : >> { %v6656_v17 = vpop.eup %6655 }
 0x372   : >> { %v8443_v61 = vadd.f32 %v6656_v17, %v6654_v5  ;;  %v8445_v16 = vpop.eup %6657 }
 0x373   : >> { %v8472_v57 = vpop.eup %6659  ;;  %v8477_v43 = vpop.f32.mrf.mxu0 }
 0x374   : >> { %2479 = vperm.xlu2 %6630, %v8445_v16   ;;  %10608 = vst [vmem:[#allocation113_spill] sm:$0xff] %v8472_v57  ;;  %v8475_v60 = vpop.f32.mrf.mxu1 }
 0x375   : >> { %10609 = vst [vmem:[#allocation114_spill] sm:$0xff] %v8475_v60 }
 0x376   : >> { %v1673_v35 = vpop.xlane.xlu2 %1672  ;;  %10610 = vst [vmem:[#allocation115_spill] sm:$0xff] %v8477_v43 }
 0x377   : >> { %v8451_v19 = vmax.f32 %v8448_v18, %v1673_v35 }
 0x379   : >> { %3031 = vst.msk [vmem:[#allocation2 + $0x88] sm:$0xff] %vm1044_vm0, %v8451_v19 }
 0x37b   : >> { %v1676_v63 = vpop.xlane.xlu0 %1675 }
 0x37c   : >> { %v8460_v39 = vmax.f32 %v8455_v1, %v1676_v63  ;;  %v8509_v1 = vpop.f32.mrf.mxu0 }
 0x37d   : >> { %10613 = vst [vmem:[#allocation118_spill] sm:$0xff] %v8509_v1 }
 0x37e   : >> { %v8462_v29 = vpop.permute.xlu2 %2459  ;;  %3032 = vst.msk [vmem:[#allocation2 + $0x90] sm:$0xff] %vm1044_vm0, %v8460_v39 }
 0x386   : >> { %v1862_v11 = vpop.permute.xlu2 %1861 }
 0x387   : >> { %v2010_v15 = vsub.f32 %v8142_v23, %v1862_v11  ;;  %v2011_v49 = vsub.f32 %v8144_v25, %v1862_v11  ;;  %v1692_v11 = vmax.f32 %v8477_v43, %v8475_v60 }
 0x389   : >> { %v2080_v35 = vmul.f32 1.442695, %v2010_v15  ;;  %v2082_v63 = vmul.f32 1.442695, %v2011_v49  ;;  %2484 = vperm.xlu1 %6632, %v8472_v57  }
 0x38b   : >> { %6661 = vpow2.f32 %v2080_v35 }
 0x38c   : >> { %6663 = vpow2.f32 %v2082_v63 }
 0x38e   : >> { %v1867_v26 = vpop.permute.xlu2 %1866 }
 0x38f   : >> { %v2012_v30 = vsub.f32 %v8150_v9, %v1867_v26  ;;  %v2013_v23 = vsub.f32 %v8152_v0, %v1867_v26 }
 0x390   : >> { %v1679_v25 = vpop.xlane.xlu1 %1678 }
 0x391   : >> { %v6662_v15 = vpop.eup %6661  ;;  %v2084_v49 = vmul.f32 1.442695, %v2012_v30  ;;  %v2086_v32 = vmul.f32 1.442695, %v2013_v23  ;;  %v8486_v35 = vmax.f32 %v8479_v28, %v1679_v25  ;;  %1896 = vperm.xlu1 %6632, %v8306_v14   ;;  %v1689_v23 = vmax.f32 %v8466_v47, %v8468_v27 }
 0x392   : >> { %v6664_v63 = vpop.eup %6663  ;;  %v2646_v18 = vpack.c.bf16 %v6662_v15, %v6654_v5 }
 0x393   : >> { %6665 = vpow2.f32 %v2084_v49  ;;  %3033 = vst.msk [vmem:[#allocation2 + $0x98] sm:$0xff] %vm1044_vm0, %v8486_v35  ;;  %v2647_v9 = vpack.c.bf16 %v6664_v63, %v6656_v17  ;;  %v8491_v0 = vadd.f32 %v6664_v63, %v6662_v15  ;;  %v1756_v17 = vsub.f32 %v8286_v20, %v8291_v41  ;;  %v8502_v15 = vpop.permute.xlu0 %2464 }
 0x394   : >> { %6667 = vpow2.f32 %v2086_v32  ;;  %2785 = vmatmul.bf16.gmra.mxu2 %v2646_v18  ;;  %1693 = vmax.xlane.f32.xlu0 %v1692_v11 }
 0x395   : >> { %2874 = vmatmul.bf16.gmra.mxu3 %v2647_v9  ;;  %v1796_v32 = vmul.f32 1.442695, %v1756_v17 }
 0x397   : >> { %6669 = vpow2.f32 %v1796_v32 }
 0x399   : >> { %v6666_v26 = vpop.eup %6665 }
 0x39a   : >> { %v6668_v30 = vpop.eup %6667 }
 0x39b   : >> { %v8495_v25 = vadd.f32 %v6668_v30, %v6666_v26  ;;  %v8511_v41 = vpop.permute.xlu0 %2474 }
 0x39d   : >> { %1690 = vmax.xlane.f32.xlu2 %v1689_v23  ;;  %v8507_v23 = vpop.f32.mrf.mxu1  ;;  %v8526_v60 = vpop.f32.mrf.mxu0 }
 0x39e   : >> { %10612 = vst [vmem:[#allocation117_spill] sm:$0xff] %v8507_v23 }
 0x39f   : >> { %10617 = vst [vmem:[#allocation122_spill] sm:$0xff] %v8526_v60 }
 0x3a8   : >> { %v8497_v5 = vpop.permute.xlu1 %2469  ;;  %1901 = vperm.xlu0 %6631, %v8331_v62  }
 0x3b0   : >> { %v1872_v18 = vpop.permute.xlu1 %1871 }
 0x3b1   : >> { %v2014_v11 = vsub.f32 %v8156_v2, %v1872_v18  ;;  %v2015_v49 = vsub.f32 %v8158_v4, %v1872_v18  ;;  %v1695_v4 = vmax.f32 %v8509_v1, %v8507_v23  ;;  %v8517_v18 = vpop.eup %6669 }
 0x3b2   : >> { %10614 = vst [vmem:[#allocation119_spill] sm:$0xff] %v8517_v18 }
 0x3b3   : >> { %v2088_v63 = vmul.f32 1.442695, %v2014_v11  ;;  %v2090_v9 = vmul.f32 1.442695, %v2015_v49 }
 0x3b5   : >> { %6671 = vpow2.f32 %v2088_v63  ;;  %1891 = vperm.xlu2 %6630, %v8298_v45  }
 0x3b6   : >> { %6673 = vpow2.f32 %v2090_v9 }
 0x3b8   : >> { %v1882_v20 = vpop.permute.xlu1 %1881 }
 0x3b9   : >> { %v2018_v17 = vsub.f32 %v8168_v34, %v1882_v20  ;;  %v2019_v2 = vsub.f32 %v8170_v36, %v1882_v20  ;;  %v8522_v34 = vld [vmem:[#allocation2 + $0xa8] sm:$0xff]  ;;  %v8524_v36 = vpop.f32.mrf.mxu1 }
 0x3ba   : >> { %10615 = vst [vmem:[#allocation120_spill] sm:$0xff] %v8522_v34 }
 0x3bb   : >> { %v6672_v32 = vpop.eup %6671  ;;  %v2096_v11 = vmul.f32 1.442695, %v2018_v17  ;;  %v2098_v49 = vmul.f32 1.442695, %v2019_v2  ;;  %1696 = vmax.xlane.f32.xlu1 %v1695_v4  ;;  %10616 = vst [vmem:[#allocation121_spill] sm:$0xff] %v8524_v36 }
 0x3bc   : >> { %v6674_v63 = vpop.eup %6673  ;;  %v2648_v9 = vpack.c.bf16 %v6672_v32, %v6666_v26 }
 0x3bd   : >> { %6675 = vpow2.f32 %v2096_v11  ;;  %2494 = vperm.xlu2 %6630, %v8517_v18   ;;  %v2649_v62 = vpack.c.bf16 %v6674_v63, %v6668_v30  ;;  %v8520_v45 = vadd.f32 %v6674_v63, %v6672_v32  ;;  %v8533_v30 = vld [vmem:[#allocation2 + $0xa0] sm:$0xff] }
 0x3be   : >> { %6677 = vpow2.f32 %v2098_v49  ;;  %2790 = vmatmul.bf16.gmra.mxu2 %v2648_v9  ;;  %10618 = vst [vmem:[#allocation123_spill] sm:$0xff] %v8533_v30  ;;  %v8544_v49 = vpop.f32.mrf.mxu0 }
 0x3bf   : >> { %2879 = vmatmul.bf16.gmra.mxu3 %v2649_v62  ;;  %10620 = vst [vmem:[#allocation125_spill] sm:$0xff] %v8544_v49 }
 0x3c1   : >> { %v1685_v20 = vpop.xlane.xlu0 %1684  ;;  %v8542_v11 = vpop.f32.mrf.mxu1 }
 0x3c2   : >> { %v8529_v17 = vmax.f32 %v8522_v34, %v1685_v20  ;;  %10619 = vst [vmem:[#allocation124_spill] sm:$0xff] %v8542_v11  ;;  %v1701_v63 = vmax.f32 %v8544_v49, %v8542_v11  ;;  %v2420_v11 = vld [vmem:[#allocation4 + $0xb0] sm:$0xff] }
 0x3c3   : >> { %v6676_v26 = vpop.eup %6675 }
 0x3c4   : >> { %v6678_v2 = vpop.eup %6677  ;;  %3035 = vst.msk [vmem:[#allocation2 + $0xa8] sm:$0xff] %vm1044_vm0, %v8529_v17 }
 0x3c5   : >> { %v8535_v4 = vadd.f32 %v6678_v2, %v6676_v26 }
 0x3c7   : >> { %v1682_v62 = vpop.xlane.xlu2 %1681 }
 0x3c8   : >> { %v8538_v32 = vmax.f32 %v8533_v30, %v1682_v62 }
 0x3ca   : >> { %3034 = vst.msk [vmem:[#allocation2 + $0xa0] sm:$0xff] %vm1044_vm0, %v8538_v32 }
 0x3cf   : >> { %v1877_v9 = vpop.permute.xlu2 %1876 }
 0x3d0   : >> { %v2016_v20 = vsub.f32 %v8162_v8, %v1877_v9  ;;  %v2017_v34 = vsub.f32 %v8164_v21, %v1877_v9  ;;  %v8553_v8 = vld [vmem:[#allocation2 + $0xb0] sm:$0xff] }
 0x3d1   : >> { %10621 = vst [vmem:[#allocation126_spill] sm:$0xff] %v8553_v8 }
 0x3d2   : >> { %v2092_v43 = vmul.f32 1.442695, %v2016_v20  ;;  %v2094_v23 = vmul.f32 1.442695, %v2017_v34  ;;  %1702 = vmax.xlane.f32.xlu0 %v1701_v63  ;;  %v1698_v34 = vmax.f32 %v8526_v60, %v8524_v36 }
 0x3d4   : >> { %6679 = vpow2.f32 %v2092_v43  ;;  %1911 = vperm.xlu1 %6632, %v8362_v51   ;;  %v2612_v43 = vmul.f32 %v8422_v22, %v2420_v11  ;;  %v1887_v11 = vpop.permute.xlu0 %1886 }
 0x3d5   : >> { %6681 = vpow2.f32 %v2094_v23 }
 0x3da   : >> { %v6680_v62 = vpop.eup %6679 }
 0x3db   : >> { %v6682_v30 = vpop.eup %6681  ;;  %v2650_v1 = vpack.c.bf16 %v6676_v26, %v6680_v62 }
 0x3dc   : >> { %v2651_v57 = vpack.c.bf16 %v6678_v2, %v6682_v30  ;;  %v8551_v18 = vadd.f32 %v6682_v30, %v6680_v62  ;;  %v8567_v62 = vpop.f32.mrf.mxu1 }
 0x3dd   : >> { %2795 = vmatmul.bf16.gmra.mxu2 %v2650_v1  ;;  %v2421_v1 = vld [vmem:[#allocation4] sm:$0xff]  ;;  %10623 = vst [vmem:[#allocation128_spill] sm:$0xff] %v8567_v62 }
 0x3de   : >> { %2884 = vmatmul.bf16.gmra.mxu3 %v2651_v57  ;;  %v2613_v30 = vmul.f32 %v8462_v29, %v2421_v1 }
 0x3e1   : >> { %v2781_v49 = vpop.f32.mrf.mxu2 }
 0x3e2   : >> { %v2870_v21 = vpop.f32.mrf.mxu3 }
 0x3e3   : >> { %v2871_v63 = vadd.f32 %v2870_v21, %v2781_v49  ;;  %v1688_v23 = vpop.xlane.xlu1 %1687  ;;  %v8565_v49 = vpop.f32.mrf.mxu0 }
 0x3e4   : >> { %v8559_v9 = vmax.f32 %v8553_v8, %v1688_v23  ;;  %10622 = vst [vmem:[#allocation127_spill] sm:$0xff] %v8565_v49  ;;  %v1704_v21 = vmax.f32 %v8565_v49, %v8567_v62  ;;  %v8578_v29 = vpop.f32.mrf.mxu1 }
 0x3e5   : >> { %v2950_v26 = vadd.f32 %v2871_v63, %v2612_v43  ;;  %v8574_v43 = vpop.permute.xlu0 %2489 }
 0x3e6   : >> { %1699 = vmax.xlane.f32.xlu2 %v1698_v34  ;;  %1916 = vperm.xlu0 %6631, %v8375_v3   ;;  %3036 = vst.msk [vmem:[#allocation2 + $0xb0] sm:$0xff] %vm1044_vm0, %v8559_v9 }
 0x3e7   : >> { %2982 = vst [vmem:[#allocation4 + $0xb0] sm:$0xff] %v2950_v26 }
 0x3e9   : >> { %v2783_v57 = vpop.f32.mrf.mxu2 }
 0x3ea   : >> { %v2872_v2 = vpop.f32.mrf.mxu3 }
 0x3eb   : >> { %v2873_v20 = vadd.f32 %v2872_v2, %v2783_v57  ;;  %v8576_v63 = vpop.f32.mrf.mxu0  ;;  %v8582_v57 = vld [vmem:[#allocation2 + $0xc0] sm:$0xff] }
 0x3ec   : >> { %10624 = vst [vmem:[#allocation129_spill] sm:$0xff] %v8582_v57  ;;  %v8591_v60 = vpop.f32.mrf.mxu1 }
 0x3ed   : >> { %v2951_v22 = vadd.f32 %v2873_v20, %v2613_v30  ;;  %10626 = vst [vmem:[#allocation131_spill] sm:$0xff] %v8591_v60 }
 0x3ef   : >> { %2983 = vst [vmem:[#allocation4] sm:$0xff] %v2951_v22  ;;  %v8584_v22 = vpop.permute.xlu2 %2479 }
 0x3f3   : >> { %v8589_v36 = vpop.f32.mrf.mxu0 }
 0x3f4   : >> { %10625 = vst [vmem:[#allocation130_spill] sm:$0xff] %v8589_v36 }
 0x3fb   : >> { %v8571_v34 = vpop.permute.xlu1 %2484 }
 0x3fe   : >> { %1906 = vperm.xlu2 %6630, %v8346_v50   ;;  %1705 = vmax.xlane.f32.xlu1 %v1704_v21 }
 0x403   : >> { %v1897_v23 = vpop.permute.xlu1 %1896 }
 0x404   : >> { %v2024_v26 = vsub.f32 %v8186_v46, %v1897_v23  ;;  %v2025_v1 = vsub.f32 %v8188_v48, %v1897_v23  ;;  %v1710_v46 = vmax.f32 %v8589_v36, %v8591_v60  ;;  %v8599_v23 = vld [vmem:[#allocation2 + $0xb8] sm:$0xff]  ;;  %v2021_v60 = vsub.f32 %v8176_v40, %v1887_v11 }
 0x405   : >> { %10627 = vst [vmem:[#allocation132_spill] sm:$0xff] %v8599_v23  ;;  %v2422_v36 = vld [vmem:[#allocation4 + $0xd8] sm:$0xff] }
 0x406   : >> { %v2108_v2 = vmul.f32 1.442695, %v2024_v26  ;;  %v2110_v30 = vmul.f32 1.442695, %v2025_v1 }
 0x407   : >> { %v1694_v20 = vpop.xlane.xlu0 %1693 }
 0x408   : >> { %6683 = vpow2.f32 %v2108_v2  ;;  %v8587_v21 = vmax.f32 %v8582_v57, %v1694_v20  ;;  %v2020_v20 = vsub.f32 %v8174_v38, %v1887_v11 }
 0x409   : >> { %6685 = vpow2.f32 %v2110_v30 }
 0x40a   : >> { %3038 = vst.msk [vmem:[#allocation2 + $0xc0] sm:$0xff] %vm1044_vm0, %v8587_v21  ;;  %v2100_v62 = vmul.f32 1.442695, %v2020_v20 }
 0x40c   : >> { %6687 = vpow2.f32 %v2100_v62 }
 0x40e   : >> { %v8597_v48 = vpop.eup %6683 }
 0x40f   : >> { %v8601_v26 = vpop.eup %6685 }
 0x410   : >> { %v1691_v1 = vpop.xlane.xlu2 %1690  ;;  %1711 = vmax.xlane.f32.xlu0 %v1710_v46  ;;  %v8605_v2 = vadd.f32 %v8601_v26, %v8597_v48  ;;  %v2102_v46 = vmul.f32 1.442695, %v2021_v60 }
 0x411   : >> { %v8608_v30 = vmax.f32 %v8599_v23, %v1691_v1  ;;  %v2614_v1 = vmul.f32 %v8502_v15, %v2422_v36 }
 0x412   : >> { %6689 = vpow2.f32 %v2102_v46  ;;  %v8621_v36 = vpop.eup %6687 }
 0x413   : >> { %3037 = vst.msk [vmem:[#allocation2 + $0xb8] sm:$0xff] %vm1044_vm0, %v8608_v30 }
 0x417   : >> { %v2786_v49 = vpop.f32.mrf.mxu2  ;;  %1926 = vperm.xlu1 %6632, %v8402_v31   ;;  %v2423_v31 = vld [vmem:[#allocation4 + $0x18] sm:$0xff] }
 0x418   : >> { %v2875_v57 = vpop.f32.mrf.mxu3  ;;  %v1892_v3 = vpop.permute.xlu2 %1891  ;;  %2261 = vadd.xlane.f32.xlu0 %v8412_v24 }
 0x419   : >> { %v2876_v23 = vadd.f32 %v2875_v57, %v2786_v49  ;;  %v2022_v38 = vsub.f32 %v8180_v42, %v1892_v3  ;;  %v2023_v50 = vsub.f32 %v8182_v44, %v1892_v3  ;;  %v2615_v3 = vmul.f32 %v8497_v5, %v2423_v31  ;;  %v8624_v49 = vpop.eup %6689  ;;  %v8635_v5 = vld [vmem:[#allocation2 + $0xc8] sm:$0xff] }
 0x41a   : >> { %v1902_v8 = vpop.permute.xlu0 %1901 }
 0x41b   : >> { %v2952_v40 = vadd.f32 %v2876_v23, %v2614_v1  ;;  %v2104_v11 = vmul.f32 1.442695, %v2022_v38  ;;  %v2106_v20 = vmul.f32 1.442695, %v2023_v50  ;;  %v2026_v28 = vsub.f32 %v8194_v6, %v1902_v8 }
 0x41c   : >> { %v2027_v60 = vsub.f32 %v8196_v52, %v1902_v8  ;;  %v1707_v23 = vmax.f32 %v8576_v63, %v8578_v29 }
 0x41d   : >> { %2984 = vst [vmem:[#allocation4 + $0xd8] sm:$0xff] %v2952_v40  ;;  %6691 = vpow2.f32 %v2104_v11  ;;  %v2112_v24 = vmul.f32 1.442695, %v2026_v28 }
 0x41e   : >> { %6693 = vpow2.f32 %v2106_v20  ;;  %v2114_v15 = vmul.f32 1.442695, %v2027_v60  ;;  %v8645_v60 = vpop.f32.mrf.mxu0 }
 0x41f   : >> { %6695 = vpow2.f32 %v2112_v24  ;;  %v2788_v42 = vpop.f32.mrf.mxu2  ;;  %v8647_v24 = vpop.f32.mrf.mxu1 }
 0x420   : >> { %6697 = vpow2.f32 %v2114_v15  ;;  %v2877_v44 = vpop.f32.mrf.mxu3  ;;  %10628 = vst [vmem:[#allocation133_spill] sm:$0xff] %v8647_v24  ;;  %v1713_v15 = vmax.f32 %v8645_v60, %v8647_v24 }
 0x421   : >> { %v2878_v50 = vadd.f32 %v2877_v44, %v2788_v42  ;;  %v2424_v42 = vld [vmem:[#allocation4 + $0x50] sm:$0xff] }
 0x423   : >> { %v6692_v6 = vpop.eup %6691  ;;  %v2953_v62 = vadd.f32 %v2878_v50, %v2615_v3  ;;  %v2616_v50 = vmul.f32 %v8511_v41, %v2424_v42 }
 0x424   : >> { %v6694_v52 = vpop.eup %6693  ;;  %v2652_v8 = vpack.c.bf16 %v6692_v6, %v8621_v36 }
 0x425   : >> { %v6696_v28 = vpop.eup %6695  ;;  %2985 = vst [vmem:[#allocation4 + $0x18] sm:$0xff] %v2953_v62  ;;  %v2653_v57 = vpack.c.bf16 %v6694_v52, %v8624_v49  ;;  %v8630_v46 = vadd.f32 %v6694_v52, %v6692_v6  ;;  %v8653_v6 = vld [vmem:[#allocation2 + $0xd8] sm:$0xff] }
 0x426   : >> { %v6698_v1 = vpop.eup %6697  ;;  %2800 = vmatmul.bf16.gmra.mxu2 %v2652_v8  ;;  %v2654_v11 = vpack.c.bf16 %v6696_v28, %v8597_v48 }
 0x427   : >> { %2889 = vmatmul.bf16.gmra.mxu3 %v2653_v57  ;;  %1708 = vmax.xlane.f32.xlu2 %v1707_v23  ;;  %v8632_v31 = vadd.f32 %v6698_v1, %v6696_v28  ;;  %v2655_v20 = vpack.c.bf16 %v6698_v1, %v8601_v26  ;;  %v2425_v23 = vld [vmem:[#allocation4 + $0x68] sm:$0xff] }
 0x42c   : >> { %1931 = vperm.xlu0 %6631, %v8451_v19  }
 0x42e   : >> { %v1697_v38 = vpop.xlane.xlu1 %1696 }
 0x42f   : >> { %v8638_v40 = vmax.f32 %v8635_v5, %v1697_v38 }
 0x431   : >> { %3039 = vst.msk [vmem:[#allocation2 + $0xc8] sm:$0xff] %vm1044_vm0, %v8638_v40 }
 0x434   : >> { %1946 = vperm.xlu0 %6631, %v8538_v32  }
 0x436   : >> { %2805 = vmatmul.bf16.gmra.mxu2 %v2654_v11 }
 0x437   : >> { %2894 = vmatmul.bf16.gmra.mxu3 %v2655_v20  ;;  %v2617_v20 = vmul.f32 %v8584_v22, %v2425_v23 }
 0x43f   : >> { %1921 = vperm.xlu2 %6630, %v8393_v55  }
 0x441   : >> { %v2791_v44 = vpop.f32.mrf.mxu2  ;;  %1714 = vmax.xlane.f32.xlu1 %v1713_v15 }
 0x442   : >> { %v2880_v3 = vpop.f32.mrf.mxu3 }
 0x443   : >> { %v2881_v48 = vadd.f32 %v2880_v3, %v2791_v44  ;;  %v8664_v44 = vpop.permute.xlu2 %2494 }
 0x445   : >> { %v2954_v26 = vadd.f32 %v2881_v48, %v2616_v50  ;;  %v1703_v62 = vpop.xlane.xlu0 %1702  ;;  %v8668_v50 = vld [vmem:[#allocation2 + $0xd0] sm:$0xff] }
 0x446   : >> { %v1912_v52 = vpop.permute.xlu1 %1911  ;;  %v8656_v8 = vmax.f32 %v8653_v6, %v1703_v62 }
 0x447   : >> { %2986 = vst [vmem:[#allocation4 + $0x50] sm:$0xff] %v2954_v26  ;;  %v2030_v28 = vsub.f32 %v8206_v58, %v1912_v52  ;;  %v2031_v57 = vsub.f32 %v8208_v10, %v1912_v52 }
 0x448   : >> { %3041 = vst.msk [vmem:[#allocation2 + $0xd8] sm:$0xff] %vm1044_vm0, %v8656_v8 }
 0x449   : >> { %v2120_v1 = vmul.f32 1.442695, %v2030_v28  ;;  %v2122_v41 = vmul.f32 1.442695, %v2031_v57  ;;  %v2793_v38 = vpop.f32.mrf.mxu2  ;;  %2267 = vadd.xlane.f32.xlu1 %v8443_v61  ;;  %v2426_v61 = vld [vmem:[#allocation4 + $0x30] sm:$0xff] }
 0x44a   : >> { %v2882_v11 = vpop.f32.mrf.mxu3  ;;  %v2618_v28 = vmul.f32 %v8571_v34, %v2426_v61 }
 0x44b   : >> { %6699 = vpow2.f32 %v2120_v1  ;;  %v2883_v15 = vadd.f32 %v2882_v11, %v2793_v38 }
 0x44c   : >> { %6701 = vpow2.f32 %v2122_v41 }
 0x44d   : >> { %v2955_v42 = vadd.f32 %v2883_v15, %v2617_v20  ;;  %v2427_v20 = vld [vmem:[#allocation4 + $0x48] sm:$0xff] }
 0x44e   : >> { %v2619_v34 = vmul.f32 %v8574_v43, %v2427_v20 }
 0x44f   : >> { %2987 = vst [vmem:[#allocation4 + $0x68] sm:$0xff] %v2955_v42 }
 0x451   : >> { %v6700_v58 = vpop.eup %6699 }
 0x452   : >> { %v6702_v10 = vpop.eup %6701 }
 0x453   : >> { %v8666_v3 = vadd.f32 %v6702_v10, %v6700_v58 }
 0x458   : >> { %v1917_v43 = vpop.permute.xlu0 %1916 }
 0x459   : >> { %v1700_v48 = vpop.xlane.xlu2 %1699 }
 0x45a   : >> { %v8671_v26 = vmax.f32 %v8668_v50, %v1700_v48 }
 0x45c   : >> { %3040 = vst.msk [vmem:[#allocation2 + $0xd0] sm:$0xff] %vm1044_vm0, %v8671_v26 }
 0x45e   : >> { %2273 = vadd.xlane.f32.xlu0 %v8495_v25 }
 0x460   : >> { %v2796_v22 = vpop.f32.mrf.mxu2 }
 0x461   : >> { %v2885_v62 = vpop.f32.mrf.mxu3  ;;  %v1907_v52 = vpop.permute.xlu2 %1906 }
 0x462   : >> { %v2886_v57 = vadd.f32 %v2885_v62, %v2796_v22  ;;  %v2028_v23 = vsub.f32 %v8200_v54, %v1907_v52  ;;  %v2029_v1 = vsub.f32 %v8202_v56, %v1907_v52  ;;  %1941 = vperm.xlu1 %6632, %v8486_v35   ;;  %v8684_v52 = vld [vmem:[#allocation2 + $0xe0] sm:$0xff] }
 0x464   : >> { %v2956_v41 = vadd.f32 %v2886_v57, %v2618_v28  ;;  %v2116_v38 = vmul.f32 1.442695, %v2028_v23  ;;  %v2118_v11 = vmul.f32 1.442695, %v2029_v1  ;;  %v2196_v23 = vld [vmem:[#allocation3] sm:$0xff] }
 0x466   : >> { %2988 = vst [vmem:[#allocation4 + $0x30] sm:$0xff] %v2956_v41  ;;  %6703 = vpow2.f32 %v2116_v38 }
 0x467   : >> { %6705 = vpow2.f32 %v2118_v11  ;;  %v10630_v11 = vld [vmem:[#allocation84_spill] sm:$0xff] }
 0x468   : >> { %v2798_v25 = vpop.f32.mrf.mxu2  ;;  %2264 = vadd.xlane.f32.xlu2 %v8424_v13  ;;  %v2228_v20 = vmul.f32 %v10630_v11, %v2196_v23 }
 0x469   : >> { %v2887_v15 = vpop.f32.mrf.mxu3 }
 0x46a   : >> { %v2888_v42 = vadd.f32 %v2887_v15, %v2798_v25 }
 0x46c   : >> { %v6704_v48 = vpop.eup %6703  ;;  %v2957_v54 = vadd.f32 %v2888_v42, %v2619_v34 }
 0x46d   : >> { %v6706_v61 = vpop.eup %6705  ;;  %v2656_v56 = vpack.c.bf16 %v6700_v58, %v6704_v48  ;;  %v8693_v58 = vld [vmem:[#allocation2 + $0xf0] sm:$0xff] }
 0x46e   : >> { %2989 = vst [vmem:[#allocation4 + $0x48] sm:$0xff] %v2957_v54  ;;  %v2657_v22 = vpack.c.bf16 %v6702_v10, %v6706_v61  ;;  %v8682_v62 = vadd.f32 %v6706_v61, %v6704_v48 }
 0x46f   : >> { %2810 = vmatmul.bf16.gmra.mxu2 %v2656_v56  ;;  %10629 = vst [vmem:[#allocation134_spill] sm:$0xff] %v8693_v58 }
 0x470   : >> { %2899 = vmatmul.bf16.gmra.mxu3 %v2657_v22 }
 0x471   : >> { %v1706_v28 = vpop.xlane.xlu1 %1705 }
 0x472   : >> { %1961 = vperm.xlu0 %6631, %v8608_v30   ;;  %v8688_v13 = vmax.f32 %v8684_v52, %v1706_v28  ;;  %v10634_v28 = vld [vmem:[#allocation81_spill] sm:$0xff] }
 0x474   : >> { %3042 = vst.msk [vmem:[#allocation2 + $0xe0] sm:$0xff] %vm1044_vm0, %v8688_v13 }
 0x480   : >> { %1936 = vperm.xlu2 %6630, %v8460_v39  }
 0x483   : >> { %v1712_v10 = vpop.xlane.xlu0 %1711 }
 0x484   : >> { %v8696_v57 = vmax.f32 %v8693_v58, %v1712_v10  ;;  %v2033_v10 = vsub.f32 %v10634_v28, %v1917_v43 }
 0x486   : >> { %3044 = vst.msk [vmem:[#allocation2 + $0xf0] sm:$0xff] %vm1044_vm0, %v8696_v57 }
 0x489   : >> { %v1927_v1 = vpop.permute.xlu1 %1926 }
 0x48a   : >> { %v2036_v41 = vsub.f32 %v8230_v7, %v1927_v1  ;;  %v2037_v38 = vsub.f32 %v8232_v59, %v1927_v1  ;;  %v8713_v59 = vld [vmem:[#allocation2 + $0xe8] sm:$0xff] }
 0x48b   : >> { %v2262_v25 = vpop.xlane.xlu0 %2261  ;;  %10631 = vst [vmem:[#allocation84_spill] sm:$0xff] %v8713_v59  ;;  %v10635_v1 = vld [vmem:[#allocation85_spill] sm:$0xff] }
 0x48c   : >> { %v2132_v15 = vmul.f32 1.442695, %v2036_v41  ;;  %v2134_v34 = vmul.f32 1.442695, %v2037_v38  ;;  %v2356_v42 = vadd.f32 %v2262_v25, %v2228_v20  ;;  %2276 = vadd.xlane.f32.xlu1 %v8520_v45  ;;  %v10633_v45 = vld [vmem:[#allocation80_spill] sm:$0xff]  ;;  %v10636_v38 = vld [vmem:[#allocation86_spill] sm:$0xff] }
 0x48d   : >> { %v2032_v22 = vsub.f32 %v10633_v45, %v1917_v43  ;;  %v2428_v43 = vld [vmem:[#allocation4 + $0x80] sm:$0xff] }
 0x48e   : >> { %6707 = vpow2.f32 %v2132_v15  ;;  %2388 = vst.msk [vmem:[#allocation3] sm:$0xff] %vm1044_vm0, %v2356_v42 }
 0x48f   : >> { %6709 = vpow2.f32 %v2134_v34  ;;  %v2124_v20 = vmul.f32 1.442695, %v2032_v22  ;;  %v2126_v34 = vmul.f32 1.442695, %v2033_v10 }
 0x494   : >> { %v8705_v48 = vpop.eup %6707 }
 0x495   : >> { %v8707_v54 = vpop.eup %6709 }
 0x496   : >> { %v8711_v7 = vadd.f32 %v8707_v54, %v8705_v48 }
 0x49a   : >> { %v1709_v61 = vpop.xlane.xlu2 %1708 }
 0x49b   : >> { %v8716_v56 = vmax.f32 %v8713_v59, %v1709_v61  ;;  %v10637_v61 = vld [vmem:[#allocation82_spill] sm:$0xff]  ;;  %v10638_v59 = vld [vmem:[#allocation83_spill] sm:$0xff] }
 0x49c   : >> { %2282 = vadd.xlane.f32.xlu0 %v8535_v4 }
 0x49d   : >> { %10632 = vst [vmem:[#allocation135_spill] sm:$0xff] %v8716_v56 }
 0x49e   : >> { %3043 = vst.msk [vmem:[#allocation2 + $0xe8] sm:$0xff] %vm1044_vm0, %v8716_v56  ;;  %v1932_v23 = vpop.permute.xlu0 %1931 }
 0x49f   : >> { %v2038_v41 = vsub.f32 %v10635_v1, %v1932_v23  ;;  %v2039_v11 = vsub.f32 %v10636_v38, %v1932_v23 }
 0x4a1   : >> { %v2136_v25 = vmul.f32 1.442695, %v2038_v41  ;;  %v2138_v15 = vmul.f32 1.442695, %v2039_v11 }
 0x4a2   : >> { %v1922_v42 = vpop.permute.xlu2 %1921 }
 0x4a3   : >> { %6711 = vpow2.f32 %v2136_v25  ;;  %v2034_v4 = vsub.f32 %v10637_v61, %v1922_v42  ;;  %v2035_v45 = vsub.f32 %v10638_v59, %v1922_v42  ;;  %v2620_v59 = vmul.f32 %v8664_v44, %v2428_v43  ;;  %v8741_v42 = vld [vmem:[#allocation2 + $0xf8] sm:$0xff]  ;;  %v2198_v43 = vld [vmem:[#allocation3 + $0x10] sm:$0xff] }
 0x4a4   : >> { %6713 = vpow2.f32 %v2138_v15  ;;  %10639 = vst [vmem:[#allocation80_spill] sm:$0xff] %v8741_v42 }
 0x4a5   : >> { %6715 = vpow2.f32 %v2124_v20  ;;  %v2128_v58 = vmul.f32 1.442695, %v2034_v4  ;;  %v2130_v24 = vmul.f32 1.442695, %v2035_v45  ;;  %1956 = vperm.xlu1 %6632, %v8559_v9  }
 0x4a6   : >> { %6717 = vpow2.f32 %v2126_v34 }
 0x4a7   : >> { %6719 = vpow2.f32 %v2128_v58 }
 0x4a8   : >> { %6721 = vpow2.f32 %v2130_v24 }
 0x4a9   : >> { %v6712_v22 = vpop.eup %6711  ;;  %v2801_v28 = vpop.f32.mrf.mxu2  ;;  %2270 = vadd.xlane.f32.xlu2 %v8491_v0 }
 0x4aa   : >> { %v6714_v10 = vpop.eup %6713  ;;  %v2890_v23 = vpop.f32.mrf.mxu3 }
 0x4ab   : >> { %v8729_v1 = vpop.eup %6715  ;;  %v2891_v41 = vadd.f32 %v2890_v23, %v2801_v28  ;;  %v8732_v38 = vadd.f32 %v6714_v10, %v6712_v22 }
 0x4ac   : >> { %v8734_v11 = vpop.eup %6717 }
 0x4ad   : >> { %v6720_v20 = vpop.eup %6719  ;;  %v2958_v25 = vadd.f32 %v2891_v41, %v2620_v59  ;;  %v10640_v59 = vld [vmem:[#allocation95_spill] sm:$0xff] }
 0x4ae   : >> { %v6722_v58 = vpop.eup %6721  ;;  %v2658_v24 = vpack.c.bf16 %v6720_v20, %v8729_v1  ;;  %v2230_v41 = vmul.f32 %v10640_v59, %v2198_v43  ;;  %v2284_v43 = vadd.f32 %v8624_v49, %v8621_v36  ;;  %v2200_v59 = vld [vmem:[#allocation3 + $0x20] sm:$0xff]  ;;  %v10644_v36 = vld [vmem:[#allocation94_spill] sm:$0xff] }
 0x4af   : >> { %2990 = vst [vmem:[#allocation4 + $0x80] sm:$0xff] %v2958_v25  ;;  %v2659_v15 = vpack.c.bf16 %v6722_v58, %v8734_v11  ;;  %v8738_v0 = vadd.f32 %v6722_v58, %v6720_v20  ;;  %v2660_v58 = vpack.c.bf16 %v6712_v22, %v8705_v48  ;;  %v10641_v48 = vld [vmem:[#allocation98_spill] sm:$0xff] }
 0x4b0   : >> { %2815 = vmatmul.bf16.gmra.mxu2 %v2658_v24  ;;  %1976 = vperm.xlu0 %6631, %v8671_v26   ;;  %v2661_v24 = vpack.c.bf16 %v6714_v10, %v8707_v54  ;;  %v2232_v22 = vmul.f32 %v10641_v48, %v2200_v59  ;;  %v10642_v10 = vld [vmem:[#allocation92_spill] sm:$0xff] }
 0x4b1   : >> { %2904 = vmatmul.bf16.gmra.mxu3 %v2659_v15  ;;  %v2803_v44 = vpop.f32.mrf.mxu2 }
 0x4b2   : >> { %v2892_v34 = vpop.f32.mrf.mxu3 }
 0x4b3   : >> { %v8743_v61 = vadd.f32 %v2892_v34, %v2803_v44 }
 0x4b4   : >> { %v1715_v4 = vpop.xlane.xlu1 %1714 }
 0x4b5   : >> { %v8746_v45 = vmax.f32 %v8741_v42, %v1715_v4  ;;  %v8761_v4 = vpop.permute.xlu0 %1946  ;;  %v2197_v42 = vld [vmem:[#allocation3 + $0x8] sm:$0xff] }
 0x4b6   : >> { %v2229_v49 = vmul.f32 %v10644_v36, %v2197_v42 }
 0x4b7   : >> { %3045 = vst.msk [vmem:[#allocation2 + $0xf8] sm:$0xff] %vm1044_vm0, %v8746_v45 }
 0x4b9   : >> { %v8750_v28 = vpop.f32.mrf.mxu2 }
 0x4ba   : >> { %v8752_v23 = vpop.f32.mrf.mxu3 }
 0x4bc   : >> { %v2268_v20 = vpop.xlane.xlu1 %2267 }
 0x4bd   : >> { %v2358_v25 = vadd.f32 %v2268_v20, %v2230_v41 }
 0x4bf   : >> { %2390 = vst.msk [vmem:[#allocation3 + $0x10] sm:$0xff] %vm1044_vm0, %v2358_v25 }
 0x4c0   : >> { %2820 = vmatmul.bf16.gmra.mxu2 %v2660_v58  ;;  %v10643_v58 = vld [vmem:[#allocation93_spill] sm:$0xff] }
 0x4c1   : >> { %2909 = vmatmul.bf16.gmra.mxu3 %v2661_v24  ;;  %v2808_v15 = vpop.f32.mrf.mxu2  ;;  %1951 = vperm.xlu2 %6630, %v8529_v17  }
 0x4c2   : >> { %v2897_v44 = vpop.f32.mrf.mxu3 }
 0x4c3   : >> { %v8759_v34 = vadd.f32 %v2897_v44, %v2808_v15 }
 0x4cf   : >> { %2285 = vadd.xlane.f32.xlu1 %v2284_v43 }
 0x4d1   : >> { %v2274_v41 = vpop.xlane.xlu0 %2273 }
 0x4d2   : >> { %v2360_v20 = vadd.f32 %v2274_v41, %v2232_v22 }
 0x4d4   : >> { %2392 = vst.msk [vmem:[#allocation3 + $0x20] sm:$0xff] %vm1044_vm0, %v2360_v20  ;;  %v1942_v54 = vpop.permute.xlu1 %1941 }
 0x4d5   : >> { %v2042_v25 = vsub.f32 %v10642_v10, %v1942_v54  ;;  %v2043_v24 = vsub.f32 %v10643_v58, %v1942_v54  ;;  %v10645_v10 = vld [vmem:[#allocation88_spill] sm:$0xff] }
 0x4d7   : >> { %v2144_v15 = vmul.f32 1.442695, %v2042_v25  ;;  %v2146_v44 = vmul.f32 1.442695, %v2043_v24  ;;  %v10646_v25 = vld [vmem:[#allocation87_spill] sm:$0xff] }
 0x4d9   : >> { %6723 = vpow2.f32 %v2144_v15 }
 0x4da   : >> { %6725 = vpow2.f32 %v2146_v44  ;;  %2291 = vadd.xlane.f32.xlu0 %v8605_v2 }
 0x4db   : >> { %v2265_v43 = vpop.xlane.xlu2 %2264 }
 0x4dc   : >> { %v2357_v59 = vadd.f32 %v2265_v43, %v2229_v49 }
 0x4de   : >> { %2389 = vst.msk [vmem:[#allocation3 + $0x8] sm:$0xff] %vm1044_vm0, %v2357_v59 }
 0x4df   : >> { %v6724_v48 = vpop.eup %6723 }
 0x4e0   : >> { %v6726_v22 = vpop.eup %6725 }
 0x4e1   : >> { %v8772_v41 = vadd.f32 %v6726_v22, %v6724_v48 }
 0x4e3   : >> { %v1937_v20 = vpop.permute.xlu2 %1936 }
 0x4e4   : >> { %v2040_v54 = vsub.f32 %v10645_v10, %v1937_v20  ;;  %v2041_v58 = vsub.f32 %v10646_v25, %v1937_v20  ;;  %v1962_v24 = vpop.permute.xlu0 %1961 }
 0x4e5   : >> { %v2050_v15 = vsub.f32 %v8466_v47, %v1962_v24  ;;  %v2051_v2 = vsub.f32 %v8468_v27, %v1962_v24 }
 0x4e6   : >> { %v2140_v44 = vmul.f32 1.442695, %v2040_v54  ;;  %v2142_v42 = vmul.f32 1.442695, %v2041_v58 }
 0x4e7   : >> { %v2160_v36 = vmul.f32 1.442695, %v2050_v15  ;;  %v2162_v49 = vmul.f32 1.442695, %v2051_v2  ;;  %v2201_v15 = vld [vmem:[#allocation3 + $0x28] sm:$0xff] }
 0x4e8   : >> { %6727 = vpow2.f32 %v2140_v44  ;;  %1971 = vperm.xlu1 %6632, %v8638_v40  }
 0x4e9   : >> { %6729 = vpow2.f32 %v2142_v42 }
 0x4ea   : >> { %6731 = vpow2.f32 %v2160_v36  ;;  %2279 = vadd.xlane.f32.xlu2 %v8551_v18 }
 0x4eb   : >> { %6733 = vpow2.f32 %v2162_v49 }
 0x4ee   : >> { %v6728_v43 = vpop.eup %6727  ;;  %1991 = vperm.xlu0 %6631, %v8716_v56  }
 0x4ef   : >> { %v6730_v59 = vpop.eup %6729  ;;  %v2662_v20 = vpack.c.bf16 %v6724_v48, %v6728_v43  ;;  %v2233_v48 = vmul.f32 %v8445_v16, %v2201_v15 }
 0x4f0   : >> { %v8781_v47 = vpop.eup %6731  ;;  %v2663_v27 = vpack.c.bf16 %v6726_v22, %v6730_v59  ;;  %v8783_v10 = vadd.f32 %v6730_v59, %v6728_v43  ;;  %v2203_v22 = vld [vmem:[#allocation3 + $0x38] sm:$0xff] }
 0x4f1   : >> { %v8785_v54 = vpop.eup %6733  ;;  %2825 = vmatmul.bf16.gmra.mxu2 %v2662_v20  ;;  %v2235_v42 = vmul.f32 %v8431_v12, %v2203_v22  ;;  %v2199_v20 = vld [vmem:[#allocation3 + $0x18] sm:$0xff] }
 0x4f2   : >> { %2914 = vmatmul.bf16.gmra.mxu3 %v2663_v27  ;;  %v2811_v25 = vpop.f32.mrf.mxu2  ;;  %v8789_v58 = vadd.f32 %v8785_v54, %v8781_v47 }
 0x4f3   : >> { %v2900_v18 = vpop.f32.mrf.mxu3 }
 0x4f4   : >> { %v8791_v24 = vadd.f32 %v2900_v18, %v2811_v25  ;;  %v10647_v18 = vld [vmem:[#allocation103_spill] sm:$0xff] }
 0x4f5   : >> { %v2231_v15 = vmul.f32 %v10647_v18, %v2199_v20  ;;  %v10651_v20 = vld [vmem:[#allocation109_spill] sm:$0xff] }
 0x4ff   : >> { %v2277_v2 = vpop.xlane.xlu1 %2276 }
 0x500   : >> { %v2361_v44 = vadd.f32 %v2277_v2, %v2233_v48  ;;  %v10648_v48 = vld [vmem:[#allocation91_spill] sm:$0xff] }
 0x501   : >> { %v1758_v2 = vsub.f32 %v10648_v48, %v8306_v14  ;;  %v10650_v14 = vld [vmem:[#allocation101_spill] sm:$0xff]  ;;  %v8816_v48 = vpop.f32.mrf.mxu2 }
 0x502   : >> { %2393 = vst.msk [vmem:[#allocation3 + $0x28] sm:$0xff] %vm1044_vm0, %v2361_v44  ;;  %1966 = vperm.xlu2 %6630, %v8587_v21  }
 0x50f   : >> { %v2283_v36 = vpop.xlane.xlu0 %2282 }
 0x510   : >> { %v2363_v49 = vadd.f32 %v2283_v36, %v2235_v42 }
 0x512   : >> { %2395 = vst.msk [vmem:[#allocation3 + $0x38] sm:$0xff] %vm1044_vm0, %v2363_v49  ;;  %2294 = vadd.xlane.f32.xlu1 %v8632_v31  ;;  %v2044_v31 = vsub.f32 %v8386_v33, %v8761_v4  ;;  %v10652_v33 = vld [vmem:[#allocation110_spill] sm:$0xff] }
 0x514   : >> { %v2148_v36 = vmul.f32 1.442695, %v2044_v31  ;;  %v10654_v31 = vld [vmem:[#allocation107_spill] sm:$0xff] }
 0x517   : >> { %v1957_v43 = vpop.permute.xlu1 %1956 }
 0x518   : >> { %v2048_v59 = vsub.f32 %v8436_v37, %v1957_v43  ;;  %v2049_v16 = vsub.f32 %v8434_v53, %v1957_v43  ;;  %2300 = vadd.xlane.f32.xlu0 %v8666_v3  ;;  %v10649_v53 = vld [vmem:[#allocation106_spill] sm:$0xff]  ;;  %v1800_v3 = vmul.f32 1.442695, %v1758_v2  ;;  %v8820_v2 = vpop.f32.mrf.mxu3 }
 0x519   : >> { %v2045_v37 = vsub.f32 %v10649_v53, %v8761_v4 }
 0x51a   : >> { %v2156_v27 = vmul.f32 1.442695, %v2048_v59  ;;  %v2158_v25 = vmul.f32 1.442695, %v2049_v16  ;;  %v1761_v16 = vsub.f32 %v10650_v14, %v8362_v51 }
 0x51b   : >> { %v2150_v49 = vmul.f32 1.442695, %v2045_v37 }
 0x51c   : >> { %6735 = vpow2.f32 %v2156_v27  ;;  %v2271_v12 = vpop.xlane.xlu2 %2270  ;;  %v1806_v4 = vmul.f32 1.442695, %v1761_v16 }
 0x51d   : >> { %6737 = vpow2.f32 %v2158_v25  ;;  %v2359_v44 = vadd.f32 %v2271_v12, %v2231_v15 }
 0x51e   : >> { %6739 = vpow2.f32 %v1800_v3 }
 0x51f   : >> { %2391 = vst.msk [vmem:[#allocation3 + $0x18] sm:$0xff] %vm1044_vm0, %v2359_v44  ;;  %6741 = vpow2.f32 %v2148_v36  ;;  %v10653_v44 = vld [vmem:[#allocation108_spill] sm:$0xff] }
 0x520   : >> { %6743 = vpow2.f32 %v2150_v49  ;;  %v1764_v53 = vsub.f32 %v10654_v31, %v10653_v44 }
 0x522   : >> { %v6736_v22 = vpop.eup %6735 }
 0x523   : >> { %v6738_v42 = vpop.eup %6737 }
 0x524   : >> { %v1952_v43 = vpop.permute.xlu2 %1951  ;;  %v8810_v59 = vadd.f32 %v6738_v42, %v6736_v22  ;;  %v6740_v12 = vpop.eup %6739 }
 0x525   : >> { %v2046_v27 = vsub.f32 %v10651_v20, %v1952_v43  ;;  %v2047_v25 = vsub.f32 %v10652_v33, %v1952_v43  ;;  %v8822_v51 = vpop.eup %6741  ;;  %v1812_v43 = vmul.f32 1.442695, %v1764_v53  ;;  %v10655_v33 = vld [vmem:[#allocation116_spill] sm:$0xff]  ;;  %v10656_v53 = vld [vmem:[#allocation126_spill] sm:$0xff] }
 0x526   : >> { %v8826_v37 = vpop.eup %6743 }
 0x527   : >> { %v2152_v18 = vmul.f32 1.442695, %v2046_v27  ;;  %v2154_v15 = vmul.f32 1.442695, %v2047_v25  ;;  %v1767_v25 = vsub.f32 %v10655_v33, %v8486_v35  ;;  %v2667_v35 = vpack.c.bf16 %v8785_v54, %v6738_v42  ;;  %v8859_v54 = vpop.permute.xlu0 %1976  ;;  %v2206_v42 = vld [vmem:[#allocation3 + $0x50] sm:$0xff] }
 0x529   : >> { %6745 = vpow2.f32 %v2152_v18 }
 0x52a   : >> { %6747 = vpow2.f32 %v2154_v15  ;;  %v1818_v15 = vmul.f32 1.442695, %v1767_v25 }
 0x52b   : >> { %2288 = vadd.xlane.f32.xlu2 %v8630_v46  ;;  %1986 = vperm.xlu1 %6632, %v8688_v13   ;;  %6749 = vpow2.f32 %v1806_v4 }
 0x52c   : >> { %2504 = vperm.xlu0 %6631, %v6740_v12   ;;  %6751 = vpow2.f32 %v1812_v43  ;;  %v2666_v43 = vpack.c.bf16 %v8781_v47, %v6736_v22  ;;  %v1773_v47 = vsub.f32 %v8635_v5, %v8638_v40 }
 0x52d   : >> { %6753 = vpow2.f32 %v1818_v15 }
 0x52e   : >> { %v1830_v22 = vmul.f32 1.442695, %v1773_v47 }
 0x52f   : >> { %v6746_v3 = vpop.eup %6745 }
 0x530   : >> { %v6748_v36 = vpop.eup %6747  ;;  %v2664_v49 = vpack.c.bf16 %v6746_v3, %v8822_v51 }
 0x531   : >> { %v2665_v46 = vpack.c.bf16 %v6748_v36, %v8826_v37  ;;  %v8830_v14 = vadd.f32 %v6748_v36, %v6746_v3  ;;  %v8832_v16 = vpop.eup %6749  ;;  %v1770_v3 = vsub.f32 %v10656_v53, %v8559_v9 }
 0x532   : >> { %2830 = vmatmul.bf16.gmra.mxu2 %v2664_v49  ;;  %v8839_v4 = vpop.eup %6751  ;;  %v2204_v49 = vld [vmem:[#allocation3 + $0x40] sm:$0xff] }
 0x533   : >> { %2919 = vmatmul.bf16.gmra.mxu3 %v2665_v46  ;;  %v2816_v20 = vpop.f32.mrf.mxu2  ;;  %v1824_v46 = vmul.f32 1.442695, %v1770_v3  ;;  %v8849_v25 = vpop.eup %6753  ;;  %v2238_v3 = vmul.f32 %v6740_v12, %v2206_v42  ;;  %v2202_v12 = vld [vmem:[#allocation3 + $0x30] sm:$0xff] }
 0x534   : >> { %v2905_v27 = vpop.f32.mrf.mxu3  ;;  %2519 = vperm.xlu0 %6631, %v8832_v16  }
 0x535   : >> { %v8837_v18 = vadd.f32 %v2905_v27, %v2816_v20  ;;  %v10657_v20 = vld [vmem:[#allocation119_spill] sm:$0xff]  ;;  %6755 = vpow2.f32 %v1824_v46 }
 0x536   : >> { %v2236_v27 = vmul.f32 %v10657_v20, %v2204_v49  ;;  %6757 = vpow2.f32 %v1830_v22  ;;  %v1776_v49 = vsub.f32 %v8684_v52, %v8688_v13  ;;  %v10661_v52 = vld [vmem:[#allocation113_spill] sm:$0xff]  ;;  %v10662_v22 = vld [vmem:[#allocation118_spill] sm:$0xff] }
 0x537   : >> { %v2234_v13 = vmul.f32 %v10661_v52, %v2202_v12 }
 0x53b   : >> { %v2818_v44 = vpop.f32.mrf.mxu2 }
 0x53c   : >> { %v2907_v31 = vpop.f32.mrf.mxu3  ;;  %2534 = vperm.xlu0 %6631, %v8839_v4  }
 0x53d   : >> { %v8844_v36 = vadd.f32 %v2907_v31, %v2818_v44  ;;  %v8862_v44 = vpop.eup %6755 }
 0x53e   : >> { %10658 = vst [vmem:[#allocation81_spill] sm:$0xff] %v8862_v44  ;;  %v8870_v46 = vpop.eup %6757 }
 0x53f   : >> { %10659 = vst [vmem:[#allocation85_spill] sm:$0xff] %v8870_v46 }
 0x542   : >> { %2835 = vmatmul.bf16.gmra.mxu2 %v2666_v43  ;;  %v2286_v33 = vpop.xlane.xlu1 %2285 }
 0x543   : >> { %2924 = vmatmul.bf16.gmra.mxu3 %v2667_v35  ;;  %v2364_v56 = vadd.f32 %v2286_v33, %v2236_v27  ;;  %1981 = vperm.xlu2 %6630, %v8656_v8   ;;  %v8852_v15 = vpop.f32.mrf.mxu2  ;;  %v2302_v35 = vadd.f32 %v8734_v11, %v8729_v1 }
 0x544   : >> { %v8854_v9 = vpop.f32.mrf.mxu3  ;;  %2549 = vperm.xlu0 %6631, %v8849_v25  }
 0x545   : >> { %2396 = vst.msk [vmem:[#allocation3 + $0x40] sm:$0xff] %vm1044_vm0, %v2364_v56  ;;  %v1836_v56 = vmul.f32 1.442695, %v1776_v49  ;;  %v10664_v49 = vld [vmem:[#allocation115_spill] sm:$0xff] }
 0x547   : >> { %6759 = vpow2.f32 %v1836_v56 }
 0x54b   : >> { %v2823_v31 = vpop.f32.mrf.mxu2 }
 0x54c   : >> { %v2912_v53 = vpop.f32.mrf.mxu3  ;;  %2564 = vperm.xlu0 %6631, %v8862_v44  }
 0x54d   : >> { %v8867_v43 = vadd.f32 %v2912_v53, %v2823_v31  ;;  %v2292_v5 = vpop.xlane.xlu0 %2291  ;;  %v8875_v20 = vpop.eup %6759  ;;  %v10663_v31 = vld [vmem:[#allocation117_spill] sm:$0xff] }
 0x54e   : >> { %v2366_v40 = vadd.f32 %v2292_v5, %v2238_v3  ;;  %10660 = vst [vmem:[#allocation86_spill] sm:$0xff] %v8875_v20 }
 0x550   : >> { %2398 = vst.msk [vmem:[#allocation3 + $0x50] sm:$0xff] %vm1044_vm0, %v2366_v40  ;;  %v10665_v40 = vld [vmem:[#allocation114_spill] sm:$0xff] }
 0x554   : >> { %2579 = vperm.xlu0 %6631, %v8870_v46  }
 0x555   : >> { %2303 = vadd.xlane.f32.xlu1 %v2302_v35  ;;  %v10666_v35 = vld [vmem:[#allocation90_spill] sm:$0xff] }
 0x55a   : >> { %v1972_v27 = vpop.permute.xlu1 %1971 }
 0x55b   : >> { %v2054_v42 = vsub.f32 %v10662_v22, %v1972_v27  ;;  %v2055_v1 = vsub.f32 %v10663_v31, %v1972_v27  ;;  %v10669_v22 = vld [vmem:[#allocation99_spill] sm:$0xff] }
 0x55c   : >> { %2594 = vperm.xlu0 %6631, %v8875_v20   ;;  %v10667_v20 = vld [vmem:[#allocation89_spill] sm:$0xff] }
 0x55d   : >> { %v2280_v33 = vpop.xlane.xlu2 %2279  ;;  %v2168_v11 = vmul.f32 1.442695, %v2054_v42  ;;  %v2170_v53 = vmul.f32 1.442695, %v2055_v1  ;;  %v1757_v46 = vsub.f32 %v10667_v20, %v10666_v35 }
 0x55e   : >> { %v2362_v47 = vadd.f32 %v2280_v33, %v2234_v13 }
 0x55f   : >> { %6761 = vpow2.f32 %v2168_v11  ;;  %v1798_v13 = vmul.f32 1.442695, %v1757_v46 }
 0x560   : >> { %2394 = vst.msk [vmem:[#allocation3 + $0x30] sm:$0xff] %vm1044_vm0, %v2362_v47  ;;  %6763 = vpow2.f32 %v2170_v53  ;;  %v10668_v47 = vld [vmem:[#allocation100_spill] sm:$0xff]  ;;  %v10670_v53 = vld [vmem:[#allocation97_spill] sm:$0xff] }
 0x561   : >> { %v1760_v42 = vsub.f32 %v10669_v22, %v10668_v47 }
 0x565   : >> { %v1967_v3 = vpop.permute.xlu2 %1966  ;;  %v8887_v27 = vpop.eup %6761 }
 0x566   : >> { %v2052_v5 = vsub.f32 %v10664_v49, %v1967_v3  ;;  %v2053_v56 = vsub.f32 %v10665_v40, %v1967_v3  ;;  %v8890_v33 = vpop.eup %6763  ;;  %v1804_v49 = vmul.f32 1.442695, %v1760_v42  ;;  %v10673_v42 = vld [vmem:[#allocation112_spill] sm:$0xff] }
 0x568   : >> { %v2164_v12 = vmul.f32 1.442695, %v2052_v5  ;;  %v2166_v52 = vmul.f32 1.442695, %v2053_v56 }
 0x56a   : >> { %6765 = vpow2.f32 %v2164_v12 }
 0x56b   : >> { %6767 = vpow2.f32 %v2166_v52  ;;  %v10672_v52 = vld [vmem:[#allocation105_spill] sm:$0xff] }
 0x56c   : >> { %2297 = vadd.xlane.f32.xlu2 %v8682_v62  ;;  %6769 = vpow2.f32 %v1798_v13  ;;  %v10671_v62 = vld [vmem:[#allocation96_spill] sm:$0xff]  ;;  %v1763_v13 = vsub.f32 %v10672_v52, %v8393_v55 }
 0x56d   : >> { %v1759_v3 = vsub.f32 %v10671_v62, %v10670_v53  ;;  %6771 = vpow2.f32 %v1804_v49  ;;  %v8912_v53 = vpop.permute.xlu0 %1991  ;;  %v10674_v55 = vld [vmem:[#allocation104_spill] sm:$0xff]  ;;  %v10675_v49 = vld [vmem:[#allocation102_spill] sm:$0xff] }
 0x56e   : >> { %2001 = vperm.xlu1 %6632, %v8746_v45   ;;  %v1810_v47 = vmul.f32 1.442695, %v1763_v13  ;;  %v2209_v13 = vld [vmem:[#allocation3 + $0x68] sm:$0xff] }
 0x56f   : >> { %v1802_v12 = vmul.f32 1.442695, %v1759_v3 }
 0x570   : >> { %v6766_v20 = vpop.eup %6765 }
 0x571   : >> { %v6768_v31 = vpop.eup %6767  ;;  %v2668_v1 = vpack.c.bf16 %v8887_v27, %v6766_v20  ;;  %6773 = vpow2.f32 %v1802_v12 }
 0x572   : >> { %v2669_v11 = vpack.c.bf16 %v8890_v33, %v6768_v31  ;;  %v8896_v46 = vadd.f32 %v6768_v31, %v6766_v20  ;;  %v8900_v40 = vpop.eup %6769  ;;  %6775 = vpow2.f32 %v1810_v47  ;;  %v1766_v20 = vsub.f32 %v10673_v42, %v8460_v39  ;;  %v10676_v39 = vld [vmem:[#allocation120_spill] sm:$0xff] }
 0x573   : >> { %2840 = vmatmul.bf16.gmra.mxu2 %v2668_v1  ;;  %v8907_v22 = vpop.eup %6771  ;;  %v2207_v1 = vld [vmem:[#allocation3 + $0x58] sm:$0xff]  ;;  %v1769_v52 = vsub.f32 %v10676_v39, %v8529_v17  ;;  %v2241_v42 = vmul.f32 %v8832_v16, %v2209_v13  ;;  %v10678_v17 = vld [vmem:[#allocation129_spill] sm:$0xff]  ;;  %v2335_v13 = vadd.f32 %v8890_v33, %v8887_v27  ;;  %v2896_v27 = vadd.f32 %v8752_v23, %v8750_v28  ;;  %v2433_v23 = vld [vmem:[#allocation4 + $0xf0] sm:$0xff] }
 0x574   : >> { %2929 = vmatmul.bf16.gmra.mxu3 %v2669_v11  ;;  %v2826_v5 = vpop.f32.mrf.mxu2  ;;  %v1816_v11 = vmul.f32 1.442695, %v1766_v20  ;;  %v1772_v16 = vsub.f32 %v10678_v17, %v8587_v21  ;;  %v1775_v21 = vsub.f32 %v8653_v6, %v8656_v8  ;;  %v10681_v8 = vld [vmem:[#allocation127_spill] sm:$0xff]  ;;  %v1774_v28 = vsub.f32 %v8668_v50, %v8671_v26 }
 0x575   : >> { %v2915_v56 = vpop.f32.mrf.mxu3  ;;  %v1822_v20 = vmul.f32 1.442695, %v1769_v52  ;;  %v2430_v52 = vld [vmem:[#allocation4 + $0xe8] sm:$0xff] }
 0x576   : >> { %v8902_v35 = vadd.f32 %v2915_v56, %v2826_v5  ;;  %2499 = vperm.xlu1 %6632, %v8900_v40   ;;  %v1762_v5 = vsub.f32 %v10675_v49, %v10674_v55  ;;  %6777 = vpow2.f32 %v1816_v11  ;;  %v1834_v39 = vmul.f32 1.442695, %v1775_v21  ;;  %v10684_v21 = vld [vmem:[#allocation121_spill] sm:$0xff] }
 0x577   : >> { %v6774_v31 = vpop.eup %6773 }
 0x578   : >> { %v2239_v62 = vmul.f32 %v6774_v31, %v2207_v1  ;;  %v8915_v3 = vpop.eup %6775  ;;  %v1808_v47 = vmul.f32 1.442695, %v1762_v5 }
 0x57a   : >> { %6779 = vpow2.f32 %v1808_v47 }
 0x57b   : >> { %6781 = vpow2.f32 %v1822_v20 }
 0x57c   : >> { %v8925_v55 = vpop.eup %6777 }
 0x57e   : >> { %2514 = vperm.xlu1 %6632, %v8907_v22  }
 0x580   : >> { %v8934_v49 = vpop.eup %6779 }
 0x581   : >> { %v8937_v5 = vpop.eup %6781 }
 0x584   : >> { %1996 = vperm.xlu2 %6630, %v8696_v57  }
 0x585   : >> { %v2295_v56 = vpop.xlane.xlu1 %2294 }
 0x586   : >> { %v2367_v12 = vadd.f32 %v2295_v56, %v2239_v62  ;;  %2309 = vadd.xlane.f32.xlu0 %v8711_v7  ;;  %2529 = vperm.xlu1 %6632, %v8915_v3   ;;  %v10677_v7 = vld [vmem:[#allocation111_spill] sm:$0xff]  ;;  %v2205_v56 = vld [vmem:[#allocation3 + $0x48] sm:$0xff] }
 0x587   : >> { %v1765_v62 = vsub.f32 %v10677_v7, %v8451_v19  ;;  %v10679_v19 = vld [vmem:[#allocation123_spill] sm:$0xff]  ;;  %v2237_v6 = vmul.f32 %v8900_v40, %v2205_v56  ;;  %v10683_v40 = vld [vmem:[#allocation122_spill] sm:$0xff] }
 0x588   : >> { %2399 = vst.msk [vmem:[#allocation3 + $0x58] sm:$0xff] %vm1044_vm0, %v2367_v12 }
 0x589   : >> { %v1814_v11 = vmul.f32 1.442695, %v1765_v62 }
 0x58b   : >> { %v2301_v1 = vpop.xlane.xlu0 %2300  ;;  %6783 = vpow2.f32 %v1814_v11 }
 0x58c   : >> { %v2369_v44 = vadd.f32 %v2301_v1, %v2241_v42  ;;  %2509 = vperm.xlu2 %6630, %v6774_v31   ;;  %v1828_v31 = vmul.f32 1.442695, %v1772_v16  ;;  %v10682_v1 = vld [vmem:[#allocation128_spill] sm:$0xff] }
 0x58e   : >> { %2401 = vst.msk [vmem:[#allocation3 + $0x68] sm:$0xff] %vm1044_vm0, %v2369_v44  ;;  %2544 = vperm.xlu1 %6632, %v8925_v55   ;;  %2318 = vadd.xlane.f32.xlu0 %v8772_v41  ;;  %v1768_v44 = vsub.f32 %v10679_v19, %v8538_v32  ;;  %6785 = vpow2.f32 %v1828_v31  ;;  %v2056_v19 = vsub.f32 %v10683_v40, %v8859_v54 }
 0x58f   : >> { %v2911_v40 = vadd.f32 %v8854_v9, %v8852_v15  ;;  %v2063_v15 = vsub.f32 %v8578_v29, %v8912_v53  ;;  %v2439_v9 = vld [vmem:[#allocation4 + $0xc8] sm:$0xff] }
 0x590   : >> { %v1820_v41 = vmul.f32 1.442695, %v1768_v44 }
 0x591   : >> { %v8945_v12 = vpop.eup %6783 }
 0x592   : >> { %6787 = vpow2.f32 %v1820_v41  ;;  %v2057_v41 = vsub.f32 %v10684_v21, %v8859_v54  ;;  %v2903_v54 = vadd.f32 %v8820_v2, %v8816_v48  ;;  %v2436_v48 = vld [vmem:[#allocation4 + $0x38] sm:$0xff]  ;;  %v2828_v2 = vpop.f32.mrf.mxu2 }
 0x593   : >> { %6789 = vpow2.f32 %v1834_v39 }
 0x594   : >> { %2524 = vperm.xlu2 %6630, %v8934_v49   ;;  %v8950_v32 = vpop.eup %6785 }
 0x596   : >> { %2559 = vperm.xlu1 %6632, %v8937_v5   ;;  %2327 = vadd.xlane.f32.xlu0 %v8810_v59  ;;  %v10680_v59 = vld [vmem:[#allocation132_spill] sm:$0xff] }
 0x597   : >> { %v1771_v47 = vsub.f32 %v10680_v59, %v8608_v30 }
 0x598   : >> { %v8965_v56 = vpop.eup %6787 }
 0x599   : >> { %v1826_v31 = vmul.f32 1.442695, %v1771_v47  ;;  %v8970_v39 = vpop.eup %6789 }
 0x59c   : >> { %2539 = vperm.xlu2 %6630, %v8945_v12  }
 0x59d   : >> { %v1987_v42 = vpop.permute.xlu1 %1986 }
 0x59e   : >> { %v2060_v20 = vsub.f32 %v10681_v8, %v1987_v42  ;;  %v2061_v7 = vsub.f32 %v10682_v1, %v1987_v42  ;;  %v2289_v62 = vpop.xlane.xlu2 %2288  ;;  %v2505_v17 = vpop.permute.xlu0 %2504  ;;  %2574 = vperm.xlu1 %6632, %v8950_v32   ;;  %2336 = vadd.xlane.f32.xlu0 %v2335_v13  ;;  %v2174_v13 = vmul.f32 1.442695, %v2057_v41  ;;  %v10685_v42 = vld [vmem:[#allocation125_spill] sm:$0xff]  ;;  %v10686_v8 = vld [vmem:[#allocation124_spill] sm:$0xff]  ;;  %v1832_v1 = vmul.f32 1.442695, %v1774_v28 }
 0x59f   : >> { %v2365_v33 = vadd.f32 %v2289_v62, %v2237_v6  ;;  %v2622_v16 = vmul.f32 %v2505_v17, %v2430_v52  ;;  %v2172_v52 = vmul.f32 1.442695, %v2056_v19 }
 0x5a0   : >> { %v2180_v11 = vmul.f32 1.442695, %v2060_v20  ;;  %v2182_v30 = vmul.f32 1.442695, %v2061_v7 }
 0x5a1   : >> { %2397 = vst.msk [vmem:[#allocation3 + $0x48] sm:$0xff] %vm1044_vm0, %v2365_v33  ;;  %v2960_v44 = vadd.f32 %v2896_v27, %v2622_v16 }
 0x5a2   : >> { %6791 = vpow2.f32 %v2180_v11  ;;  %v2917_v11 = vpop.f32.mrf.mxu3 }
 0x5a3   : >> { %6793 = vpow2.f32 %v2182_v30  ;;  %2992 = vst [vmem:[#allocation4 + $0xe8] sm:$0xff] %v2960_v44 }
 0x5a4   : >> { %2554 = vperm.xlu2 %6630, %v8965_v56   ;;  %6795 = vpow2.f32 %v1826_v31 }
 0x5a5   : >> { %6797 = vpow2.f32 %v2172_v52 }
 0x5a6   : >> { %v1982_v59 = vpop.permute.xlu2 %1981  ;;  %v2520_v47 = vpop.permute.xlu0 %2519  ;;  %2589 = vperm.xlu1 %6632, %v8970_v39   ;;  %6799 = vpow2.f32 %v2174_v13  ;;  %v2062_v13 = vsub.f32 %v8576_v63, %v8912_v53 }
 0x5a7   : >> { %v2058_v6 = vsub.f32 %v10685_v42, %v1982_v59  ;;  %v2059_v20 = vsub.f32 %v10686_v8, %v1982_v59  ;;  %v2625_v50 = vmul.f32 %v2520_v47, %v2433_v23 }
 0x5a8   : >> { %v6792_v26 = vpop.eup %6791  ;;  %v2184_v8 = vmul.f32 1.442695, %v2062_v13 }
 0x5a9   : >> { %v6794_v7 = vpop.eup %6793  ;;  %v2176_v62 = vmul.f32 1.442695, %v2058_v6  ;;  %v2178_v17 = vmul.f32 1.442695, %v2059_v20  ;;  %v2963_v27 = vadd.f32 %v2903_v54, %v2625_v50  ;;  %v2918_v20 = vadd.f32 %v2917_v11, %v2828_v2  ;;  %v2210_v2 = vld [vmem:[#allocation3 + $0x70] sm:$0xff] }
 0x5aa   : >> { %v2344_v33 = vadd.f32 %v6794_v7, %v6792_v26  ;;  %v8977_v16 = vpop.eup %6795 }
 0x5ab   : >> { %6801 = vpow2.f32 %v2176_v62  ;;  %2995 = vst [vmem:[#allocation4 + $0xf0] sm:$0xff] %v2963_v27  ;;  %v8980_v31 = vpop.eup %6797 }
 0x5ac   : >> { %6803 = vpow2.f32 %v2178_v17  ;;  %2345 = vadd.xlane.f32.xlu0 %v2344_v33  ;;  %2569 = vperm.xlu2 %6630, %v8977_v16   ;;  %v8984_v44 = vpop.eup %6799 }
 0x5ad   : >> { %6805 = vpow2.f32 %v1832_v1  ;;  %v2186_v1 = vmul.f32 1.442695, %v2063_v15 }
 0x5ae   : >> { %v2535_v30 = vpop.permute.xlu0 %2534  ;;  %6807 = vpow2.f32 %v2184_v8  ;;  %v10687_v8 = vld [vmem:[#allocation133_spill] sm:$0xff] }
 0x5af   : >> { %v2628_v19 = vmul.f32 %v2535_v30, %v2436_v48  ;;  %6809 = vpow2.f32 %v2186_v1 }
 0x5b1   : >> { %v6802_v21 = vpop.eup %6801  ;;  %v2966_v41 = vadd.f32 %v2911_v40, %v2628_v19  ;;  %v2442_v40 = vld [vmem:[#allocation4 + $0x70] sm:$0xff] }
 0x5b2   : >> { %v6804_v28 = vpop.eup %6803  ;;  %v2670_v23 = vpack.c.bf16 %v6802_v21, %v8980_v31 }
 0x5b3   : >> { %v8987_v52 = vpop.eup %6805  ;;  %2998 = vst [vmem:[#allocation4 + $0x38] sm:$0xff] %v2966_v41  ;;  %v2671_v59 = vpack.c.bf16 %v6804_v28, %v8984_v44  ;;  %v8992_v47 = vadd.f32 %v6804_v28, %v6802_v21 }
 0x5b4   : >> { %2584 = vperm.xlu2 %6630, %v8987_v52   ;;  %2845 = vmatmul.bf16.gmra.mxu2 %v2670_v23  ;;  %v6808_v27 = vpop.eup %6807  ;;  %v2242_v23 = vmul.f32 %v8934_v49, %v2210_v2 }
 0x5b5   : >> { %2934 = vmatmul.bf16.gmra.mxu3 %v2671_v59  ;;  %v2831_v54 = vpop.f32.mrf.mxu2  ;;  %v6810_v33 = vpop.eup %6809  ;;  %v2672_v48 = vpack.c.bf16 %v6808_v27, %v6792_v26  ;;  %v2320_v26 = vadd.f32 %v8826_v37, %v8822_v51  ;;  %v2429_v51 = vld [vmem:[#allocation4 + $0x88] sm:$0xff] }
 0x5b6   : >> { %v2920_v42 = vpop.f32.mrf.mxu3  ;;  %v2550_v6 = vpop.permute.xlu0 %2549  ;;  %v2673_v30 = vpack.c.bf16 %v6810_v33, %v6794_v7  ;;  %v2208_v7 = vld [vmem:[#allocation3 + $0x60] sm:$0xff] }
 0x5b7   : >> { %v8997_v50 = vadd.f32 %v2920_v42, %v2831_v54  ;;  %v2631_v63 = vmul.f32 %v2550_v6, %v2439_v9  ;;  %v2240_v9 = vmul.f32 %v8907_v22, %v2208_v7  ;;  %v10688_v22 = vld [vmem:[#allocation130_spill] sm:$0xff] }
 0x5b9   : >> { %v2969_v62 = vadd.f32 %v2918_v20, %v2631_v63 }
 0x5bb   : >> { %3001 = vst [vmem:[#allocation4 + $0xc8] sm:$0xff] %v2969_v62 }
 0x5bd   : >> { %v2833_v17 = vpop.f32.mrf.mxu2 }
 0x5be   : >> { %v2922_v29 = vpop.f32.mrf.mxu3  ;;  %v2565_v19 = vpop.permute.xlu0 %2564 }
 0x5bf   : >> { %v8999_v53 = vadd.f32 %v2922_v29, %v2833_v17  ;;  %v2634_v41 = vmul.f32 %v2565_v19, %v2442_v40 }
 0x5c4   : >> { %2850 = vmatmul.bf16.gmra.mxu2 %v2672_v48 }
 0x5c5   : >> { %2939 = vmatmul.bf16.gmra.mxu3 %v2673_v30  ;;  %v2836_v11 = vpop.f32.mrf.mxu2 }
 0x5c6   : >> { %v2925_v21 = vpop.f32.mrf.mxu3  ;;  %v9015_v37 = vpop.permute.xlu0 %2579 }
 0x5c7   : >> { %v2926_v28 = vadd.f32 %v2925_v21, %v2836_v11  ;;  %v2347_v11 = vadd.f32 %v6810_v33, %v6808_v27  ;;  %v2432_v21 = vld [vmem:[#allocation4 + $0x60] sm:$0xff] }
 0x5c8   : >> { %v2304_v13 = vpop.xlane.xlu1 %2303  ;;  %v10690_v27 = vld [vmem:[#allocation80_spill] sm:$0xff] }
 0x5c9   : >> { %v2972_v59 = vadd.f32 %v2926_v28, %v2634_v41  ;;  %v2370_v15 = vadd.f32 %v2304_v13, %v2242_v23  ;;  %v1779_v33 = vsub.f32 %v10690_v27, %v8746_v45 }
 0x5cb   : >> { %3004 = vst [vmem:[#allocation4 + $0x70] sm:$0xff] %v2972_v59 }
 0x5cc   : >> { %2402 = vst.msk [vmem:[#allocation3 + $0x70] sm:$0xff] %vm1044_vm0, %v2370_v15 }
 0x5cd   : >> { %v9021_v2 = vpop.f32.mrf.mxu2 }
 0x5ce   : >> { %v9023_v41 = vpop.f32.mrf.mxu3 }
 0x5d0   : >> { %2312 = vadd.xlane.f32.xlu1 %v8732_v38 }
 0x5d8   : >> { %2321 = vadd.xlane.f32.xlu1 %v2320_v26 }
 0x5dd   : >> { %2306 = vadd.xlane.f32.xlu2 %v8738_v0  ;;  %v2338_v0 = vadd.f32 %v8984_v44, %v8980_v31  ;;  %v2431_v44 = vld [vmem:[#allocation4 + $0xb8] sm:$0xff] }
 0x5df   : >> { %v2298_v54 = vpop.xlane.xlu2 %2297 }
 0x5e0   : >> { %v2368_v42 = vadd.f32 %v2298_v54, %v2240_v9  ;;  %2330 = vadd.xlane.f32.xlu1 %v8789_v58  ;;  %v2002_v49 = vpop.permute.xlu1 %2001 }
 0x5e1   : >> { %v2066_v6 = vsub.f32 %v8645_v60, %v2002_v49  ;;  %v2067_v20 = vsub.f32 %v10687_v8, %v2002_v49  ;;  %v10689_v60 = vld [vmem:[#allocation131_spill] sm:$0xff]  ;;  %v2212_v49 = vld [vmem:[#allocation3 + $0x80] sm:$0xff] }
 0x5e2   : >> { %2400 = vst.msk [vmem:[#allocation3 + $0x60] sm:$0xff] %vm1044_vm0, %v2368_v42  ;;  %v2434_v42 = vld [vmem:[#allocation4 + $0x8] sm:$0xff]  ;;  %v2435_v8 = vld [vmem:[#allocation4 + $0x78] sm:$0xff]  ;;  %v2244_v45 = vmul.f32 %v8839_v4, %v2212_v49 }
 0x5e3   : >> { %v2192_v38 = vmul.f32 1.442695, %v2066_v6  ;;  %v2194_v63 = vmul.f32 1.442695, %v2067_v20 }
 0x5e5   : >> { %6811 = vpow2.f32 %v2192_v38  ;;  %2315 = vadd.xlane.f32.xlu2 %v8783_v10 }
 0x5e6   : >> { %6813 = vpow2.f32 %v2194_v63 }
 0x5e7   : >> { %v1997_v58 = vpop.permute.xlu2 %1996 }
 0x5e8   : >> { %v2064_v1 = vsub.f32 %v10688_v22, %v1997_v58  ;;  %v2065_v62 = vsub.f32 %v10689_v60, %v1997_v58  ;;  %2339 = vadd.xlane.f32.xlu1 %v2338_v0  ;;  %v2500_v17 = vpop.permute.xlu1 %2499  ;;  %v10691_v58 = vld [vmem:[#allocation134_spill] sm:$0xff] }
 0x5e9   : >> { %v2621_v29 = vmul.f32 %v2500_v17, %v2429_v51  ;;  %v2437_v17 = vld [vmem:[#allocation4 + $0x58] sm:$0xff] }
 0x5ea   : >> { %v2188_v48 = vmul.f32 1.442695, %v2064_v1  ;;  %v2190_v30 = vmul.f32 1.442695, %v2065_v62  ;;  %v2445_v62 = vld [vmem:[#allocation4 + $0xd0] sm:$0xff] }
 0x5eb   : >> { %v6812_v40 = vpop.eup %6811  ;;  %v2959_v10 = vadd.f32 %v8743_v61, %v2621_v29  ;;  %v9025_v61 = vpop.permute.xlu0 %2594 }
 0x5ec   : >> { %v6814_v19 = vpop.eup %6813  ;;  %6815 = vpow2.f32 %v2188_v48  ;;  %v2438_v48 = vld [vmem:[#allocation4 + $0x40] sm:$0xff] }
 0x5ed   : >> { %6817 = vpow2.f32 %v2190_v30  ;;  %2991 = vst [vmem:[#allocation4 + $0x88] sm:$0xff] %v2959_v10  ;;  %2324 = vadd.xlane.f32.xlu2 %v8830_v14  ;;  %v2353_v31 = vadd.f32 %v6814_v19, %v6812_v40  ;;  %v2215_v30 = vld [vmem:[#allocation3 + $0x98] sm:$0xff] }
 0x5ef   : >> { %2354 = vadd.xlane.f32.xlu0 %v2353_v31  ;;  %v2510_v28 = vpop.permute.xlu2 %2509 }
 0x5f0   : >> { %v2623_v23 = vmul.f32 %v2510_v28, %v2431_v44  ;;  %2348 = vadd.xlane.f32.xlu1 %v2347_v11  ;;  %v2515_v13 = vpop.permute.xlu1 %2514  ;;  %v2247_v44 = vmul.f32 %v8849_v25, %v2215_v30  ;;  %v2441_v25 = vld [vmem:[#allocation4 + $0x90] sm:$0xff] }
 0x5f1   : >> { %v2624_v59 = vmul.f32 %v2515_v13, %v2432_v21 }
 0x5f2   : >> { %v6816_v15 = vpop.eup %6815  ;;  %v2961_v26 = vadd.f32 %v8759_v34, %v2623_v23 }
 0x5f3   : >> { %v6818_v14 = vpop.eup %6817  ;;  %v2962_v7 = vadd.f32 %v8791_v24, %v2624_v59  ;;  %v2674_v9 = vpack.c.bf16 %v6812_v40, %v6816_v15  ;;  %v1842_v24 = vmul.f32 1.442695, %v1779_v33  ;;  %v10692_v33 = vld [vmem:[#allocation81_spill] sm:$0xff] }
 0x5f4   : >> { %2993 = vst [vmem:[#allocation4 + $0xb8] sm:$0xff] %v2961_v26  ;;  %v2675_v54 = vpack.c.bf16 %v6814_v19, %v6818_v14  ;;  %v2350_v59 = vadd.f32 %v6818_v14, %v6816_v15  ;;  %v2218_v26 = vld [vmem:[#allocation3 + $0xb0] sm:$0xff] }
 0x5f5   : >> { %2994 = vst [vmem:[#allocation4 + $0x60] sm:$0xff] %v2962_v7  ;;  %2333 = vadd.xlane.f32.xlu2 %v8896_v46  ;;  %2855 = vmatmul.bf16.gmra.mxu2 %v2674_v9  ;;  %v1778_v46 = vsub.f32 %v10691_v58, %v8696_v57  ;;  %6819 = vpow2.f32 %v1842_v24  ;;  %v10693_v24 = vld [vmem:[#allocation135_spill] sm:$0xff] }
 0x5f6   : >> { %2944 = vmatmul.bf16.gmra.mxu3 %v2675_v54  ;;  %v9032_v6 = vpop.f32.mrf.mxu2 }
 0x5f7   : >> { %v9034_v34 = vpop.f32.mrf.mxu3  ;;  %v2525_v20 = vpop.permute.xlu2 %2524  ;;  %v1840_v29 = vmul.f32 1.442695, %v1778_v46 }
 0x5f8   : >> { %v2626_v38 = vmul.f32 %v2525_v20, %v2434_v42  ;;  %v2530_v63 = vpop.permute.xlu1 %2529  ;;  %v2221_v20 = vld [vmem:[#allocation3 + $0xc8] sm:$0xff] }
 0x5f9   : >> { %v2627_v0 = vmul.f32 %v2530_v63, %v2435_v8  ;;  %v2310_v51 = vpop.xlane.xlu0 %2309  ;;  %6821 = vpow2.f32 %v1840_v29  ;;  %v2443_v8 = vld [vmem:[#allocation4 + $0xc0] sm:$0xff] }
 0x5fa   : >> { %v2964_v22 = vadd.f32 %v8837_v18, %v2626_v38  ;;  %v2372_v1 = vadd.f32 %v2310_v51, %v2244_v45  ;;  %v2637_v18 = vmul.f32 %v9015_v37, %v2445_v62  ;;  %v2440_v37 = vld [vmem:[#allocation4 + $0xe0] sm:$0xff]  ;;  %v2444_v45 = vld [vmem:[#allocation4 + $0xa8] sm:$0xff]  ;;  %v2928_v51 = vadd.f32 %v9023_v41, %v9021_v2  ;;  %v10696_v41 = vld [vmem:[#allocation86_spill] sm:$0xff] }
 0x5fb   : >> { %v2965_v60 = vadd.f32 %v8844_v36, %v2627_v0  ;;  %v9045_v21 = vpop.eup %6819  ;;  %v10694_v38 = vld [vmem:[#allocation84_spill] sm:$0xff] }
 0x5fc   : >> { %2996 = vst [vmem:[#allocation4 + $0x8] sm:$0xff] %v2964_v22  ;;  %v1777_v63 = vsub.f32 %v10694_v38, %v10693_v24  ;;  %v2219_v24 = vld [vmem:[#allocation3 + $0xb8] sm:$0xff] }
 0x5fd   : >> { %2997 = vst [vmem:[#allocation4 + $0x78] sm:$0xff] %v2965_v60  ;;  %2342 = vadd.xlane.f32.xlu2 %v8992_v47 }
 0x5fe   : >> { %2404 = vst.msk [vmem:[#allocation3 + $0x80] sm:$0xff] %vm1044_vm0, %v2372_v1  ;;  %v2843_v4 = vpop.f32.mrf.mxu2  ;;  %v1838_v62 = vmul.f32 1.442695, %v1777_v63 }
 0x5ff   : >> { %v2932_v40 = vpop.f32.mrf.mxu3  ;;  %v2540_v57 = vpop.permute.xlu2 %2539 }
 0x600   : >> { %v2933_v10 = vadd.f32 %v2932_v40, %v2843_v4  ;;  %v2629_v19 = vmul.f32 %v2540_v57, %v2437_v17  ;;  %v2545_v36 = vpop.permute.xlu1 %2544  ;;  %v9051_v9 = vpop.eup %6821  ;;  %6823 = vpow2.f32 %v1838_v62  ;;  %v2225_v62 = vld [vmem:[#allocation3 + $0xe8] sm:$0xff] }
 0x601   : >> { %v2630_v31 = vmul.f32 %v2545_v36, %v2438_v48  ;;  %v2319_v11 = vpop.xlane.xlu0 %2318  ;;  %v2224_v48 = vld [vmem:[#allocation3 + $0xe0] sm:$0xff] }
 0x602   : >> { %v2975_v47 = vadd.f32 %v2933_v10, %v2637_v18  ;;  %v2967_v28 = vadd.f32 %v8867_v43, %v2629_v19  ;;  %v2375_v13 = vadd.f32 %v2319_v11, %v2247_v44  ;;  %v2256_v30 = vmul.f32 %v10696_v41, %v2224_v48  ;;  %v2447_v11 = vld [vmem:[#allocation4 + $0x28] sm:$0xff] }
 0x603   : >> { %v2968_v23 = vadd.f32 %v8902_v35, %v2630_v31  ;;  %2609 = vperm.xlu0 %6631, %v9045_v21   ;;  %v2250_v35 = vmul.f32 %v10692_v33, %v2218_v26  ;;  %v2216_v33 = vld [vmem:[#allocation3 + $0xa0] sm:$0xff] }
 0x604   : >> { %3007 = vst [vmem:[#allocation4 + $0xd0] sm:$0xff] %v2975_v47 }
 0x605   : >> { %2999 = vst [vmem:[#allocation4 + $0x58] sm:$0xff] %v2967_v28  ;;  %2351 = vadd.xlane.f32.xlu2 %v2350_v59  ;;  %v2213_v28 = vld [vmem:[#allocation3 + $0x88] sm:$0xff] }
 0x606   : >> { %3000 = vst [vmem:[#allocation4 + $0x40] sm:$0xff] %v2968_v23  ;;  %v9066_v2 = vpop.eup %6823 }
 0x607   : >> { %2407 = vst.msk [vmem:[#allocation3 + $0x98] sm:$0xff] %vm1044_vm0, %v2375_v13  ;;  %v2555_v7 = vpop.permute.xlu2 %2554  ;;  %v2257_v48 = vmul.f32 %v9066_v2, %v2225_v62 }
 0x608   : >> { %v2632_v27 = vmul.f32 %v2555_v7, %v2440_v37  ;;  %v2560_v43 = vpop.permute.xlu1 %2559  ;;  %v2245_v37 = vmul.f32 %v8945_v12, %v2213_v28  ;;  %v2450_v28 = vld [vmem:[#allocation4 + $0x20] sm:$0xff] }
 0x609   : >> { %v2633_v54 = vmul.f32 %v2560_v43, %v2441_v25  ;;  %2604 = vperm.xlu1 %6632, %v9051_v9   ;;  %v2328_v15 = vpop.xlane.xlu0 %2327 }
 0x60a   : >> { %v2970_v14 = vadd.f32 %v8997_v50, %v2632_v27  ;;  %v2378_v42 = vadd.f32 %v2328_v15, %v2250_v35  ;;  %v10695_v50 = vld [vmem:[#allocation85_spill] sm:$0xff]  ;;  %v2448_v27 = vld [vmem:[#allocation4 + $0xa0] sm:$0xff] }
 0x60b   : >> { %v2971_v49 = vadd.f32 %v8999_v53, %v2633_v54  ;;  %v2253_v22 = vmul.f32 %v10695_v50, %v2221_v20  ;;  %v2931_v53 = vadd.f32 %v9034_v34, %v9032_v6  ;;  %v2446_v34 = vld [vmem:[#allocation4 + $0x10] sm:$0xff]  ;;  %v2640_v54 = vmul.f32 %v9025_v61, %v2448_v27  ;;  %v2211_v20 = vld [vmem:[#allocation3 + $0x78] sm:$0xff] }
 0x60c   : >> { %3002 = vst [vmem:[#allocation4 + $0xe0] sm:$0xff] %v2970_v14  ;;  %v2248_v14 = vmul.f32 %v8965_v56, %v2216_v33  ;;  %v2243_v12 = vmul.f32 %v8915_v3, %v2211_v20 }
 0x60d   : >> { %3003 = vst [vmem:[#allocation4 + $0x90] sm:$0xff] %v2971_v49 }
 0x60e   : >> { %2410 = vst.msk [vmem:[#allocation3 + $0xb0] sm:$0xff] %vm1044_vm0, %v2378_v42 }
 0x60f   : >> { %v2570_v0 = vpop.permute.xlu2 %2569 }
 0x610   : >> { %v2635_v58 = vmul.f32 %v2570_v0, %v2443_v8  ;;  %v2575_v46 = vpop.permute.xlu1 %2574 }
 0x611   : >> { %v2636_v1 = vmul.f32 %v2575_v46, %v2444_v45  ;;  %v2337_v60 = vpop.xlane.xlu0 %2336  ;;  %v2251_v45 = vmul.f32 %v8977_v16, %v2219_v24  ;;  %v2227_v16 = vld [vmem:[#allocation3 + $0xf8] sm:$0xff] }
 0x612   : >> { %v2973_v17 = vadd.f32 %v2928_v51, %v2635_v58  ;;  %v2381_v29 = vadd.f32 %v2337_v60, %v2253_v22  ;;  %v2214_v51 = vld [vmem:[#allocation3 + $0x90] sm:$0xff] }
 0x613   : >> { %v2974_v4 = vadd.f32 %v2931_v53, %v2636_v1  ;;  %v2246_v56 = vmul.f32 %v8925_v55, %v2214_v51  ;;  %v2222_v58 = vld [vmem:[#allocation3 + $0xd0] sm:$0xff]  ;;  %v2217_v1 = vld [vmem:[#allocation3 + $0xa8] sm:$0xff]  ;;  %v2259_v55 = vmul.f32 %v9045_v21, %v2227_v16  ;;  %v2223_v21 = vld [vmem:[#allocation3 + $0xd8] sm:$0xff] }
 0x614   : >> { %3005 = vst [vmem:[#allocation4 + $0xc0] sm:$0xff] %v2973_v17  ;;  %v2254_v22 = vmul.f32 %v8987_v52, %v2222_v58  ;;  %v2249_v60 = vmul.f32 %v8937_v5, %v2217_v1 }
 0x615   : >> { %3006 = vst [vmem:[#allocation4 + $0xa8] sm:$0xff] %v2974_v4 }
 0x616   : >> { %2413 = vst.msk [vmem:[#allocation3 + $0xc8] sm:$0xff] %vm1044_vm0, %v2381_v29 }
 0x617   : >> { %v2585_v57 = vpop.permute.xlu2 %2584 }
 0x618   : >> { %v2638_v19 = vmul.f32 %v2585_v57, %v2446_v34  ;;  %v2590_v31 = vpop.permute.xlu1 %2589  ;;  %v2255_v57 = vmul.f32 %v8970_v39, %v2223_v21 }
 0x619   : >> { %v2639_v13 = vmul.f32 %v2590_v31, %v2447_v11 }
 0x61d   : >> { %2599 = vperm.xlu2 %6630, %v9066_v2  }
 0x61f   : >> { %v2346_v40 = vpop.xlane.xlu0 %2345 }
 0x620   : >> { %v2384_v6 = vadd.f32 %v2346_v40, %v2256_v30  ;;  %v2220_v40 = vld [vmem:[#allocation3 + $0xc0] sm:$0xff] }
 0x621   : >> { %v2252_v5 = vmul.f32 %v8950_v32, %v2220_v40 }
 0x622   : >> { %2416 = vst.msk [vmem:[#allocation3 + $0xe0] sm:$0xff] %vm1044_vm0, %v2384_v6 }
 0x637   : >> { %v2846_v18 = vpop.f32.mrf.mxu2 }
 0x638   : >> { %v2935_v10 = vpop.f32.mrf.mxu3 }
 0x639   : >> { %v2936_v36 = vadd.f32 %v2935_v10, %v2846_v18 }
 0x63b   : >> { %v2976_v44 = vadd.f32 %v2936_v36, %v2638_v19  ;;  %v2226_v36 = vld [vmem:[#allocation3 + $0xf0] sm:$0xff] }
 0x63c   : >> { %v2258_v31 = vmul.f32 %v9051_v9, %v2226_v36 }
 0x63d   : >> { %3008 = vst [vmem:[#allocation4 + $0x10] sm:$0xff] %v2976_v44 }
 0x63f   : >> { %v2848_v47 = vpop.f32.mrf.mxu2 }
 0x640   : >> { %v2937_v23 = vpop.f32.mrf.mxu3 }
 0x641   : >> { %v2938_v59 = vadd.f32 %v2937_v23, %v2848_v47 }
 0x643   : >> { %v2977_v26 = vadd.f32 %v2938_v59, %v2639_v13  ;;  %v2313_v25 = vpop.xlane.xlu1 %2312 }
 0x644   : >> { %v2373_v7 = vadd.f32 %v2313_v25, %v2245_v37  ;;  %v2449_v37 = vld [vmem:[#allocation4 + $0xf8] sm:$0xff] }
 0x645   : >> { %3009 = vst [vmem:[#allocation4 + $0x28] sm:$0xff] %v2977_v26  ;;  %v2451_v26 = vld [vmem:[#allocation4 + $0x98] sm:$0xff] }
 0x646   : >> { %2405 = vst.msk [vmem:[#allocation3 + $0x88] sm:$0xff] %vm1044_vm0, %v2373_v7 }
 0x647   : >> { %v2851_v43 = vpop.f32.mrf.mxu2 }
 0x648   : >> { %v2940_v35 = vpop.f32.mrf.mxu3 }
 0x649   : >> { %v2941_v15 = vadd.f32 %v2940_v35, %v2851_v43 }
 0x64b   : >> { %v2978_v42 = vadd.f32 %v2941_v15, %v2640_v54  ;;  %v2322_v49 = vpop.xlane.xlu1 %2321 }
 0x64c   : >> { %v2376_v8 = vadd.f32 %v2322_v49, %v2248_v14 }
 0x64d   : >> { %3010 = vst [vmem:[#allocation4 + $0xa0] sm:$0xff] %v2978_v42 }
 0x64e   : >> { %2408 = vst.msk [vmem:[#allocation3 + $0xa0] sm:$0xff] %vm1044_vm0, %v2376_v8 }
 0x64f   : >> { %v2853_v2 = vpop.f32.mrf.mxu2 }
 0x650   : >> { %v2307_v38 = vpop.xlane.xlu2 %2306  ;;  %v2942_v10 = vpop.f32.mrf.mxu3 }
 0x651   : >> { %v2371_v63 = vadd.f32 %v2307_v38, %v2243_v12  ;;  %v2943_v43 = vadd.f32 %v2942_v10, %v2853_v2 }
 0x653   : >> { %2403 = vst.msk [vmem:[#allocation3 + $0x78] sm:$0xff] %vm1044_vm0, %v2371_v63  ;;  %v2331_v61 = vpop.xlane.xlu1 %2330 }
 0x654   : >> { %v2379_v0 = vadd.f32 %v2331_v61, %v2251_v45 }
 0x656   : >> { %2411 = vst.msk [vmem:[#allocation3 + $0xb8] sm:$0xff] %vm1044_vm0, %v2379_v0 }
 0x658   : >> { %v2316_v46 = vpop.xlane.xlu2 %2315 }
 0x659   : >> { %v2374_v50 = vadd.f32 %v2316_v46, %v2246_v56 }
 0x65b   : >> { %2406 = vst.msk [vmem:[#allocation3 + $0x90] sm:$0xff] %vm1044_vm0, %v2374_v50  ;;  %v2340_v3 = vpop.xlane.xlu1 %2339 }
 0x65c   : >> { %v2382_v53 = vadd.f32 %v2340_v3, %v2254_v22 }
 0x65e   : >> { %2414 = vst.msk [vmem:[#allocation3 + $0xd0] sm:$0xff] %vm1044_vm0, %v2382_v53 }
 0x660   : >> { %v2325_v17 = vpop.xlane.xlu2 %2324 }
 0x661   : >> { %v2377_v29 = vadd.f32 %v2325_v17, %v2249_v60 }
 0x662   : >> { %v2355_v4 = vpop.xlane.xlu0 %2354 }
 0x663   : >> { %2409 = vst.msk [vmem:[#allocation3 + $0xa8] sm:$0xff] %vm1044_vm0, %v2377_v29  ;;  %v2387_v52 = vadd.f32 %v2355_v4, %v2259_v55  ;;  %v2349_v41 = vpop.xlane.xlu1 %2348 }
 0x664   : >> { %v2385_v30 = vadd.f32 %v2349_v41, %v2257_v48 }
 0x665   : >> { %2419 = vst.msk [vmem:[#allocation3 + $0xf8] sm:$0xff] %vm1044_vm0, %v2387_v52 }
 0x666   : >> { %2417 = vst.msk [vmem:[#allocation3 + $0xe8] sm:$0xff] %vm1044_vm0, %v2385_v30 }
 0x668   : >> { %v2334_v6 = vpop.xlane.xlu2 %2333 }
 0x669   : >> { %v2380_v34 = vadd.f32 %v2334_v6, %v2252_v5 }
 0x66b   : >> { %2412 = vst.msk [vmem:[#allocation3 + $0xc0] sm:$0xff] %vm1044_vm0, %v2380_v34 }
 0x670   : >> { %v2343_v18 = vpop.xlane.xlu2 %2342 }
 0x671   : >> { %v2383_v19 = vadd.f32 %v2343_v18, %v2255_v57 }
 0x673   : >> { %2415 = vst.msk [vmem:[#allocation3 + $0xd8] sm:$0xff] %vm1044_vm0, %v2383_v19 }
 0x675   : >> { %v2610_v25 = vpop.permute.xlu0 %2609 }
 0x676   : >> { %v2643_v35 = vmul.f32 %v2610_v25, %v2451_v26 }
 0x678   : >> { %v2352_v44 = vpop.xlane.xlu2 %2351  ;;  %v2856_v11 = vpop.f32.mrf.mxu2 }
 0x679   : >> { %v2386_v47 = vadd.f32 %v2352_v44, %v2258_v31  ;;  %v2945_v32 = vpop.f32.mrf.mxu3 }
 0x67a   : >> { %v2946_v13 = vadd.f32 %v2945_v32, %v2856_v11 }
 0x67b   : >> { %2418 = vst.msk [vmem:[#allocation3 + $0xf0] sm:$0xff] %vm1044_vm0, %v2386_v47  ;;  %v2605_v23 = vpop.permute.xlu1 %2604 }
 0x67c   : >> { %v2642_v59 = vmul.f32 %v2605_v23, %v2450_v28 }
 0x67e   : >> { %v2980_v39 = vadd.f32 %v2946_v13, %v2642_v59 }
 0x680   : >> { %3012 = vst [vmem:[#allocation4 + $0x20] sm:$0xff] %v2980_v39  ;;  %v2600_v7 = vpop.permute.xlu2 %2599  ;;  %v2858_v27 = vpop.f32.mrf.mxu2 }
 0x681   : >> { %v2641_v33 = vmul.f32 %v2600_v7, %v2449_v37  ;;  %v2947_v9 = vpop.f32.mrf.mxu3 }
 0x682   : >> { %v2948_v54 = vadd.f32 %v2947_v9, %v2858_v27  ;;  %1146 = sbr.rel (!%p1143_p6) target bundleno = 397 (0x18d), region = 258 }
 0x683   : >> { %v2979_v15 = vadd.f32 %v2943_v43, %v2641_v33 }
 0x684   : >> { %v2981_v14 = vadd.f32 %v2948_v54, %v2643_v35 }
 0x685   : >> { %3011 = vst [vmem:[#allocation4 + $0xf8] sm:$0xff] %v2979_v15 }
 0x686   : >> { %3013 = vst [vmem:[#allocation4 + $0x98] sm:$0xff] %v2981_v14 }
 0x687 PF: > { %s10698_s3 = sld [smem:[#allocation10_spill]]  ;;  %v10699_v22 = vld [vmem:[#allocation16_spill] sm:$0xff]  ;;  %v10700_v3 = vld [vmem:[#allocation18_spill] sm:$0xff]  ;;  %v3487_v19 = vlaneseq }
 0x688   : > { %v6124_v53 = vor.u32 %v10700_v3, %v10699_v22  ;;  %v10701_v1 = vld [vmem:[#allocation20_spill] sm:$0xff]  ;;  %v10702_v16 = vld [vmem:[#allocation22_spill] sm:$0xff]  ;;  %s10827_s12 = sld [smem:[#allocation10_spill]] (%p7359_p0) }
 0x689   : > { %v6128_v60 = vor.u32 %v10702_v16, %v10701_v1  ;;  %v10703_v62 = vld [vmem:[#allocation24_spill] sm:$0xff]  ;;  %v10704_v17 = vld [vmem:[#allocation26_spill] sm:$0xff]  ;;  %v9124_v36 = vshrl.u32 %v3487_v19, 7  ;;  %v9126_v31 = vand.u32 127, %v3487_v19  ;;  %s10830_s30 = sld [smem:[#allocation137_spill]] (%p7359_p0) }
 0x68a   : > { %v6132_v29 = vor.u32 %v10704_v17, %v10703_v62  ;;  %v10705_v55 = vld [vmem:[#allocation28_spill] sm:$0xff]  ;;  %v10706_v4 = vld [vmem:[#allocation30_spill] sm:$0xff] }
 0x68b   : > { %v6136_v48 = vor.u32 %v10706_v4, %v10705_v55  ;;  %v10707_v52 = vld [vmem:[#allocation32_spill] sm:$0xff]  ;;  %v10708_v41 = vld [vmem:[#allocation34_spill] sm:$0xff]  ;;  %vm3523_vm1 = vcmp.ge.s32.totalorder %v9124_v36, %v9126_v31  ;;  %v3489_v59 = vadd.s32 8, %v9124_v36  ;;  %v3490_v7 = vadd.s32 16, %v9124_v36 }
 0x68c   : > { %v6140_v30 = vor.u32 %v10708_v41, %v10707_v52  ;;  %v10709_v40 = vld [vmem:[#allocation36_spill] sm:$0xff]  ;;  %v10710_v5 = vld [vmem:[#allocation38_spill] sm:$0xff]  ;;  %v3491_v35 = vadd.s32 24, %v9124_v36  ;;  %v3495_v1 = vadd.s32 56, %v9124_v36  ;;  %v3497_v41 = vadd.s32 72, %v9124_v36 }
 0x68d   : > { %s6118_s14 = sshll.u32 %s10698_s3, 8  ;;  %v6144_v6 = vor.u32 %v10710_v5, %v10709_v40  ;;  %v10711_v34 = vld [vmem:[#allocation40_spill] sm:$0xff]  ;;  %v10712_v21 = vld [vmem:[#allocation42_spill] sm:$0xff]  ;;  %vm3525_vm2 = vcmp.ge.s32.totalorder %v3489_v59, %v9126_v31  ;;  %vm3527_vm3 = vcmp.ge.s32.totalorder %v3490_v7, %v9126_v31  ;;  %v3500_v59 = vadd.s32 96, %v9124_v36 }
 0x68e   : > { %s9101_s20 = sshra.s32 %s6118_s14, 3  ;;  %v6148_v57 = vor.u32 %v10712_v21, %v10711_v34  ;;  %v10713_v2 = vld [vmem:[#allocation44_spill] sm:$0xff]  ;;  %v10714_v18 = vld [vmem:[#allocation46_spill] sm:$0xff]  ;;  %vm3529_vm4 = vcmp.ge.s32.totalorder %v3491_v35, %v9126_v31  ;;  %vm3537_vm8 = vcmp.ge.s32.totalorder %v3495_v1, %v9126_v31  ;;  %vm3541_vm10 = vcmp.ge.s32.totalorder %v3497_v41, %v9126_v31  ;;  %s6416_s6 = sshll.u32 (%p7359_p0), %s10827_s12, 6 }
 0x68f   : > { %s6119_s10 = sshll.u32 %s9101_s20, 2  ;;  %v6152_v10 = vor.u32 %v10714_v18, %v10713_v2  ;;  %v10715_v44 = vld [vmem:[#allocation48_spill] sm:$0xff]  ;;  %v10716_v11 = vld [vmem:[#allocation50_spill] sm:$0xff]  ;;  %v3498_v34 = vadd.s32 80, %v9124_v36  ;;  %vm3547_vm13 = vcmp.ge.s32.totalorder %v3500_v59, %v9126_v31  ;;  %v3504_v1 = vadd.s32 128, %v9124_v36 }
 0x690   : > { %s3050_s28 = scalar_lea.vmem %s973_s16, %s6119_s10 [#allocation6]  ;;  %v6156_v47 = vor.u32 %v10716_v11, %v10715_v44  ;;  %v10717_v54 = vld [vmem:[#allocation52_spill] sm:$0xff]  ;;  %v10718_v15 = vld [vmem:[#allocation54_spill] sm:$0xff]  ;;  %s9333_s25 = scalar_lea.vmem %s980_s29, %s6119_s10 [#allocation7] }
 0x691   : > { %v6391_v42 = vld [vmem:[%s3050_s28 + $0x38] sm:$0xff]  ;;  %v6390_v8 = vld [vmem:[%s3050_s28 + $0x30] sm:$0xff]  ;;  %v6389_v12 = vld [vmem:[%s3050_s28 + $0x28] sm:$0xff]  ;;  %v6160_v14 = vor.u32 %v10718_v15, %v10717_v54  ;;  %vm3543_vm11 = vcmp.ge.s32.totalorder %v3498_v34, %v9126_v31  ;;  %v3502_v15 = vadd.s32 112, %v9124_v36  ;;  %s10828_s16 = sld [smem:[#allocation12_spill]] (%p7359_p0) }
 0x692   : > { %v6399_v49 = vld [vmem:[%s3050_s28 + $0x78] sm:$0xff]  ;;  %3309 = vmatpush.bf16.xpose.msra.mxu0 %v6391_v42  ;;  %v6398_v20 = vld [vmem:[%s3050_s28 + $0x70] sm:$0xff]  ;;  %v6397_v24 = vld [vmem:[%s3050_s28 + $0x68] sm:$0xff]  ;;  %s10829_s29 = sld [smem:[#allocation11_spill]] (%p7359_p0) }
 0x693   : > { %3398 = vmatpush.bf16.xpose.msra.mxu1 %v6399_v49  ;;  %v6388_v38 = vld [vmem:[%s3050_s28 + $0x20] sm:$0xff]  ;;  %v6387_v45 = vld [vmem:[%s3050_s28 + $0x18] sm:$0xff]  ;;  %v6386_v0 = vld [vmem:[%s3050_s28 + $0x10] sm:$0xff]  ;;  %vm3551_vm15 = vcmp.ge.s32.totalorder %v3502_v15, %v9126_v31  ;;  %v3505_v15 = vadd.s32 136, %v9124_v36 }
 0x694   : > { %v6396_v63 = vld [vmem:[%s3050_s28 + $0x60] sm:$0xff]  ;;  %v6395_v61 = vld [vmem:[%s3050_s28 + $0x58] sm:$0xff]  ;;  %v6394_v51 = vld [vmem:[%s3050_s28 + $0x50] sm:$0xff] }
 0x695   : > { %v6385_v56 = vld [vmem:[%s3050_s28 + $0x8] sm:$0xff]  ;;  %v6384_v46 = vld [vmem:[%s3050_s28] sm:$0xff]  ;;  %v10720_v44 = vld [vmem:[#allocation58_spill] sm:$0xff] }
 0x696   : > { %v6393_v58 = vld [vmem:[%s3050_s28 + $0x48] sm:$0xff]  ;;  %v6392_v50 = vld [vmem:[%s3050_s28 + $0x40] sm:$0xff]  ;;  %v9238_v34 = vld [vmem:[#allocation2 + $0x18] sm:$0xff] }
 0x697   : > { %v10719_v19 = vld [vmem:[#allocation56_spill] sm:$0xff]  ;;  %s6316_s9 = sshll.u32 (%p7359_p0), %s10828_s16, 7 }
 0x698   : > { %v6164_v11 = vor.u32 %v10720_v44, %v10719_v19  ;;  %v3655_v19 = vld [vmem:[#allocation2 + $0x20] sm:$0xff]  ;;  %s5470_s7 = sadd.s32 (%p7359_p0), %s10829_s29, %s6416_s6 }
 0x699   : > { %s5472_s11 = sadd.s32 (%p7359_p0), %s6316_s9, %s5470_s7 }
 0x69a   : > { %3310 = vmatpush.bf16.xpose.msra.mxu0 %v6390_v8  ;;  %s6317_s4 = sshll.u32 (%p7359_p0), %s5472_s11, 2 }
 0x69b   : > { %3399 = vmatpush.bf16.xpose.msra.mxu1 %v6398_v20  ;;  %s10233_s2 = scalar_lea.vmem (%p7359_p0), %s10830_s30, %s6317_s4 }
 0x6a2   : > { %3311 = vmatpush.bf16.xpose.msra.mxu0 %v6389_v12  ;;  %v3492_v12 = vadd.s32 32, %v9124_v36 }
 0x6a3   : > { %3400 = vmatpush.bf16.xpose.msra.mxu1 %v6397_v24 }
 0x6a4   : > { %vm3531_vm5 = vcmp.ge.s32.totalorder %v3492_v12, %v9126_v31 }
 0x6aa   : > { %3312 = vmatpush.bf16.xpose.msra.mxu0 %v6388_v38 }
 0x6ab   : > { %3401 = vmatpush.bf16.xpose.msra.mxu1 %v6396_v63 }
 0x6b2   : > { %3313 = vmatpush.bf16.xpose.msra.mxu0 %v6387_v45 }
 0x6b3   : > { %3402 = vmatpush.bf16.xpose.msra.mxu1 %v6395_v61  ;;  %v3493_v61 = vadd.s32 40, %v9124_v36 }
 0x6b5   : > { %vm3533_vm6 = vcmp.ge.s32.totalorder %v3493_v61, %v9126_v31  ;;  %v10721_v61 = vld [vmem:[#allocation60_spill] sm:$0xff] }
 0x6ba   : > { %3314 = vmatpush.bf16.xpose.msra.mxu0 %v6386_v0 }
 0x6bb   : > { %3403 = vmatpush.bf16.xpose.msra.mxu1 %v6394_v51 }
 0x6c2   : > { %3315 = vmatpush.bf16.xpose.msra.mxu0 %v6385_v56 }
 0x6c3   : > { %3404 = vmatpush.bf16.xpose.msra.mxu1 %v6393_v58 }
 0x6ca   : > { %3316 = vmatpush.bf16.xpose.msra.mxu0 %v6384_v46  ;;  %v3494_v46 = vadd.s32 48, %v9124_v36 }
 0x6cb   : > { %3405 = vmatpush.bf16.xpose.msra.mxu1 %v6392_v50 }
 0x6cc   : > { %vm3535_vm7 = vcmp.ge.s32.totalorder %v3494_v46, %v9126_v31 }
 0x6d1   : > { %3317 = vmatmul.bf16.vlgmr.msra.gmra.mxu0 %v6124_v53 }
 0x6d2   : > { %3406 = vmatmul.bf16.vlgmr.msra.gmra.mxu1 %v6124_v53 }
 0x6e1   : > { %3322 = vmatmul.bf16.gmra.mxu0 %v6128_v60 }
 0x6e2   : > { %3411 = vmatmul.bf16.gmra.mxu1 %v6128_v60 }
 0x6f1   : > { %3327 = vmatmul.bf16.gmra.mxu0 %v6132_v29 }
 0x6f2   : > { %3416 = vmatmul.bf16.gmra.mxu1 %v6132_v29  ;;  %v3496_v29 = vadd.s32 64, %v9124_v36 }
 0x6f4   : > { %vm3539_vm9 = vcmp.ge.s32.totalorder %v3496_v29, %v9126_v31 }
 0x701   : > { %3332 = vmatmul.bf16.gmra.mxu0 %v6136_v48 }
 0x702   : > { %3421 = vmatmul.bf16.gmra.mxu1 %v6136_v48 }
 0x711   : > { %3337 = vmatmul.bf16.gmra.mxu0 %v6140_v30 }
 0x712   : > { %3426 = vmatmul.bf16.gmra.mxu1 %v6140_v30 }
 0x721   : > { %3342 = vmatmul.bf16.gmra.mxu0 %v6144_v6 }
 0x722   : > { %3431 = vmatmul.bf16.gmra.mxu1 %v6144_v6 }
 0x731   : > { %3347 = vmatmul.bf16.gmra.mxu0 %v6148_v57 }
 0x732   : > { %3436 = vmatmul.bf16.gmra.mxu1 %v6148_v57 }
 0x741   : > { %3352 = vmatmul.bf16.gmra.mxu0 %v6152_v10 }
 0x742   : > { %3441 = vmatmul.bf16.gmra.mxu1 %v6152_v10  ;;  %v3499_v10 = vadd.s32 88, %v9124_v36 }
 0x744   : > { %vm3545_vm12 = vcmp.ge.s32.totalorder %v3499_v10, %v9126_v31 }
 0x74e   : > { %v3318_v32 = vpop.f32.mrf.mxu0 }
 0x74f   : > { %v3407_v28 = vpop.f32.mrf.mxu1  ;;  %v9132_v23 = vsel %vm3523_vm1, %v3318_v32, -1e+30 }
 0x750   : > { %v3683_v13 = vmax.f32 %v9132_v23, -1e+30 }
 0x751   : > { %3357 = vmatmul.bf16.gmra.mxu0 %v6156_v47 }
 0x752   : > { %3446 = vmatmul.bf16.gmra.mxu1 %v6156_v47  ;;  %3684 = vmax.xlane.f32.xlu0 %v3683_v13 }
 0x756   : > { %v3320_v39 = vpop.f32.mrf.mxu0 }
 0x757   : > { %v3409_v37 = vpop.f32.mrf.mxu1  ;;  %v9137_v26 = vsel %vm3525_vm2, %v3320_v39, -1e+30 }
 0x758   : > { %v3686_v25 = vmax.f32 %v9137_v26, -1e+30 }
 0x75a   : > { %3687 = vmax.xlane.f32.xlu0 %v3686_v25 }
 0x75e   : > { %v3323_v27 = vpop.f32.mrf.mxu0 }
 0x75f   : > { %v3412_v43 = vpop.f32.mrf.mxu1  ;;  %v9142_v33 = vsel %vm3527_vm3, %v3323_v27, -1e+30  ;;  %v3501_v27 = vadd.s32 104, %v9124_v36 }
 0x760   : > { %v3689_v9 = vmax.f32 %v9142_v33, -1e+30 }
 0x761   : > { %3362 = vmatmul.bf16.gmra.mxu0 %v6160_v14  ;;  %vm3549_vm14 = vcmp.ge.s32.totalorder %v3501_v27, %v9126_v31  ;;  %v9262_v27 = vld [vmem:[#allocation2 + $0x30] sm:$0xff] }
 0x762   : > { %3690 = vmax.xlane.f32.xlu1 %v3689_v9  ;;  %3451 = vmatmul.bf16.gmra.mxu1 %v6160_v14  ;;  %v7204_v14 = vmov 0  }
 0x763   : > { %6825 = vset.pattern.permute.xlu2 %v7204_v14  ;;  %6826 = vset.pattern.permute.xlu0 %v7204_v14 }
 0x764   : > { %6827 = vset.pattern.permute.xlu1 %v7204_v14 }
 0x766   : > { %v3325_v42 = vpop.f32.mrf.mxu0 }
 0x767   : > { %v3414_v49 = vpop.f32.mrf.mxu1  ;;  %v9149_v8 = vsel %vm3529_vm4, %v3325_v42, -1e+30 }
 0x768   : > { %v3692_v20 = vmax.f32 %v9149_v8, -1e+30 }
 0x76a   : > { %3693 = vmax.xlane.f32.xlu1 %v3692_v20 }
 0x76e   : > { %v3328_v24 = vpop.f32.mrf.mxu0 }
 0x76f   : > { %v3417_v38 = vpop.f32.mrf.mxu1  ;;  %v9154_v63 = vsel %vm3531_vm5, %v3328_v24, -1e+30  ;;  %v3503_v24 = vadd.s32 120, %v9124_v36 }
 0x770   : > { %v3695_v45 = vmax.f32 %v9154_v63, -1e+30  ;;  %v3651_v38 = vld [vmem:[#allocation2] sm:$0xff] }
 0x771   : > { %3367 = vmatmul.bf16.gmra.mxu0 %v6164_v11  ;;  %vm3553_vm1 = vcmp.ge.s32.totalorder %v3503_v24, %v9126_v31 }
 0x772   : > { %3696 = vmax.xlane.f32.xlu2 %v3695_v45  ;;  %3456 = vmatmul.bf16.gmra.mxu1 %v6164_v11 }
 0x776   : > { %v3330_v0 = vpop.f32.mrf.mxu0 }
 0x777   : > { %v3419_v51 = vpop.f32.mrf.mxu1  ;;  %v9159_v56 = vsel %vm3533_vm6, %v3330_v0, -1e+30  ;;  %v10722_v0 = vld [vmem:[#allocation62_spill] sm:$0xff] }
 0x778   : > { %v3698_v58 = vmax.f32 %v9159_v56, -1e+30  ;;  %v6168_v51 = vor.u32 %v10722_v0, %v10721_v61 }
 0x77a   : > { %3699 = vmax.xlane.f32.xlu2 %v3698_v58 }
 0x77e   : > { %v3333_v50 = vpop.f32.mrf.mxu0 }
 0x77f   : > { %v3422_v22 = vpop.f32.mrf.mxu1  ;;  %v9164_v3 = vsel %vm3535_vm7, %v3333_v50, -1e+30 }
 0x780   : > { %v3701_v53 = vmax.f32 %v9164_v3, -1e+30 }
 0x781   : > { %3372 = vmatmul.bf16.gmra.mxu0 %v6168_v51 }
 0x782   : > { %3702 = vmax.xlane.f32.xlu0 %v3701_v53  ;;  %3461 = vmatmul.bf16.gmra.mxu1 %v6168_v51 }
 0x786   : > { %v3335_v16 = vpop.f32.mrf.mxu0 }
 0x787   : > { %v3424_v60 = vpop.f32.mrf.mxu1  ;;  %v9169_v62 = vsel %vm3537_vm8, %v3335_v16, -1e+30  ;;  %v9219_v16 = vadd.s32 128, %v9126_v31 }
 0x788   : > { %v3704_v17 = vmax.f32 %v9169_v62, -1e+30  ;;  %v9221_v60 = vld [vmem:[#allocation2 + $0x8] sm:$0xff] }
 0x789   : > { %vm3556_vm2 = vcmp.ge.s32.totalorder %v3504_v1, %v9219_v16  ;;  %vm3558_vm3 = vcmp.ge.s32.totalorder %v3505_v15, %v9219_v16  ;;  %v9299_v1 = vld [vmem:[#allocation2 + $0x48] sm:$0xff]  ;;  %v6407_v15 = vld [vmem:[%s9333_s25 + $0x38] sm:$0xff] }
 0x78a   : > { %3705 = vmax.xlane.f32.xlu1 %v3704_v17  ;;  %4835 = vmatpush.bf16.msra.mxu2 %v6407_v15 }
 0x78e   : > { %v3338_v55 = vpop.f32.mrf.mxu0 }
 0x78f   : > { %v3427_v4 = vpop.f32.mrf.mxu1  ;;  %v9174_v48 = vsel %vm3539_vm9, %v3338_v55, -1e+30 }
 0x790   : > { %v3707_v52 = vmax.f32 %v9174_v48, -1e+30 }
 0x792   : > { %3708 = vmax.xlane.f32.xlu2 %v3707_v52 }
 0x796   : > { %v3340_v30 = vpop.f32.mrf.mxu0 }
 0x797   : > { %v3429_v40 = vpop.f32.mrf.mxu1  ;;  %v9179_v5 = vsel %vm3541_vm10, %v3340_v30, -1e+30  ;;  %v3653_v30 = vld [vmem:[#allocation2 + $0x10] sm:$0xff] }
 0x798   : > { %v3710_v6 = vmax.f32 %v9179_v5, -1e+30 }
 0x79a   : > { %3711 = vmax.xlane.f32.xlu0 %v3710_v6 }
 0x79e   : > { %v3343_v21 = vpop.f32.mrf.mxu0 }
 0x79f   : > { %v3432_v57 = vpop.f32.mrf.mxu1  ;;  %v9184_v2 = vsel %vm3543_vm11, %v3343_v21, -1e+30 }
 0x7a0   : > { %v3713_v18 = vmax.f32 %v9184_v2, -1e+30 }
 0x7a2   : > { %3714 = vmax.xlane.f32.xlu1 %v3713_v18 }
 0x7a6   : > { %v3345_v47 = vpop.f32.mrf.mxu0 }
 0x7a7   : > { %v3434_v32 = vpop.f32.mrf.mxu1  ;;  %v9191_v28 = vsel %vm3545_vm12, %v3345_v47, -1e+30 }
 0x7a8   : > { %v3716_v13 = vmax.f32 %v9191_v28, -1e+30  ;;  %v9253_v32 = vld [vmem:[#allocation2 + $0x28] sm:$0xff] }
 0x7aa   : > { %3717 = vmax.xlane.f32.xlu2 %v3716_v13 }
 0x7ae   : > { %v3348_v39 = vpop.f32.mrf.mxu0 }
 0x7af   : > { %v3437_v37 = vpop.f32.mrf.mxu1  ;;  %v9196_v25 = vsel %vm3547_vm13, %v3348_v39, -1e+30  ;;  %v10723_v39 = vld [vmem:[#allocation64_spill] sm:$0xff] }
 0x7b0   : > { %v3719_v7 = vmax.f32 %v9196_v25, -1e+30  ;;  %v10724_v37 = vld [vmem:[#allocation66_spill] sm:$0xff] }
 0x7b2   : > { %3720 = vmax.xlane.f32.xlu0 %v3719_v7  ;;  %v6172_v7 = vor.u32 %v10724_v37, %v10723_v39 }
 0x7b4   : > { %3466 = vmatmul.bf16.gmra.mxu1 %v6172_v7  ;;  %3377 = vmatmul.bf16.gmra.mxu0 %v6172_v7 }
 0x7b6   : > { %v3350_v43 = vpop.f32.mrf.mxu0 }
 0x7b7   : > { %v3439_v9 = vpop.f32.mrf.mxu1  ;;  %v9201_v35 = vsel %vm3549_vm14, %v3350_v43, -1e+30 }
 0x7b8   : > { %v3722_v54 = vmax.f32 %v9201_v35, -1e+30 }
 0x7ba   : > { %3723 = vmax.xlane.f32.xlu1 %v3722_v54 }
 0x7be   : > { %v3353_v42 = vpop.f32.mrf.mxu0 }
 0x7bf   : > { %v3442_v49 = vpop.f32.mrf.mxu1  ;;  %v9206_v20 = vsel %vm3551_vm15, %v3353_v42, -1e+30  ;;  %v3506_v42 = vadd.s32 144, %v9124_v36 }
 0x7c0   : > { %v3725_v12 = vmax.f32 %v9206_v20, -1e+30  ;;  %v9274_v49 = vld [vmem:[#allocation2 + $0x38] sm:$0xff] }
 0x7c1   : > { %vm3560_vm4 = vcmp.ge.s32.totalorder %v3506_v42, %v9219_v16  ;;  %v6415_v42 = vld [vmem:[%s9333_s25 + $0x78] sm:$0xff] }
 0x7c2   : > { %3726 = vmax.xlane.f32.xlu2 %v3725_v12  ;;  %4924 = vmatpush.bf16.msra.mxu3 %v6415_v42  ;;  %v6402_v42 = vld [vmem:[%s9333_s25 + $0x10] sm:$0xff] }
 0x7c5   : > { %v3685_v45 = vpop.xlane.xlu0 %3684 }
 0x7c6   : > { %v3779_v58 = vmax.f32 %v3651_v38, %v3685_v45  ;;  %v3355_v46 = vpop.f32.mrf.mxu0 }
 0x7c7   : > { %v3444_v50 = vpop.f32.mrf.mxu1  ;;  %v9213_v22 = vsel %vm3553_vm1, %v3355_v46, -1e+30 }
 0x7c8   : > { %5077 = vst.msk [vmem:[#allocation2] sm:$0xff] %vm1044_vm0, %v3779_v58  ;;  %v3728_v53 = vmax.f32 %v9213_v22, -1e+30  ;;  %v3811_v21 = vsub.f32 %v3651_v38, %v3779_v58 }
 0x7ca   : > { %3729 = vmax.xlane.f32.xlu0 %v3728_v53  ;;  %v3843_v10 = vmul.f32 1.442695, %v3811_v21  ;;  %v9307_v21 = vld [vmem:[#allocation2 + $0x50] sm:$0xff] }
 0x7cc   : > { %6828 = vpow2.f32 %v3843_v10 }
 0x7cd   : > { %v3688_v17 = vpop.xlane.xlu0 %3687 }
 0x7ce   : > { %v9225_v29 = vmax.f32 %v9221_v60, %v3688_v17  ;;  %v9227_v55 = vpop.f32.mrf.mxu0 }
 0x7cf   : > { %v3447_v4 = vpop.f32.mrf.mxu1 }
 0x7d0   : > { %v9229_v52 = vsel %vm3556_vm2, %v3447_v4, -1e+30  ;;  %v3812_v41 = vsub.f32 %v9221_v60, %v9225_v29  ;;  %5078 = vst.msk [vmem:[#allocation2 + $0x8] sm:$0xff] %vm1044_vm0, %v9225_v29 }
 0x7d1   : > { %v3731_v31 = vmax.f32 %v9227_v55, %v9229_v52 }
 0x7d2   : > { %v9250_v47 = vpop.eup %6828  ;;  %v3845_v4 = vmul.f32 1.442695, %v3812_v41 }
 0x7d3   : > { %3732 = vmax.xlane.f32.xlu1 %v3731_v31 }
 0x7d4   : > { %6830 = vpow2.f32 %v3845_v4  ;;  %v6413_v4 = vld [vmem:[%s9333_s25 + $0x68] sm:$0xff] }
 0x7d5   : > { %v3691_v40 = vpop.xlane.xlu1 %3690 }
 0x7d6   : > { %v3781_v6 = vmax.f32 %v3653_v30, %v3691_v40  ;;  %v9270_v14 = vpop.f32.mrf.mxu0  ;;  %v3507_v40 = vadd.s32 152, %v9124_v36 }
 0x7d7   : > { %v3449_v9 = vpop.f32.mrf.mxu1 }
 0x7d8   : > { %5079 = vst.msk [vmem:[#allocation2 + $0x10] sm:$0xff] %vm1044_vm0, %v3781_v6  ;;  %v9276_v24 = vsel %vm3558_vm3, %v3449_v9, -1e+30  ;;  %v3813_v60 = vsub.f32 %v3653_v30, %v3781_v6  ;;  %vm3562_vm5 = vcmp.ge.s32.totalorder %v3507_v40, %v9219_v16  ;;  %v6404_v40 = vld [vmem:[%s9333_s25 + $0x20] sm:$0xff] }
 0x7d9   : > { %10725 = vst [vmem:[#allocation17_spill] sm:$0xff] %v9276_v24  ;;  %v3734_v61 = vmax.f32 %v9270_v14, %v9276_v24 }
 0x7da   : > { %3909 = vperm.xlu2 %6825, %v3779_v58   ;;  %v9290_v58 = vld [vmem:[#allocation2 + $0x40] sm:$0xff]  ;;  %v3847_v31 = vmul.f32 1.442695, %v3813_v60  ;;  %v9320_v39 = vpop.eup %6830 }
 0x7db   : > { %10730 = vst [vmem:[#allocation27_spill] sm:$0xff] %v9320_v39 }
 0x7dc   : > { %6832 = vpow2.f32 %v3847_v31 }
 0x7dd   : > { %v3694_v57 = vpop.xlane.xlu1 %3693 }
 0x7de   : > { %v9241_v18 = vmax.f32 %v9238_v34, %v3694_v57  ;;  %3914 = vperm.xlu0 %6826, %v9225_v29   ;;  %v9288_v51 = vpop.f32.mrf.mxu0 }
 0x7df   : > { %v3452_v45 = vpop.f32.mrf.mxu1  ;;  %10727 = vst [vmem:[#allocation21_spill] sm:$0xff] %v9288_v51 }
 0x7e0   : > { %5080 = vst.msk [vmem:[#allocation2 + $0x18] sm:$0xff] %vm1044_vm0, %v9241_v18  ;;  %v9286_v0 = vsel %vm3560_vm4, %v3452_v45, -1e+30  ;;  %v6414_v45 = vld [vmem:[%s9333_s25 + $0x70] sm:$0xff]  ;;  %v3814_v31 = vsub.f32 %v9238_v34, %v9241_v18  ;;  %v6403_v34 = vld [vmem:[%s9333_s25 + $0x18] sm:$0xff] }
 0x7e1   : > { %10726 = vst [vmem:[#allocation19_spill] sm:$0xff] %v9286_v0  ;;  %v3737_v46 = vmax.f32 %v9288_v51, %v9286_v0  ;;  %4925 = vmatpush.bf16.msra.mxu3 %v6414_v45  ;;  %v9376_v45 = vld [vmem:[#allocation2 + $0x70] sm:$0xff] }
 0x7e2   : > { %v9322_v37 = vpop.eup %6832 }
 0x7e3   : > { %10731 = vst [vmem:[#allocation29_spill] sm:$0xff] %v9322_v37 }
 0x7e5   : > { %v3697_v44 = vpop.xlane.xlu2 %3696  ;;  %4926 = vmatpush.bf16.msra.mxu3 %v6413_v4 }
 0x7e6   : > { %v9246_v11 = vmax.f32 %v3655_v19, %v3697_v44  ;;  %v9316_v44 = vpop.f32.mrf.mxu0 }
 0x7e7   : > { %v3454_v30 = vpop.f32.mrf.mxu1  ;;  %10729 = vst [vmem:[#allocation25_spill] sm:$0xff] %v9316_v44 }
 0x7e8   : > { %5081 = vst.msk [vmem:[#allocation2 + $0x20] sm:$0xff] %vm1044_vm0, %v9246_v11  ;;  %v3815_v57 = vsub.f32 %v3655_v19, %v9246_v11  ;;  %v9314_v10 = vsel %vm3562_vm5, %v3454_v30, -1e+30  ;;  %v9325_v19 = vld [vmem:[#allocation2 + $0x58] sm:$0xff]  ;;  %v3849_v30 = vmul.f32 1.442695, %v3814_v31 }
 0x7e9   : > { %10728 = vst [vmem:[#allocation23_spill] sm:$0xff] %v9314_v10  ;;  %v3740_v7 = vmax.f32 %v9316_v44, %v9314_v10  ;;  %v6401_v31 = vld [vmem:[%s9333_s25 + $0x8] sm:$0xff] }
 0x7ec   : > { %4517 = vperm.xlu1 %6827, %v9250_v47  }
 0x7ed   : > { %v3700_v13 = vpop.xlane.xlu2 %3699 }
 0x7ee   : > { %v9256_v59 = vmax.f32 %v9253_v32, %v3700_v13  ;;  %v3851_v13 = vmul.f32 1.442695, %v3815_v57  ;;  %v6412_v57 = vld [vmem:[%s9333_s25 + $0x60] sm:$0xff] }
 0x7ef   : > { %4927 = vmatpush.bf16.msra.mxu3 %v6412_v57  ;;  %v6400_v57 = vld [vmem:[%s9333_s25] sm:$0xff] }
 0x7f0   : > { %5082 = vst.msk [vmem:[#allocation2 + $0x28] sm:$0xff] %vm1044_vm0, %v9256_v59  ;;  %6834 = vpow2.f32 %v3851_v13 }
 0x7f1   : > { %6836 = vpow2.f32 %v3849_v30  ;;  %v6408_v30 = vld [vmem:[%s9333_s25 + $0x40] sm:$0xff] }
 0x7f4   : > { %3919 = vperm.xlu1 %6827, %v3781_v6  }
 0x7f5   : > { %v3703_v43 = vpop.xlane.xlu0 %3702 }
 0x7f6   : > { %v9265_v54 = vmax.f32 %v9262_v27, %v3703_v43 }
 0x7f8   : > { %5083 = vst.msk [vmem:[#allocation2 + $0x30] sm:$0xff] %vm1044_vm0, %v9265_v54 }
 0x7fd   : > { %v3706_v12 = vpop.xlane.xlu1 %3705 }
 0x7fe   : > { %v9279_v38 = vmax.f32 %v9274_v49, %v3706_v12  ;;  %v6406_v12 = vld [vmem:[%s9333_s25 + $0x30] sm:$0xff] }
 0x7ff   : > { %4836 = vmatpush.bf16.msra.mxu2 %v6406_v12  ;;  %v6410_v12 = vld [vmem:[%s9333_s25 + $0x50] sm:$0xff] }
 0x800   : > { %5084 = vst.msk [vmem:[#allocation2 + $0x38] sm:$0xff] %vm1044_vm0, %v9279_v38 }
 0x803   : > { %3735 = vmax.xlane.f32.xlu2 %v3734_v61  ;;  %v9345_v61 = vpop.eup %6834 }
 0x804   : > { %10732 = vst [vmem:[#allocation31_spill] sm:$0xff] %v9345_v61 }
 0x805   : > { %v3709_v50 = vpop.xlane.xlu2 %3708 }
 0x806   : > { %v9295_v53 = vmax.f32 %v9290_v58, %v3709_v50 }
 0x808   : > { %5085 = vst.msk [vmem:[#allocation2 + $0x40] sm:$0xff] %vm1044_vm0, %v9295_v53  ;;  %3738 = vmax.xlane.f32.xlu0 %v3737_v46  ;;  %v9348_v46 = vld [vmem:[#allocation2 + $0x60] sm:$0xff] }
 0x80d   : > { %v3712_v17 = vpop.xlane.xlu0 %3711 }
 0x80e   : > { %v9302_v29 = vmax.f32 %v9299_v1, %v3712_v17  ;;  %v6405_v17 = vld [vmem:[%s9333_s25 + $0x28] sm:$0xff] }
 0x80f   : > { %4837 = vmatpush.bf16.msra.mxu2 %v6405_v17 }
 0x810   : > { %5086 = vst.msk [vmem:[#allocation2 + $0x48] sm:$0xff] %vm1044_vm0, %v9302_v29 }
 0x813   : > { %4838 = vmatpush.bf16.msra.mxu2 %v6404_v40  ;;  %v6409_v40 = vld [vmem:[%s9333_s25 + $0x48] sm:$0xff] }
 0x815   : > { %v3715_v6 = vpop.xlane.xlu1 %3714 }
 0x816   : > { %v9312_v41 = vmax.f32 %v9307_v21, %v3715_v6  ;;  %v9363_v6 = vld [vmem:[#allocation2 + $0x68] sm:$0xff] }
 0x817   : > { %4839 = vmatpush.bf16.msra.mxu2 %v6403_v34  ;;  %v9390_v34 = vld [vmem:[#allocation2 + $0x78] sm:$0xff] }
 0x818   : > { %5087 = vst.msk [vmem:[#allocation2 + $0x50] sm:$0xff] %vm1044_vm0, %v9312_v41 }
 0x81b   : > { %4522 = vperm.xlu2 %6825, %v9320_v39   ;;  %4840 = vmatpush.bf16.msra.mxu2 %v6402_v42  ;;  %v10740_v39 = vld [vmem:[#allocation72_spill] sm:$0xff] }
 0x81c   : > { %4527 = vperm.xlu0 %6826, %v9322_v37  }
 0x81d   : > { %v3718_v43 = vpop.xlane.xlu2 %3717 }
 0x81e   : > { %3741 = vmax.xlane.f32.xlu1 %v3740_v7  ;;  %v9337_v9 = vmax.f32 %v9325_v19, %v3718_v43  ;;  %v10733_v43 = vld [vmem:[#allocation68_spill] sm:$0xff] }
 0x81f   : > { %4841 = vmatpush.bf16.msra.mxu2 %v6401_v31 }
 0x820   : > { %5088 = vst.msk [vmem:[#allocation2 + $0x58] sm:$0xff] %vm1044_vm0, %v9337_v9 }
 0x823   : > { %3924 = vperm.xlu2 %6825, %v9241_v18   ;;  %v6411_v18 = vld [vmem:[%s9333_s25 + $0x58] sm:$0xff]  ;;  %4842 = vmatpush.bf16.msra.mxu2 %v6400_v57  ;;  %v9402_v57 = vld [vmem:[#allocation2 + $0x80] sm:$0xff] }
 0x824   : > { %4537 = vperm.xlu0 %6826, %v9345_v61   ;;  %4928 = vmatpush.bf16.msra.mxu3 %v6411_v18  ;;  %v9392_v18 = vpop.f32.mrf.mxu0 }
 0x825   : > { %v3721_v50 = vpop.xlane.xlu0 %3720  ;;  %10736 = vst [vmem:[#allocation35_spill] sm:$0xff] %v9392_v18 }
 0x826   : > { %v9352_v60 = vmax.f32 %v9348_v46, %v3721_v50  ;;  %v9378_v50 = vpop.eup %6836 }
 0x827   : > { %10735 = vst [vmem:[#allocation33_spill] sm:$0xff] %v9378_v50 }
 0x828   : > { %5089 = vst.msk [vmem:[#allocation2 + $0x60] sm:$0xff] %vm1044_vm0, %v9352_v60  ;;  %4929 = vmatpush.bf16.msra.mxu3 %v6410_v12 }
 0x82b   : > { %3929 = vperm.xlu2 %6825, %v9246_v11   ;;  %v10734_v11 = vld [vmem:[#allocation70_spill] sm:$0xff] }
 0x82c   : > { %v6176_v15 = vor.u32 %v10734_v11, %v10733_v43  ;;  %4930 = vmatpush.bf16.msra.mxu3 %v6409_v40  ;;  %v3509_v40 = vadd.s32 168, %v9124_v36 }
 0x82d   : > { %v3724_v13 = vpop.xlane.xlu1 %3723 }
 0x82e   : > { %v9366_v7 = vmax.f32 %v9363_v6, %v3724_v13  ;;  %3471 = vmatmul.bf16.gmra.mxu1 %v6176_v15  ;;  %3382 = vmatmul.bf16.gmra.mxu0 %v6176_v15  ;;  %v3457_v13 = vpop.f32.mrf.mxu1  ;;  %vm3566_vm6 = vcmp.ge.s32.totalorder %v3509_v40, %v9219_v16 }
 0x830   : > { %5090 = vst.msk [vmem:[#allocation2 + $0x68] sm:$0xff] %vm1044_vm0, %v9366_v7  ;;  %4931 = vmatpush.bf16.msra.mxu3 %v6408_v30 }
 0x835   : > { %v3727_v17 = vpop.xlane.xlu2 %3726 }
 0x836   : > { %v9381_v4 = vmax.f32 %v9376_v45, %v3727_v17  ;;  %v3459_v30 = vpop.f32.mrf.mxu1 }
 0x837   : > { %4532 = vperm.xlu1 %6827, %v9378_v50  }
 0x838   : > { %5091 = vst.msk [vmem:[#allocation2 + $0x70] sm:$0xff] %vm1044_vm0, %v9381_v4 }
 0x83d   : > { %v3910_v43 = vpop.permute.xlu2 %3909  ;;  %v3730_v11 = vpop.xlane.xlu0 %3729 }
 0x83e   : > { %v4067_v15 = vsub.f32 %v9132_v23, %v3910_v43  ;;  %v4068_v42 = vsub.f32 -1e+30, %v3910_v43  ;;  %v9396_v12 = vmax.f32 %v9390_v34, %v3730_v11  ;;  %v3508_v43 = vadd.s32 160, %v9124_v36 }
 0x83f   : > { %3934 = vperm.xlu1 %6827, %v9256_v59  }
 0x840   : > { %v4131_v17 = vmul.f32 1.442695, %v4067_v15  ;;  %v4133_v31 = vmul.f32 1.442695, %v4068_v42  ;;  %5092 = vst.msk [vmem:[#allocation2 + $0x78] sm:$0xff] %vm1044_vm0, %v9396_v12  ;;  %v9412_v42 = vpop.f32.mrf.mxu0  ;;  %vm3564_vm7 = vcmp.ge.s32.totalorder %v3508_v43, %v9219_v16 }
 0x841   : > { %v9410_v15 = vsel %vm3566_vm6, %v3459_v30, -1e+30  ;;  %10738 = vst [vmem:[#allocation39_spill] sm:$0xff] %v9412_v42 }
 0x842   : > { %6838 = vpow2.f32 %v4131_v17  ;;  %10737 = vst [vmem:[#allocation37_spill] sm:$0xff] %v9410_v15 }
 0x843   : > { %6840 = vpow2.f32 %v4133_v31  ;;  %v3746_v31 = vmax.f32 %v9412_v42, %v9410_v15  ;;  %v3818_v15 = vsub.f32 %v9274_v49, %v9279_v38  ;;  %v3816_v49 = vsub.f32 %v9253_v32, %v9256_v59 }
 0x846   : > { %v3733_v23 = vpop.xlane.xlu1 %3732 }
 0x847   : > { %v9407_v11 = vmax.f32 %v9402_v57, %v3733_v23  ;;  %3944 = vperm.xlu1 %6827, %v9279_v38   ;;  %v9421_v23 = vsel %vm3564_vm7, %v3457_v13, -1e+30 }
 0x848   : > { %v6839_v50 = vpop.eup %6838  ;;  %10739 = vst [vmem:[#allocation41_spill] sm:$0xff] %v9421_v23  ;;  %v3743_v30 = vmax.f32 %v9392_v18, %v9421_v23 }
 0x849   : > { %5093 = vst.msk [vmem:[#allocation2 + $0x80] sm:$0xff] %vm1044_vm0, %v9407_v11  ;;  %v6841_v17 = vpop.eup %6840 }
 0x84a   : > { %v9419_v40 = vadd.f32 %v6841_v17, %v6839_v50 }
 0x84e   : > { %3747 = vmax.xlane.f32.xlu0 %v3746_v31  ;;  %v10741_v31 = vld [vmem:[#allocation74_spill] sm:$0xff] }
 0x84f   : > { %v6180_v61 = vor.u32 %v10741_v31, %v10740_v39  ;;  %v9462_v31 = vld [vmem:[#allocation2 + $0x90] sm:$0xff] }
 0x850   : > { %v3915_v10 = vpop.permute.xlu0 %3914 }
 0x851   : > { %v4069_v44 = vsub.f32 %v9137_v26, %v3915_v10  ;;  %v4070_v37 = vsub.f32 -1e+30, %v3915_v10  ;;  %3476 = vmatmul.bf16.gmra.mxu1 %v6180_v61  ;;  %v3857_v26 = vmul.f32 1.442695, %v3818_v15  ;;  %3387 = vmatmul.bf16.gmra.mxu0 %v6180_v61  ;;  %v3853_v61 = vmul.f32 1.442695, %v3816_v49 }
 0x853   : > { %v4135_v0 = vmul.f32 1.442695, %v4069_v44  ;;  %v4137_v51 = vmul.f32 1.442695, %v4070_v37  ;;  %v3462_v44 = vpop.f32.mrf.mxu1 }
 0x854   : > { %3744 = vmax.xlane.f32.xlu2 %v3743_v30  ;;  %v9455_v30 = vld [vmem:[#allocation2 + $0x88] sm:$0xff] }
 0x855   : > { %6842 = vpow2.f32 %v4135_v0  ;;  %v3510_v0 = vadd.s32 176, %v9124_v36 }
 0x856   : > { %6844 = vpow2.f32 %v4137_v51 }
 0x857   : > { %6846 = vpow2.f32 %v3857_v26  ;;  %vm3568_vm8 = vcmp.ge.s32.totalorder %v3510_v0, %v9219_v16  ;;  %v3817_v26 = vsub.f32 %v9262_v27, %v9265_v54 }
 0x858   : > { %v9442_v15 = vsel %vm3568_vm8, %v3462_v44, -1e+30 }
 0x859   : > { %10743 = vst [vmem:[#allocation45_spill] sm:$0xff] %v9442_v15  ;;  %v3855_v44 = vmul.f32 1.442695, %v3817_v26 }
 0x85b   : > { %v6843_v43 = vpop.eup %6842 }
 0x85c   : > { %v6845_v42 = vpop.eup %6844  ;;  %v4707_v13 = vpack.c.bf16 %v6843_v43, %v6839_v50 }
 0x85d   : > { %v4708_v23 = vpack.c.bf16 %v6845_v42, %v6841_v17  ;;  %v9432_v18 = vadd.f32 %v6845_v42, %v6843_v43  ;;  %v9440_v50 = vpop.eup %6846  ;;  %v9445_v42 = vpop.f32.mrf.mxu0 }
 0x85e   : > { %v9430_v24 = vpop.permute.xlu1 %4517  ;;  %4843 = vmatmul.bf16.vlgmr.msra.gmra.mxu2 %v4707_v13  ;;  %10742 = vst [vmem:[#allocation43_spill] sm:$0xff] %v9440_v50 }
 0x85f   : > { %4932 = vmatmul.bf16.vlgmr.msra.gmra.mxu3 %v4708_v23  ;;  %10744 = vst [vmem:[#allocation47_spill] sm:$0xff] %v9445_v42 }
 0x862   : > { %3949 = vperm.xlu0 %6826, %v9295_v53  }
 0x866   : > { %v3920_v38 = vpop.permute.xlu1 %3919 }
 0x867   : > { %v4071_v51 = vsub.f32 %v9142_v33, %v3920_v38  ;;  %v4072_v10 = vsub.f32 -1e+30, %v3920_v38  ;;  %v3749_v33 = vmax.f32 %v9445_v42, %v9442_v15  ;;  %v10746_v38 = vld [vmem:[#allocation76_spill] sm:$0xff]  ;;  %v9487_v42 = vld [vmem:[#allocation2 + $0x98] sm:$0xff] }
 0x869   : > { %v4139_v39 = vmul.f32 1.442695, %v4071_v51  ;;  %v4141_v37 = vmul.f32 1.442695, %v4072_v10  ;;  %v10747_v51 = vld [vmem:[#allocation78_spill] sm:$0xff] }
 0x86a   : > { %4552 = vperm.xlu0 %6826, %v9440_v50   ;;  %v6184_v10 = vor.u32 %v10747_v51, %v10746_v38 }
 0x86b   : > { %6848 = vpow2.f32 %v4139_v39 }
 0x86c   : > { %6850 = vpow2.f32 %v4141_v37  ;;  %3939 = vperm.xlu2 %6825, %v9265_v54   ;;  %3481 = vmatmul.bf16.gmra.mxu1 %v6184_v10  ;;  %v3464_v37 = vpop.f32.mrf.mxu1  ;;  %v3512_v54 = vadd.s32 192, %v9124_v36 }
 0x86d   : > { %6852 = vpow2.f32 %v3853_v61  ;;  %3392 = vmatmul.bf16.gmra.mxu0 %v6184_v10  ;;  %v9475_v61 = vpop.f32.mrf.mxu0 }
 0x86e   : > { %6854 = vpow2.f32 %v3855_v44  ;;  %10748 = vst [vmem:[#allocation51_spill] sm:$0xff] %v9475_v61  ;;  %vm3572_vm9 = vcmp.ge.s32.totalorder %v3512_v54, %v9219_v16 }
 0x871   : > { %v6849_v32 = vpop.eup %6848  ;;  %3750 = vmax.xlane.f32.xlu1 %v3749_v33 }
 0x872   : > { %v6851_v59 = vpop.eup %6850 }
 0x873   : > { %v9450_v17 = vadd.f32 %v6851_v59, %v6849_v32  ;;  %v9452_v23 = vpop.eup %6852 }
 0x874   : > { %10745 = vst [vmem:[#allocation49_spill] sm:$0xff] %v9452_v23  ;;  %4542 = vperm.xlu2 %6825, %v9452_v23   ;;  %v3467_v51 = vpop.f32.mrf.mxu1 }
 0x875   : > { %v9483_v10 = vsel %vm3572_vm9, %v3467_v51, -1e+30  ;;  %v9485_v44 = vpop.f32.mrf.mxu0 }
 0x876   : > { %v3736_v43 = vpop.xlane.xlu2 %3735  ;;  %10750 = vst [vmem:[#allocation55_spill] sm:$0xff] %v9483_v10 }
 0x877   : > { %v9458_v13 = vmax.f32 %v9455_v30, %v3736_v43  ;;  %10751 = vst [vmem:[#allocation57_spill] sm:$0xff] %v9485_v44 }
 0x879   : > { %5094 = vst.msk [vmem:[#allocation2 + $0x88] sm:$0xff] %vm1044_vm0, %v9458_v13 }
 0x87b   : > { %v3739_v0 = vpop.xlane.xlu0 %3738 }
 0x87c   : > { %v9467_v49 = vmax.f32 %v9462_v31, %v3739_v0  ;;  %v9479_v0 = vpop.eup %6854 }
 0x87d   : > { %10749 = vst [vmem:[#allocation53_spill] sm:$0xff] %v9479_v0 }
 0x87e   : > { %v9471_v39 = vpop.permute.xlu2 %4522  ;;  %5095 = vst.msk [vmem:[#allocation2 + $0x90] sm:$0xff] %vm1044_vm0, %v9467_v49 }
 0x886   : > { %v3925_v27 = vpop.permute.xlu2 %3924 }
 0x887   : > { %v4073_v33 = vsub.f32 %v9149_v8, %v3925_v27  ;;  %v4074_v43 = vsub.f32 -1e+30, %v3925_v27 }
 0x889   : > { %v4143_v26 = vmul.f32 1.442695, %v4073_v33  ;;  %v4145_v38 = vmul.f32 1.442695, %v4074_v43  ;;  %v3755_v33 = vmax.f32 %v9485_v44, %v9483_v10 }
 0x88a   : > { %4547 = vperm.xlu1 %6827, %v9479_v0   ;;  %v3511_v0 = vadd.s32 184, %v9124_v36 }
 0x88b   : > { %6856 = vpow2.f32 %v4143_v26 }
 0x88c   : > { %6858 = vpow2.f32 %v4145_v38  ;;  %vm3570_vm10 = vcmp.ge.s32.totalorder %v3511_v0, %v9219_v16 }
 0x88e   : > { %v3930_v15 = vpop.permute.xlu2 %3929  ;;  %v9517_v0 = vpop.permute.xlu0 %4527 }
 0x88f   : > { %v4075_v8 = vsub.f32 %v9154_v63, %v3930_v15  ;;  %v4076_v27 = vsub.f32 -1e+30, %v3930_v15 }
 0x891   : > { %v3742_v23 = vpop.xlane.xlu1 %3741  ;;  %v6857_v43 = vpop.eup %6856  ;;  %v4147_v54 = vmul.f32 1.442695, %v4075_v8  ;;  %v4149_v26 = vmul.f32 1.442695, %v4076_v27  ;;  %v9502_v8 = vsel %vm3570_vm10, %v3464_v37, -1e+30 }
 0x892   : > { %v9494_v38 = vmax.f32 %v9487_v42, %v3742_v23  ;;  %3959 = vperm.xlu1 %6827, %v9312_v41   ;;  %v6859_v51 = vpop.eup %6858  ;;  %v4709_v50 = vpack.c.bf16 %v6857_v43, %v6849_v32  ;;  %10752 = vst [vmem:[#allocation59_spill] sm:$0xff] %v9502_v8  ;;  %v3752_v32 = vmax.f32 %v9475_v61, %v9502_v8 }
 0x893   : > { %6860 = vpow2.f32 %v4147_v54  ;;  %v4710_v63 = vpack.c.bf16 %v6859_v51, %v6851_v59  ;;  %v9499_v15 = vadd.f32 %v6859_v51, %v6857_v43  ;;  %v3821_v59 = vsub.f32 %v9307_v21, %v9312_v41 }
 0x894   : > { %5096 = vst.msk [vmem:[#allocation2 + $0x98] sm:$0xff] %vm1044_vm0, %v9494_v38  ;;  %6862 = vpow2.f32 %v4149_v26  ;;  %4848 = vmatmul.bf16.gmra.mxu2 %v4709_v50  ;;  %3756 = vmax.xlane.f32.xlu0 %v3755_v33  ;;  %v3819_v50 = vsub.f32 %v9290_v58, %v9295_v53  ;;  %v3513_v33 = vadd.s32 200, %v9124_v36  ;;  %v9526_v53 = vpop.f32.mrf.mxu0 }
 0x895   : > { %4937 = vmatmul.bf16.gmra.mxu3 %v4710_v63  ;;  %v3863_v43 = vmul.f32 1.442695, %v3821_v59  ;;  %10755 = vst [vmem:[#allocation65_spill] sm:$0xff] %v9526_v53 }
 0x896   : > { %v3859_v51 = vmul.f32 1.442695, %v3819_v50  ;;  %vm3574_vm11 = vcmp.ge.s32.totalorder %v3513_v33, %v9219_v16  ;;  %v9528_v10 = vpop.permute.xlu0 %4537 }
 0x897   : > { %6864 = vpow2.f32 %v3863_v43 }
 0x898   : > { %6866 = vpow2.f32 %v3859_v51 }
 0x899   : > { %v6861_v23 = vpop.eup %6860 }
 0x89a   : > { %v6863_v27 = vpop.eup %6862 }
 0x89b   : > { %v9506_v54 = vadd.f32 %v6863_v27, %v6861_v23 }
 0x89d   : > { %3753 = vmax.xlane.f32.xlu2 %v3752_v32  ;;  %v9515_v37 = vpop.eup %6864  ;;  %v3469_v32 = vpop.f32.mrf.mxu1 }
 0x89e   : > { %10753 = vst [vmem:[#allocation61_spill] sm:$0xff] %v9515_v37  ;;  %v9524_v58 = vsel %vm3574_vm11, %v3469_v32, -1e+30 }
 0x89f   : > { %10754 = vst [vmem:[#allocation63_spill] sm:$0xff] %v9524_v58  ;;  %v3758_v33 = vmax.f32 %v9526_v53, %v9524_v58 }
 0x8a8   : > { %3964 = vperm.xlu0 %6826, %v9337_v9  }
 0x8a9   : > { %v9510_v26 = vpop.permute.xlu1 %4532 }
 0x8b0   : > { %4567 = vperm.xlu0 %6826, %v9515_v37  }
 0x8b1   : > { %v3935_v63 = vpop.permute.xlu1 %3934 }
 0x8b2   : > { %v4077_v21 = vsub.f32 %v9159_v56, %v3935_v63  ;;  %v4078_v41 = vsub.f32 -1e+30, %v3935_v63 }
 0x8b4   : > { %v4151_v59 = vmul.f32 1.442695, %v4077_v21  ;;  %v4153_v43 = vmul.f32 1.442695, %v4078_v41  ;;  %v9533_v21 = vpop.eup %6866 }
 0x8b5   : > { %3954 = vperm.xlu2 %6825, %v9302_v29   ;;  %10756 = vst [vmem:[#allocation67_spill] sm:$0xff] %v9533_v21 }
 0x8b6   : > { %6868 = vpow2.f32 %v4151_v59 }
 0x8b7   : > { %6870 = vpow2.f32 %v4153_v43 }
 0x8b9   : > { %v3945_v50 = vpop.permute.xlu1 %3944 }
 0x8ba   : > { %v4081_v56 = vsub.f32 %v9169_v62, %v3945_v50  ;;  %v4082_v63 = vsub.f32 -1e+30, %v3945_v50  ;;  %v9538_v62 = vld [vmem:[#allocation2 + $0xa8] sm:$0xff] }
 0x8bb   : > { %10758 = vst [vmem:[#allocation71_spill] sm:$0xff] %v9538_v62 }
 0x8bc   : > { %v6869_v51 = vpop.eup %6868  ;;  %v4159_v41 = vmul.f32 1.442695, %v4081_v56  ;;  %v4161_v59 = vmul.f32 1.442695, %v4082_v63  ;;  %3759 = vmax.xlane.f32.xlu1 %v3758_v33 }
 0x8bd   : > { %v6871_v32 = vpop.eup %6870  ;;  %v4711_v44 = vpack.c.bf16 %v6869_v51, %v6861_v23  ;;  %4557 = vperm.xlu2 %6825, %v9533_v21   ;;  %v3820_v23 = vsub.f32 %v9299_v1, %v9302_v29 }
 0x8be   : > { %6872 = vpow2.f32 %v4159_v41  ;;  %v4712_v43 = vpack.c.bf16 %v6871_v32, %v6863_v27  ;;  %v9536_v37 = vadd.f32 %v6871_v32, %v6869_v51  ;;  %v9547_v27 = vld [vmem:[#allocation2 + $0xa0] sm:$0xff]  ;;  %v9554_v32 = vpop.f32.mrf.mxu0 }
 0x8bf   : > { %6874 = vpow2.f32 %v4161_v59  ;;  %4853 = vmatmul.bf16.gmra.mxu2 %v4711_v44  ;;  %v3472_v44 = vpop.f32.mrf.mxu1  ;;  %v3861_v59 = vmul.f32 1.442695, %v3820_v23  ;;  %10760 = vst [vmem:[#allocation75_spill] sm:$0xff] %v9554_v32 }
 0x8c0   : > { %10757 = vst [vmem:[#allocation69_spill] sm:$0xff] %v9536_v37  ;;  %4942 = vmatmul.bf16.gmra.mxu3 %v4712_v43  ;;  %v3515_v43 = vadd.s32 216, %v9124_v36 }
 0x8c1   : > { %v3748_v50 = vpop.xlane.xlu0 %3747  ;;  %6876 = vpow2.f32 %v3861_v59 }
 0x8c2   : > { %v9541_v58 = vmax.f32 %v9538_v62, %v3748_v50  ;;  %vm3578_vm12 = vcmp.ge.s32.totalorder %v3515_v43, %v9219_v16 }
 0x8c4   : > { %10759 = vst [vmem:[#allocation73_spill] sm:$0xff] %v9541_v58  ;;  %v6873_v56 = vpop.eup %6872 }
 0x8c5   : > { %v6875_v63 = vpop.eup %6874  ;;  %5098 = vst.msk [vmem:[#allocation2 + $0xa8] sm:$0xff] %vm1044_vm0, %v9541_v58 }
 0x8c6   : > { %v9549_v33 = vadd.f32 %v6875_v63, %v6873_v56  ;;  %v9565_v61 = vpop.f32.mrf.mxu0 }
 0x8c7   : > { %v3745_v51 = vpop.xlane.xlu2 %3744  ;;  %v3474_v53 = vpop.f32.mrf.mxu1  ;;  %10763 = vst [vmem:[#allocation16_spill] sm:$0xff] %v9565_v61 }
 0x8c8   : > { %v9552_v41 = vmax.f32 %v9547_v27, %v3745_v51  ;;  %v9561_v51 = vpop.eup %6876  ;;  %v9563_v23 = vsel %vm3578_vm12, %v3474_v53, -1e+30 }
 0x8c9   : > { %10761 = vst [vmem:[#allocation77_spill] sm:$0xff] %v9561_v51  ;;  %v3764_v59 = vmax.f32 %v9565_v61, %v9563_v23 }
 0x8ca   : > { %5097 = vst.msk [vmem:[#allocation2 + $0xa0] sm:$0xff] %vm1044_vm0, %v9552_v41 }
 0x8cb   : > { %10762 = vst [vmem:[#allocation79_spill] sm:$0xff] %v9563_v23  ;;  %v9577_v23 = vld [vmem:[#allocation2 + $0xb0] sm:$0xff] }
 0x8cf   : > { %v3940_v50 = vpop.permute.xlu2 %3939 }
 0x8d0   : > { %v4079_v1 = vsub.f32 %v9164_v3, %v3940_v50  ;;  %v4080_v29 = vsub.f32 -1e+30, %v3940_v50  ;;  %v3514_v3 = vadd.s32 208, %v9124_v36 }
 0x8d2   : > { %v4155_v21 = vmul.f32 1.442695, %v4079_v1  ;;  %v4157_v8 = vmul.f32 1.442695, %v4080_v29  ;;  %vm3576_vm13 = vcmp.ge.s32.totalorder %v3514_v3, %v9219_v16 }
 0x8d4   : > { %6878 = vpow2.f32 %v4155_v21  ;;  %v9575_v21 = vsel %vm3576_vm13, %v3472_v44, -1e+30  ;;  %v3824_v44 = vsub.f32 %v9363_v6, %v9366_v7  ;;  %v3822_v6 = vsub.f32 %v9325_v19, %v9337_v9 }
 0x8d5   : > { %4562 = vperm.xlu1 %6827, %v9561_v51   ;;  %6880 = vpow2.f32 %v4157_v8  ;;  %10765 = vst [vmem:[#allocation20_spill] sm:$0xff] %v9575_v21  ;;  %v4483_v8 = vld [vmem:[#allocation4 + $0xb0] sm:$0xff] }
 0x8da   : > { %v6879_v50 = vpop.eup %6878  ;;  %3765 = vmax.xlane.f32.xlu0 %v3764_v59  ;;  %v3761_v59 = vmax.f32 %v9554_v32, %v9575_v21  ;;  %v3869_v21 = vmul.f32 1.442695, %v3824_v44 }
 0x8db   : > { %v6881_v43 = vpop.eup %6880  ;;  %v4713_v1 = vpack.c.bf16 %v6873_v56, %v6879_v50  ;;  %v4675_v56 = vmul.f32 %v9430_v24, %v4483_v8  ;;  %v3950_v8 = vpop.permute.xlu0 %3949 }
 0x8dc   : > { %v4714_v53 = vpack.c.bf16 %v6875_v63, %v6881_v43  ;;  %v9573_v29 = vadd.f32 %v6881_v43, %v6879_v50  ;;  %v4484_v43 = vld [vmem:[#allocation4] sm:$0xff]  ;;  %6882 = vpow2.f32 %v3869_v21 }
 0x8dd   : > { %3974 = vperm.xlu1 %6827, %v9366_v7   ;;  %4858 = vmatmul.bf16.gmra.mxu2 %v4713_v1  ;;  %v4676_v24 = vmul.f32 %v9471_v39, %v4484_v43  ;;  %v3516_v7 = vadd.s32 224, %v9124_v36  ;;  %v3477_v39 = vpop.f32.mrf.mxu1 }
 0x8de   : > { %10764 = vst [vmem:[#allocation18_spill] sm:$0xff] %v9573_v29  ;;  %4947 = vmatmul.bf16.gmra.mxu3 %v4714_v53 }
 0x8df   : > { %vm3580_vm14 = vcmp.ge.s32.totalorder %v3516_v7, %v9219_v16 }
 0x8e1   : > { %v4844_v51 = vpop.f32.mrf.mxu2 }
 0x8e2   : > { %v4933_v61 = vpop.f32.mrf.mxu3 }
 0x8e3   : > { %v4934_v3 = vadd.f32 %v4933_v61, %v4844_v51  ;;  %v9601_v21 = vpop.permute.xlu0 %4552 }
 0x8e4   : > { %v3751_v62 = vpop.xlane.xlu1 %3750 }
 0x8e5   : > { %v9583_v63 = vmax.f32 %v9577_v23, %v3751_v62  ;;  %v5013_v50 = vadd.f32 %v4934_v3, %v4675_v56  ;;  %v9591_v62 = vpop.eup %6882  ;;  %v9603_v3 = vsel %vm3580_vm14, %v3477_v39, -1e+30  ;;  %v9626_v39 = vld [vmem:[#allocation2 + $0xb8] sm:$0xff] }
 0x8e6   : > { %3762 = vmax.xlane.f32.xlu2 %v3761_v59  ;;  %10766 = vst [vmem:[#allocation22_spill] sm:$0xff] %v9591_v62  ;;  %v3865_v59 = vmul.f32 1.442695, %v3822_v6  ;;  %v9615_v6 = vpop.permute.xlu2 %4542 }
 0x8e7   : > { %5099 = vst.msk [vmem:[#allocation2 + $0xb0] sm:$0xff] %vm1044_vm0, %v9583_v63 }
 0x8e8   : > { %5045 = vst [vmem:[#allocation4 + $0xb0] sm:$0xff] %v5013_v50  ;;  %6884 = vpow2.f32 %v3865_v59  ;;  %v9605_v50 = vpop.f32.mrf.mxu0  ;;  %v9624_v59 = vpop.f32.mrf.mxu1 }
 0x8e9   : > { %v4846_v1 = vpop.f32.mrf.mxu2  ;;  %10767 = vst [vmem:[#allocation24_spill] sm:$0xff] %v9603_v3  ;;  %v3767_v19 = vmax.f32 %v9605_v50, %v9603_v3  ;;  %v3518_v3 = vadd.s32 240, %v9124_v36 }
 0x8ea   : > { %v4935_v53 = vpop.f32.mrf.mxu3  ;;  %10768 = vst [vmem:[#allocation26_spill] sm:$0xff] %v9605_v50 }
 0x8eb   : > { %v4936_v61 = vadd.f32 %v4935_v53, %v4846_v1  ;;  %v9612_v53 = vld [vmem:[#allocation2 + $0xc0] sm:$0xff]  ;;  %10772 = vst [vmem:[#allocation34_spill] sm:$0xff] %v9626_v39  ;;  %vm3584_vm15 = vcmp.ge.s32.totalorder %v3518_v3, %v9219_v16 }
 0x8ec   : > { %10770 = vst [vmem:[#allocation30_spill] sm:$0xff] %v9612_v53 }
 0x8ed   : > { %v5014_v51 = vadd.f32 %v4936_v61, %v4676_v24 }
 0x8ee   : > { %3979 = vperm.xlu0 %6826, %v9381_v4   ;;  %v9610_v1 = vpop.eup %6884 }
 0x8ef   : > { %5046 = vst [vmem:[#allocation4] sm:$0xff] %v5014_v51 }
 0x8f0   : > { %10769 = vst [vmem:[#allocation28_spill] sm:$0xff] %v9610_v1  ;;  %v3482_v32 = vpop.f32.mrf.mxu1 }
 0x8f1   : > { %v9648_v37 = vsel %vm3584_vm15, %v3482_v32, -1e+30  ;;  %v4486_v32 = vld [vmem:[#allocation4 + $0x18] sm:$0xff] }
 0x8f2   : > { %10774 = vst [vmem:[#allocation38_spill] sm:$0xff] %v9648_v37 }
 0x8f6   : > { %4582 = vperm.xlu0 %6826, %v9591_v62  }
 0x8fc   : > { %v9597_v56 = vpop.permute.xlu1 %4547 }
 0x8fe   : > { %3969 = vperm.xlu2 %6825, %v9352_v60  }
 0x904   : > { %v3960_v9 = vpop.permute.xlu1 %3959 }
 0x905   : > { %v4087_v44 = vsub.f32 %v9184_v2, %v3960_v9  ;;  %v4088_v43 = vsub.f32 -1e+30, %v3960_v9 }
 0x906   : > { %4572 = vperm.xlu2 %6825, %v9610_v1   ;;  %v4084_v1 = vsub.f32 -1e+30, %v3950_v8 }
 0x907   : > { %v4171_v24 = vmul.f32 1.442695, %v4087_v44  ;;  %v4173_v61 = vmul.f32 1.442695, %v4088_v43  ;;  %3768 = vmax.xlane.f32.xlu1 %v3767_v19  ;;  %v3757_v51 = vpop.xlane.xlu0 %3756  ;;  %v3823_v19 = vsub.f32 %v9348_v46, %v9352_v60  ;;  %v4485_v46 = vld [vmem:[#allocation4 + $0xd8] sm:$0xff] }
 0x908   : > { %v9618_v7 = vmax.f32 %v9612_v53, %v3757_v51  ;;  %v4083_v51 = vsub.f32 %v9174_v48, %v3950_v8  ;;  %v4677_v53 = vmul.f32 %v9517_v0, %v4485_v46 }
 0x909   : > { %6886 = vpow2.f32 %v4171_v24  ;;  %v9636_v24 = vpop.f32.mrf.mxu0  ;;  %v3867_v50 = vmul.f32 1.442695, %v3823_v19 }
 0x90a   : > { %10771 = vst [vmem:[#allocation32_spill] sm:$0xff] %v9618_v7  ;;  %6888 = vpow2.f32 %v4173_v61  ;;  %v4163_v60 = vmul.f32 1.442695, %v4083_v51 }
 0x90b   : > { %5101 = vst.msk [vmem:[#allocation2 + $0xc0] sm:$0xff] %vm1044_vm0, %v9618_v7  ;;  %6890 = vpow2.f32 %v3867_v50 }
 0x90c   : > { %6892 = vpow2.f32 %v4163_v60  ;;  %v3517_v60 = vadd.s32 232, %v9124_v36 }
 0x90e   : > { %vm3582_vm1 = vcmp.ge.s32.totalorder %v3517_v60, %v9219_v16 }
 0x90f   : > { %v9622_v2 = vpop.eup %6886 }
 0x910   : > { %v9628_v9 = vpop.eup %6888  ;;  %v3754_v44 = vpop.xlane.xlu2 %3753 }
 0x911   : > { %v9634_v43 = vadd.f32 %v9628_v9, %v9622_v2  ;;  %v9639_v61 = vmax.f32 %v9626_v39, %v3754_v44  ;;  %v4165_v44 = vmul.f32 1.442695, %v4084_v1  ;;  %v9650_v19 = vpop.f32.mrf.mxu0 }
 0x912   : > { %v3773_v1 = vmax.f32 %v9650_v19, %v9648_v37 }
 0x913   : > { %10773 = vst [vmem:[#allocation36_spill] sm:$0xff] %v9634_v43  ;;  %6894 = vpow2.f32 %v4165_v44 }
 0x914   : > { %5100 = vst.msk [vmem:[#allocation2 + $0xb8] sm:$0xff] %vm1044_vm0, %v9639_v61 }
 0x917   : > { %v4849_v62 = vpop.f32.mrf.mxu2 }
 0x918   : > { %v4938_v7 = vpop.f32.mrf.mxu3  ;;  %v3955_v39 = vpop.permute.xlu2 %3954 }
 0x919   : > { %v4939_v48 = vadd.f32 %v4938_v7, %v4849_v62  ;;  %v4085_v29 = vsub.f32 %v9179_v5, %v3955_v39  ;;  %v4086_v43 = vsub.f32 -1e+30, %v3955_v39  ;;  %v9655_v62 = vpop.eup %6890 }
 0x91a   : > { %v3965_v8 = vpop.permute.xlu0 %3964 }
 0x91b   : > { %v5015_v51 = vadd.f32 %v4939_v48, %v4677_v53  ;;  %v4167_v58 = vmul.f32 1.442695, %v4085_v29  ;;  %v4169_v3 = vmul.f32 1.442695, %v4086_v43  ;;  %v4089_v50 = vsub.f32 %v9191_v28, %v3965_v8  ;;  %v9658_v29 = vpop.eup %6892 }
 0x91c   : > { %v4090_v0 = vsub.f32 -1e+30, %v3965_v8  ;;  %v4678_v53 = vmul.f32 %v9510_v26, %v4486_v32  ;;  %v9661_v46 = vpop.eup %6894 }
 0x91d   : > { %5047 = vst [vmem:[#allocation4 + $0xd8] sm:$0xff] %v5015_v51  ;;  %6896 = vpow2.f32 %v4167_v58  ;;  %v4175_v5 = vmul.f32 1.442695, %v4089_v50 }
 0x91e   : > { %6898 = vpow2.f32 %v4169_v3  ;;  %v4177_v7 = vmul.f32 1.442695, %v4090_v0 }
 0x91f   : > { %6900 = vpow2.f32 %v4175_v5  ;;  %v4851_v39 = vpop.f32.mrf.mxu2  ;;  %v9676_v5 = vld [vmem:[#allocation2 + $0xc8] sm:$0xff] }
 0x920   : > { %4577 = vperm.xlu1 %6827, %v9655_v62   ;;  %6902 = vpow2.f32 %v4177_v7  ;;  %v4940_v28 = vpop.f32.mrf.mxu3  ;;  %3774 = vmax.xlane.f32.xlu0 %v3773_v1  ;;  %v9674_v1 = vsel %vm3582_vm1, %v9624_v59, -1e+30 }
 0x921   : > { %v4941_v43 = vadd.f32 %v4940_v28, %v4851_v39  ;;  %v3770_v32 = vmax.f32 %v9636_v24, %v9674_v1 }
 0x923   : > { %v6897_v58 = vpop.eup %6896  ;;  %v5016_v44 = vadd.f32 %v4941_v43, %v4678_v53  ;;  %v3825_v43 = vsub.f32 %v9376_v45, %v9381_v4  ;;  %v4488_v45 = vld [vmem:[#allocation4 + $0x68] sm:$0xff]  ;;  %v3484_v4 = vpop.f32.mrf.mxu1 }
 0x924   : > { %v6899_v48 = vpop.eup %6898  ;;  %v4715_v8 = vpack.c.bf16 %v6897_v58, %v9658_v29 }
 0x925   : > { %v6901_v51 = vpop.eup %6900  ;;  %5048 = vst [vmem:[#allocation4 + $0x18] sm:$0xff] %v5016_v44  ;;  %v4716_v3 = vpack.c.bf16 %v6899_v48, %v9661_v46  ;;  %v9666_v50 = vadd.f32 %v6899_v48, %v6897_v58  ;;  %v4487_v58 = vld [vmem:[#allocation4 + $0x50] sm:$0xff] }
 0x926   : > { %v6903_v0 = vpop.eup %6902  ;;  %4863 = vmatmul.bf16.gmra.mxu2 %v4715_v8  ;;  %v4717_v28 = vpack.c.bf16 %v6901_v51, %v9622_v2  ;;  %v4679_v2 = vmul.f32 %v9528_v10, %v4487_v58 }
 0x927   : > { %4952 = vmatmul.bf16.gmra.mxu3 %v4716_v3  ;;  %v9670_v26 = vadd.f32 %v6903_v0, %v6901_v51  ;;  %v4718_v59 = vpack.c.bf16 %v6903_v0, %v9628_v9  ;;  %v3519_v51 = vadd.s32 248, %v9124_v36  ;;  %v9708_v36 = vpop.f32.mrf.mxu0 }
 0x928   : > { %3989 = vperm.xlu1 %6827, %v9407_v11   ;;  %4324 = vadd.xlane.f32.xlu0 %v9419_v40  ;;  %v3827_v40 = vsub.f32 %v9402_v57, %v9407_v11  ;;  %v3871_v57 = vmul.f32 1.442695, %v3825_v43  ;;  %v9696_v11 = vpop.permute.xlu0 %4567  ;;  %10776 = vst [vmem:[#allocation42_spill] sm:$0xff] %v9708_v36 }
 0x929   : > { %vm3586_vm2 = vcmp.ge.s32.totalorder %v3519_v51, %v9219_v16 }
 0x92a   : > { %v3875_v53 = vmul.f32 1.442695, %v3827_v40  ;;  %v9706_v40 = vsel %vm3586_vm2, %v3484_v4, -1e+30 }
 0x92b   : > { %10775 = vst [vmem:[#allocation40_spill] sm:$0xff] %v9706_v40 }
 0x92c   : > { %6904 = vpow2.f32 %v3875_v53 }
 0x92d   : > { %6906 = vpow2.f32 %v3871_v57 }
 0x92f   : > { %v3760_v7 = vpop.xlane.xlu1 %3759  ;;  %3771 = vmax.xlane.f32.xlu2 %v3770_v32  ;;  %v4680_v32 = vmul.f32 %v9615_v6, %v4488_v45  ;;  %v3776_v6 = vmax.f32 %v9708_v36, %v9706_v40 }
 0x930   : > { %v9681_v39 = vmax.f32 %v9676_v5, %v3760_v7 }
 0x932   : > { %5102 = vst.msk [vmem:[#allocation2 + $0xc8] sm:$0xff] %vm1044_vm0, %v9681_v39  ;;  %v9692_v48 = vpop.eup %6904 }
 0x933   : > { %v9711_v43 = vpop.eup %6906 }
 0x934   : > { %10777 = vst [vmem:[#allocation44_spill] sm:$0xff] %v9711_v43 }
 0x936   : > { %4868 = vmatmul.bf16.gmra.mxu2 %v4717_v28  ;;  %v9704_v28 = vld [vmem:[#allocation2 + $0xd8] sm:$0xff] }
 0x937   : > { %4957 = vmatmul.bf16.gmra.mxu3 %v4718_v59 }
 0x93c   : > { %3994 = vperm.xlu0 %6826, %v9458_v13  }
 0x942   : > { %v4854_v60 = vpop.f32.mrf.mxu2 }
 0x943   : > { %v4943_v44 = vpop.f32.mrf.mxu3 }
 0x944   : > { %v4944_v8 = vadd.f32 %v4943_v44, %v4854_v60  ;;  %4597 = vperm.xlu0 %6826, %v9692_v48  }
 0x946   : > { %v5017_v9 = vadd.f32 %v4944_v8, %v4679_v2  ;;  %v9722_v2 = vpop.permute.xlu2 %4557 }
 0x947   : > { %v9699_v3 = vpop.permute.xlu1 %4562  ;;  %3984 = vperm.xlu2 %6825, %v9396_v12  }
 0x948   : > { %5049 = vst [vmem:[#allocation4 + $0x50] sm:$0xff] %v5017_v9  ;;  %v9724_v9 = vld [vmem:[#allocation2 + $0xd0] sm:$0xff] }
 0x94a   : > { %v4856_v10 = vpop.f32.mrf.mxu2 }
 0x94b   : > { %v4945_v0 = vpop.f32.mrf.mxu3 }
 0x94c   : > { %v4946_v7 = vadd.f32 %v4945_v0, %v4856_v10  ;;  %4009 = vperm.xlu0 %6826, %v9552_v41   ;;  %v3826_v10 = vsub.f32 %v9390_v34, %v9396_v12  ;;  %v4490_v12 = vld [vmem:[#allocation4 + $0x48] sm:$0xff] }
 0x94d   : > { %v3766_v53 = vpop.xlane.xlu0 %3765 }
 0x94e   : > { %v5018_v59 = vadd.f32 %v4946_v7, %v4680_v32  ;;  %v9714_v16 = vmax.f32 %v9704_v28, %v3766_v53  ;;  %v3873_v32 = vmul.f32 1.442695, %v3826_v10  ;;  %v4489_v7 = vld [vmem:[#allocation4 + $0x30] sm:$0xff] }
 0x94f   : > { %v3975_v58 = vpop.permute.xlu1 %3974  ;;  %4587 = vperm.xlu2 %6825, %v9711_v43   ;;  %v4682_v43 = vmul.f32 %v9601_v21, %v4490_v12 }
 0x950   : > { %5050 = vst [vmem:[#allocation4 + $0x68] sm:$0xff] %v5018_v59  ;;  %v4093_v60 = vsub.f32 %v9201_v35, %v3975_v58  ;;  %v4094_v44 = vsub.f32 -1e+30, %v3975_v58 }
 0x951   : > { %5104 = vst.msk [vmem:[#allocation2 + $0xd8] sm:$0xff] %vm1044_vm0, %v9714_v16 }
 0x952   : > { %v4183_v8 = vmul.f32 1.442695, %v4093_v60  ;;  %v4185_v57 = vmul.f32 1.442695, %v4094_v44  ;;  %3777 = vmax.xlane.f32.xlu1 %v3776_v6  ;;  %v4681_v6 = vmul.f32 %v9597_v56, %v4489_v7 }
 0x954   : > { %6908 = vpow2.f32 %v4183_v8 }
 0x955   : > { %6910 = vpow2.f32 %v4185_v57 }
 0x956   : > { %6912 = vpow2.f32 %v3873_v32 }
 0x959   : > { %v3763_v45 = vpop.xlane.xlu2 %3762 }
 0x95a   : > { %v6909_v51 = vpop.eup %6908  ;;  %v9727_v35 = vmax.f32 %v9724_v9, %v3763_v45 }
 0x95b   : > { %v6911_v4 = vpop.eup %6910 }
 0x95c   : > { %v9731_v0 = vadd.f32 %v6911_v4, %v6909_v51  ;;  %5103 = vst.msk [vmem:[#allocation2 + $0xd0] sm:$0xff] %vm1044_vm0, %v9727_v35  ;;  %v9737_v10 = vpop.eup %6912 }
 0x960   : > { %v4859_v59 = vpop.f32.mrf.mxu2 }
 0x961   : > { %v4948_v53 = vpop.f32.mrf.mxu3  ;;  %v3970_v58 = vpop.permute.xlu2 %3969 }
 0x962   : > { %v4949_v60 = vadd.f32 %v4948_v53, %v4859_v59  ;;  %v4091_v44 = vsub.f32 %v9196_v25, %v3970_v58  ;;  %v4092_v8 = vsub.f32 -1e+30, %v3970_v58  ;;  %v9744_v58 = vld [vmem:[#allocation2 + $0xe0] sm:$0xff] }
 0x964   : > { %v5019_v57 = vadd.f32 %v4949_v60, %v4681_v6  ;;  %v4179_v45 = vmul.f32 1.442695, %v4091_v44  ;;  %v4181_v34 = vmul.f32 1.442695, %v4092_v8  ;;  %v9764_v6 = vld [vmem:[#allocation2 + $0xf0] sm:$0xff] }
 0x966   : > { %5051 = vst [vmem:[#allocation4 + $0x30] sm:$0xff] %v5019_v57  ;;  %6914 = vpow2.f32 %v4179_v45 }
 0x967   : > { %6916 = vpow2.f32 %v4181_v34 }
 0x968   : > { %v4861_v40 = vpop.f32.mrf.mxu2 }
 0x969   : > { %v4950_v36 = vpop.f32.mrf.mxu3  ;;  %v9776_v57 = vpop.permute.xlu2 %4572 }
 0x96a   : > { %v4951_v37 = vadd.f32 %v4950_v36, %v4861_v40 }
 0x96b   : > { %4592 = vperm.xlu1 %6827, %v9737_v10  }
 0x96c   : > { %v5020_v56 = vadd.f32 %v4951_v37, %v4682_v43  ;;  %v6915_v25 = vpop.eup %6914  ;;  %v3830_v37 = vsub.f32 %v9487_v42, %v9494_v38  ;;  %v3980_v43 = vpop.permute.xlu0 %3979 }
 0x96d   : > { %v6917_v7 = vpop.eup %6916  ;;  %v4719_v32 = vpack.c.bf16 %v6909_v51, %v6915_v25 }
 0x96e   : > { %5052 = vst [vmem:[#allocation4 + $0x48] sm:$0xff] %v5020_v56  ;;  %v4720_v59 = vpack.c.bf16 %v6911_v4, %v6917_v7  ;;  %v9741_v53 = vadd.f32 %v6917_v7, %v6915_v25  ;;  %v3881_v36 = vmul.f32 1.442695, %v3830_v37 }
 0x96f   : > { %4873 = vmatmul.bf16.gmra.mxu2 %v4719_v32  ;;  %v9782_v32 = vld [vmem:[#allocation2 + $0xe8] sm:$0xff] }
 0x970   : > { %4962 = vmatmul.bf16.gmra.mxu3 %v4720_v59  ;;  %6918 = vpow2.f32 %v3881_v36  ;;  %v4096_v36 = vsub.f32 -1e+30, %v3980_v43 }
 0x976   : > { %4336 = vadd.xlane.f32.xlu0 %v9506_v54  ;;  %v9754_v51 = vpop.eup %6918  ;;  %v3828_v54 = vsub.f32 %v9455_v30, %v9458_v13  ;;  %v4259_v13 = vld [vmem:[#allocation3] sm:$0xff] }
 0x977   : > { %v4291_v12 = vmul.f32 %v9250_v47, %v4259_v13  ;;  %v4095_v47 = vsub.f32 %v9206_v20, %v3980_v43 }
 0x978   : > { %4327 = vadd.xlane.f32.xlu2 %v9432_v18  ;;  %v9759_v18 = vpop.permute.xlu0 %4582  ;;  %v3877_v4 = vmul.f32 1.442695, %v3828_v54 }
 0x979   : > { %v4187_v13 = vmul.f32 1.442695, %v4095_v47 }
 0x97a   : > { %v3769_v21 = vpop.xlane.xlu1 %3768  ;;  %6920 = vpow2.f32 %v3877_v4 }
 0x97b   : > { %v9748_v40 = vmax.f32 %v9744_v58, %v3769_v21 }
 0x97d   : > { %5105 = vst.msk [vmem:[#allocation2 + $0xe0] sm:$0xff] %vm1044_vm0, %v9748_v40 }
 0x980   : > { %v9773_v30 = vpop.eup %6920 }
 0x98a   : > { %4612 = vperm.xlu0 %6826, %v9754_v51  }
 0x990   : > { %3999 = vperm.xlu2 %6825, %v9467_v49  }
 0x992   : > { %v9762_v42 = vpop.permute.xlu1 %4577  ;;  %4024 = vperm.xlu0 %6826, %v9639_v61  }
 0x993   : > { %v3775_v60 = vpop.xlane.xlu0 %3774 }
 0x994   : > { %v9768_v44 = vmax.f32 %v9764_v6, %v3775_v60  ;;  %v4491_v60 = vld [vmem:[#allocation4 + $0x80] sm:$0xff] }
 0x995   : > { %4330 = vadd.xlane.f32.xlu1 %v9450_v17 }
 0x996   : > { %5107 = vst.msk [vmem:[#allocation2 + $0xf0] sm:$0xff] %vm1044_vm0, %v9768_v44 }
 0x998   : > { %4602 = vperm.xlu2 %6825, %v9773_v30  }
 0x99a   : > { %v3990_v8 = vpop.permute.xlu1 %3989 }
 0x99b   : > { %v4099_v45 = vsub.f32 %v9227_v55, %v3990_v8  ;;  %v4100_v34 = vsub.f32 %v9229_v52, %v3990_v8  ;;  %v4325_v56 = vpop.xlane.xlu0 %4324  ;;  %v3829_v55 = vsub.f32 %v9462_v31, %v9467_v49  ;;  %v4683_v31 = vmul.f32 %v9722_v2, %v4491_v60  ;;  %v4492_v2 = vld [vmem:[#allocation4 + $0x88] sm:$0xff] }
 0x99c   : > { %v4419_v7 = vadd.f32 %v4325_v56, %v4291_v12 }
 0x99d   : > { %v4195_v25 = vmul.f32 1.442695, %v4099_v45  ;;  %v4197_v17 = vmul.f32 1.442695, %v4100_v34  ;;  %v3879_v4 = vmul.f32 1.442695, %v3829_v55 }
 0x99e   : > { %4451 = vst.msk [vmem:[#allocation3] sm:$0xff] %vm1044_vm0, %v4419_v7  ;;  %v4189_v45 = vmul.f32 1.442695, %v4096_v36  ;;  %v10778_v55 = vld [vmem:[#allocation17_spill] sm:$0xff] }
 0x99f   : > { %6922 = vpow2.f32 %v4195_v25 }
 0x9a0   : > { %6924 = vpow2.f32 %v4197_v17 }
 0x9a1   : > { %6926 = vpow2.f32 %v3879_v4 }
 0x9a2   : > { %v3772_v59 = vpop.xlane.xlu2 %3771  ;;  %6928 = vpow2.f32 %v4187_v13 }
 0x9a3   : > { %v9785_v21 = vmax.f32 %v9782_v32, %v3772_v59  ;;  %6930 = vpow2.f32 %v4189_v45 }
 0x9a5   : > { %v9787_v37 = vpop.eup %6922  ;;  %5106 = vst.msk [vmem:[#allocation2 + $0xe8] sm:$0xff] %vm1044_vm0, %v9785_v21 }
 0x9a6   : > { %v9791_v52 = vpop.eup %6924 }
 0x9a7   : > { %v9798_v54 = vadd.f32 %v9791_v52, %v9787_v37  ;;  %v9805_v4 = vpop.eup %6926 }
 0x9a9   : > { %v4864_v8 = vpop.f32.mrf.mxu2 }
 0x9aa   : > { %v4953_v34 = vpop.f32.mrf.mxu3  ;;  %v3985_v12 = vpop.permute.xlu2 %3984 }
 0x9ab   : > { %v4954_v49 = vadd.f32 %v4953_v34, %v4864_v8  ;;  %v4097_v20 = vsub.f32 %v9213_v22, %v3985_v12  ;;  %v4098_v56 = vsub.f32 -1e+30, %v3985_v12  ;;  %v9807_v8 = vpop.eup %6928 }
 0x9ac   : > { %v9810_v34 = vpop.eup %6930 }
 0x9ad   : > { %v5021_v43 = vadd.f32 %v4954_v49, %v4683_v31  ;;  %v4191_v25 = vmul.f32 1.442695, %v4097_v20  ;;  %v4193_v17 = vmul.f32 1.442695, %v4098_v56 }
 0x9ae   : > { %4004 = vperm.xlu1 %6827, %v9494_v38   ;;  %v3995_v7 = vpop.permute.xlu0 %3994  ;;  %v4684_v38 = vmul.f32 %v9699_v3, %v4492_v2 }
 0x9af   : > { %5053 = vst [vmem:[#allocation4 + $0x80] sm:$0xff] %v5021_v43  ;;  %6932 = vpow2.f32 %v4191_v25  ;;  %v4101_v59 = vsub.f32 %v9270_v14, %v3995_v7  ;;  %v4102_v47 = vsub.f32 %v10778_v55, %v3995_v7  ;;  %v4493_v43 = vld [vmem:[#allocation4 + $0xe8] sm:$0xff] }
 0x9b0   : > { %6934 = vpow2.f32 %v4193_v17 }
 0x9b1   : > { %v4199_v36 = vmul.f32 1.442695, %v4101_v59  ;;  %v4201_v22 = vmul.f32 1.442695, %v4102_v47  ;;  %v4866_v60 = vpop.f32.mrf.mxu2  ;;  %v4685_v59 = vmul.f32 %v9696_v11, %v4493_v43 }
 0x9b2   : > { %v4955_v13 = vpop.f32.mrf.mxu3 }
 0x9b3   : > { %6936 = vpow2.f32 %v4199_v36  ;;  %v4956_v45 = vadd.f32 %v4955_v13, %v4866_v60  ;;  %v4494_v36 = vld [vmem:[#allocation4 + $0xb8] sm:$0xff] }
 0x9b4   : > { %6938 = vpow2.f32 %v4201_v22  ;;  %v3833_v22 = vsub.f32 %v9577_v23, %v9583_v63 }
 0x9b5   : > { %v6933_v14 = vpop.eup %6932  ;;  %v5022_v12 = vadd.f32 %v4956_v45, %v4684_v38  ;;  %v9824_v38 = vld [vmem:[#allocation2 + $0xf8] sm:$0xff]  ;;  %v4686_v45 = vmul.f32 %v9776_v57, %v4494_v36  ;;  %v3831_v57 = vsub.f32 %v9547_v27, %v9552_v41  ;;  %v4260_v27 = vld [vmem:[#allocation3 + $0x8] sm:$0xff] }
 0x9b6   : > { %4607 = vperm.xlu1 %6827, %v9805_v4   ;;  %v6935_v31 = vpop.eup %6934  ;;  %v4721_v49 = vpack.c.bf16 %v6933_v14, %v9807_v8  ;;  %v9839_v43 = vpop.permute.xlu0 %4597  ;;  %v10781_v41 = vld [vmem:[#allocation31_spill] sm:$0xff] }
 0x9b7   : > { %5054 = vst [vmem:[#allocation4 + $0x88] sm:$0xff] %v5022_v12  ;;  %v4722_v20 = vpack.c.bf16 %v6935_v31, %v9810_v34  ;;  %v9815_v56 = vadd.f32 %v6935_v31, %v6933_v14  ;;  %v3887_v12 = vmul.f32 1.442695, %v3833_v22  ;;  %v10782_v36 = vld [vmem:[#allocation27_spill] sm:$0xff] }
 0x9b8   : > { %4878 = vmatmul.bf16.gmra.mxu2 %v4721_v49  ;;  %v4292_v22 = vmul.f32 %v10782_v36, %v4260_v27 }
 0x9b9   : > { %v6937_v3 = vpop.eup %6936  ;;  %4967 = vmatmul.bf16.gmra.mxu3 %v4722_v20  ;;  %v4869_v25 = vpop.f32.mrf.mxu2  ;;  %6940 = vpow2.f32 %v3887_v12  ;;  %v3883_v20 = vmul.f32 1.442695, %v3831_v57  ;;  %v10784_v57 = vld [vmem:[#allocation21_spill] sm:$0xff] }
 0x9ba   : > { %v6939_v17 = vpop.eup %6938  ;;  %v4958_v7 = vpop.f32.mrf.mxu3  ;;  %v4723_v49 = vpack.c.bf16 %v6937_v3, %v9787_v37  ;;  %v10779_v37 = vld [vmem:[#allocation73_spill] sm:$0xff] }
 0x9bb   : > { %v4959_v55 = vadd.f32 %v4958_v7, %v4869_v25  ;;  %v9818_v47 = vadd.f32 %v6939_v17, %v6937_v3  ;;  %v4724_v23 = vpack.c.bf16 %v6939_v17, %v9791_v52  ;;  %6942 = vpow2.f32 %v3883_v20  ;;  %v10780_v52 = vld [vmem:[#allocation69_spill] sm:$0xff]  ;;  %v9849_v17 = vpop.permute.xlu2 %4587  ;;  %v4263_v7 = vld [vmem:[#allocation3 + $0x20] sm:$0xff] }
 0x9bc   : > { %4345 = vadd.xlane.f32.xlu0 %v9549_v33 }
 0x9bd   : > { %v5023_v2 = vadd.f32 %v4959_v55, %v4685_v59  ;;  %v4295_v59 = vmul.f32 %v10781_v41, %v4263_v7 }
 0x9be   : > { %v9846_v25 = vpop.permute.xlu0 %4009 }
 0x9bf   : > { %5055 = vst [vmem:[#allocation4 + $0xe8] sm:$0xff] %v5023_v2 }
 0x9c1   : > { %v4871_v60 = vpop.f32.mrf.mxu2  ;;  %4333 = vadd.xlane.f32.xlu2 %v9499_v15  ;;  %v9834_v15 = vpop.eup %6940 }
 0x9c2   : > { %v4960_v13 = vpop.f32.mrf.mxu3  ;;  %v9844_v3 = vpop.eup %6942 }
 0x9c3   : > { %v4961_v11 = vadd.f32 %v4960_v13, %v4871_v60 }
 0x9c5   : > { %v3778_v14 = vpop.xlane.xlu1 %3777  ;;  %v5024_v31 = vadd.f32 %v4961_v11, %v4686_v45  ;;  %v10783_v45 = vld [vmem:[#allocation71_spill] sm:$0xff] }
 0x9c6   : > { %v9828_v33 = vmax.f32 %v9824_v38, %v3778_v14  ;;  %v3832_v11 = vsub.f32 %v10783_v45, %v10779_v37  ;;  %v4495_v14 = vld [vmem:[#allocation4 + $0x60] sm:$0xff] }
 0x9c7   : > { %5056 = vst [vmem:[#allocation4 + $0xb8] sm:$0xff] %v5024_v31  ;;  %v4687_v27 = vmul.f32 %v9762_v42, %v4495_v14 }
 0x9c8   : > { %5108 = vst.msk [vmem:[#allocation2 + $0xf8] sm:$0xff] %vm1044_vm0, %v9828_v33  ;;  %4883 = vmatmul.bf16.gmra.mxu2 %v4723_v49  ;;  %v3885_v12 = vmul.f32 1.442695, %v3832_v11 }
 0x9c9   : > { %4972 = vmatmul.bf16.gmra.mxu3 %v4724_v23 }
 0x9ca   : > { %6944 = vpow2.f32 %v3885_v12 }
 0x9d0   : > { %4627 = vperm.xlu0 %6826, %v9834_v15  }
 0x9d8   : > { %4039 = vperm.xlu0 %6826, %v9727_v35  }
 0x9d9   : > { %4014 = vperm.xlu2 %6825, %v10779_v37   ;;  %v4496_v37 = vld [vmem:[#allocation4 + $0xf0] sm:$0xff] }
 0x9dd   : > { %v9864_v14 = vpop.permute.xlu1 %4592 }
 0x9e0   : > { %4339 = vadd.xlane.f32.xlu1 %v10780_v52  ;;  %v10785_v52 = vld [vmem:[#allocation19_spill] sm:$0xff] }
 0x9e1   : > { %4617 = vperm.xlu2 %6825, %v9844_v3  }
 0x9e9   : > { %v4337_v55 = vpop.xlane.xlu0 %4336 }
 0x9ea   : > { %v4423_v2 = vadd.f32 %v4337_v55, %v4295_v59 }
 0x9eb   : > { %v4328_v60 = vpop.xlane.xlu2 %4327 }
 0x9ec   : > { %4455 = vst.msk [vmem:[#allocation3 + $0x20] sm:$0xff] %vm1044_vm0, %v4423_v2  ;;  %v4420_v13 = vadd.f32 %v4328_v60, %v4292_v22  ;;  %v9861_v60 = vpop.eup %6944 }
 0x9ee   : > { %4452 = vst.msk [vmem:[#allocation3 + $0x8] sm:$0xff] %vm1044_vm0, %v4420_v13  ;;  %v4688_v13 = vmul.f32 %v9759_v18, %v4496_v37 }
 0x9f2   : > { %v4874_v31 = vpop.f32.mrf.mxu2 }
 0x9f3   : > { %v4000_v49 = vpop.permute.xlu2 %3999  ;;  %v4963_v23 = vpop.f32.mrf.mxu3 }
 0x9f4   : > { %v4103_v20 = vsub.f32 %v10784_v57, %v4000_v49  ;;  %v4104_v7 = vsub.f32 %v10785_v52, %v4000_v49  ;;  %v4964_v41 = vadd.f32 %v4963_v23, %v4874_v31  ;;  %v4261_v49 = vld [vmem:[#allocation3 + $0x10] sm:$0xff]  ;;  %v10787_v23 = vld [vmem:[#allocation29_spill] sm:$0xff] }
 0x9f5   : > { %v4293_v57 = vmul.f32 %v10787_v23, %v4261_v49  ;;  %v10792_v49 = vld [vmem:[#allocation32_spill] sm:$0xff] }
 0x9f6   : > { %v4203_v59 = vmul.f32 1.442695, %v4103_v20  ;;  %v4205_v55 = vmul.f32 1.442695, %v4104_v7  ;;  %v5025_v2 = vadd.f32 %v4964_v41, %v4687_v27  ;;  %v3836_v20 = vsub.f32 %v9676_v5, %v9681_v39  ;;  %v10788_v7 = vld [vmem:[#allocation18_spill] sm:$0xff] }
 0x9f8   : > { %6946 = vpow2.f32 %v4203_v59  ;;  %5057 = vst [vmem:[#allocation4 + $0x60] sm:$0xff] %v5025_v2  ;;  %v3893_v27 = vmul.f32 1.442695, %v3836_v20  ;;  %v10789_v59 = vld [vmem:[#allocation34_spill] sm:$0xff] }
 0x9f9   : > { %4019 = vperm.xlu1 %6827, %v9583_v63   ;;  %6948 = vpow2.f32 %v4205_v55  ;;  %v10786_v63 = vld [vmem:[#allocation36_spill] sm:$0xff]  ;;  %v3834_v55 = vsub.f32 %v10789_v59, %v9639_v61  ;;  %v4347_v61 = vadd.f32 %v9661_v46, %v9658_v29  ;;  %v4262_v46 = vld [vmem:[#allocation3 + $0x18] sm:$0xff] }
 0x9fa   : > { %v4876_v36 = vpop.f32.mrf.mxu2  ;;  %6950 = vpow2.f32 %v3893_v27 }
 0x9fb   : > { %v4965_v22 = vpop.f32.mrf.mxu3  ;;  %v3889_v5 = vmul.f32 1.442695, %v3834_v55  ;;  %v9893_v27 = vpop.permute.xlu2 %4602 }
 0x9fc   : > { %v4966_v45 = vadd.f32 %v4965_v22, %v4876_v36  ;;  %v9880_v2 = vpop.permute.xlu0 %4612  ;;  %v10790_v36 = vld [vmem:[#allocation25_spill] sm:$0xff] }
 0x9fd   : > { %6952 = vpow2.f32 %v3889_v5  ;;  %v10794_v5 = vld [vmem:[#allocation43_spill] sm:$0xff] }
 0x9fe   : > { %v6947_v11 = vpop.eup %6946  ;;  %v5026_v31 = vadd.f32 %v4966_v45, %v4688_v13  ;;  %v10791_v13 = vld [vmem:[#allocation23_spill] sm:$0xff] }
 0x9ff   : > { %v6949_v42 = vpop.eup %6948 }
 0xa00   : > { %v9867_v12 = vadd.f32 %v6949_v42, %v6947_v11  ;;  %5058 = vst [vmem:[#allocation4 + $0xf0] sm:$0xff] %v5026_v31  ;;  %v9875_v41 = vpop.eup %6950 }
 0xa01   : > { %4622 = vperm.xlu1 %6827, %v9861_v60  }
 0xa02   : > { %4354 = vadd.xlane.f32.xlu0 %v10786_v63 }
 0xa04   : > { %v9886_v23 = vpop.permute.xlu0 %4024 }
 0xa08   : > { %v4331_v18 = vpop.xlane.xlu1 %4330 }
 0xa09   : > { %v4421_v52 = vadd.f32 %v4331_v18, %v4293_v57  ;;  %v9890_v57 = vpop.eup %6952 }
 0xa0a   : > { %4342 = vadd.xlane.f32.xlu2 %v10788_v7  ;;  %10793 = vst [vmem:[#allocation46_spill] sm:$0xff] %v9890_v57  ;;  %v4266_v7 = vld [vmem:[#allocation3 + $0x38] sm:$0xff] }
 0xa0b   : > { %4453 = vst.msk [vmem:[#allocation3 + $0x10] sm:$0xff] %vm1044_vm0, %v4421_v52 }
 0xa16   : > { %4642 = vperm.xlu0 %6826, %v9875_v41  }
 0xa1e   : > { %4054 = vperm.xlu0 %6826, %v9785_v21  }
 0xa20   : > { %v4005_v37 = vpop.permute.xlu1 %4004 }
 0xa21   : > { %v4105_v22 = vsub.f32 %v10790_v36, %v4005_v37  ;;  %v4106_v45 = vsub.f32 %v10791_v13, %v4005_v37  ;;  %v4298_v37 = vmul.f32 %v10794_v5, %v4266_v7  ;;  %v10798_v7 = vld [vmem:[#allocation30_spill] sm:$0xff] }
 0xa22   : > { %4029 = vperm.xlu2 %6825, %v10792_v49  }
 0xa23   : > { %v4207_v31 = vmul.f32 1.442695, %v4105_v22  ;;  %v4209_v63 = vmul.f32 1.442695, %v4106_v45  ;;  %v10795_v22 = vld [vmem:[#allocation33_spill] sm:$0xff] }
 0xa24   : > { %v4294_v13 = vmul.f32 %v10795_v22, %v4262_v46  ;;  %v10799_v22 = vld [vmem:[#allocation39_spill] sm:$0xff] }
 0xa25   : > { %6954 = vpow2.f32 %v4207_v31 }
 0xa26   : > { %6956 = vpow2.f32 %v4209_v63 }
 0xa2a   : > { %4632 = vperm.xlu2 %6825, %v9890_v57  }
 0xa2b   : > { %v6955_v20 = vpop.eup %6954  ;;  %4348 = vadd.xlane.f32.xlu1 %v4347_v61 }
 0xa2c   : > { %v6957_v18 = vpop.eup %6956  ;;  %v4725_v52 = vpack.c.bf16 %v6955_v20, %v6947_v11  ;;  %v10796_v11 = vld [vmem:[#allocation35_spill] sm:$0xff] }
 0xa2d   : > { %v4726_v59 = vpack.c.bf16 %v6957_v18, %v6949_v42  ;;  %v9895_v55 = vadd.f32 %v6957_v18, %v6955_v20  ;;  %v4107_v63 = vsub.f32 %v10796_v11, %v9846_v25  ;;  %v10797_v42 = vld [vmem:[#allocation41_spill] sm:$0xff] }
 0xa2e   : > { %4888 = vmatmul.bf16.gmra.mxu2 %v4725_v52  ;;  %v4108_v61 = vsub.f32 %v10797_v42, %v9846_v25  ;;  %v4497_v20 = vld [vmem:[#allocation4 + $0x8] sm:$0xff] }
 0xa2f   : > { %4977 = vmatmul.bf16.gmra.mxu3 %v4726_v59  ;;  %v4346_v36 = vpop.xlane.xlu0 %4345  ;;  %v4211_v18 = vmul.f32 1.442695, %v4107_v63  ;;  %v3835_v59 = vsub.f32 %v10798_v7, %v10792_v49  ;;  %v4498_v63 = vld [vmem:[#allocation4 + $0x78] sm:$0xff] }
 0xa30   : > { %v4426_v29 = vadd.f32 %v4346_v36, %v4298_v37  ;;  %v4213_v5 = vmul.f32 1.442695, %v4108_v61 }
 0xa31   : > { %6958 = vpow2.f32 %v4211_v18  ;;  %v3891_v42 = vmul.f32 1.442695, %v3835_v59 }
 0xa32   : > { %4458 = vst.msk [vmem:[#allocation3 + $0x38] sm:$0xff] %vm1044_vm0, %v4426_v29  ;;  %v4689_v29 = vmul.f32 %v9849_v17, %v4497_v20  ;;  %6960 = vpow2.f32 %v4213_v5  ;;  %v4690_v20 = vmul.f32 %v9864_v14, %v4498_v63 }
 0xa34   : > { %v4334_v45 = vpop.xlane.xlu2 %4333 }
 0xa35   : > { %v4422_v31 = vadd.f32 %v4334_v45, %v4294_v13  ;;  %v10800_v45 = vld [vmem:[#allocation37_spill] sm:$0xff] }
 0xa37   : > { %4454 = vst.msk [vmem:[#allocation3 + $0x18] sm:$0xff] %vm1044_vm0, %v4422_v31  ;;  %v9911_v61 = vpop.eup %6958 }
 0xa38   : > { %v9914_v18 = vpop.eup %6960 }
 0xa3b   : > { %v4879_v52 = vpop.f32.mrf.mxu2 }
 0xa3c   : > { %v4968_v37 = vpop.f32.mrf.mxu3  ;;  %v4015_v36 = vpop.permute.xlu2 %4014 }
 0xa3d   : > { %v4969_v46 = vadd.f32 %v4968_v37, %v4879_v52  ;;  %v4109_v13 = vsub.f32 %v10799_v22, %v4015_v36  ;;  %v4110_v11 = vsub.f32 %v10800_v45, %v4015_v36 }
 0xa3f   : > { %v5027_v31 = vadd.f32 %v4969_v46, %v4689_v29  ;;  %v4215_v57 = vmul.f32 1.442695, %v4109_v13  ;;  %v4217_v25 = vmul.f32 1.442695, %v4110_v11  ;;  %v4499_v29 = vld [vmem:[#allocation4 + $0x38] sm:$0xff]  ;;  %v9923_v46 = vpop.permute.xlu1 %4607  ;;  %v4264_v11 = vld [vmem:[#allocation3 + $0x28] sm:$0xff] }
 0xa40   : > { %v4691_v13 = vmul.f32 %v9839_v43, %v4499_v29 }
 0xa41   : > { %5059 = vst [vmem:[#allocation4 + $0x8] sm:$0xff] %v5027_v31  ;;  %6962 = vpow2.f32 %v4215_v57 }
 0xa42   : > { %6964 = vpow2.f32 %v4217_v25 }
 0xa43   : > { %v4881_v49 = vpop.f32.mrf.mxu2  ;;  %6966 = vpow2.f32 %v3891_v42  ;;  %v10801_v42 = vld [vmem:[#allocation49_spill] sm:$0xff] }
 0xa44   : > { %4034 = vperm.xlu1 %6827, %v9681_v39   ;;  %v4970_v17 = vpop.f32.mrf.mxu3  ;;  %v4296_v63 = vmul.f32 %v10801_v42, %v4264_v11  ;;  %v10804_v11 = vld [vmem:[#allocation47_spill] sm:$0xff] }
 0xa45   : > { %v4971_v52 = vadd.f32 %v4970_v17, %v4881_v49  ;;  %v4500_v49 = vld [vmem:[#allocation4 + $0x58] sm:$0xff] }
 0xa47   : > { %v6963_v7 = vpop.eup %6962  ;;  %v5028_v37 = vadd.f32 %v4971_v52, %v4690_v20 }
 0xa48   : > { %v6965_v59 = vpop.eup %6964  ;;  %4363 = vadd.xlane.f32.xlu0 %v9731_v0  ;;  %v4727_v57 = vpack.c.bf16 %v6963_v7, %v9911_v61  ;;  %v3839_v0 = vsub.f32 %v9744_v58, %v9748_v40 }
 0xa49   : > { %5060 = vst [vmem:[#allocation4 + $0x78] sm:$0xff] %v5028_v37  ;;  %v4728_v5 = vpack.c.bf16 %v6965_v59, %v9914_v18  ;;  %v9919_v39 = vadd.f32 %v6965_v59, %v6963_v7  ;;  %v9921_v36 = vpop.eup %6966  ;;  %v4692_v37 = vmul.f32 %v9893_v27, %v4500_v49 }
 0xa4a   : > { %4893 = vmatmul.bf16.gmra.mxu2 %v4727_v57  ;;  %v3899_v25 = vmul.f32 1.442695, %v3839_v0  ;;  %v9936_v57 = vpop.permute.xlu0 %4627 }
 0xa4b   : > { %4982 = vmatmul.bf16.gmra.mxu3 %v4728_v5  ;;  %v4884_v14 = vpop.f32.mrf.mxu2  ;;  %v3837_v5 = vsub.f32 %v9724_v9, %v9727_v35 }
 0xa4c   : > { %4637 = vperm.xlu1 %6827, %v9921_v36   ;;  %v4973_v22 = vpop.f32.mrf.mxu3  ;;  %6968 = vpow2.f32 %v3899_v25  ;;  %v10805_v25 = vld [vmem:[#allocation45_spill] sm:$0xff] }
 0xa4d   : > { %v4974_v45 = vadd.f32 %v4973_v22, %v4884_v14  ;;  %v10803_v14 = vld [vmem:[#allocation59_spill] sm:$0xff]  ;;  %v3895_v22 = vmul.f32 1.442695, %v3837_v5 }
 0xa4e   : > { %v4114_v27 = vsub.f32 %v10803_v14, %v9886_v23 }
 0xa4f   : > { %v5029_v31 = vadd.f32 %v4974_v45, %v4691_v13  ;;  %6970 = vpow2.f32 %v3895_v22  ;;  %v4265_v22 = vld [vmem:[#allocation3 + $0x30] sm:$0xff] }
 0xa50   : > { %v4225_v13 = vmul.f32 1.442695, %v4114_v27 }
 0xa51   : > { %5061 = vst [vmem:[#allocation4 + $0x38] sm:$0xff] %v5029_v31 }
 0xa52   : > { %v9933_v59 = vpop.eup %6968 }
 0xa53   : > { %v4340_v17 = vpop.xlane.xlu1 %4339  ;;  %4351 = vadd.xlane.f32.xlu2 %v9666_v50  ;;  %v4886_v52 = vpop.f32.mrf.mxu2  ;;  %v10802_v50 = vld [vmem:[#allocation51_spill] sm:$0xff] }
 0xa54   : > { %v4424_v20 = vadd.f32 %v4340_v17, %v4296_v63  ;;  %v4975_v7 = vpop.f32.mrf.mxu3  ;;  %v4113_v29 = vsub.f32 %v10802_v50, %v9886_v23  ;;  %v9947_v63 = vpop.permute.xlu0 %4039  ;;  %v4269_v23 = vld [vmem:[#allocation3 + $0x50] sm:$0xff] }
 0xa55   : > { %v4976_v58 = vadd.f32 %v4975_v7, %v4886_v52  ;;  %v9949_v49 = vpop.eup %6970  ;;  %v10806_v52 = vld [vmem:[#allocation61_spill] sm:$0xff] }
 0xa56   : > { %4456 = vst.msk [vmem:[#allocation3 + $0x28] sm:$0xff] %vm1044_vm0, %v4424_v20  ;;  %v4223_v0 = vmul.f32 1.442695, %v4113_v29  ;;  %v4301_v7 = vmul.f32 %v10806_v52, %v4269_v23 }
 0xa57   : > { %v5030_v43 = vadd.f32 %v4976_v58, %v4692_v37  ;;  %v9957_v58 = vpop.permute.xlu2 %4617 }
 0xa58   : > { %6972 = vpow2.f32 %v4223_v0  ;;  %v10807_v0 = vld [vmem:[#allocation53_spill] sm:$0xff] }
 0xa59   : > { %5062 = vst [vmem:[#allocation4 + $0x58] sm:$0xff] %v5030_v43  ;;  %6974 = vpow2.f32 %v4225_v13  ;;  %v4297_v13 = vmul.f32 %v10807_v0, %v4265_v22 }
 0xa5c   : > { %4657 = vperm.xlu0 %6826, %v9933_v59  }
 0xa5e   : > { %v9951_v17 = vpop.eup %6972 }
 0xa5f   : > { %v9954_v20 = vpop.eup %6974 }
 0xa6b   : > { %v4020_v45 = vpop.permute.xlu1 %4019  ;;  %4044 = vperm.xlu2 %6825, %v9714_v16  }
 0xa6c   : > { %v4111_v31 = vsub.f32 %v10804_v11, %v4020_v45  ;;  %v4112_v42 = vsub.f32 %v10805_v25, %v4020_v45 }
 0xa6e   : > { %v4219_v9 = vmul.f32 1.442695, %v4111_v31  ;;  %v4221_v35 = vmul.f32 1.442695, %v4112_v42  ;;  %v10808_v31 = vld [vmem:[#allocation57_spill] sm:$0xff]  ;;  %v10809_v42 = vld [vmem:[#allocation55_spill] sm:$0xff] }
 0xa70   : > { %6976 = vpow2.f32 %v4219_v9 }
 0xa71   : > { %6978 = vpow2.f32 %v4221_v35  ;;  %v3838_v35 = vsub.f32 %v9704_v28, %v9714_v16  ;;  %v5143_v16 = vld [vmem:[#allocation3 + $0x10] sm:$0xff] }
 0xa73   : > { %4647 = vperm.xlu2 %6825, %v9949_v49   ;;  %v9979_v28 = vpop.permute.xlu1 %4622 }
 0xa75   : > { %v4355_v43 = vpop.xlane.xlu0 %4354 }
 0xa76   : > { %v6977_v37 = vpop.eup %6976  ;;  %4357 = vadd.xlane.f32.xlu1 %v9670_v26  ;;  %v4429_v50 = vadd.f32 %v4355_v43, %v4301_v7  ;;  %v3897_v7 = vmul.f32 1.442695, %v3838_v35 }
 0xa77   : > { %v6979_v5 = vpop.eup %6978  ;;  %v4729_v29 = vpack.c.bf16 %v9951_v17, %v6977_v37 }
 0xa78   : > { %v4730_v14 = vpack.c.bf16 %v9954_v20, %v6979_v5  ;;  %v9962_v27 = vadd.f32 %v6979_v5, %v6977_v37  ;;  %4461 = vst.msk [vmem:[#allocation3 + $0x50] sm:$0xff] %vm1044_vm0, %v4429_v50  ;;  %v3842_v37 = vsub.f32 %v9824_v38, %v9828_v33  ;;  %v4267_v38 = vld [vmem:[#allocation3 + $0x40] sm:$0xff] }
 0xa79   : > { %4898 = vmatmul.bf16.gmra.mxu2 %v4729_v29 }
 0xa7a   : > { %4987 = vmatmul.bf16.gmra.mxu3 %v4730_v14  ;;  %v3905_v43 = vmul.f32 1.442695, %v3842_v37  ;;  %v10811_v37 = vld [vmem:[#allocation65_spill] sm:$0xff] }
 0xa7d   : > { %v4343_v45 = vpop.xlane.xlu2 %4342 }
 0xa7e   : > { %v4425_v11 = vadd.f32 %v4343_v45, %v4297_v13 }
 0xa80   : > { %4457 = vst.msk [vmem:[#allocation3 + $0x30] sm:$0xff] %vm1044_vm0, %v4425_v11 }
 0xa85   : > { %v4030_v26 = vpop.permute.xlu2 %4029 }
 0xa86   : > { %v4115_v25 = vsub.f32 %v10808_v31, %v4030_v26  ;;  %v4116_v9 = vsub.f32 %v10809_v42, %v4030_v26  ;;  %4372 = vadd.xlane.f32.xlu0 %v9798_v54  ;;  %v3840_v26 = vsub.f32 %v9782_v32, %v9785_v21  ;;  %v4501_v31 = vld [vmem:[#allocation4 + $0x40] sm:$0xff]  ;;  %v4502_v32 = vld [vmem:[#allocation4 + $0xc8] sm:$0xff] }
 0xa87   : > { %v4693_v35 = vmul.f32 %v9923_v46, %v4501_v31  ;;  %v4272_v21 = vld [vmem:[#allocation3 + $0x68] sm:$0xff]  ;;  %v4694_v46 = vmul.f32 %v9880_v2, %v4502_v32  ;;  %v4365_v2 = vadd.f32 %v9810_v34, %v9807_v8  ;;  %v10816_v8 = vld [vmem:[#allocation20_spill] sm:$0xff] }
 0xa88   : > { %v4227_v23 = vmul.f32 1.442695, %v4115_v25  ;;  %v4229_v52 = vmul.f32 1.442695, %v4116_v9  ;;  %v9988_v11 = vpop.permute.xlu0 %4642  ;;  %v3901_v42 = vmul.f32 1.442695, %v3840_v26  ;;  %v4120_v34 = vsub.f32 %v10816_v8, %v9947_v63 }
 0xa89   : > { %v10813_v26 = vld [vmem:[#allocation22_spill] sm:$0xff]  ;;  %v10814_v32 = vld [vmem:[#allocation77_spill] sm:$0xff] }
 0xa8a   : > { %6980 = vpow2.f32 %v4227_v23  ;;  %v4304_v31 = vmul.f32 %v10813_v26, %v4272_v21 }
 0xa8b   : > { %6982 = vpow2.f32 %v4229_v52 }
 0xa8c   : > { %6984 = vpow2.f32 %v3897_v7 }
 0xa8d   : > { %6986 = vpow2.f32 %v3905_v43 }
 0xa8e   : > { %6988 = vrcp.f32 %v5143_v16  ;;  %v10812_v16 = vld [vmem:[#allocation63_spill] sm:$0xff] }
 0xa8f   : > { %4049 = vperm.xlu1 %6827, %v9748_v40   ;;  %v10810_v40 = vld [vmem:[#allocation67_spill] sm:$0xff]  ;;  %6990 = vpow2.f32 %v3901_v42 }
 0xa90   : > { %v6981_v5 = vpop.eup %6980  ;;  %v4299_v22 = vmul.f32 %v10810_v40, %v4267_v38  ;;  %v9993_v23 = vpop.permute.xlu0 %4054 }
 0xa91   : > { %v6983_v50 = vpop.eup %6982 }
 0xa92   : > { %v9975_v29 = vadd.f32 %v6983_v50, %v6981_v5  ;;  %v9977_v54 = vpop.eup %6984 }
 0xa93   : > { %v9982_v14 = vpop.eup %6986 }
 0xa94   : > { %v6989_v45 = vpop.eup %6988 }
 0xa97   : > { %4652 = vperm.xlu1 %6827, %v9977_v54  }
 0xa9a   : > { %4672 = vperm.xlu0 %6826, %v9982_v14  }
 0xa9c   : > { %4360 = vadd.xlane.f32.xlu2 %v9741_v53 }
 0xa9e   : > { %v4349_v0 = vpop.xlane.xlu1 %4348 }
 0xa9f   : > { %v4427_v13 = vadd.f32 %v4349_v0, %v4299_v22 }
 0xaa1   : > { %4459 = vst.msk [vmem:[#allocation3 + $0x40] sm:$0xff] %vm1044_vm0, %v4427_v13 }
 0xaa2   : > { %5217 = vperm.xlu0 %6826, %v6989_v45  }
 0xab1   : > { %v4889_v25 = vpop.f32.mrf.mxu2 }
 0xab2   : > { %v4978_v9 = vpop.f32.mrf.mxu3 }
 0xab3   : > { %v4979_v53 = vadd.f32 %v4978_v9, %v4889_v25  ;;  %v10000_v25 = vpop.eup %6990 }
 0xab4   : > { %4059 = vperm.xlu2 %6825, %v9768_v44  }
 0xab5   : > { %v5031_v52 = vadd.f32 %v4979_v53, %v4693_v35  ;;  %v10005_v53 = vpop.permute.xlu2 %4632 }
 0xab6   : > { %v4035_v7 = vpop.permute.xlu1 %4034 }
 0xab7   : > { %5063 = vst [vmem:[#allocation4 + $0x40] sm:$0xff] %v5031_v52  ;;  %v4117_v43 = vsub.f32 %v10811_v37, %v4035_v7  ;;  %v4118_v38 = vsub.f32 %v10812_v16, %v4035_v7  ;;  %v4268_v16 = vld [vmem:[#allocation3 + $0x48] sm:$0xff] }
 0xab8   : > { %v4300_v21 = vmul.f32 %v10814_v32, %v4268_v16  ;;  %v4504_v32 = vld [vmem:[#allocation4 + $0x90] sm:$0xff] }
 0xab9   : > { %v4231_v40 = vmul.f32 1.442695, %v4117_v43  ;;  %v4233_v22 = vmul.f32 1.442695, %v4118_v38  ;;  %v4891_v0 = vpop.f32.mrf.mxu2 }
 0xaba   : > { %v4980_v13 = vpop.f32.mrf.mxu3 }
 0xabb   : > { %6992 = vpow2.f32 %v4231_v40  ;;  %v4981_v45 = vadd.f32 %v4980_v13, %v4891_v0  ;;  %v4364_v42 = vpop.xlane.xlu0 %4363  ;;  %v10815_v0 = vld [vmem:[#allocation75_spill] sm:$0xff] }
 0xabc   : > { %6994 = vpow2.f32 %v4233_v22  ;;  %v4432_v35 = vadd.f32 %v4364_v42, %v4304_v31  ;;  %4662 = vperm.xlu2 %6825, %v10000_v25   ;;  %v4119_v13 = vsub.f32 %v10815_v0, %v9947_v63 }
 0xabd   : > { %v10002_v9 = vadd.f32 %v4981_v45, %v4694_v46  ;;  %v4503_v46 = vld [vmem:[#allocation4 + $0xe0] sm:$0xff]  ;;  %v4237_v45 = vmul.f32 1.442695, %v4120_v34 }
 0xabe   : > { %4464 = vst.msk [vmem:[#allocation3 + $0x68] sm:$0xff] %vm1044_vm0, %v4432_v35  ;;  %v4695_v42 = vmul.f32 %v9957_v58, %v4503_v46 }
 0xabf   : > { %5064 = vst [vmem:[#allocation4 + $0xc8] sm:$0xff] %v10002_v9 }
 0xac1   : > { %v6993_v52 = vpop.eup %6992  ;;  %4366 = vadd.xlane.f32.xlu1 %v4365_v2  ;;  %v10817_v2 = vld [vmem:[#allocation16_spill] sm:$0xff] }
 0xac2   : > { %v6995_v7 = vpop.eup %6994  ;;  %v4731_v37 = vpack.c.bf16 %v6993_v52, %v6981_v5  ;;  %v4235_v5 = vmul.f32 1.442695, %v4119_v13  ;;  %v4696_v13 = vmul.f32 %v9979_v28, %v4504_v32  ;;  %v4505_v32 = vld [vmem:[#allocation4 + $0x70] sm:$0xff] }
 0xac3   : > { %v4732_v43 = vpack.c.bf16 %v6995_v7, %v6983_v50  ;;  %v10011_v38 = vadd.f32 %v6995_v7, %v6993_v52  ;;  %v10818_v7 = vld [vmem:[#allocation79_spill] sm:$0xff] }
 0xac4   : > { %4903 = vmatmul.bf16.gmra.mxu2 %v4731_v37  ;;  %6996 = vpow2.f32 %v4235_v5 }
 0xac5   : > { %4992 = vmatmul.bf16.gmra.mxu3 %v4732_v43  ;;  %6998 = vpow2.f32 %v4237_v45 }
 0xac6   : > { %v4352_v40 = vpop.xlane.xlu2 %4351 }
 0xac7   : > { %v4428_v22 = vadd.f32 %v4352_v40, %v4300_v21 }
 0xac9   : > { %4460 = vst.msk [vmem:[#allocation3 + $0x48] sm:$0xff] %vm1044_vm0, %v4428_v22  ;;  %v5146_v22 = vld [vmem:[#allocation3 + $0x28] sm:$0xff] }
 0xaca   : > { %v10028_v0 = vpop.eup %6996 }
 0xacb   : > { %v10031_v34 = vpop.eup %6998 }
 0xacc   : > { %4381 = vadd.xlane.f32.xlu0 %v9895_v55  ;;  %v3841_v55 = vsub.f32 %v9764_v6, %v9768_v44 }
 0xacd   : > { %v4894_v50 = vpop.f32.mrf.mxu2 }
 0xace   : > { %v4983_v26 = vpop.f32.mrf.mxu3  ;;  %v4045_v31 = vpop.permute.xlu2 %4044  ;;  %v3903_v21 = vmul.f32 1.442695, %v3841_v55 }
 0xacf   : > { %v4984_v35 = vadd.f32 %v4983_v26, %v4894_v50  ;;  %v4121_v52 = vsub.f32 %v10817_v2, %v4045_v31  ;;  %v4122_v37 = vsub.f32 %v10818_v7, %v4045_v31  ;;  %v10043_v31 = vpop.permute.xlu1 %4637  ;;  %v10049_v7 = vpop.permute.xlu0 %4657 }
 0xad1   : > { %v10023_v43 = vadd.f32 %v4984_v35, %v4695_v42  ;;  %v4239_v16 = vmul.f32 1.442695, %v4121_v52  ;;  %v4241_v63 = vmul.f32 1.442695, %v4122_v37  ;;  %v10819_v42 = vld [vmem:[#allocation28_spill] sm:$0xff] }
 0xad2   : > { %v5141_v37 = vld [vmem:[#allocation3] sm:$0xff] }
 0xad3   : > { %5065 = vst [vmem:[#allocation4 + $0xe0] sm:$0xff] %v10023_v43  ;;  %7000 = vpow2.f32 %v4239_v16  ;;  %v4275_v16 = vld [vmem:[#allocation3 + $0x80] sm:$0xff] }
 0xad4   : > { %7002 = vpow2.f32 %v4241_v63  ;;  %v4307_v63 = vmul.f32 %v9692_v48, %v4275_v16 }
 0xad5   : > { %v4896_v58 = vpop.f32.mrf.mxu2  ;;  %7004 = vrcp.f32 %v5146_v22  ;;  %v4126_v22 = vsub.f32 %v9674_v1, %v9993_v23 }
 0xad6   : > { %v4985_v40 = vpop.f32.mrf.mxu3  ;;  %7006 = vpow2.f32 %v3903_v21  ;;  %v4125_v21 = vsub.f32 %v9636_v24, %v9993_v23  ;;  %v10820_v24 = vld [vmem:[#allocation26_spill] sm:$0xff]  ;;  %v10064_v16 = vpop.permute.xlu2 %4647 }
 0xad7   : > { %v4986_v8 = vadd.f32 %v4985_v40, %v4896_v58  ;;  %7008 = vrcp.f32 %v5141_v37 }
 0xad9   : > { %v7001_v46 = vpop.eup %7000  ;;  %v10033_v5 = vadd.f32 %v4986_v8, %v4696_v13  ;;  %v4697_v8 = vmul.f32 %v9936_v57, %v4505_v32 }
 0xada   : > { %4064 = vperm.xlu1 %6827, %v9828_v33   ;;  %v7003_v6 = vpop.eup %7002  ;;  %v4733_v44 = vpack.c.bf16 %v7001_v46, %v10028_v0  ;;  %v4270_v33 = vld [vmem:[#allocation3 + $0x58] sm:$0xff] }
 0xadb   : > { %5066 = vst [vmem:[#allocation4 + $0x90] sm:$0xff] %v10033_v5  ;;  %v4734_v50 = vpack.c.bf16 %v7003_v6, %v10031_v34  ;;  %v10039_v45 = vadd.f32 %v7003_v6, %v7001_v46  ;;  %v7005_v28 = vpop.eup %7004  ;;  %v4302_v35 = vmul.f32 %v10819_v42, %v4270_v33  ;;  %v4247_v6 = vmul.f32 1.442695, %v4125_v21  ;;  %v10821_v33 = vld [vmem:[#allocation24_spill] sm:$0xff] }
 0xadc   : > { %4908 = vmatmul.bf16.gmra.mxu2 %v4733_v44  ;;  %v10041_v26 = vpop.eup %7006  ;;  %v4249_v44 = vmul.f32 1.442695, %v4126_v22  ;;  %v4271_v21 = vld [vmem:[#allocation3 + $0x60] sm:$0xff] }
 0xadd   : > { %4997 = vmatmul.bf16.gmra.mxu3 %v4734_v50  ;;  %v7009_v40 = vpop.eup %7008  ;;  %7010 = vpow2.f32 %v4247_v6 }
 0xade   : > { %7012 = vpow2.f32 %v4249_v44  ;;  %v10822_v44 = vld [vmem:[#allocation38_spill] sm:$0xff] }
 0xae0   : > { %5232 = vperm.xlu0 %6826, %v7005_v28  }
 0xae2   : > { %4667 = vperm.xlu1 %6827, %v10041_v26  }
 0xae5   : > { %4369 = vadd.xlane.f32.xlu2 %v9815_v56 }
 0xae9   : > { %v4358_v2 = vpop.xlane.xlu1 %4357 }
 0xaea   : > { %v4430_v52 = vadd.f32 %v4358_v2, %v4302_v35  ;;  %v4506_v35 = vld [vmem:[#allocation4 + $0xc0] sm:$0xff] }
 0xaec   : > { %4462 = vst.msk [vmem:[#allocation3 + $0x58] sm:$0xff] %vm1044_vm0, %v4430_v52  ;;  %v4698_v52 = vmul.f32 %v10005_v53, %v4506_v35 }
 0xaf9   : > { %v4373_v55 = vpop.xlane.xlu0 %4372 }
 0xafa   : > { %v4435_v58 = vadd.f32 %v4373_v55, %v4307_v63  ;;  %v10068_v55 = vpop.eup %7010 }
 0xafb   : > { %v10071_v32 = vpop.eup %7012 }
 0xafc   : > { %v4899_v56 = vpop.f32.mrf.mxu2  ;;  %4467 = vst.msk [vmem:[#allocation3 + $0x80] sm:$0xff] %vm1044_vm0, %v4435_v58 }
 0xafd   : > { %v4988_v13 = vpop.f32.mrf.mxu3  ;;  %5207 = vperm.xlu2 %6825, %v7009_v40  }
 0xafe   : > { %v4989_v46 = vadd.f32 %v4988_v13, %v4899_v56  ;;  %v4303_v13 = vmul.f32 %v9655_v62, %v4271_v21 }
 0xb00   : > { %v10058_v48 = vadd.f32 %v4989_v46, %v4697_v8 }
 0xb01   : > { %v4050_v50 = vpop.permute.xlu1 %4049 }
 0xb02   : > { %5067 = vst [vmem:[#allocation4 + $0x70] sm:$0xff] %v10058_v48  ;;  %v4123_v28 = vsub.f32 %v10820_v24, %v4050_v50  ;;  %v4124_v42 = vsub.f32 %v10821_v33, %v4050_v50  ;;  %v5142_v24 = vld [vmem:[#allocation3 + $0x8] sm:$0xff] }
 0xb04   : > { %v4243_v1 = vmul.f32 1.442695, %v4123_v28  ;;  %v4245_v23 = vmul.f32 1.442695, %v4124_v42  ;;  %v4901_v2 = vpop.f32.mrf.mxu2 }
 0xb05   : > { %v4990_v57 = vpop.f32.mrf.mxu3 }
 0xb06   : > { %7014 = vpow2.f32 %v4243_v1  ;;  %v4991_v37 = vadd.f32 %v4990_v57, %v4901_v2  ;;  %v4273_v57 = vld [vmem:[#allocation3 + $0x70] sm:$0xff] }
 0xb07   : > { %7016 = vpow2.f32 %v4245_v23 }
 0xb08   : > { %v10066_v63 = vadd.f32 %v4991_v37, %v4698_v52  ;;  %v10823_v52 = vld [vmem:[#allocation44_spill] sm:$0xff] }
 0xb09   : > { %v10086_v2 = vpop.permute.xlu1 %4652  ;;  %v4305_v37 = vmul.f32 %v10823_v52, %v4273_v57  ;;  %v4383_v57 = vadd.f32 %v9914_v18, %v9911_v61  ;;  %v4508_v52 = vld [vmem:[#allocation4 + $0xd0] sm:$0xff] }
 0xb0a   : > { %5068 = vst [vmem:[#allocation4 + $0xc0] sm:$0xff] %v10066_v63  ;;  %4390 = vadd.xlane.f32.xlu0 %v9962_v27  ;;  %v5149_v27 = vld [vmem:[#allocation3 + $0x40] sm:$0xff] }
 0xb0b   : > { %7018 = vrcp.f32 %v5149_v27  ;;  %v4507_v27 = vld [vmem:[#allocation4 + $0xa8] sm:$0xff] }
 0xb0c   : > { %v7015_v58 = vpop.eup %7014  ;;  %4375 = vadd.xlane.f32.xlu1 %v9818_v47  ;;  %7020 = vrcp.f32 %v5142_v24 }
 0xb0d   : > { %v7017_v53 = vpop.eup %7016  ;;  %v4735_v56 = vpack.c.bf16 %v10068_v55, %v7015_v58 }
 0xb0e   : > { %v4736_v40 = vpack.c.bf16 %v10071_v32, %v7017_v53  ;;  %v10077_v22 = vadd.f32 %v7017_v53, %v7015_v58  ;;  %v5144_v53 = vld [vmem:[#allocation3 + $0x18] sm:$0xff] }
 0xb0f   : > { %4913 = vmatmul.bf16.gmra.mxu2 %v4735_v56  ;;  %v4361_v8 = vpop.xlane.xlu2 %4360 }
 0xb10   : > { %5002 = vmatmul.bf16.gmra.mxu3 %v4736_v40  ;;  %v4431_v46 = vadd.f32 %v4361_v8, %v4303_v13  ;;  %v4278_v40 = vld [vmem:[#allocation3 + $0x98] sm:$0xff] }
 0xb11   : > { %v7019_v42 = vpop.eup %7018 }
 0xb12   : > { %4463 = vst.msk [vmem:[#allocation3 + $0x60] sm:$0xff] %vm1044_vm0, %v4431_v46  ;;  %v7021_v62 = vpop.eup %7020 }
 0xb17   : > { %v4060_v6 = vpop.permute.xlu2 %4059 }
 0xb18   : > { %v4127_v47 = vsub.f32 %v9650_v19, %v4060_v6  ;;  %v4128_v50 = vsub.f32 %v10822_v44, %v4060_v6  ;;  %v10088_v19 = vpop.permute.xlu0 %4672  ;;  %v4699_v44 = vmul.f32 %v10043_v31, %v4507_v27 }
 0xb1a   : > { %v4251_v28 = vmul.f32 1.442695, %v4127_v47  ;;  %v4253_v33 = vmul.f32 1.442695, %v4128_v50 }
 0xb1c   : > { %7022 = vpow2.f32 %v4251_v28 }
 0xb1d   : > { %7024 = vpow2.f32 %v4253_v33  ;;  %v10824_v33 = vld [vmem:[#allocation42_spill] sm:$0xff] }
 0xb1e   : > { %5247 = vperm.xlu0 %6826, %v7019_v42   ;;  %7026 = vrcp.f32 %v5144_v53 }
 0xb1f   : > { %v10106_v53 = vpop.permute.xlu2 %4662 }
 0xb20   : > { %v10092_v56 = vpop.permute.xlu0 %5217 }
 0xb22   : > { %v7023_v35 = vpop.eup %7022 }
 0xb23   : > { %v7025_v1 = vpop.eup %7024 }
 0xb24   : > { %v10083_v23 = vadd.f32 %v7025_v1, %v7023_v35  ;;  %v7027_v13 = vpop.eup %7026 }
 0xb25   : > { %5212 = vperm.xlu1 %6827, %v7021_v62  }
 0xb26   : > { %4378 = vadd.xlane.f32.xlu2 %v9867_v12  ;;  %v4310_v12 = vmul.f32 %v9754_v51, %v4278_v40  ;;  %v10825_v51 = vld [vmem:[#allocation40_spill] sm:$0xff] }
 0xb34   : > { %v4367_v58 = vpop.xlane.xlu1 %4366 }
 0xb35   : > { %v4433_v21 = vadd.f32 %v4367_v58, %v4305_v37 }
 0xb37   : > { %4465 = vst.msk [vmem:[#allocation3 + $0x70] sm:$0xff] %vm1044_vm0, %v4433_v21 }
 0xb3e   : > { %5222 = vperm.xlu2 %6825, %v7027_v13  }
 0xb3f   : > { %v4382_v8 = vpop.xlane.xlu0 %4381 }
 0xb40   : > { %v4438_v46 = vadd.f32 %v4382_v8, %v4310_v12  ;;  %v5152_v12 = vld [vmem:[#allocation3 + $0x58] sm:$0xff] }
 0xb41   : > { %v4274_v8 = vld [vmem:[#allocation3 + $0x78] sm:$0xff] }
 0xb42   : > { %4470 = vst.msk [vmem:[#allocation3 + $0x98] sm:$0xff] %vm1044_vm0, %v4438_v46  ;;  %v4306_v46 = vmul.f32 %v9737_v10, %v4274_v8  ;;  %v4276_v8 = vld [vmem:[#allocation3 + $0x88] sm:$0xff] }
 0xb47   : > { %v4904_v6 = vpop.f32.mrf.mxu2 }
 0xb48   : > { %v4993_v47 = vpop.f32.mrf.mxu3  ;;  %4399 = vadd.xlane.f32.xlu0 %v10011_v38  ;;  %v4700_v38 = vmul.f32 %v9988_v11, %v4508_v52 }
 0xb49   : > { %v4994_v50 = vadd.f32 %v4993_v47, %v4904_v6 }
 0xb4b   : > { %v10098_v24 = vadd.f32 %v4994_v50, %v4699_v44 }
 0xb4c   : > { %v4065_v28 = vpop.permute.xlu1 %4064 }
 0xb4d   : > { %5069 = vst [vmem:[#allocation4 + $0xa8] sm:$0xff] %v10098_v24  ;;  %v4129_v42 = vsub.f32 %v10824_v33, %v4065_v28  ;;  %v4130_v62 = vsub.f32 %v10825_v51, %v4065_v28  ;;  %v5145_v28 = vld [vmem:[#allocation3 + $0x20] sm:$0xff]  ;;  %v4509_v33 = vld [vmem:[#allocation4 + $0x10] sm:$0xff] }
 0xb4f   : > { %v4255_v37 = vmul.f32 1.442695, %v4129_v42  ;;  %v4257_v58 = vmul.f32 1.442695, %v4130_v62  ;;  %4384 = vadd.xlane.f32.xlu1 %v4383_v57  ;;  %v4906_v31 = vpop.f32.mrf.mxu2  ;;  %v4701_v62 = vmul.f32 %v10064_v16, %v4509_v33  ;;  %v4510_v57 = vld [vmem:[#allocation4 + $0x28] sm:$0xff] }
 0xb50   : > { %v4995_v21 = vpop.f32.mrf.mxu3 }
 0xb51   : > { %7028 = vpow2.f32 %v4255_v37  ;;  %v4996_v40 = vadd.f32 %v4995_v21, %v4906_v31 }
 0xb52   : > { %7030 = vpow2.f32 %v4257_v58  ;;  %v4702_v58 = vmul.f32 %v10086_v2, %v4510_v57  ;;  %v10124_v16 = vpop.permute.xlu0 %5232 }
 0xb53   : > { %v10108_v13 = vadd.f32 %v4996_v40, %v4700_v38  ;;  %7032 = vrcp.f32 %v5152_v12  ;;  %v5147_v38 = vld [vmem:[#allocation3 + $0x30] sm:$0xff] }
 0xb54   : > { %7034 = vrcp.f32 %v5145_v28  ;;  %v10126_v40 = vpop.permute.xlu1 %4667  ;;  %v4281_v12 = vld [vmem:[#allocation3 + $0xb0] sm:$0xff] }
 0xb55   : > { %5070 = vst [vmem:[#allocation4 + $0xd0] sm:$0xff] %v10108_v13  ;;  %7036 = vrcp.f32 %v5147_v38 }
 0xb57   : > { %v7029_v61 = vpop.eup %7028 }
 0xb58   : > { %v7031_v18 = vpop.eup %7030  ;;  %v4737_v27 = vpack.c.bf16 %v7029_v61, %v7023_v35  ;;  %v4370_v6 = vpop.xlane.xlu2 %4369 }
 0xb59   : > { %v4738_v47 = vpack.c.bf16 %v7031_v18, %v7025_v1  ;;  %v10112_v11 = vadd.f32 %v7031_v18, %v7029_v61  ;;  %v4434_v44 = vadd.f32 %v4370_v6, %v4306_v46  ;;  %v7033_v50 = vpop.eup %7032  ;;  %v4308_v18 = vmul.f32 %v9773_v30, %v4276_v8 }
 0xb5a   : > { %4918 = vmatmul.bf16.gmra.mxu2 %v4737_v27  ;;  %v7035_v1 = vpop.eup %7034 }
 0xb5b   : > { %5007 = vmatmul.bf16.gmra.mxu3 %v4738_v47  ;;  %4466 = vst.msk [vmem:[#allocation3 + $0x78] sm:$0xff] %vm1044_vm0, %v4434_v44  ;;  %v7037_v46 = vpop.eup %7036  ;;  %v4392_v47 = vadd.f32 %v9954_v20, %v9951_v17  ;;  %v4511_v44 = vld [vmem:[#allocation4 + $0xa0] sm:$0xff]  ;;  %v4512_v20 = vld [vmem:[#allocation4 + $0xf8] sm:$0xff] }
 0xb5c   : > { %5262 = vperm.xlu0 %6826, %v7033_v50   ;;  %v5155_v50 = vld [vmem:[#allocation3 + $0x70] sm:$0xff]  ;;  %v4703_v33 = vmul.f32 %v10049_v7, %v4511_v44  ;;  %v4704_v8 = vmul.f32 %v10106_v53, %v4512_v20  ;;  %v5114_v20 = vld [vmem:[#allocation4 + $0x68] sm:$0xff] }
 0xb5d   : > { %7038 = vrcp.f32 %v5155_v50  ;;  %v5150_v50 = vld [vmem:[#allocation3 + $0x48] sm:$0xff] }
 0xb5f   : > { %v4909_v42 = vpop.f32.mrf.mxu2 }
 0xb60   : > { %v4998_v51 = vpop.f32.mrf.mxu3 }
 0xb61   : > { %v4999_v10 = vadd.f32 %v4998_v51, %v4909_v42 }
 0xb63   : > { %v10116_v35 = vadd.f32 %v4999_v10, %v4701_v62  ;;  %v4277_v62 = vld [vmem:[#allocation3 + $0x90] sm:$0xff] }
 0xb64   : > { %v5109_v10 = vld [vmem:[#allocation4 + $0xb0] sm:$0xff] }
 0xb65   : > { %5071 = vst [vmem:[#allocation4 + $0x10] sm:$0xff] %v10116_v35 }
 0xb67   : > { %4387 = vadd.xlane.f32.xlu2 %v9919_v39  ;;  %v4911_v52 = vpop.f32.mrf.mxu2  ;;  %v4313_v39 = vmul.f32 %v9834_v15, %v4281_v12  ;;  %v5208_v15 = vpop.permute.xlu2 %5207 }
 0xb68   : > { %5227 = vperm.xlu1 %6827, %v7035_v1   ;;  %v5000_v37 = vpop.f32.mrf.mxu3  ;;  %v5110_v1 = vld [vmem:[#allocation4] sm:$0xff]  ;;  %v5365_v57 = vmul.f32 %v5208_v15, %v5109_v10  ;;  %v4284_v15 = vld [vmem:[#allocation3 + $0xc8] sm:$0xff] }
 0xb69   : > { %v5001_v31 = vadd.f32 %v5000_v37, %v4911_v52  ;;  %v4309_v52 = vmul.f32 %v9805_v4, %v4277_v62  ;;  %v7039_v37 = vpop.eup %7038  ;;  %v5111_v4 = vld [vmem:[#allocation4 + $0xd8] sm:$0xff] }
 0xb6b   : > { %v10121_v21 = vadd.f32 %v5001_v31, %v4702_v58 }
 0xb6d   : > { %5072 = vst [vmem:[#allocation4 + $0x28] sm:$0xff] %v10121_v21 }
 0xb7d   : > { %v4391_v61 = vpop.xlane.xlu0 %4390 }
 0xb7e   : > { %v4441_v2 = vadd.f32 %v4391_v61, %v4313_v39 }
 0xb7f   : > { %v4376_v27 = vpop.xlane.xlu1 %4375  ;;  %5237 = vperm.xlu2 %6825, %v7037_v46   ;;  %v5112_v46 = vld [vmem:[#allocation4 + $0x18] sm:$0xff] }
 0xb80   : > { %v4436_v6 = vadd.f32 %v4376_v27, %v4308_v18  ;;  %4473 = vst.msk [vmem:[#allocation3 + $0xb0] sm:$0xff] %vm1044_vm0, %v4441_v2  ;;  %v5148_v18 = vld [vmem:[#allocation3 + $0x38] sm:$0xff]  ;;  %v5367_v27 = vmul.f32 %v10092_v56, %v5111_v4 }
 0xb81   : > { %7040 = vrcp.f32 %v5148_v18 }
 0xb82   : > { %4468 = vst.msk [vmem:[#allocation3 + $0x88] sm:$0xff] %vm1044_vm0, %v4436_v6  ;;  %7042 = vrcp.f32 %v5150_v50  ;;  %v4287_v50 = vld [vmem:[#allocation3 + $0xe0] sm:$0xff] }
 0xb86   : > { %4408 = vadd.xlane.f32.xlu0 %v10077_v22 }
 0xb87   : > { %v7041_v53 = vpop.eup %7040 }
 0xb88   : > { %v7043_v56 = vpop.eup %7042 }
 0xb90   : > { %v10149_v44 = vpop.permute.xlu0 %5247 }
 0xb92   : > { %4393 = vadd.xlane.f32.xlu1 %v4392_v47  ;;  %v4914_v28 = vpop.f32.mrf.mxu2 }
 0xb93   : > { %v5003_v30 = vpop.f32.mrf.mxu3 }
 0xb94   : > { %v5004_v42 = vadd.f32 %v5003_v30, %v4914_v28  ;;  %v4316_v28 = vmul.f32 %v9875_v41, %v4284_v15  ;;  %v4401_v41 = vadd.f32 %v10031_v34, %v10028_v0  ;;  %v5153_v15 = vld [vmem:[#allocation3 + $0x60] sm:$0xff] }
 0xb96   : > { %v10136_v51 = vadd.f32 %v5004_v42, %v4703_v33  ;;  %v4279_v42 = vld [vmem:[#allocation3 + $0xa0] sm:$0xff] }
 0xb97   : > { %v5213_v22 = vpop.permute.xlu1 %5212  ;;  %v4311_v62 = vmul.f32 %v9844_v3, %v4279_v42  ;;  %v4282_v42 = vld [vmem:[#allocation3 + $0xb8] sm:$0xff] }
 0xb98   : > { %5073 = vst [vmem:[#allocation4 + $0xa0] sm:$0xff] %v10136_v51  ;;  %v5366_v17 = vmul.f32 %v5213_v22, %v5110_v1  ;;  %v5158_v1 = vld [vmem:[#allocation3 + $0x88] sm:$0xff] }
 0xb99   : > { %v4379_v31 = vpop.xlane.xlu2 %4378  ;;  %7044 = vrcp.f32 %v5158_v1  ;;  %v4280_v22 = vld [vmem:[#allocation3 + $0xa8] sm:$0xff] }
 0xb9a   : > { %v6420_v58 = vpack.c.bf16 %v5366_v17, %v5365_v57  ;;  %v4916_v7 = vpop.f32.mrf.mxu2  ;;  %v4437_v38 = vadd.f32 %v4379_v31, %v4309_v52  ;;  %5277 = vperm.xlu0 %6826, %v7039_v37   ;;  %v5113_v52 = vld [vmem:[#allocation4 + $0x50] sm:$0xff]  ;;  %v4312_v37 = vmul.f32 %v9861_v60, %v4280_v22  ;;  %v4514_v60 = vld [vmem:[#allocation4 + $0x98] sm:$0xff]  ;;  %v4283_v22 = vld [vmem:[#allocation3 + $0xc0] sm:$0xff] }
 0xb9b   : > { %v5005_v12 = vpop.f32.mrf.mxu3 }
 0xb9c   : > { %6421 = vst [vmem:[%s8090_s5] sm:$0xff] %v6420_v58   ;;  %v5006_v39 = vadd.f32 %v5005_v12, %v4916_v7  ;;  %v5370_v58 = vmul.f32 %v10124_v16, %v5114_v20  ;;  %v4513_v7 = vld [vmem:[#allocation4 + $0x20] sm:$0xff]  ;;  %v5151_v16 = vld [vmem:[#allocation3 + $0x50] sm:$0xff] }
 0xb9d   : > { %4469 = vst.msk [vmem:[#allocation3 + $0x90] sm:$0xff] %vm1044_vm0, %v4437_v38  ;;  %v5115_v20 = vld [vmem:[#allocation4 + $0x30] sm:$0xff] }
 0xb9e   : > { %v10143_v61 = vadd.f32 %v5006_v39, %v4704_v8  ;;  %v4705_v8 = vmul.f32 %v10126_v40, %v4513_v7  ;;  %v5118_v7 = vld [vmem:[#allocation4 + $0x88] sm:$0xff] }
 0xb9f   : > { %v7045_v17 = vpop.eup %7044 }
 0xba0   : > { %5074 = vst [vmem:[#allocation4 + $0xf8] sm:$0xff] %v10143_v61 }
 0xba1   : > { %v5223_v2 = vpop.permute.xlu2 %5222 }
 0xba2   : > { %v5368_v6 = vmul.f32 %v5223_v2, %v5112_v46 }
 0xba4   : > { %v6425_v47 = vpack.c.bf16 %v5368_v6, %v5367_v27  ;;  %v4706_v27 = vmul.f32 %v10088_v19, %v4514_v60 }
 0xba6   : > { %6497 = vst [vmem:[%s8090_s5 + $0x8] sm:$0xff] %v6425_v47  }
 0xba8   : > { %4396 = vadd.xlane.f32.xlu2 %v9975_v29 }
 0xbab   : > { %5242 = vperm.xlu1 %6827, %v7041_v53  }
 0xbbb   : > { %v4400_v30 = vpop.xlane.xlu0 %4399 }
 0xbbc   : > { %v4444_v33 = vadd.f32 %v4400_v30, %v4316_v28  ;;  %v4319_v28 = vmul.f32 %v9933_v59, %v4287_v50  ;;  %v4410_v59 = vadd.f32 %v10071_v32, %v10068_v55  ;;  %v7084_v55 = vld [vmem:[#allocation4 + $0x80] sm:$0xff] }
 0xbbd   : > { %v5373_v32 = vmul.f32 %v7084_v55, %v10149_v44 }
 0xbbe   : > { %4476 = vst.msk [vmem:[#allocation3 + $0xc8] sm:$0xff] %vm1044_vm0, %v4444_v33 }
 0xbc0   : > { %5252 = vperm.xlu2 %6825, %v7043_v56   ;;  %v10826_v56 = vld [vmem:[#allocation46_spill] sm:$0xff] }
 0xbc2   : > { %v4385_v10 = vpop.xlane.xlu1 %4384 }
 0xbc3   : > { %v4439_v29 = vadd.f32 %v4385_v10, %v4311_v62 }
 0xbc4   : > { %4417 = vadd.xlane.f32.xlu0 %v10112_v11 }
 0xbc5   : > { %4471 = vst.msk [vmem:[#allocation3 + $0xa0] sm:$0xff] %vm1044_vm0, %v4439_v29 }
 0xbcc   : > { %v5161_v57 = vld [vmem:[#allocation3 + $0xa0] sm:$0xff] }
 0xbcd   : > { %7046 = vrcp.f32 %v5161_v57  ;;  %v4315_v57 = vmul.f32 %v9921_v36, %v4283_v22  ;;  %v5154_v36 = vld [vmem:[#allocation3 + $0x68] sm:$0xff]  ;;  %v4286_v22 = vld [vmem:[#allocation3 + $0xd8] sm:$0xff] }
 0xbce   : > { %7048 = vrcp.f32 %v5151_v16  ;;  %v10171_v53 = vpop.permute.xlu0 %5262  ;;  %v5160_v16 = vld [vmem:[#allocation3 + $0x98] sm:$0xff] }
 0xbcf   : > { %7050 = vrcp.f32 %v5153_v15  ;;  %v4285_v15 = vld [vmem:[#allocation3 + $0xd0] sm:$0xff] }
 0xbd3   : > { %v7047_v18 = vpop.eup %7046 }
 0xbd4   : > { %v7049_v40 = vpop.eup %7048 }
 0xbd5   : > { %4402 = vadd.xlane.f32.xlu1 %v4401_v41  ;;  %v7051_v19 = vpop.eup %7050 }
 0xbd8   : > { %5292 = vperm.xlu0 %6826, %v7045_v17  }
 0xbda   : > { %v5228_v3 = vpop.permute.xlu1 %5227  ;;  %v4388_v31 = vpop.xlane.xlu2 %4387 }
 0xbdb   : > { %v5369_v11 = vmul.f32 %v5228_v3, %v5113_v52  ;;  %v4440_v38 = vadd.f32 %v4388_v31, %v4312_v37  ;;  %v5116_v3 = vld [vmem:[#allocation4 + $0x48] sm:$0xff] }
 0xbdd   : > { %v6430_v12 = vpack.c.bf16 %v5370_v58, %v5369_v11  ;;  %v4919_v0 = vpop.f32.mrf.mxu2  ;;  %4472 = vst.msk [vmem:[#allocation3 + $0xa8] sm:$0xff] %vm1044_vm0, %v4440_v38 }
 0xbde   : > { %v5008_v34 = vpop.f32.mrf.mxu3 }
 0xbdf   : > { %6498 = vst [vmem:[%s8090_s5 + $0x10] sm:$0xff] %v6430_v12   ;;  %v5009_v39 = vadd.f32 %v5008_v34, %v4919_v0  ;;  %v5157_v34 = vld [vmem:[#allocation3 + $0x80] sm:$0xff] }
 0xbe0   : > { %5307 = vperm.xlu0 %6826, %v7047_v18   ;;  %v4290_v18 = vld [vmem:[#allocation3 + $0xf8] sm:$0xff] }
 0xbe1   : > { %v10163_v4 = vadd.f32 %v5009_v39, %v4705_v8  ;;  %v4322_v60 = vmul.f32 %v9982_v14, %v4290_v18  ;;  %v4317_v14 = vmul.f32 %v9949_v49, %v4285_v15  ;;  %v4289_v18 = vld [vmem:[#allocation3 + $0xf0] sm:$0xff]  ;;  %v7086_v15 = vld [vmem:[#allocation4 + $0x8] sm:$0xff] }
 0xbe2   : > { %v5238_v1 = vpop.permute.xlu2 %5237 }
 0xbe3   : > { %5075 = vst [vmem:[#allocation4 + $0x20] sm:$0xff] %v10163_v4  ;;  %v5371_v58 = vmul.f32 %v5238_v1, %v5115_v20 }
 0xbe5   : > { %v4921_v46 = vpop.f32.mrf.mxu2 }
 0xbe6   : > { %v5010_v2 = vpop.f32.mrf.mxu3 }
 0xbe7   : > { %v5011_v6 = vadd.f32 %v5010_v2, %v4921_v46 }
 0xbe9   : > { %v10167_v47 = vadd.f32 %v5011_v6, %v4706_v27  ;;  %4405 = vadd.xlane.f32.xlu2 %v10039_v45  ;;  %v4314_v45 = vmul.f32 %v10826_v56, %v4282_v42  ;;  %v5156_v27 = vld [vmem:[#allocation3 + $0x78] sm:$0xff]  ;;  %v5162_v42 = vld [vmem:[#allocation3 + $0xa8] sm:$0xff] }
 0xbeb   : > { %5076 = vst [vmem:[#allocation4 + $0x98] sm:$0xff] %v10167_v47 }
 0xbee   : > { %5257 = vperm.xlu1 %6827, %v7049_v40   ;;  %v5159_v40 = vld [vmem:[#allocation3 + $0x90] sm:$0xff] }
 0xbf9   : > { %v4409_v30 = vpop.xlane.xlu0 %4408 }
 0xbfa   : > { %v4447_v33 = vadd.f32 %v4409_v30, %v4319_v28  ;;  %v5166_v28 = vld [vmem:[#allocation3 + $0xc8] sm:$0xff] }
 0xbfc   : > { %4479 = vst.msk [vmem:[#allocation3 + $0xe0] sm:$0xff] %vm1044_vm0, %v4447_v33 }
 0xc01   : > { %5267 = vperm.xlu2 %6825, %v7051_v19  }
 0xc05   : > { %v4394_v62 = vpop.xlane.xlu1 %4393 }
 0xc06   : > { %v4442_v10 = vadd.f32 %v4394_v62, %v4314_v45  ;;  %v5169_v45 = vld [vmem:[#allocation3 + $0xe0] sm:$0xff] }
 0xc08   : > { %4474 = vst.msk [vmem:[#allocation3 + $0xb8] sm:$0xff] %vm1044_vm0, %v4442_v10 }
 0xc0c   : > { %v10185_v39 = vpop.permute.xlu0 %5277 }
 0xc0f   : > { %v5164_v29 = vld [vmem:[#allocation3 + $0xb8] sm:$0xff] }
 0xc10   : > { %7052 = vrcp.f32 %v5164_v29 }
 0xc11   : > { %7054 = vrcp.f32 %v5154_v36 }
 0xc12   : > { %7056 = vrcp.f32 %v5157_v34 }
 0xc13   : > { %7058 = vrcp.f32 %v5160_v16 }
 0xc14   : > { %7060 = vrcp.f32 %v5156_v27 }
 0xc16   : > { %v7053_v41 = vpop.eup %7052 }
 0xc17   : > { %5322 = vperm.xlu0 %6826, %v7053_v41   ;;  %v7055_v8 = vpop.eup %7054 }
 0xc18   : > { %4411 = vadd.xlane.f32.xlu1 %v4410_v59  ;;  %v7057_v46 = vpop.eup %7056 }
 0xc19   : > { %v7059_v6 = vpop.eup %7058 }
 0xc1a   : > { %v7061_v50 = vpop.eup %7060 }
 0xc1b   : > { %v4397_v17 = vpop.xlane.xlu2 %4396 }
 0xc1c   : > { %v4443_v52 = vadd.f32 %v4397_v17, %v4315_v57  ;;  %v4318_v17 = vmul.f32 %v9977_v54, %v4286_v22 }
 0xc1d   : > { %v5243_v37 = vpop.permute.xlu1 %5242 }
 0xc1e   : > { %v5372_v11 = vmul.f32 %v5243_v37, %v5116_v3  ;;  %4475 = vst.msk [vmem:[#allocation3 + $0xc0] sm:$0xff] %vm1044_vm0, %v4443_v52  ;;  %v5119_v37 = vld [vmem:[#allocation4 + $0xe8] sm:$0xff] }
 0xc20   : > { %v6435_v31 = vpack.c.bf16 %v5372_v11, %v5371_v58  ;;  %v7085_v11 = vld [vmem:[#allocation4 + $0xb8] sm:$0xff] }
 0xc22   : > { %6499 = vst [vmem:[%s8090_s5 + $0x18] sm:$0xff] %v6435_v31   ;;  %v5376_v31 = vmul.f32 %v7085_v11, %v10171_v53 }
 0xc23   : > { %v5253_v38 = vpop.permute.xlu2 %5252 }
 0xc24   : > { %v5374_v12 = vmul.f32 %v5253_v38, %v5118_v7 }
 0xc25   : > { %v5165_v10 = vld [vmem:[#allocation3 + $0xc0] sm:$0xff] }
 0xc26   : > { %v6440_v0 = vpack.c.bf16 %v5374_v12, %v5373_v32  ;;  %v4288_v12 = vld [vmem:[#allocation3 + $0xe8] sm:$0xff] }
 0xc27   : > { %v4320_v54 = vmul.f32 %v10000_v25, %v4288_v12  ;;  %v5122_v25 = vld [vmem:[#allocation4 + $0xf0] sm:$0xff] }
 0xc28   : > { %6500 = vst [vmem:[%s8090_s5 + $0x20] sm:$0xff] %v6440_v0  }
 0xc2a   : > { %4414 = vadd.xlane.f32.xlu2 %v10083_v23  ;;  %v5163_v23 = vld [vmem:[#allocation3 + $0xb0] sm:$0xff] }
 0xc2b   : > { %7062 = vrcp.f32 %v5163_v23 }
 0xc2c   : > { %7064 = vrcp.f32 %v5159_v40 }
 0xc2d   : > { %7066 = vrcp.f32 %v5166_v28 }
 0xc2e   : > { %7068 = vrcp.f32 %v5162_v42 }
 0xc2f   : > { %7070 = vrcp.f32 %v5169_v45 }
 0xc31   : > { %5272 = vperm.xlu1 %6827, %v7055_v8   ;;  %v7063_v30 = vpop.eup %7062 }
 0xc32   : > { %v7065_v56 = vpop.eup %7064 }
 0xc33   : > { %v7067_v62 = vpop.eup %7066 }
 0xc34   : > { %v7069_v29 = vpop.eup %7068 }
 0xc35   : > { %v7071_v41 = vpop.eup %7070 }
 0xc37   : > { %v4418_v2 = vpop.xlane.xlu0 %4417 }
 0xc38   : > { %v4450_v44 = vadd.f32 %v4418_v2, %v4322_v60  ;;  %v4321_v60 = vmul.f32 %v10041_v26, %v4289_v18  ;;  %v5121_v2 = vld [vmem:[#allocation4 + $0x60] sm:$0xff] }
 0xc39   : > { %5287 = vperm.xlu1 %6827, %v7057_v46  }
 0xc3a   : > { %4482 = vst.msk [vmem:[#allocation3 + $0xf8] sm:$0xff] %vm1044_vm0, %v4450_v44 }
 0xc41   : > { %5302 = vperm.xlu1 %6827, %v7059_v6   ;;  %v5172_v49 = vld [vmem:[#allocation3 + $0xf8] sm:$0xff] }
 0xc42   : > { %5282 = vperm.xlu2 %6825, %v7061_v50   ;;  %v5124_v50 = vld [vmem:[#allocation4 + $0x78] sm:$0xff] }
 0xc48   : > { %v4403_v33 = vpop.xlane.xlu1 %4402 }
 0xc49   : > { %v4445_v19 = vadd.f32 %v4403_v33, %v4317_v14  ;;  %5317 = vperm.xlu1 %6827, %v7063_v30   ;;  %v5379_v14 = vmul.f32 %v7086_v15, %v10185_v39 }
 0xc4a   : > { %5297 = vperm.xlu2 %6825, %v7065_v56   ;;  %v5293_v28 = vpop.permute.xlu0 %5292  ;;  %v7087_v56 = vld [vmem:[#allocation4 + $0x58] sm:$0xff] }
 0xc4b   : > { %4477 = vst.msk [vmem:[#allocation3 + $0xd0] sm:$0xff] %vm1044_vm0, %v4445_v19  ;;  %v5125_v19 = vld [vmem:[#allocation4 + $0x38] sm:$0xff]  ;;  %v5382_v45 = vmul.f32 %v7087_v56, %v5293_v28 }
 0xc51   : > { %5332 = vperm.xlu1 %6827, %v7067_v62  }
 0xc52   : > { %v5167_v1 = vld [vmem:[#allocation3 + $0xd0] sm:$0xff]  ;;  %5312 = vperm.xlu2 %6825, %v7069_v29   ;;  %v5308_v39 = vpop.permute.xlu0 %5307 }
 0xc53   : > { %7072 = vrcp.f32 %v5167_v1 }
 0xc54   : > { %7074 = vrcp.f32 %v5165_v10 }
 0xc55   : > { %7076 = vrcp.f32 %v5172_v49 }
 0xc59   : > { %v7073_v59 = vpop.eup %7072  ;;  %5347 = vperm.xlu1 %6827, %v7071_v41   ;;  %v7088_v41 = vld [vmem:[#allocation4 + $0x40] sm:$0xff] }
 0xc5a   : > { %v7075_v57 = vpop.eup %7074  ;;  %5337 = vperm.xlu0 %6826, %v7073_v59  }
 0xc5b   : > { %5327 = vperm.xlu2 %6825, %v7075_v57   ;;  %v7077_v3 = vpop.eup %7076 }
 0xc5c   : > { %v4406_v20 = vpop.xlane.xlu2 %4405 }
 0xc5d   : > { %v4446_v52 = vadd.f32 %v4406_v20, %v4318_v17  ;;  %v5385_v20 = vmul.f32 %v5308_v39, %v10023_v43 }
 0xc5f   : > { %4478 = vst.msk [vmem:[#allocation3 + $0xd8] sm:$0xff] %vm1044_vm0, %v4446_v52 }
 0xc60   : > { %v5258_v58 = vpop.permute.xlu1 %5257 }
 0xc61   : > { %v5375_v7 = vmul.f32 %v5258_v58, %v5119_v37  ;;  %5362 = vperm.xlu1 %6827, %v7077_v3  }
 0xc63   : > { %v6445_v38 = vpack.c.bf16 %v5376_v31, %v5375_v7 }
 0xc64   : > { %v5268_v8 = vpop.permute.xlu2 %5267 }
 0xc65   : > { %6501 = vst [vmem:[%s8090_s5 + $0x28] sm:$0xff] %v6445_v38   ;;  %v5377_v27 = vmul.f32 %v5268_v8, %v5121_v2  ;;  %v5505_v2 = vld [vmem:[%s8090_s5 + $0x1c] sm:$0xf] (%p7359_p0) }
 0xc66   : > { %v5168_v55 = vld [vmem:[#allocation3 + $0xd8] sm:$0xff]  ;;  %5506 = vst [vmem:[%s10233_s2 + $0x38] sm:$0xf] (%p7359_p0), %v5505_v2 }
 0xc67   : > { %7078 = vrcp.f32 %v5168_v55 }
 0xc6d   : > { %v7079_v32 = vpop.eup %7078 }
 0xc6e   : > { %5342 = vperm.xlu2 %6825, %v7079_v32  }
 0xc89   : > { %v5323_v3 = vpop.permute.xlu0 %5322 }
 0xc8a   : > { %v5388_v11 = vmul.f32 %v5323_v3, %v10066_v63 }
 0xc8b   : > { %v4412_v0 = vpop.xlane.xlu1 %4411 }
 0xc8c   : > { %v4448_v36 = vadd.f32 %v4412_v0, %v4320_v54 }
 0xc8e   : > { %4480 = vst.msk [vmem:[#allocation3 + $0xe8] sm:$0xff] %vm1044_vm0, %v4448_v36 }
 0xc95   : > { %v5170_v34 = vld [vmem:[#allocation3 + $0xe8] sm:$0xff] }
 0xc96   : > { %7080 = vrcp.f32 %v5170_v34 }
 0xc9c   : > { %v7081_v53 = vpop.eup %7080 }
 0xc9d   : > { %5352 = vperm.xlu0 %6826, %v7081_v53   ;;  %v4415_v16 = vpop.xlane.xlu2 %4414 }
 0xc9e   : > { %v4449_v46 = vadd.f32 %v4415_v16, %v4321_v60 }
 0xca0   : > { %4481 = vst.msk [vmem:[#allocation3 + $0xf0] sm:$0xff] %vm1044_vm0, %v4449_v46  ;;  %v5503_v46 = vld [vmem:[%s8090_s5 + $0x18] sm:$0xf] (%p7359_p0) }
 0xca1   : > { %5504 = vst [vmem:[%s10233_s2 + $0x30] sm:$0xf] (%p7359_p0), %v5503_v46 }
 0xca3   : > { %v5273_v44 = vpop.permute.xlu1 %5272 }
 0xca4   : > { %v5378_v23 = vmul.f32 %v5273_v44, %v5122_v25  ;;  %v5507_v25 = vld [vmem:[%s8090_s5 + $0x20] sm:$0xf] (%p7359_p0)  ;;  %v5509_v44 = vld [vmem:[%s8090_s5 + $0x24] sm:$0xf] (%p7359_p0) }
 0xca5   : > { %v5283_v40 = vpop.permute.xlu2 %5282  ;;  %5508 = vst [vmem:[%s10233_s2 + $0x40] sm:$0xf] (%p7359_p0), %v5507_v25 }
 0xca6   : > { %v6450_v6 = vpack.c.bf16 %v5378_v23, %v5377_v27  ;;  %v5380_v26 = vmul.f32 %v5283_v40, %v5124_v50  ;;  %v5511_v27 = vld [vmem:[%s8090_s5 + $0x28] sm:$0xf] (%p7359_p0)  ;;  %v5513_v23 = vld [vmem:[%s8090_s5 + $0x2c] sm:$0xf] (%p7359_p0)  ;;  %5510 = vst [vmem:[%s10233_s2 + $0x48] sm:$0xf] (%p7359_p0), %v5509_v44 }
 0xca7   : > { %v5171_v30 = vld [vmem:[#allocation3 + $0xf0] sm:$0xff]  ;;  %5512 = vst [vmem:[%s10233_s2 + $0x50] sm:$0xf] (%p7359_p0), %v5511_v27 }
 0xca8   : > { %6502 = vst [vmem:[%s8090_s5 + $0x30] sm:$0xff] %v6450_v6   ;;  %v6455_v33 = vpack.c.bf16 %v5380_v26, %v5379_v14  ;;  %7082 = vrcp.f32 %v5171_v30 }
 0xca9   : > { %5514 = vst [vmem:[%s10233_s2 + $0x58] sm:$0xf] (%p7359_p0), %v5513_v23 }
 0xcaa   : > { %6503 = vst [vmem:[%s8090_s5 + $0x38] sm:$0xff] %v6455_v33  }
 0xcab   : > { %v5288_v42 = vpop.permute.xlu1 %5287 }
 0xcac   : > { %v5381_v62 = vmul.f32 %v5288_v42, %v5125_v19 }
 0xcad   : > { %v5298_v29 = vpop.permute.xlu2 %5297 }
 0xcae   : > { %v6460_v10 = vpack.c.bf16 %v5382_v45, %v5381_v62  ;;  %v7083_v1 = vpop.eup %7082  ;;  %v5383_v59 = vmul.f32 %v7088_v41, %v5298_v29 }
 0xcaf   : > { %5357 = vperm.xlu2 %6825, %v7083_v1   ;;  %v5515_v6 = vld [vmem:[%s8090_s5 + $0x30] sm:$0xf] (%p7359_p0)  ;;  %v5517_v40 = vld [vmem:[%s8090_s5 + $0x34] sm:$0xf] (%p7359_p0) }
 0xcb0   : > { %6504 = vst [vmem:[%s8090_s5 + $0x40] sm:$0xff] %v6460_v10  }
 0xcb1   : > { %v5519_v50 = vld [vmem:[%s8090_s5 + $0x38] sm:$0xf] (%p7359_p0)  ;;  %5516 = vst [vmem:[%s10233_s2 + $0x60] sm:$0xf] (%p7359_p0), %v5515_v6  ;;  %v5521_v15 = vld [vmem:[%s8090_s5 + $0x3c] sm:$0xf] (%p7359_p0) }
 0xcb2   : > { %5518 = vst [vmem:[%s10233_s2 + $0x68] sm:$0xf] (%p7359_p0), %v5517_v40 }
 0xcb3   : > { %v5303_v49 = vpop.permute.xlu1 %5302  ;;  %5520 = vst [vmem:[%s10233_s2 + $0x70] sm:$0xf] (%p7359_p0), %v5519_v50 }
 0xcb4   : > { %v5384_v22 = vmul.f32 %v5303_v49, %v10002_v9  ;;  %5522 = vst [vmem:[%s10233_s2 + $0x78] sm:$0xf] (%p7359_p0), %v5521_v15 }
 0xcb5   : > { %v5313_v17 = vpop.permute.xlu2 %5312 }
 0xcb6   : > { %v6465_v57 = vpack.c.bf16 %v5384_v22, %v5383_v59  ;;  %v5386_v52 = vmul.f32 %v5313_v17, %v10033_v5 }
 0xcb7   : > { %v5523_v14 = vld [vmem:[%s8090_s5 + $0x40] sm:$0xf] (%p7359_p0)  ;;  %v5525_v28 = vld [vmem:[%s8090_s5 + $0x44] sm:$0xf] (%p7359_p0) }
 0xcb8   : > { %6505 = vst [vmem:[%s8090_s5 + $0x48] sm:$0xff] %v6465_v57   ;;  %v6470_v37 = vpack.c.bf16 %v5386_v52, %v5385_v20 }
 0xcb9   : > { %5524 = vst [vmem:[%s10233_s2 + $0x80] sm:$0xf] (%p7359_p0), %v5523_v14 }
 0xcba   : > { %6506 = vst [vmem:[%s8090_s5 + $0x50] sm:$0xff] %v6470_v37  }
 0xcbb   : > { %v5318_v58 = vpop.permute.xlu1 %5317  ;;  %5526 = vst [vmem:[%s10233_s2 + $0x88] sm:$0xf] (%p7359_p0), %v5525_v28 }
 0xcbc   : > { %v5387_v31 = vmul.f32 %v5318_v58, %v10058_v48 }
 0xcbd   : > { %v5328_v9 = vpop.permute.xlu2 %5327 }
 0xcbe   : > { %v6475_v7 = vpack.c.bf16 %v5388_v11, %v5387_v31  ;;  %v5389_v55 = vmul.f32 %v5328_v9, %v10098_v24 }
 0xcbf   : > { %v5527_v26 = vld [vmem:[%s8090_s5 + $0x48] sm:$0xf] (%p7359_p0)  ;;  %v5529_v30 = vld [vmem:[%s8090_s5 + $0x4c] sm:$0xf] (%p7359_p0) }
 0xcc0   : > { %6507 = vst [vmem:[%s8090_s5 + $0x58] sm:$0xff] %v6475_v7  }
 0xcc1   : > { %v5531_v33 = vld [vmem:[%s8090_s5 + $0x50] sm:$0xf] (%p7359_p0)  ;;  %5528 = vst [vmem:[%s10233_s2 + $0x90] sm:$0xf] (%p7359_p0), %v5527_v26  ;;  %v5533_v19 = vld [vmem:[%s8090_s5 + $0x54] sm:$0xf] (%p7359_p0) }
 0xcc2   : > { %5530 = vst [vmem:[%s10233_s2 + $0x98] sm:$0xf] (%p7359_p0), %v5529_v30 }
 0xcc3   : > { %v5333_v38 = vpop.permute.xlu1 %5332  ;;  %5532 = vst [vmem:[%s10233_s2 + $0xa0] sm:$0xf] (%p7359_p0), %v5531_v33 }
 0xcc4   : > { %v5390_v43 = vmul.f32 %v5333_v38, %v10108_v13  ;;  %5534 = vst [vmem:[%s10233_s2 + $0xa8] sm:$0xf] (%p7359_p0), %v5533_v19 }
 0xcc6   : > { %v6480_v5 = vpack.c.bf16 %v5390_v43, %v5389_v55 }
 0xcc7   : > { %v5535_v42 = vld [vmem:[%s8090_s5 + $0x58] sm:$0xf] (%p7359_p0)  ;;  %v5537_v56 = vld [vmem:[%s8090_s5 + $0x5c] sm:$0xf] (%p7359_p0) }
 0xcc8   : > { %6508 = vst [vmem:[%s8090_s5 + $0x60] sm:$0xff] %v6480_v5   ;;  %v5343_v32 = vpop.permute.xlu2 %5342 }
 0xcc9   : > { %v5392_v54 = vmul.f32 %v5343_v32, %v10121_v21  ;;  %v5493_v21 = vld [vmem:[%s8090_s5 + $0x4] sm:$0xf] (%p7359_p0)  ;;  %5536 = vst [vmem:[%s10233_s2 + $0xb0] sm:$0xf] (%p7359_p0), %v5535_v42 }
 0xcca   : > { %5494 = vst [vmem:[%s10233_s2 + $0x8] sm:$0xf] (%p7359_p0), %v5493_v21 }
 0xccb   : > { %v5348_v48 = vpop.permute.xlu1 %5347  ;;  %5538 = vst [vmem:[%s10233_s2 + $0xb8] sm:$0xf] (%p7359_p0), %v5537_v56 }
 0xccc   : > { %v5338_v12 = vpop.permute.xlu0 %5337  ;;  %v5393_v53 = vmul.f32 %v5348_v48, %v10136_v51  ;;  %v5495_v51 = vld [vmem:[%s8090_s5 + $0x8] sm:$0xf] (%p7359_p0) }
 0xccd   : > { %v5391_v63 = vmul.f32 %v5338_v12, %v10116_v35  ;;  %v5491_v35 = vld [vmem:[%s8090_s5] sm:$0xf] (%p7359_p0)  ;;  %5496 = vst [vmem:[%s10233_s2 + $0x10] sm:$0xf] (%p7359_p0), %v5495_v51 }
 0xcce   : > { %5492 = vst [vmem:[%s10233_s2] sm:$0xf] (%p7359_p0), %v5491_v35 }
 0xccf   : > { %v6485_v0 = vpack.c.bf16 %v5392_v54, %v5391_v63  ;;  %v5539_v45 = vld [vmem:[%s8090_s5 + $0x60] sm:$0xf] (%p7359_p0)  ;;  %v5541_v62 = vld [vmem:[%s8090_s5 + $0x64] sm:$0xf] (%p7359_p0) }
 0xcd0   : > { %5540 = vst [vmem:[%s10233_s2 + $0xc0] sm:$0xf] (%p7359_p0), %v5539_v45 }
 0xcd1   : > { %6509 = vst [vmem:[%s8090_s5 + $0x68] sm:$0xff] %v6485_v0  }
 0xcd2   : > { %5542 = vst [vmem:[%s10233_s2 + $0xc8] sm:$0xf] (%p7359_p0), %v5541_v62 }
 0xcd3   : > { %v5363_v36 = vpop.permute.xlu1 %5362 }
 0xcd4   : > { %v5396_v8 = vmul.f32 %v5363_v36, %v10167_v47  ;;  %v5501_v47 = vld [vmem:[%s8090_s5 + $0x14] sm:$0xf] (%p7359_p0) }
 0xcd5   : > { %5502 = vst [vmem:[%s10233_s2 + $0x28] sm:$0xf] (%p7359_p0), %v5501_v47 }
 0xcd8   : > { %v5543_v10 = vld [vmem:[%s8090_s5 + $0x68] sm:$0xf] (%p7359_p0)  ;;  %v5545_v29 = vld [vmem:[%s8090_s5 + $0x6c] sm:$0xf] (%p7359_p0) }
 0xcd9   : > { %5544 = vst [vmem:[%s10233_s2 + $0xd0] sm:$0xf] (%p7359_p0), %v5543_v10 }
 0xcda   : > { %5546 = vst [vmem:[%s10233_s2 + $0xd8] sm:$0xf] (%p7359_p0), %v5545_v29 }
 0xd09   : > { %v5358_v34 = vpop.permute.xlu2 %5357 }
 0xd0a   : > { %v5395_v24 = vmul.f32 %v5358_v34, %v10163_v4  ;;  %v5499_v4 = vld [vmem:[%s8090_s5 + $0x10] sm:$0xf] (%p7359_p0) }
 0xd0b   : > { %5500 = vst [vmem:[%s10233_s2 + $0x20] sm:$0xf] (%p7359_p0), %v5499_v4 }
 0xd0c   : > { %v6495_v18 = vpack.c.bf16 %v5396_v8, %v5395_v24 }
 0xd0e   : > { %6511 = vst [vmem:[%s8090_s5 + $0x78] sm:$0xff] %v6495_v18  }
 0xd0f   : > { %v5353_v13 = vpop.permute.xlu0 %5352 }
 0xd10   : > { %v5394_v60 = vmul.f32 %v5353_v13, %v10143_v61  ;;  %5467 = sbr.rel (!%p7359_p0) target bundleno = 3358 (0xd1e), region = 166  ;;  %v5497_v61 = vld [vmem:[%s8090_s5 + $0xc] sm:$0xf] (%p7359_p0) }
 0xd11   : > { %5498 = vst [vmem:[%s10233_s2 + $0x18] sm:$0xf] (%p7359_p0), %v5497_v61 }
 0xd12   : > { %v6490_v16 = vpack.c.bf16 %v5394_v60, %v5393_v53 }
 0xd14   : > { %6510 = vst [vmem:[%s8090_s5 + $0x70] sm:$0xff] %v6490_v16  }
 0xd15   : > { %v5551_v49 = vld [vmem:[%s8090_s5 + $0x78] sm:$0xf]  ;;  %v5553_v41 = vld [vmem:[%s8090_s5 + $0x7c] sm:$0xf] }
 0xd16   : > { %5552 = vst [vmem:[%s10233_s2 + $0xf0] sm:$0xf] %v5551_v49 }
 0xd17   : > { %5554 = vst [vmem:[%s10233_s2 + $0xf8] sm:$0xf] %v5553_v41 }
 0xd1b   : > { %v5547_v1 = vld [vmem:[%s8090_s5 + $0x70] sm:$0xf]  ;;  %v5549_v39 = vld [vmem:[%s8090_s5 + $0x74] sm:$0xf] }
 0xd1c   : > { %5548 = vst [vmem:[%s10233_s2 + $0xe0] sm:$0xf] %v5547_v1 }
 0xd1d   : > { %5550 = vst [vmem:[%s10233_s2 + $0xe8] sm:$0xf] %v5549_v39 }
 0xd1e PF: > { %s13_s24 = sadd.s32 1, %s7195_s24   ;;  %s10832_s5 = sld [smem:[#allocation13_spill]] }
 0xd1f   : > { %p10298_p7 = scmp.ge.s32.totalorder %s13_s24, 10   ;;  %s10833_s10 = sld [smem:[#allocation14_spill]] }
 0xd20   : > { %s10834_s28 = sld [smem:[#allocation15_spill]]  ;;  %s10835_s12 = smov %s7151_s13 }
 0xd21   : > { %s10836_s13 = smov %s7348_s27  ;;  %s10837_s14 = smov %s7159_s15 }
 0xd22   : > { %s10838_s15 = smov %s7335_s19  ;;  %s10839_s16 = smov %s7167_s17 }
 0xd23   : > { %s10840_s17 = smov %s7340_s18  ;;  %s10841_s18 = smov %s7183_s21 }
 0xd24   : > { %s10842_s19 = smov %s7187_s22  ;;  %s10843_s20 = smov %s7191_s23 }
 0xd25   : > { %s10844_s21 = smov %s10832_s5  ;;  %s10845_s22 = smov %s10833_s10 }
 0xd26   : > { %s10846_s23 = smov %s10834_s28  ;;  %12 = sbr.rel (!%p10298_p7) target bundleno = 10 (0xa), region = 269 }

</bundles_post_ra>
